<compile_context>
chip_gen: v7x
topology: tpu7x:2x2x1
jax: 0.10.0
libtpu: 0.0.40
codegen_flags: <defaults>
</compile_context>

<pallas_src>
import jax
import jax.numpy as jnp
from jax.experimental import pallas as pl
from jax.experimental.pallas import tpu as pltpu

LEAKY_SLOPE = 0.2
BN_EPS = 0.8


def _leaky_relu(x):
    # Equivalent to where(x > 0, x, 0.2*x) since the slope is positive: mul + max.
    return jnp.maximum(x, LEAKY_SLOPE * x)


def _bn_scale_shift(y, gamma, beta, n):
    """Single-pass training-mode BN stats over axis 0 of y:(N, C).

    Returns per-channel (scale, shift) so normalization is one FMA per element.
    Biased variance (PyTorch training mode), eps = 0.8.
    """
    inv_n = 1.0 / float(n)
    mean = jnp.sum(y, axis=0, keepdims=True) * inv_n
    ex2 = jnp.sum(y * y, axis=0, keepdims=True) * inv_n
    var = ex2 - mean * mean
    inv = jax.lax.rsqrt(var + BN_EPS)
    scale = inv * gamma
    shift = beta - mean * scale
    return scale, shift


def _im2col_3x3(slab_ref, src, H, W, C):
    """Fill lanes [0, 9*C) of slab_ref (B,H,W,>=9*C) with the 9 shifted taps of src.

    src is (B,H,W,C) bfloat16.  SAME zero-padding is realized by (a) zeroing the top
    and bottom slab rows before the tap stores and (b) building the +/-1 column shift
    on the value side (concat with a zero column), so every store uses the full W
    sublane extent — only lane strips are masked.
    """
    B = src.shape[0]
    K9 = 9 * C
    zero_row = jnp.zeros((B, 1, W, K9), src.dtype)
    slab_ref[:, 0:1, :, 0:K9] = zero_row
    slab_ref[:, H - 1:H, :, 0:K9] = zero_row
    for dy in range(3):
        h0, h1 = max(0, 1 - dy), H - max(0, dy - 1)
        rows = src[:, h0 + dy - 1:h1 + dy - 1, :, :]          # (B, h1-h0, W, C)
        zcol = jnp.zeros((B, h1 - h0, 1, C), src.dtype)
        for dx in range(3):
            t = dy * 3 + dx
            if dx == 0:       # column offset -1: shift right, zero at w=0
                val = jnp.concatenate([zcol, rows[:, :, :W - 1, :]], axis=2)
            elif dx == 1:     # column offset 0
                val = rows
            else:             # column offset +1: shift left, zero at w=W-1
                val = jnp.concatenate([rows[:, :, 1:, :], zcol], axis=2)
            slab_ref[:, h0:h1, :, t * C:(t + 1) * C] = val


def disc_residual_block_kernel(
    x_ref,      # (B, H, W, Cin)        f32  NHWC input (unpadded; borders in-kernel)
    w1_ref,     # (9*Cin, Cout)         bf16 conv1 weights (HWIO, im2col-flattened)
    w2_ref,     # (9*Cout, Cout)        bf16 conv2 weights
    wp_ref,     # (Cin, Cout)           bf16 1x1 projection weights
    pb_ref,     # (5, Cout)             f32  rows: [g1, be1, g2, be2, bp]
    out_ref,    # (B, H, W, Cout)       f32
    slab_ref,   # VMEM (B,H,W,9*Cmax)   bf16 scratch: im2col slab, reused by both convs
):
    B, H, W, Cin = x_ref.shape
    Cout = out_ref.shape[-1]
    N = B * H * W

    g1, be1 = pb_ref[0:1, :], pb_ref[1:2, :]
    g2, be2 = pb_ref[2:3, :], pb_ref[3:4, :]
    bp = pb_ref[4:5, :]

    x = x_ref[...]
    xb = x.astype(jnp.bfloat16)            # single cast, reused by conv1 + projection

    # ---- conv1: im2col slab -> single (N, 9*Cin) x (9*Cin, Cout) MXU matmul ----
    # Conv bias omitted: exactly cancelled by the training-mode BN mean subtraction.
    _im2col_3x3(slab_ref, xb, H, W, Cin)
    p1 = slab_ref[:, :, :, 0:9 * Cin].reshape(N, 9 * Cin)
    y1 = jnp.dot(p1, w1_ref[...], preferred_element_type=jnp.float32)
    sc1, sh1 = _bn_scale_shift(y1, g1, be1, N)
    y1 = _leaky_relu(y1 * sc1 + sh1)

    # ---- conv2: same structure on the (B,H,W,Cout)-shaped activations (slab reused) --
    _im2col_3x3(slab_ref, y1.astype(jnp.bfloat16).reshape(B, H, W, Cout), H, W, Cout)
    p2 = slab_ref[:, :, :, 0:9 * Cout].reshape(N, 9 * Cout)
    y2 = jnp.dot(p2, w2_ref[...], preferred_element_type=jnp.float32)
    sc2, sh2 = _bn_scale_shift(y2, g2, be2, N)
    y2 = y2 * sc2 + sh2

    # ---- 1x1 projection of the identity branch (in_channels != out_channels) ----
    ident = jnp.dot(xb.reshape(N, Cin), wp_ref[...],
                    preferred_element_type=jnp.float32) + bp

    out_ref[...] = _leaky_relu(y2 + ident).reshape(B, H, W, Cout)


def disc_residual_block(x_nchw, params):
    """x_nchw: (B, Cin, H, W) float32 (PyTorch layout). Returns (B, Cout, H, W)."""
    B, Cin, H, W = x_nchw.shape
    Cout = params["w1"].shape[-1]
    Cmax = max(Cin, Cout)

    x_nhwc = jnp.transpose(x_nchw, (0, 2, 3, 1)).astype(jnp.float32)

    # im2col-flattened weights (HWIO -> (9*C, Cout)), bf16 for the MXU.
    w1 = params["w1"].reshape(9 * Cin, Cout).astype(jnp.bfloat16)
    w2 = params["w2"].reshape(9 * Cout, Cout).astype(jnp.bfloat16)
    wp = params["wp"].astype(jnp.bfloat16)
    # Conv biases b1/b2 are NOT passed: training-mode BN cancels them exactly.
    pb = jnp.concatenate(
        [params["g1"], params["be1"], params["g2"], params["be2"], params["bp"]],
        axis=0).astype(jnp.float32)                      # (5, Cout)

    n = B * H * W
    flops = (2 * n * (9 * Cin) * Cout + 2 * n * (9 * Cout) * Cout
             + 2 * n * Cin * Cout + 10 * n * Cout)
    bytes_accessed = (4 * (x_nhwc.size + n * Cout)
                      + 2 * (w1.size + w2.size + wp.size) + 4 * pb.size)

    vmem = pl.BlockSpec(memory_space=pltpu.MemorySpace.VMEM)
    out_nhwc = pl.pallas_call(
        disc_residual_block_kernel,
        out_shape=jax.ShapeDtypeStruct((B, H, W, Cout), jnp.float32),
        in_specs=[vmem] * 5,
        out_specs=vmem,
        scratch_shapes=[pltpu.VMEM((B, H, W, 9 * Cmax), jnp.bfloat16)],
        compiler_params=pltpu.CompilerParams(vmem_limit_bytes=32 * 1024 * 1024),
        cost_estimate=pl.CostEstimate(flops=flops, transcendentals=2 * Cout,
                                      bytes_accessed=bytes_accessed),
    )(x_nhwc, w1, w2, wp, pb)
    return jnp.transpose(out_nhwc, (0, 3, 1, 2))


def reference(x_nchw, params):
    """Pure-JAX f32 reference (same math as the PyTorch module, training-mode BN)."""
    x = jnp.transpose(x_nchw, (0, 2, 3, 1))

    def conv(v, w, b):
        y = jax.lax.conv_general_dilated(
            v, w, window_strides=(1, 1), padding="SAME",
            dimension_numbers=("NHWC", "HWIO", "NHWC"))
        return y + b.reshape(1, 1, 1, -1)

    def bn(y, g, be):
        mean = jnp.mean(y, axis=(0, 1, 2), keepdims=True)
        var = jnp.mean((y - mean) ** 2, axis=(0, 1, 2), keepdims=True)
        return (y - mean) * jax.lax.rsqrt(var + BN_EPS) * g.reshape(1, 1, 1, -1) \
            + be.reshape(1, 1, 1, -1)

    lr = lambda v: jnp.where(v > 0, v, LEAKY_SLOPE * v)
    y1 = lr(bn(conv(x, params["w1"], params["b1"]), params["g1"], params["be1"]))
    y2 = bn(conv(y1, params["w2"], params["b2"]), params["g2"], params["be2"])
    wp4 = params["wp"].reshape(1, 1, *params["wp"].shape)
    ident = conv(x, wp4, params["bp"])
    out = lr(y2 + ident)
    return jnp.transpose(out, (0, 3, 1, 2))


if __name__ == "__main__":
    B, Cin, Cout, H, W = 2, 4, 8, 16, 16   # in_channels != out_channels -> proj branch
    key = jax.random.PRNGKey(0)
    ks = jax.random.split(key, 7)

    # Deterministic synthetic parameters (conv weights in HWIO, BN affine = default 1/0).
    # b1/b2 are used only by the reference; the kernel relies on their exact
    # cancellation under training-mode BatchNorm.
    params = {
        "w1": jax.random.normal(ks[0], (3, 3, Cin, Cout), jnp.float32) * 0.1,
        "b1": jax.random.normal(ks[1], (1, Cout), jnp.float32) * 0.1,
        "g1": jnp.ones((1, Cout), jnp.float32),
        "be1": jnp.zeros((1, Cout), jnp.float32),
        "w2": jax.random.normal(ks[2], (3, 3, Cout, Cout), jnp.float32) * 0.1,
        "b2": jax.random.normal(ks[3], (1, Cout), jnp.float32) * 0.1,
        "g2": jnp.ones((1, Cout), jnp.float32),
        "be2": jnp.zeros((1, Cout), jnp.float32),
        "wp": jax.random.normal(ks[4], (Cin, Cout), jnp.float32) * 0.1,
        "bp": jax.random.normal(ks[5], (1, Cout), jnp.float32) * 0.1,
    }
    x = jax.random.normal(ks[6], (B, Cin, H, W), jnp.float32)

    out = jax.block_until_ready(disc_residual_block(x, params))
    ref = reference(x, params)

    assert out.shape == (B, Cout, H, W), out.shape
    # Tolerance accounts for bf16 MXU operands (f32 accumulation); structural bugs
    # would produce O(0.1-1) errors, bf16 rounding stays well under 1e-2 here.
    max_err = float(jnp.max(jnp.abs(out - ref)))
    assert jnp.allclose(out, ref, rtol=2e-2, atol=2e-2), f"max abs err {max_err}"
    print("KERNEL_OK")
</pallas_src>

<mosaic_0001>
module attributes {stable_mosaic.version = 11 : i64} {
  func.func @disc_residual_block_kernel(%arg0: memref<2x16x16x4xf32, #tpu.memory_space<vmem>>, %arg1: memref<36x8xbf16, #tpu.memory_space<vmem>>, %arg2: memref<72x8xbf16, #tpu.memory_space<vmem>>, %arg3: memref<4x8xbf16, #tpu.memory_space<vmem>>, %arg4: memref<5x8xf32, #tpu.memory_space<vmem>>, %arg5: memref<2x16x16x8xf32, #tpu.memory_space<vmem>>, %arg6: memref<2x16x16x72xbf16, #tpu.memory_space<vmem>>) attributes {dimension_semantics = [], scalar_prefetch = 0 : i64, scratch_operands = 1 : i64, tpu.core_type = #tpu.core_type<tc>} {
    %c0 = arith.constant 0 : index
    %c0_0 = arith.constant 0 : index
    %0 = vector.load %arg4[%c0, %c0_0] : memref<5x8xf32, #tpu.memory_space<vmem>>, vector<1x8xf32>
    %c1 = arith.constant 1 : index
    %c0_1 = arith.constant 0 : index
    %1 = vector.load %arg4[%c1, %c0_1] : memref<5x8xf32, #tpu.memory_space<vmem>>, vector<1x8xf32>
    %c2 = arith.constant 2 : index
    %c0_2 = arith.constant 0 : index
    %2 = vector.load %arg4[%c2, %c0_2] : memref<5x8xf32, #tpu.memory_space<vmem>>, vector<1x8xf32>
    %c3 = arith.constant 3 : index
    %c0_3 = arith.constant 0 : index
    %3 = vector.load %arg4[%c3, %c0_3] : memref<5x8xf32, #tpu.memory_space<vmem>>, vector<1x8xf32>
    %c4 = arith.constant 4 : index
    %c0_4 = arith.constant 0 : index
    %4 = vector.load %arg4[%c4, %c0_4] : memref<5x8xf32, #tpu.memory_space<vmem>>, vector<1x8xf32>
    %c0_5 = arith.constant 0 : index
    %c0_6 = arith.constant 0 : index
    %c0_7 = arith.constant 0 : index
    %c0_8 = arith.constant 0 : index
    %5 = vector.load %arg0[%c0_5, %c0_6, %c0_7, %c0_8] : memref<2x16x16x4xf32, #tpu.memory_space<vmem>>, vector<2x16x16x4xf32>
    %6 = arith.truncf %5 : vector<2x16x16x4xf32> to vector<2x16x16x4xbf16>
    %cst = arith.constant 0.000000e+00 : bf16
    %7 = vector.broadcast %cst : bf16 to vector<2x1x16x36xbf16>
    %c0_9 = arith.constant 0 : index
    %c0_10 = arith.constant 0 : index
    %c0_11 = arith.constant 0 : index
    %c0_12 = arith.constant 0 : index
    %8 = vector.load %arg6[%c0_9, %c0_10, %c0_11, %c0_12] : memref<2x16x16x72xbf16, #tpu.memory_space<vmem>>, vector<2x1x16x36xbf16>
    tpu.vector_store %arg6[%c0_9, %c0_10, %c0_11, %c0_12], %7 {strides = array<i32>} : memref<2x16x16x72xbf16, #tpu.memory_space<vmem>>, vector<2x1x16x36xbf16>,
    %c0_13 = arith.constant 0 : index
    %c15 = arith.constant 15 : index
    %c0_14 = arith.constant 0 : index
    %c0_15 = arith.constant 0 : index
    %9 = vector.load %arg6[%c0_13, %c15, %c0_14, %c0_15] : memref<2x16x16x72xbf16, #tpu.memory_space<vmem>>, vector<2x1x16x36xbf16>
    tpu.vector_store %arg6[%c0_13, %c15, %c0_14, %c0_15], %7 {strides = array<i32>} : memref<2x16x16x72xbf16, #tpu.memory_space<vmem>>, vector<2x1x16x36xbf16>,
    %10 = vector.extract_strided_slice %6 {offsets = [0, 0, 0, 0], sizes = [2, 15, 16, 4], strides = [1, 1, 1, 1]} : vector<2x16x16x4xbf16> to vector<2x15x16x4xbf16>
    %cst_16 = arith.constant 0.000000e+00 : bf16
    %11 = vector.broadcast %cst_16 : bf16 to vector<2x15x1x4xbf16>
    %12 = vector.extract_strided_slice %10 {offsets = [0, 0, 0, 0], sizes = [2, 15, 15, 4], strides = [1, 1, 1, 1]} : vector<2x15x16x4xbf16> to vector<2x15x15x4xbf16>
    %13 = tpu.concatenate %11, %12 in 2 : vector<2x15x1x4xbf16>, vector<2x15x15x4xbf16> -> vector<2x15x16x4xbf16>
    %c0_17 = arith.constant 0 : index
    %c1_18 = arith.constant 1 : index
    %c0_19 = arith.constant 0 : index
    %c0_20 = arith.constant 0 : index
    %14 = vector.load %arg6[%c0_17, %c1_18, %c0_19, %c0_20] : memref<2x16x16x72xbf16, #tpu.memory_space<vmem>>, vector<2x15x16x4xbf16>
    tpu.vector_store %arg6[%c0_17, %c1_18, %c0_19, %c0_20], %13 {strides = array<i32>} : memref<2x16x16x72xbf16, #tpu.memory_space<vmem>>, vector<2x15x16x4xbf16>,
    %c0_21 = arith.constant 0 : index
    %c1_22 = arith.constant 1 : index
    %c0_23 = arith.constant 0 : index
    %c4_24 = arith.constant 4 : index
    %15 = vector.load %arg6[%c0_21, %c1_22, %c0_23, %c4_24] : memref<2x16x16x72xbf16, #tpu.memory_space<vmem>>, vector<2x15x16x4xbf16>
    tpu.vector_store %arg6[%c0_21, %c1_22, %c0_23, %c4_24], %10 {strides = array<i32>} : memref<2x16x16x72xbf16, #tpu.memory_space<vmem>>, vector<2x15x16x4xbf16>,
    %16 = vector.extract_strided_slice %10 {offsets = [0, 0, 1, 0], sizes = [2, 15, 15, 4], strides = [1, 1, 1, 1]} : vector<2x15x16x4xbf16> to vector<2x15x15x4xbf16>
    %17 = tpu.concatenate %16, %11 in 2 : vector<2x15x15x4xbf16>, vector<2x15x1x4xbf16> -> vector<2x15x16x4xbf16>
    %c0_25 = arith.constant 0 : index
    %c1_26 = arith.constant 1 : index
    %c0_27 = arith.constant 0 : index
    %c8 = arith.constant 8 : index
    %18 = vector.load %arg6[%c0_25, %c1_26, %c0_27, %c8] : memref<2x16x16x72xbf16, #tpu.memory_space<vmem>>, vector<2x15x16x4xbf16>
    tpu.vector_store %arg6[%c0_25, %c1_26, %c0_27, %c8], %17 {strides = array<i32>} : memref<2x16x16x72xbf16, #tpu.memory_space<vmem>>, vector<2x15x16x4xbf16>,
    %cst_28 = arith.constant 0.000000e+00 : bf16
    %19 = vector.broadcast %cst_28 : bf16 to vector<2x16x1x4xbf16>
    %20 = vector.extract_strided_slice %6 {offsets = [0, 0, 0, 0], sizes = [2, 16, 15, 4], strides = [1, 1, 1, 1]} : vector<2x16x16x4xbf16> to vector<2x16x15x4xbf16>
    %21 = tpu.concatenate %19, %20 in 2 : vector<2x16x1x4xbf16>, vector<2x16x15x4xbf16> -> vector<2x16x16x4xbf16>
    %c0_29 = arith.constant 0 : index
    %c0_30 = arith.constant 0 : index
    %c0_31 = arith.constant 0 : index
    %c12 = arith.constant 12 : index
    %22 = vector.load %arg6[%c0_29, %c0_30, %c0_31, %c12] : memref<2x16x16x72xbf16, #tpu.memory_space<vmem>>, vector<2x16x16x4xbf16>
    tpu.vector_store %arg6[%c0_29, %c0_30, %c0_31, %c12], %21 {strides = array<i32>} : memref<2x16x16x72xbf16, #tpu.memory_space<vmem>>, vector<2x16x16x4xbf16>,
    %c0_32 = arith.constant 0 : index
    %c0_33 = arith.constant 0 : index
    %c0_34 = arith.constant 0 : index
    %c16 = arith.constant 16 : index
    %23 = vector.load %arg6[%c0_32, %c0_33, %c0_34, %c16] : memref<2x16x16x72xbf16, #tpu.memory_space<vmem>>, vector<2x16x16x4xbf16>
    tpu.vector_store %arg6[%c0_32, %c0_33, %c0_34, %c16], %6 {strides = array<i32>} : memref<2x16x16x72xbf16, #tpu.memory_space<vmem>>, vector<2x16x16x4xbf16>,
    %24 = vector.extract_strided_slice %6 {offsets = [0, 0, 1, 0], sizes = [2, 16, 15, 4], strides = [1, 1, 1, 1]} : vector<2x16x16x4xbf16> to vector<2x16x15x4xbf16>
    %25 = tpu.concatenate %24, %19 in 2 : vector<2x16x15x4xbf16>, vector<2x16x1x4xbf16> -> vector<2x16x16x4xbf16>
    %c0_35 = arith.constant 0 : index
    %c0_36 = arith.constant 0 : index
    %c0_37 = arith.constant 0 : index
    %c20 = arith.constant 20 : index
    %26 = vector.load %arg6[%c0_35, %c0_36, %c0_37, %c20] : memref<2x16x16x72xbf16, #tpu.memory_space<vmem>>, vector<2x16x16x4xbf16>
    tpu.vector_store %arg6[%c0_35, %c0_36, %c0_37, %c20], %25 {strides = array<i32>} : memref<2x16x16x72xbf16, #tpu.memory_space<vmem>>, vector<2x16x16x4xbf16>,
    %27 = vector.extract_strided_slice %6 {offsets = [0, 1, 0, 0], sizes = [2, 15, 16, 4], strides = [1, 1, 1, 1]} : vector<2x16x16x4xbf16> to vector<2x15x16x4xbf16>
    %cst_38 = arith.constant 0.000000e+00 : bf16
    %28 = vector.broadcast %cst_38 : bf16 to vector<2x15x1x4xbf16>
    %29 = vector.extract_strided_slice %27 {offsets = [0, 0, 0, 0], sizes = [2, 15, 15, 4], strides = [1, 1, 1, 1]} : vector<2x15x16x4xbf16> to vector<2x15x15x4xbf16>
    %30 = tpu.concatenate %28, %29 in 2 : vector<2x15x1x4xbf16>, vector<2x15x15x4xbf16> -> vector<2x15x16x4xbf16>
    %c0_39 = arith.constant 0 : index
    %c0_40 = arith.constant 0 : index
    %c0_41 = arith.constant 0 : index
    %c24 = arith.constant 24 : index
    %31 = vector.load %arg6[%c0_39, %c0_40, %c0_41, %c24] : memref<2x16x16x72xbf16, #tpu.memory_space<vmem>>, vector<2x15x16x4xbf16>
    tpu.vector_store %arg6[%c0_39, %c0_40, %c0_41, %c24], %30 {strides = array<i32>} : memref<2x16x16x72xbf16, #tpu.memory_space<vmem>>, vector<2x15x16x4xbf16>,
    %c0_42 = arith.constant 0 : index
    %c0_43 = arith.constant 0 : index
    %c0_44 = arith.constant 0 : index
    %c28 = arith.constant 28 : index
    %32 = vector.load %arg6[%c0_42, %c0_43, %c0_44, %c28] : memref<2x16x16x72xbf16, #tpu.memory_space<vmem>>, vector<2x15x16x4xbf16>
    tpu.vector_store %arg6[%c0_42, %c0_43, %c0_44, %c28], %27 {strides = array<i32>} : memref<2x16x16x72xbf16, #tpu.memory_space<vmem>>, vector<2x15x16x4xbf16>,
    %33 = vector.extract_strided_slice %27 {offsets = [0, 0, 1, 0], sizes = [2, 15, 15, 4], strides = [1, 1, 1, 1]} : vector<2x15x16x4xbf16> to vector<2x15x15x4xbf16>
    %34 = tpu.concatenate %33, %28 in 2 : vector<2x15x15x4xbf16>, vector<2x15x1x4xbf16> -> vector<2x15x16x4xbf16>
    %c0_45 = arith.constant 0 : index
    %c0_46 = arith.constant 0 : index
    %c0_47 = arith.constant 0 : index
    %c32 = arith.constant 32 : index
    %35 = vector.load %arg6[%c0_45, %c0_46, %c0_47, %c32] : memref<2x16x16x72xbf16, #tpu.memory_space<vmem>>, vector<2x15x16x4xbf16>
    tpu.vector_store %arg6[%c0_45, %c0_46, %c0_47, %c32], %34 {strides = array<i32>} : memref<2x16x16x72xbf16, #tpu.memory_space<vmem>>, vector<2x15x16x4xbf16>,
    %c0_48 = arith.constant 0 : index
    %c0_49 = arith.constant 0 : index
    %c0_50 = arith.constant 0 : index
    %c0_51 = arith.constant 0 : index
    %36 = vector.load %arg6[%c0_48, %c0_49, %c0_50, %c0_51] : memref<2x16x16x72xbf16, #tpu.memory_space<vmem>>, vector<2x16x16x36xbf16>
    %37 = vector.shape_cast %36 : vector<2x16x16x36xbf16> to vector<512x36xbf16>
    %c0_52 = arith.constant 0 : index
    %c0_53 = arith.constant 0 : index
    %38 = vector.load %arg1[%c0_52, %c0_53] : memref<36x8xbf16, #tpu.memory_space<vmem>>, vector<36x8xbf16>
    %cst_54 = arith.constant dense<0.000000e+00> : vector<512x8xf32>
    %39 = tpu.matmul %37, %38, %cst_54 {dimension_numbers = #tpu.dot_dimension_numbers<[1], [0], [0], [1], [0, 0, 1, 1], [], []>} : vector<512x36xbf16>, vector<36x8xbf16>, vector<512x8xf32> -> vector<512x8xf32>
    %cst_55 = arith.constant dense<0.000000e+00> : vector<8xf32>
    %40 = vector.multi_reduction <add>, %39, %cst_55 [0] : vector<512x8xf32> to vector<8xf32>
    %41 = vector.shape_cast %40 : vector<8xf32> to vector<1x8xf32>
    %cst_56 = arith.constant 0.001953125 : f32
    %42 = vector.broadcast %cst_56 : f32 to vector<1x8xf32>
    %43 = arith.mulf %41, %42 : vector<1x8xf32>
    %44 = arith.mulf %39, %39 : vector<512x8xf32>
    %cst_57 = arith.constant dense<0.000000e+00> : vector<8xf32>
    %45 = vector.multi_reduction <add>, %44, %cst_57 [0] : vector<512x8xf32> to vector<8xf32>
    %46 = vector.shape_cast %45 : vector<8xf32> to vector<1x8xf32>
    %cst_58 = arith.constant 0.001953125 : f32
    %47 = vector.broadcast %cst_58 : f32 to vector<1x8xf32>
    %48 = arith.mulf %46, %47 : vector<1x8xf32>
    %49 = arith.mulf %43, %43 : vector<1x8xf32>
    %50 = arith.subf %48, %49 : vector<1x8xf32>
    %cst_59 = arith.constant 8.000000e-01 : f32
    %51 = vector.broadcast %cst_59 : f32 to vector<1x8xf32>
    %52 = arith.addf %50, %51 : vector<1x8xf32>
    %53 = math.rsqrt %52 : vector<1x8xf32>
    %54 = arith.mulf %53, %0 : vector<1x8xf32>
    %55 = arith.mulf %43, %54 : vector<1x8xf32>
    %56 = arith.subf %1, %55 : vector<1x8xf32>
    %57 = vector.broadcast %54 : vector<1x8xf32> to vector<512x8xf32>
    %58 = arith.mulf %39, %57 : vector<512x8xf32>
    %59 = vector.broadcast %56 : vector<1x8xf32> to vector<512x8xf32>
    %60 = arith.addf %58, %59 : vector<512x8xf32>
    %cst_60 = arith.constant 2.000000e-01 : f32
    %61 = vector.broadcast %cst_60 : f32 to vector<512x8xf32>
    %62 = arith.mulf %61, %60 : vector<512x8xf32>
    %63 = arith.maximumf %60, %62 : vector<512x8xf32>
    %64 = arith.truncf %63 : vector<512x8xf32> to vector<512x8xbf16>
    %65 = vector.shape_cast %64 : vector<512x8xbf16> to vector<2x16x16x8xbf16>
    %cst_61 = arith.constant 0.000000e+00 : bf16
    %66 = vector.broadcast %cst_61 : bf16 to vector<2x1x16x72xbf16>
    %c0_62 = arith.constant 0 : index
    %c0_63 = arith.constant 0 : index
    %c0_64 = arith.constant 0 : index
    %c0_65 = arith.constant 0 : index
    %67 = vector.load %arg6[%c0_62, %c0_63, %c0_64, %c0_65] : memref<2x16x16x72xbf16, #tpu.memory_space<vmem>>, vector<2x1x16x72xbf16>
    tpu.vector_store %arg6[%c0_62, %c0_63, %c0_64, %c0_65], %66 {strides = array<i32>} : memref<2x16x16x72xbf16, #tpu.memory_space<vmem>>, vector<2x1x16x72xbf16>,
    %c0_66 = arith.constant 0 : index
    %c15_67 = arith.constant 15 : index
    %c0_68 = arith.constant 0 : index
    %c0_69 = arith.constant 0 : index
    %68 = vector.load %arg6[%c0_66, %c15_67, %c0_68, %c0_69] : memref<2x16x16x72xbf16, #tpu.memory_space<vmem>>, vector<2x1x16x72xbf16>
    tpu.vector_store %arg6[%c0_66, %c15_67, %c0_68, %c0_69], %66 {strides = array<i32>} : memref<2x16x16x72xbf16, #tpu.memory_space<vmem>>, vector<2x1x16x72xbf16>,
    %69 = vector.extract_strided_slice %65 {offsets = [0, 0, 0, 0], sizes = [2, 15, 16, 8], strides = [1, 1, 1, 1]} : vector<2x16x16x8xbf16> to vector<2x15x16x8xbf16>
    %cst_70 = arith.constant 0.000000e+00 : bf16
    %70 = vector.broadcast %cst_70 : bf16 to vector<2x15x1x8xbf16>
    %71 = vector.extract_strided_slice %69 {offsets = [0, 0, 0, 0], sizes = [2, 15, 15, 8], strides = [1, 1, 1, 1]} : vector<2x15x16x8xbf16> to vector<2x15x15x8xbf16>
    %72 = tpu.concatenate %70, %71 in 2 : vector<2x15x1x8xbf16>, vector<2x15x15x8xbf16> -> vector<2x15x16x8xbf16>
    %c0_71 = arith.constant 0 : index
    %c1_72 = arith.constant 1 : index
    %c0_73 = arith.constant 0 : index
    %c0_74 = arith.constant 0 : index
    %73 = vector.load %arg6[%c0_71, %c1_72, %c0_73, %c0_74] : memref<2x16x16x72xbf16, #tpu.memory_space<vmem>>, vector<2x15x16x8xbf16>
    tpu.vector_store %arg6[%c0_71, %c1_72, %c0_73, %c0_74], %72 {strides = array<i32>} : memref<2x16x16x72xbf16, #tpu.memory_space<vmem>>, vector<2x15x16x8xbf16>,
    %c0_75 = arith.constant 0 : index
    %c1_76 = arith.constant 1 : index
    %c0_77 = arith.constant 0 : index
    %c8_78 = arith.constant 8 : index
    %74 = vector.load %arg6[%c0_75, %c1_76, %c0_77, %c8_78] : memref<2x16x16x72xbf16, #tpu.memory_space<vmem>>, vector<2x15x16x8xbf16>
    tpu.vector_store %arg6[%c0_75, %c1_76, %c0_77, %c8_78], %69 {strides = array<i32>} : memref<2x16x16x72xbf16, #tpu.memory_space<vmem>>, vector<2x15x16x8xbf16>,
    %75 = vector.extract_strided_slice %69 {offsets = [0, 0, 1, 0], sizes = [2, 15, 15, 8], strides = [1, 1, 1, 1]} : vector<2x15x16x8xbf16> to vector<2x15x15x8xbf16>
    %76 = tpu.concatenate %75, %70 in 2 : vector<2x15x15x8xbf16>, vector<2x15x1x8xbf16> -> vector<2x15x16x8xbf16>
    %c0_79 = arith.constant 0 : index
    %c1_80 = arith.constant 1 : index
    %c0_81 = arith.constant 0 : index
    %c16_82 = arith.constant 16 : index
    %77 = vector.load %arg6[%c0_79, %c1_80, %c0_81, %c16_82] : memref<2x16x16x72xbf16, #tpu.memory_space<vmem>>, vector<2x15x16x8xbf16>
    tpu.vector_store %arg6[%c0_79, %c1_80, %c0_81, %c16_82], %76 {strides = array<i32>} : memref<2x16x16x72xbf16, #tpu.memory_space<vmem>>, vector<2x15x16x8xbf16>,
    %cst_83 = arith.constant 0.000000e+00 : bf16
    %78 = vector.broadcast %cst_83 : bf16 to vector<2x16x1x8xbf16>
    %79 = vector.extract_strided_slice %65 {offsets = [0, 0, 0, 0], sizes = [2, 16, 15, 8], strides = [1, 1, 1, 1]} : vector<2x16x16x8xbf16> to vector<2x16x15x8xbf16>
    %80 = tpu.concatenate %78, %79 in 2 : vector<2x16x1x8xbf16>, vector<2x16x15x8xbf16> -> vector<2x16x16x8xbf16>
    %c0_84 = arith.constant 0 : index
    %c0_85 = arith.constant 0 : index
    %c0_86 = arith.constant 0 : index
    %c24_87 = arith.constant 24 : index
    %81 = vector.load %arg6[%c0_84, %c0_85, %c0_86, %c24_87] : memref<2x16x16x72xbf16, #tpu.memory_space<vmem>>, vector<2x16x16x8xbf16>
    tpu.vector_store %arg6[%c0_84, %c0_85, %c0_86, %c24_87], %80 {strides = array<i32>} : memref<2x16x16x72xbf16, #tpu.memory_space<vmem>>, vector<2x16x16x8xbf16>,
    %c0_88 = arith.constant 0 : index
    %c0_89 = arith.constant 0 : index
    %c0_90 = arith.constant 0 : index
    %c32_91 = arith.constant 32 : index
    %82 = vector.load %arg6[%c0_88, %c0_89, %c0_90, %c32_91] : memref<2x16x16x72xbf16, #tpu.memory_space<vmem>>, vector<2x16x16x8xbf16>
    tpu.vector_store %arg6[%c0_88, %c0_89, %c0_90, %c32_91], %65 {strides = array<i32>} : memref<2x16x16x72xbf16, #tpu.memory_space<vmem>>, vector<2x16x16x8xbf16>,
    %83 = vector.extract_strided_slice %65 {offsets = [0, 0, 1, 0], sizes = [2, 16, 15, 8], strides = [1, 1, 1, 1]} : vector<2x16x16x8xbf16> to vector<2x16x15x8xbf16>
    %84 = tpu.concatenate %83, %78 in 2 : vector<2x16x15x8xbf16>, vector<2x16x1x8xbf16> -> vector<2x16x16x8xbf16>
    %c0_92 = arith.constant 0 : index
    %c0_93 = arith.constant 0 : index
    %c0_94 = arith.constant 0 : index
    %c40 = arith.constant 40 : index
    %85 = vector.load %arg6[%c0_92, %c0_93, %c0_94, %c40] : memref<2x16x16x72xbf16, #tpu.memory_space<vmem>>, vector<2x16x16x8xbf16>
    tpu.vector_store %arg6[%c0_92, %c0_93, %c0_94, %c40], %84 {strides = array<i32>} : memref<2x16x16x72xbf16, #tpu.memory_space<vmem>>, vector<2x16x16x8xbf16>,
    %86 = vector.extract_strided_slice %65 {offsets = [0, 1, 0, 0], sizes = [2, 15, 16, 8], strides = [1, 1, 1, 1]} : vector<2x16x16x8xbf16> to vector<2x15x16x8xbf16>
    %cst_95 = arith.constant 0.000000e+00 : bf16
    %87 = vector.broadcast %cst_95 : bf16 to vector<2x15x1x8xbf16>
    %88 = vector.extract_strided_slice %86 {offsets = [0, 0, 0, 0], sizes = [2, 15, 15, 8], strides = [1, 1, 1, 1]} : vector<2x15x16x8xbf16> to vector<2x15x15x8xbf16>
    %89 = tpu.concatenate %87, %88 in 2 : vector<2x15x1x8xbf16>, vector<2x15x15x8xbf16> -> vector<2x15x16x8xbf16>
    %c0_96 = arith.constant 0 : index
    %c0_97 = arith.constant 0 : index
    %c0_98 = arith.constant 0 : index
    %c48 = arith.constant 48 : index
    %90 = vector.load %arg6[%c0_96, %c0_97, %c0_98, %c48] : memref<2x16x16x72xbf16, #tpu.memory_space<vmem>>, vector<2x15x16x8xbf16>
    tpu.vector_store %arg6[%c0_96, %c0_97, %c0_98, %c48], %89 {strides = array<i32>} : memref<2x16x16x72xbf16, #tpu.memory_space<vmem>>, vector<2x15x16x8xbf16>,
    %c0_99 = arith.constant 0 : index
    %c0_100 = arith.constant 0 : index
    %c0_101 = arith.constant 0 : index
    %c56 = arith.constant 56 : index
    %91 = vector.load %arg6[%c0_99, %c0_100, %c0_101, %c56] : memref<2x16x16x72xbf16, #tpu.memory_space<vmem>>, vector<2x15x16x8xbf16>
    tpu.vector_store %arg6[%c0_99, %c0_100, %c0_101, %c56], %86 {strides = array<i32>} : memref<2x16x16x72xbf16, #tpu.memory_space<vmem>>, vector<2x15x16x8xbf16>,
    %92 = vector.extract_strided_slice %86 {offsets = [0, 0, 1, 0], sizes = [2, 15, 15, 8], strides = [1, 1, 1, 1]} : vector<2x15x16x8xbf16> to vector<2x15x15x8xbf16>
    %93 = tpu.concatenate %92, %87 in 2 : vector<2x15x15x8xbf16>, vector<2x15x1x8xbf16> -> vector<2x15x16x8xbf16>
    %c0_102 = arith.constant 0 : index
    %c0_103 = arith.constant 0 : index
    %c0_104 = arith.constant 0 : index
    %c64 = arith.constant 64 : index
    %94 = vector.load %arg6[%c0_102, %c0_103, %c0_104, %c64] : memref<2x16x16x72xbf16, #tpu.memory_space<vmem>>, vector<2x15x16x8xbf16>
    tpu.vector_store %arg6[%c0_102, %c0_103, %c0_104, %c64], %93 {strides = array<i32>} : memref<2x16x16x72xbf16, #tpu.memory_space<vmem>>, vector<2x15x16x8xbf16>,
    %c0_105 = arith.constant 0 : index
    %c0_106 = arith.constant 0 : index
    %c0_107 = arith.constant 0 : index
    %c0_108 = arith.constant 0 : index
    %95 = vector.load %arg6[%c0_105, %c0_106, %c0_107, %c0_108] : memref<2x16x16x72xbf16, #tpu.memory_space<vmem>>, vector<2x16x16x72xbf16>
    %96 = vector.shape_cast %95 : vector<2x16x16x72xbf16> to vector<512x72xbf16>
    %c0_109 = arith.constant 0 : index
    %c0_110 = arith.constant 0 : index
    %97 = vector.load %arg2[%c0_109, %c0_110] : memref<72x8xbf16, #tpu.memory_space<vmem>>, vector<72x8xbf16>
    %cst_111 = arith.constant dense<0.000000e+00> : vector<512x8xf32>
    %98 = tpu.matmul %96, %97, %cst_111 {dimension_numbers = #tpu.dot_dimension_numbers<[1], [0], [0], [1], [0, 0, 1, 1], [], []>} : vector<512x72xbf16>, vector<72x8xbf16>, vector<512x8xf32> -> vector<512x8xf32>
    %cst_112 = arith.constant dense<0.000000e+00> : vector<8xf32>
    %99 = vector.multi_reduction <add>, %98, %cst_112 [0] : vector<512x8xf32> to vector<8xf32>
    %100 = vector.shape_cast %99 : vector<8xf32> to vector<1x8xf32>
    %cst_113 = arith.constant 0.001953125 : f32
    %101 = vector.broadcast %cst_113 : f32 to vector<1x8xf32>
    %102 = arith.mulf %100, %101 : vector<1x8xf32>
    %103 = arith.mulf %98, %98 : vector<512x8xf32>
    %cst_114 = arith.constant dense<0.000000e+00> : vector<8xf32>
    %104 = vector.multi_reduction <add>, %103, %cst_114 [0] : vector<512x8xf32> to vector<8xf32>
    %105 = vector.shape_cast %104 : vector<8xf32> to vector<1x8xf32>
    %cst_115 = arith.constant 0.001953125 : f32
    %106 = vector.broadcast %cst_115 : f32 to vector<1x8xf32>
    %107 = arith.mulf %105, %106 : vector<1x8xf32>
    %108 = arith.mulf %102, %102 : vector<1x8xf32>
    %109 = arith.subf %107, %108 : vector<1x8xf32>
    %cst_116 = arith.constant 8.000000e-01 : f32
    %110 = vector.broadcast %cst_116 : f32 to vector<1x8xf32>
    %111 = arith.addf %109, %110 : vector<1x8xf32>
    %112 = math.rsqrt %111 : vector<1x8xf32>
    %113 = arith.mulf %112, %2 : vector<1x8xf32>
    %114 = arith.mulf %102, %113 : vector<1x8xf32>
    %115 = arith.subf %3, %114 : vector<1x8xf32>
    %116 = vector.broadcast %113 : vector<1x8xf32> to vector<512x8xf32>
    %117 = arith.mulf %98, %116 : vector<512x8xf32>
    %118 = vector.broadcast %115 : vector<1x8xf32> to vector<512x8xf32>
    %119 = arith.addf %117, %118 : vector<512x8xf32>
    %120 = vector.shape_cast %6 : vector<2x16x16x4xbf16> to vector<512x4xbf16>
    %c0_117 = arith.constant 0 : index
    %c0_118 = arith.constant 0 : index
    %121 = vector.load %arg3[%c0_117, %c0_118] : memref<4x8xbf16, #tpu.memory_space<vmem>>, vector<4x8xbf16>
    %cst_119 = arith.constant dense<0.000000e+00> : vector<512x8xf32>
    %122 = tpu.matmul %120, %121, %cst_119 {dimension_numbers = #tpu.dot_dimension_numbers<[1], [0], [0], [1], [0, 0, 1, 1], [], []>} : vector<512x4xbf16>, vector<4x8xbf16>, vector<512x8xf32> -> vector<512x8xf32>
    %123 = vector.broadcast %4 : vector<1x8xf32> to vector<512x8xf32>
    %124 = arith.addf %122, %123 : vector<512x8xf32>
    %125 = arith.addf %119, %124 : vector<512x8xf32>
    %cst_120 = arith.constant 2.000000e-01 : f32
    %126 = vector.broadcast %cst_120 : f32 to vector<512x8xf32>
    %127 = arith.mulf %126, %125 : vector<512x8xf32>
    %128 = arith.maximumf %125, %127 : vector<512x8xf32>
    %129 = vector.shape_cast %128 : vector<512x8xf32> to vector<2x16x16x8xf32>
    %c0_121 = arith.constant 0 : index
    %c0_122 = arith.constant 0 : index
    %c0_123 = arith.constant 0 : index
    %c0_124 = arith.constant 0 : index
    %130 = vector.load %arg5[%c0_121, %c0_122, %c0_123, %c0_124] : memref<2x16x16x8xf32, #tpu.memory_space<vmem>>, vector<2x16x16x8xf32>
    tpu.vector_store %arg5[%c0_121, %c0_122, %c0_123, %c0_124], %129 {strides = array<i32>} : memref<2x16x16x8xf32, #tpu.memory_space<vmem>>, vector<2x16x16x8xf32>,
    return
  }
}

</mosaic_0001>

<bundles_post_ra>
// kernel: tpu_custom_call.1
= control target key start
LH: loop header
LB: loop body
LE: loop exit
PB: predicated region body
PF: predicated region fallthrough
CT: control target
= control target key end

     0   :  { %s6294_s9 = smov 4   ;;  %vm368_vm0 = vcmask 1040384   ;;  %vm369_vm1 = vsmask.f32 256  ;;  %vm402_vm2 = vcmask 31744   ;;  %vm122_vm4 = vcmask 293888   ;;  %s11991_s0 = inlined_call_operand.vmem [shape: f32[2,16,16,4], index: 0, kind: input, shape index: {}]   ;;  %s11992_s1 = inlined_call_operand.vmem [shape: bf16[36,8], index: 1, kind: input, shape index: {}]   ;;  %s11993_s4 = inlined_call_operand.vmem [shape: f32[5,8], index: 4, kind: input, shape index: {}]   ;;  %s11994_s2 = inlined_call_operand.vmem [shape: bf16[72,8], index: 2, kind: input, shape index: {}]   ;;  %s11995_s3 = inlined_call_operand.vmem [shape: bf16[4,8], index: 3, kind: input, shape index: {}]   ;;  %s11996_s5 = inlined_call_operand.vmem [shape: f32[2,16,16,8], index: 5, kind: output, shape index: {}]  }
   0x1   :  { %v30_v0 = vld [vmem:[%s11991_s0 + $0x20] sm:$0xff]  ;;  %v31_v1 = vld [vmem:[%s11991_s0 + $0x28] sm:$0xff]  ;;  %v32_v5 = vld [vmem:[%s11991_s0 + $0x30] sm:$0xff]  ;;  %vm674_vm5 = vcmask 1047552   ;;  %vm675_vm6 = vsmask.f32 7424 }
   0x2   :  { %v26_v2 = vld [vmem:[%s11991_s0] sm:$0xff]  ;;  %v6346_v3 = vpack.c.bf16 %v31_v1, %v30_v0  ;;  %v27_v4 = vld [vmem:[%s11991_s0 + $0x8] sm:$0xff]  ;;  %v33_v6 = vld [vmem:[%s11991_s0 + $0x38] sm:$0xff]  ;;  %s6296_s10 = smov 12   ;;  %s6297_s11 = smov 8   ;;  %vm1818_vm8 = vcmask 1041408  }
   0x3   :  { %v6357_v7 = vpack.c.bf16 %v27_v4, %v26_v2  ;;  %v28_v8 = vld [vmem:[%s11991_s0 + $0x10] sm:$0xff]  ;;  %v29_v9 = vld [vmem:[%s11991_s0 + $0x18] sm:$0xff]  ;;  %v6367_v10 = vpack.c.bf16 %v33_v6, %v32_v5  ;;  %v34_v15 = vld [vmem:[%s11991_s0 + $0x40] sm:$0xff]  ;;  %s6298_s12 = smov 16   ;;  %s6299_s15 = smov 20   ;;  %vm553_vm9 = vcmask 64544  }
   0x4   :  { %12302 = vst [vmem:[#allocation3_spill] sm:$0xff] %v6346_v3  ;;  %467 = vrot.lane.b32.xlu1 %v6346_v3, %s6294_s9  ;;  %v36_v11 = vld [vmem:[%s11991_s0 + $0x50] sm:$0xff]  ;;  %v11999_v12 = vshrl.u32 %v6346_v3, 16  ;;  %v6375_v13 = vpack.c.bf16 %v29_v9, %v28_v8  ;;  %v37_v14 = vld [vmem:[%s11991_s0 + $0x58] sm:$0xff]  ;;  %v35_v16 = vld [vmem:[%s11991_s0 + $0x48] sm:$0xff]  ;;  %v12000_v30 = vshll.u32 %v6346_v3, 16 }
   0x5   :  { %12303 = vst [vmem:[#allocation4_spill] sm:$0xff] %v6367_v10  ;;  %463 = vrot.lane.b32.xlu0 %v6357_v7, %s6294_s9  ;;  %v40_v17 = vld [vmem:[%s11991_s0 + $0x70] sm:$0xff]  ;;  %v41_v18 = vld [vmem:[%s11991_s0 + $0x78] sm:$0xff]  ;;  %v38_v19 = vld [vmem:[%s11991_s0 + $0x60] sm:$0xff]  ;;  %v12014_v20 = vshrl.u32 %v6357_v7, 16  ;;  %v6408_v25 = vpack.c.bf16 %v37_v14, %v36_v11  ;;  %v6424_v31 = vpack.c.bf16 %v35_v16, %v34_v15  ;;  %v12018_v35 = vshll.u32 %v6357_v7, 16 }
   0x6   :  { %12304 = vst [vmem:[#allocation5_spill] sm:$0xff] %v6375_v13  ;;  %v39_v21 = vld [vmem:[%s11991_s0 + $0x68] sm:$0xff]  ;;  %v44_v22 = vld [vmem:[%s11991_s0 + $0x90] sm:$0xff]  ;;  %v45_v23 = vld [vmem:[%s11991_s0 + $0x98] sm:$0xff]  ;;  %v12002_v24 = vshrl.u32 %v6375_v13, 16  ;;  %v145_v29 = vrot.slane %v11999_v12, 7  ;;  %v6436_v36 = vpack.c.bf16 %v41_v18, %v40_v17 }
   0x7   :  { %12305 = vst [vmem:[#allocation6_spill] sm:$0xff] %v6408_v25  ;;  %v42_v26 = vld [vmem:[%s11991_s0 + $0x80] sm:$0xff]  ;;  %v43_v27 = vld [vmem:[%s11991_s0 + $0x88] sm:$0xff]  ;;  %v48_v28 = vld [vmem:[%s11991_s0 + $0xb0] sm:$0xff]  ;;  %v6438_v37 = vpack.c.bf16 %v39_v21, %v38_v19  ;;  %v131_v41 = vrot.slane %v12014_v20, 7  ;;  %v12006_v42 = vshll.u32 %v6375_v13, 16  ;;  %v6452_v43 = vpack.c.bf16 %v45_v23, %v44_v22 }
   0x8   :  { %469 = vrot.lane.b32.xlu1 %v6367_v10, %s6294_s9  ;;  %12306 = vst [vmem:[#allocation7_spill] sm:$0xff] %v6424_v31  ;;  %v49_v32 = vld [vmem:[%s11991_s0 + $0xb8] sm:$0xff]  ;;  %v46_v33 = vld [vmem:[%s11991_s0 + $0xa0] sm:$0xff]  ;;  %v47_v34 = vld [vmem:[%s11991_s0 + $0xa8] sm:$0xff]  ;;  %v138_v47 = vrot.slane %v12002_v24, 7  ;;  %v150_v48 = vshrl.u32 %v6367_v10, 16  ;;  %v6469_v50 = vpack.c.bf16 %v43_v27, %v42_v26  ;;  %v148_v54 = vor.u32 %v12000_v30, %v145_v29 }
   0x9   :  { %465 = vrot.lane.b32.xlu0 %v6375_v13, %s6294_s9  ;;  %12307 = vst [vmem:[#allocation8_spill] sm:$0xff] %v6436_v36  ;;  %12308 = vst [vmem:[#allocation9_spill] sm:$0xff] %v6438_v37  ;;  %v52_v38 = vld [vmem:[%s11991_s0 + $0xd0] sm:$0xff]  ;;  %v53_v39 = vld [vmem:[%s11991_s0 + $0xd8] sm:$0xff]  ;;  %v153_v49 = vshll.u32 %v6367_v10, 16  ;;  %v157_v55 = vshrl.u32 %v6424_v31, 16  ;;  %v6486_v57 = vpack.c.bf16 %v49_v32, %v48_v28  ;;  %v6488_v58 = vpack.c.bf16 %v47_v34, %v46_v33 }
   0xa   :  { %v50_v40 = vld [vmem:[%s11991_s0 + $0xc0] sm:$0xff]  ;;  %12309 = vst [vmem:[#allocation10_spill] sm:$0xff] %v6452_v43  ;;  %v51_v44 = vld [vmem:[%s11991_s0 + $0xc8] sm:$0xff]  ;;  %12310 = vst [vmem:[#allocation11_spill] sm:$0xff] %v6469_v50  ;;  %v160_v56 = vshll.u32 %v6424_v31, 16  ;;  %v152_v62 = vrot.slane %v150_v48, 7  ;;  %v134_v4 = vor.u32 %v12018_v35, %v131_v41  ;;  %v6511_v9 = vpack.c.bf16 %v53_v39, %v52_v38 }
   0xb   :  { %v58_v45 = vld [vmem:[%s11991_s0 + $0x100] sm:$0xff]  ;;  %v59_v46 = vld [vmem:[%s11991_s0 + $0x108] sm:$0xff]  ;;  %12311 = vst [vmem:[#allocation12_spill] sm:$0xff] %v6486_v57  ;;  %12312 = vst [vmem:[#allocation13_spill] sm:$0xff] %v6488_v58  ;;  %v590_v63 = vrot.slane %v153_v49, 1  ;;  %v159_v5 = vrot.slane %v157_v55, 7  ;;  %v6513_v11 = vpack.c.bf16 %v51_v44, %v50_v40  ;;  %v141_v17 = vor.u32 %v12006_v42, %v138_v47 }
   0xc   :  { %473 = vrot.lane.b32.xlu1 %v6408_v25, %s6294_s9  ;;  %v54_v51 = vld [vmem:[%s11991_s0 + $0xe0] sm:$0xff]  ;;  %v55_v52 = vld [vmem:[%s11991_s0 + $0xe8] sm:$0xff]  ;;  %v60_v60 = vld [vmem:[%s11991_s0 + $0x110] sm:$0xff]  ;;  %v592_v6 = vrot.slane %v160_v56, 1  ;;  %v164_v8 = vshrl.u32 %v6408_v25, 16  ;;  %12313 = vst [vmem:[#allocation14_spill] sm:$0xff] %v6511_v9  ;;  %v6530_v19 = vpack.c.bf16 %v59_v46, %v58_v45  ;;  %v155_v34 = vor.u32 %v153_v49, %v152_v62 }
   0xd   :  { %v62_v53 = vld [vmem:[%s11991_s0 + $0x120] sm:$0xff]  ;;  %471 = vrot.lane.b32.xlu0 %v6424_v31, %s6294_s9  ;;  %v63_v59 = vld [vmem:[%s11991_s0 + $0x128] sm:$0xff]  ;;  %v61_v61 = vld [vmem:[%s11991_s0 + $0x118] sm:$0xff]  ;;  %12314 = vst [vmem:[#allocation15_spill] sm:$0xff] %v6513_v11  ;;  %v6526_v18 = vor.u32 %v590_v63, %v150_v48  ;;  %v6532_v21 = vpack.c.bf16 %v55_v52, %v54_v51  ;;  %v167_v38 = vshll.u32 %v6408_v25, 16  ;;  %v162_v45 = vor.u32 %v160_v56, %v159_v5  ;;  %s6300_s18 = smov 24  }
   0xe   :  { %v66_v0 = vld [vmem:[%s11991_s0 + $0x140] sm:$0xff]  ;;  %v67_v1 = vld [vmem:[%s11991_s0 + $0x148] sm:$0xff]  ;;  %v64_v2 = vld [vmem:[%s11991_s0 + $0x130] sm:$0xff]  ;;  %12315 = vst [vmem:[#allocation16_spill] sm:$0xff] %v6530_v19  ;;  %v6537_v23 = vor.u32 %v592_v6, %v157_v55  ;;  %v166_v26 = vrot.slane %v164_v8, 7  ;;  %v6541_v27 = vpack.c.bf16 %v63_v59, %v62_v53  ;;  %v6543_v28 = vpack.c.bf16 %v61_v61, %v60_v60  ;;  %s6301_s21 = smov 28  }
   0xf   :  { %v65_v14 = vld [vmem:[%s11991_s0 + $0x138] sm:$0xff]  ;;  %v70_v15 = vld [vmem:[%s11991_s0 + $0x160] sm:$0xff]  ;;  %v71_v16 = vld [vmem:[%s11991_s0 + $0x168] sm:$0xff]  ;;  %12316 = vst [vmem:[#allocation17_spill] sm:$0xff] %v6532_v21  ;;  %v6555_v39 = vpack.c.bf16 %v67_v1, %v66_v0  ;;  %v594_v51 = vrot.slane %v167_v38, 1  ;;  %v12022_v52 = vshrl.u32 %v6436_v36, 16 }
  0x10   :  { %477 = vrot.lane.b32.xlu1 %v6436_v36, %s6294_s9  ;;  %v68_v22 = vld [vmem:[%s11991_s0 + $0x150] sm:$0xff]  ;;  %12317 = vst [vmem:[#allocation18_spill] sm:$0xff] %v6541_v27  ;;  %12318 = vst [vmem:[#allocation19_spill] sm:$0xff] %v6543_v28  ;;  %v69_v29 = vld [vmem:[%s11991_s0 + $0x158] sm:$0xff]  ;;  %v6557_v40 = vpack.c.bf16 %v65_v14, %v64_v2  ;;  %v6559_v41 = vpack.c.bf16 %v71_v16, %v70_v15  ;;  %v169_v49 = vor.u32 %v167_v38, %v166_v26  ;;  %v12324_v59 = vmov 0  ;;  %s6303_s23 = smov 40  }
  0x11   :  { %475 = vrot.lane.b32.xlu0 %v6438_v37, %s6294_s9  ;;  %v74_v32 = vld [vmem:[%s11991_s0 + $0x180] sm:$0xff]  ;;  %v75_v33 = vld [vmem:[%s11991_s0 + $0x188] sm:$0xff]  ;;  %12319 = vst [vmem:[#allocation20_spill] sm:$0xff] %v6555_v39  ;;  %v72_v44 = vld [vmem:[%s11991_s0 + $0x170] sm:$0xff]  ;;  %v171_v53 = vshrl.u32 %v6438_v37, 16  ;;  %v6577_v55 = vpack.c.bf16 %v69_v29, %v68_v22  ;;  %v181_v60 = vshll.u32 %v6436_v36, 16  ;;  %v6637_v15 = vor.u32 %v594_v51, %v164_v8 }
  0x12   :  { %12320 = vst [vmem:[#allocation21_spill] sm:$0xff] %v6557_v40  ;;  %12321 = vst [vmem:[#allocation22_spill] sm:$0xff] %v6559_v41  ;;  %v73_v46 = vld [vmem:[%s11991_s0 + $0x178] sm:$0xff]  ;;  %v78_v47 = vld [vmem:[%s11991_s0 + $0x1a0] sm:$0xff]  ;;  %v6579_v56 = vpack.c.bf16 %v75_v33, %v74_v32  ;;  %v174_v61 = vshll.u32 %v6438_v37, 16  ;;  %v180_v16 = vrot.slane %v12022_v52, 7 }
  0x13   :  { %v79_v48 = vld [vmem:[%s11991_s0 + $0x1a8] sm:$0xff]  ;;  %12322 = vst [vmem:[#allocation23_spill] sm:$0xff] %v6577_v55  ;;  %vm6583_vm3 = vmand %vm368_vm0, %vm369_vm1  ;;  %v6607_v2 = vpack.c.bf16 %v73_v46, %v72_v44  ;;  %v77_v6 = vld [vmem:[%s11991_s0 + $0x198] sm:$0xff]  ;;  %v12010_v22 = vshrl.u32 %v6452_v43, 16  ;;  %v12015_v26 = vshll.u32 %v6452_v43, 16  ;;  %v12019_v29 = vshrl.u32 %v6469_v50, 16 }
  0x14   :  { %481 = vrot.lane.b32.xlu1 %v6452_v43, %s6294_s9  ;;  %12323 = vst [vmem:[#allocation24_spill] sm:$0xff] %v6579_v56  ;;  %v12325_v59 = vsel %vm6583_vm3, 4294967295, %v12324_v59  ;;  %v6593_v62 = vsel %vm6583_vm3, 0, %v134_v4  ;;  %v6597_v63 = vsel %vm6583_vm3, 0, %v141_v17  ;;  %v6601_v0 = vsel %vm6583_vm3, 0, %v148_v54  ;;  %v76_v4 = vld [vmem:[%s11991_s0 + $0x190] sm:$0xff]  ;;  %vm6975_vm7 = vmand %vm674_vm5, %vm675_vm6 }
  0x15   :  { %12326 = vst [vmem:[#allocation25_spill] sm:$0xff] %v12325_v59  ;;  %479 = vrot.lane.b32.xlu0 %v6469_v50, %s6294_s9  ;;  %v6605_v1 = vsel %vm6583_vm3, 0, %v155_v34  ;;  %12327 = vst [vmem:[#allocation26_spill] sm:$0xff] %v6607_v2  ;;  %v6609_v5 = vpack.c.bf16 %v79_v48, %v78_v47  ;;  %v6627_v54 = vsel %vm6583_vm3, 0, %v162_v45  ;;  %v6631_v14 = vsel %vm6583_vm3, 0, %v169_v49  ;;  %s6304_s26 = smov 48  }
  0x16   :  { %403 = vst.msk [vmem:[#allocation2 + $0x8] sm:$0xff] %vm402_vm2, %v6593_v62  ;;  %404 = vst.msk [vmem:[#allocation2 + $0x10] sm:$0xff] %vm402_vm2, %v6597_v63  ;;  %v173_v17 = vrot.slane %v171_v53, 7  ;;  %v12021_v32 = vshll.u32 %v6469_v50, 16  ;;  %v11997_v8 = vshrl.u32 %v6486_v57, 16  ;;  %v6652_v33 = vpack.c.bf16 %v77_v6, %v76_v4  ;;  %s6305_s29 = smov 56  }
  0x17   :  { %12328 = vst [vmem:[#allocation27_spill] sm:$0xff] %v6609_v5  ;;  %405 = vst.msk [vmem:[#allocation2 + $0x18] sm:$0xff] %vm402_vm2, %v6601_v0  ;;  %v183_v34 = vor.u32 %v181_v60, %v180_v16  ;;  %v194_v44 = vrot.slane %v12010_v22, 7  ;;  %v187_v45 = vrot.slane %v12019_v29, 7  ;;  %v11998_v47 = vshll.u32 %v6486_v57, 16  ;;  %s6306_s7 = smov 64  }
  0x18   :  { %406 = vst.msk [vmem:[#allocation2 + $0x20] sm:$0xff] %vm402_vm2, %v6605_v1  ;;  %407 = vst.msk [vmem:[#allocation2 + $0x28] sm:$0xff] %vm402_vm2, %v6627_v54  ;;  %485 = vrot.lane.b32.xlu1 %v6486_v57, %s6294_s9  ;;  %v176_v38 = vor.u32 %v174_v61, %v173_v17  ;;  %v208_v46 = vrot.slane %v11997_v8, 7  ;;  %v12001_v48 = vshrl.u32 %v6488_v58, 16  ;;  %v12003_v6 = vshll.u32 %v6488_v58, 16  ;;  %v83_v8 = vld [vmem:[%s11991_s0 + $0x1c8] sm:$0xff] }
  0x19   :  { %408 = vst.msk [vmem:[#allocation2 + $0x30] sm:$0xff] %vm402_vm2, %v6631_v14  ;;  %483 = vrot.lane.b32.xlu0 %v6488_v58, %s6294_s9  ;;  %12329 = vst [vmem:[#allocation28_spill] sm:$0xff] %v6652_v33  ;;  %v6666_v49 = vsel %vm6583_vm3, 0, %v183_v34  ;;  %v197_v4 = vor.u32 %v12015_v26, %v194_v44  ;;  %v190_v16 = vor.u32 %v12021_v32, %v187_v45  ;;  %v82_v44 = vld [vmem:[%s11991_s0 + $0x1c0] sm:$0xff]  ;;  %v12009_v24 = vshll.u32 %v6513_v11, 16 }
  0x1a   :  { %v6670_v51 = vsel %vm6583_vm3, 0, %v176_v38  ;;  %410 = vst.msk [vmem:[#allocation2 + $0x40] sm:$0xff] %vm402_vm2, %v6666_v49  ;;  %v211_v17 = vor.u32 %v11998_v47, %v208_v46  ;;  %v201_v34 = vrot.slane %v12001_v48, 7  ;;  %v596_v38 = vrot.slane %v174_v61, 1 }
  0x1b   :  { %409 = vst.msk [vmem:[#allocation2 + $0x38] sm:$0xff] %vm402_vm2, %v6670_v51  ;;  %v6697_v45 = vsel %vm6583_vm3, 0, %v197_v4  ;;  %v12004_v46 = vshrl.u32 %v6511_v9, 16  ;;  %v12008_v47 = vshll.u32 %v6511_v9, 16  ;;  %v12005_v61 = vshrl.u32 %v6513_v11, 16 }
  0x1c   :  { %489 = vrot.lane.b32.xlu1 %v6511_v9, %s6294_s9  ;;  %412 = vst.msk [vmem:[#allocation2 + $0x50] sm:$0xff] %vm402_vm2, %v6697_v45  ;;  %v6706_v12 = vsel %vm6583_vm3, 0, %v190_v16  ;;  %v6710_v30 = vsel %vm6583_vm3, 0, %v211_v17  ;;  %v204_v4 = vor.u32 %v12003_v6, %v201_v34  ;;  %v6716_v48 = vor.u32 %v596_v38, %v171_v53 }
  0x1d   :  { %487 = vrot.lane.b32.xlu0 %v6513_v11, %s6294_s9  ;;  %411 = vst.msk [vmem:[#allocation2 + $0x48] sm:$0xff] %vm402_vm2, %v6706_v12  ;;  %414 = vst.msk [vmem:[#allocation2 + $0x60] sm:$0xff] %vm402_vm2, %v6710_v30  ;;  %v222_v16 = vrot.slane %v12004_v46, 7  ;;  %v215_v17 = vrot.slane %v12005_v61, 7  ;;  %v12007_v34 = vshrl.u32 %v6530_v19, 16  ;;  %v6730_v53 = vpack.c.bf16 %v83_v8, %v82_v44 }
  0x1e   :  { %v6734_v38 = vsel %vm6583_vm3, 0, %v204_v4  ;;  %v12013_v6 = vshll.u32 %v6530_v19, 16  ;;  %v12011_v4 = vmov 0   ;;  %v12016_v61 = vshrl.u32 %v6532_v21, 16 }
  0x1f   :  { %12330 = vst [vmem:[#allocation29_spill] sm:$0xff] %v6730_v53  ;;  %413 = vst.msk [vmem:[#allocation2 + $0x58] sm:$0xff] %vm402_vm2, %v6734_v38  ;;  %v225_v46 = vor.u32 %v12008_v47, %v222_v16  ;;  %v218_v8 = vor.u32 %v12009_v24, %v215_v17  ;;  %v236_v44 = vrot.slane %v12007_v34, 7  ;;  %v12027_v42 = vshll.u32 %v6532_v21, 16 }
  0x20   :  { %493 = vrot.lane.b32.xlu1 %v6530_v19, %s6294_s9  ;;  %126 = vst.msk [vmem:[#allocation2 + $0x78] sm:$0xff] %vm122_vm4, %v12011_v4  ;;  %123 = vst.msk [vmem:[#allocation2] sm:$0xff] %vm122_vm4, %v12011_v4  ;;  %v12017_v16 = vshrl.u32 %v6541_v27, 16  ;;  %v12025_v17 = vshll.u32 %v6541_v27, 16  ;;  %v12020_v22 = vshrl.u32 %v6543_v28, 16  ;;  %v12028_v29 = vshll.u32 %v6557_v40, 16 }
  0x21   :  { %491 = vrot.lane.b32.xlu0 %v6532_v21, %s6294_s9  ;;  %124 = vst.msk [vmem:[#allocation2 + $0x80] sm:$0xff] %vm122_vm4, %v12011_v4  ;;  %127 = vst.msk [vmem:[#allocation2 + $0xf8] sm:$0xff] %vm122_vm4, %v12011_v4  ;;  %v6761_v34 = vsel %vm6583_vm3, 0, %v225_v46  ;;  %v6765_v47 = vsel %vm6583_vm3, 0, %v218_v8  ;;  %v239_v24 = vor.u32 %v12013_v6, %v236_v44  ;;  %v229_v46 = vrot.slane %v12016_v61, 7 }
  0x22   :  { %416 = vst.msk [vmem:[#allocation2 + $0x70] sm:$0xff] %vm402_vm2, %v6761_v34  ;;  %415 = vst.msk [vmem:[#allocation2 + $0x68] sm:$0xff] %vm402_vm2, %v6765_v47  ;;  %v250_v8 = vrot.slane %v12017_v16, 7  ;;  %v12026_v4 = vshll.u32 %v6543_v28, 16  ;;  %v12023_v44 = vshrl.u32 %v6555_v39, 16  ;;  %v243_v20 = vrot.slane %v12020_v22, 7 }
  0x23   :  { %v6786_v6 = vsel %vm6583_vm3, 0, %v239_v24  ;;  %v12024_v61 = vshrl.u32 %v6557_v40, 16  ;;  %v232_v16 = vor.u32 %v12027_v42, %v229_v46  ;;  %v598_v52 = vrot.slane %v181_v60, 1  ;;  %v80_v46 = vld [vmem:[%s11991_s0 + $0x1b0] sm:$0xff] }
  0x24   :  { %497 = vrot.lane.b32.xlu1 %v6541_v27, %s6294_s9  ;;  %418 = vst.msk [vmem:[#allocation2 + $0x88] sm:$0xff] %vm402_vm2, %v6786_v6  ;;  %v253_v35 = vor.u32 %v12025_v17, %v250_v8  ;;  %v264_v24 = vrot.slane %v12023_v44, 7  ;;  %v246_v22 = vor.u32 %v12026_v4, %v243_v20  ;;  %v12029_v26 = vshrl.u32 %v6559_v41, 16  ;;  %v81_v8 = vld [vmem:[%s11991_s0 + $0x1b8] sm:$0xff] }
  0x25   :  { %495 = vrot.lane.b32.xlu0 %v6543_v28, %s6294_s9  ;;  %v257_v32 = vrot.slane %v12024_v61, 7  ;;  %v6818_v20 = vsel %vm6583_vm3, 0, %v232_v16  ;;  %v12331_v44 = vshll.u32 %v6555_v39, 16  ;;  %v12339_v17 = vshll.u32 %v6579_v56, 16 }
  0x26   :  { %v6822_v60 = vsel %vm6583_vm3, 0, %v253_v35  ;;  %417 = vst.msk [vmem:[#allocation2 + $0x78] sm:$0xff] %vm402_vm2, %v6818_v20  ;;  %v6835_v16 = vsel %vm6583_vm3, 0, %v246_v22  ;;  %v278_v4 = vrot.slane %v12029_v26, 7  ;;  %v12030_v22 = vshrl.u32 %v6577_v55, 16 }
  0x27   :  { %v267_v61 = vor.u32 %v12331_v44, %v264_v24  ;;  %420 = vst.msk [vmem:[#allocation2 + $0x98] sm:$0xff] %vm402_vm2, %v6822_v60  ;;  %v260_v35 = vor.u32 %v12028_v29, %v257_v32  ;;  %v12332_v44 = vshrl.u32 %v6436_v36, 16  ;;  %419 = vst.msk [vmem:[#allocation2 + $0x90] sm:$0xff] %vm402_vm2, %v6835_v16  ;;  %v12031_v32 = vshrl.u32 %v6579_v56, 16 }
  0x28   :  { %501 = vrot.lane.b32.xlu1 %v6555_v39, %s6294_s9  ;;  %v6854_v29 = vpack.c.bf16 %v81_v8, %v80_v46  ;;  %v271_v46 = vrot.slane %v12030_v22, 7  ;;  %v12047_v22 = vshrl.u32 %v6652_v33, 16  ;;  %vm1004_vm10 = vcmask 130144  }
  0x29   :  { %499 = vrot.lane.b32.xlu0 %v6557_v40, %s6294_s9  ;;  %v6841_v24 = vor.u32 %v598_v52, %v12332_v44  ;;  %v6849_v42 = vsel %vm6583_vm3, 0, %v267_v61  ;;  %v6860_v52 = vsel %vm6583_vm3, 0, %v260_v35  ;;  %v12336_v44 = vshll.u32 %v6559_v41, 16 }
  0x2a   :  { %12333 = vst [vmem:[#allocation30_spill] sm:$0xff] %v6849_v42  ;;  %12334 = vst [vmem:[#allocation31_spill] sm:$0xff] %v6854_v29  ;;  %v292_v8 = vrot.slane %v12031_v32, 7  ;;  %v12338_v32 = vshll.u32 %v6577_v55, 16  ;;  %v299_v61 = vrot.slane %v12047_v22, 7  ;;  %v12341_v40 = vshll.u32 %v6469_v50, 16 }
  0x2b   :  { %422 = vst.msk [vmem:[#allocation2 + $0xa8] sm:$0xff] %vm402_vm2, %v6849_v42  ;;  %12335 = vst [vmem:[#allocation32_spill] sm:$0xff] %v6860_v52  ;;  %v281_v26 = vor.u32 %v12336_v44, %v278_v4  ;;  %v12046_v44 = vshrl.u32 %v6609_v5, 16  ;;  %v12340_v42 = vshrl.u32 %v6607_v2, 16  ;;  %v12346_v22 = vshll.u32 %v6357_v7, 16 }
  0x2c   :  { %505 = vrot.lane.b32.xlu1 %v6559_v41, %s6294_s9  ;;  %421 = vst.msk [vmem:[#allocation2 + $0xa0] sm:$0xff] %vm402_vm2, %v6860_v52  ;;  %v274_v35 = vor.u32 %v12338_v32, %v271_v46  ;;  %v295_v41 = vor.u32 %v12339_v17, %v292_v8  ;;  %v12343_v32 = vshll.u32 %v6607_v2, 16  ;;  %vm827_vm11 = vcmask 97344  }
  0x2d   :  { %503 = vrot.lane.b32.xlu0 %v6577_v55, %s6294_s9  ;;  %v6879_v4 = vsel %vm6583_vm3, 0, %v281_v26  ;;  %v285_v39 = vrot.slane %v12340_v42, 7  ;;  %v12054_v26 = vshll.u32 %v6652_v33, 16  ;;  %v306_v52 = vrot.slane %v12046_v44, 7 }
  0x2e   :  { %12337 = vst [vmem:[#allocation33_spill] sm:$0xff] %v6879_v4  ;;  %424 = vst.msk [vmem:[#allocation2 + $0xb8] sm:$0xff] %vm402_vm2, %v6879_v4  ;;  %v600_v4 = vrot.slane %v12341_v40, 1  ;;  %v12052_v55 = vshrl.u32 %v6730_v53, 16  ;;  %v6904_v17 = vsel %vm6583_vm3, 0, %v274_v35  ;;  %v6908_v42 = vsel %vm6583_vm3, 0, %v295_v41 }
  0x2f   :  { %12342 = vst [vmem:[#allocation34_spill] sm:$0xff] %v6908_v42  ;;  %v288_v46 = vor.u32 %v12343_v32, %v285_v39  ;;  %423 = vst.msk [vmem:[#allocation2 + $0xb0] sm:$0xff] %vm402_vm2, %v6904_v17  ;;  %v12344_v40 = vshll.u32 %v6609_v5, 16  ;;  %v302_v41 = vor.u32 %v12054_v26, %v299_v61  ;;  %v12345_v44 = vshrl.u32 %v6469_v50, 16 }
  0x30   :  { %509 = vrot.lane.b32.xlu1 %v6579_v56, %s6294_s9  ;;  %426 = vst.msk [vmem:[#allocation2 + $0xc8] sm:$0xff] %vm402_vm2, %v6908_v42  ;;  %v320_v32 = vrot.slane %v12052_v55, 7  ;;  %v584_v8 = vrot.slane %v12346_v22, 1  ;;  %v12053_v42 = vshrl.u32 %v6854_v29, 16  ;;  %v12347_v22 = vshll.u32 %v6730_v53, 16 }
  0x31   :  { %507 = vrot.lane.b32.xlu0 %v6607_v2, %s6294_s9  ;;  %v309_v35 = vor.u32 %v12344_v40, %v306_v52  ;;  %v6925_v39 = vor.u32 %v600_v4, %v12345_v44  ;;  %v6933_v56 = vsel %vm6583_vm3, 0, %v288_v46  ;;  %v12055_v52 = vshll.u32 %v6854_v29, 16 }
  0x32   :  { %425 = vst.msk [vmem:[#allocation2 + $0xc0] sm:$0xff] %vm402_vm2, %v6933_v56  ;;  %v6945_v4 = vsel %vm6583_vm3, 0, %v302_v41  ;;  %v323_v44 = vor.u32 %v12347_v22, %v320_v32  ;;  %v313_v46 = vrot.slane %v12053_v42, 7  ;;  %v12348_v40 = vshll.u32 %v6452_v43, 16 }
  0x33   :  { %v6941_v61 = vsel %vm6583_vm3, 0, %v309_v35  ;;  %427 = vst.msk [vmem:[#allocation2 + $0xd0] sm:$0xff] %vm402_vm2, %v6945_v4  ;;  %v12350_v32 = vshrl.u32 %v6357_v7, 16  ;;  %v12351_v42 = vshrl.u32 %v6452_v43, 16  ;;  %vm1135_vm12 = vcmask 162944  }
  0x34   :  { %513 = vrot.lane.b32.xlu1 %v6609_v5, %s6294_s9  ;;  %428 = vst.msk [vmem:[#allocation2 + $0xd8] sm:$0xff] %vm402_vm2, %v6941_v61  ;;  %v602_v35 = vrot.slane %v12348_v40, 1  ;;  %v6963_v41 = vsel %vm6583_vm3, 0, %v323_v44  ;;  %v316_v55 = vor.u32 %v12055_v52, %v313_v46  ;;  %v12352_v40 = vmov 0 }
  0x35   :  { %511 = vrot.lane.b32.xlu0 %v6652_v33, %s6294_s9  ;;  %12349 = vst [vmem:[#allocation35_spill] sm:$0xff] %v6963_v41  ;;  %v585_v22 = vor.u32 %v584_v8, %v12350_v32  ;;  %430 = vst.msk [vmem:[#allocation2 + $0xe8] sm:$0xff] %vm402_vm2, %v6963_v41  ;;  %v12353_v40 = vsel %vm6975_vm7, 4294967295, %v12352_v40  ;;  %v12355_v44 = vshll.u32 %v6375_v13, 16  ;;  %v12356_v46 = vshll.u32 %v6488_v58, 16 }
  0x36   :  { %v6973_v26 = vor.u32 %v602_v35, %v12351_v42  ;;  %12354 = vst [vmem:[#allocation36_spill] sm:$0xff] %v12353_v40  ;;  %v6983_v8 = vsel %vm6583_vm3, 0, %v316_v55  ;;  %v12357_v32 = vshrl.u32 %v6375_v13, 16  ;;  %v12358_v52 = vshrl.u32 %v6488_v58, 16 }
  0x37   :  { %429 = vst.msk [vmem:[#allocation2 + $0xe0] sm:$0xff] %vm402_vm2, %v6983_v8  ;;  %v677_v42 = vsel %vm6975_vm7, %v585_v22, 0  ;;  %v586_v55 = vrot.slane %v12355_v44, 1  ;;  %v604_v35 = vrot.slane %v12356_v46, 1  ;;  %vm1274_vm13 = vcmask 195744  }
  0x38   :  { %517 = vrot.lane.b32.xlu1 %v6730_v53, %s6294_s9  ;;  %vm1397_vm14 = vcmask 228544   ;;  %vm1518_vm15 = vcmask 261344   ;;  %vm1639_vm0 = vcmask 294144   ;;  %vm2111_vm1 = vcmask 64512  }
  0x39   :  { %515 = vrot.lane.b32.xlu0 %v6854_v29, %s6294_s9  ;;  %v587_v22 = vor.u32 %v586_v55, %v12357_v32  ;;  %v7009_v44 = vor.u32 %v604_v35, %v12358_v52  ;;  %v6283_v55 = vld [vmem:[%s11992_s1 + $0x8] sm:$0xff]   ;;  %v12359_v52 = vshll.u32 %v6346_v3, 16  ;;  %v6284_v35 = vld [vmem:[%s11992_s1 + $0x10] ss:$0 sps:$4 sm:$0x33]   ;;  %v12360_v32 = vshrl.u32 %v6346_v3, 16 }
  0x3a   :  { %vm4450_vm5 = vcmask 1043456   ;;  %vm3172_vm6 = vcmask 130112  }
  0x3b   :  { %v678_v46 = vsel %vm6975_vm7, %v587_v22, 0 }
  0x3c   :  { %908 = vrot.lane.b32.xlu1 %v6593_v62, %s6296_s10  ;;  %v6282_v62 = vld [vmem:[%s11992_s1] sm:$0xff]   ;;  %s6302_s1 = smov 32  }
  0x3d   :  { %737 = vrot.lane.b32.xlu0 %v677_v42, %s6297_s11  ;;  %6049 = vmatprep.subr.bf16.mxu0 %v6282_v62 }
  0x3e   :  { %6050 = vmatpush3.bf16.msra.mxu0 %v6282_v62  ;;  %6259 = vmatprep.subr.bf16.mxu1 %v6282_v62 }
  0x3f   :  { %6262 = vmatpush3.bf16.msra.mxu1 %v6282_v62  ;;  %6051 = vmatprep.subr.bf16.mxu0 %v6283_v55  ;;  %v12361_v62 = vshll.u32 %v6486_v57, 16 }
  0x40   :  { %1039 = vrot.lane.b32.xlu1 %v6357_v7, %s6298_s12  ;;  %6260 = vmatprep.subr.bf16.mxu1 %v6283_v55 }
  0x41   :  { %910 = vrot.lane.b32.xlu0 %v6597_v63, %s6296_s10 }
  0x42   :  { %6052 = vmatpush3.bf16.msra.mxu0 %v6283_v55 }
  0x43   :  { %6263 = vmatpush3.bf16.msra.mxu1 %v6283_v55  ;;  %6265 = vmatprep.subr.msk.bf16.mxu0 %vm1818_vm8, %v6284_v35  ;;  %v606_v55 = vrot.slane %v12361_v62, 1 }
  0x44   :  { %1178 = vrot.lane.b32.xlu1 %v677_v42, %s6299_s15  ;;  %v588_v42 = vrot.slane %v12359_v52, 1  ;;  %6266 = vmatprep.subr.msk.bf16.mxu1 %vm1818_vm8, %v6284_v35 }
  0x45   :  { %1041 = vrot.lane.b32.xlu0 %v6375_v13, %s6298_s12 }
  0x46   :  { %v589_v22 = vor.u32 %v588_v42, %v12360_v32  ;;  %v12363_v42 = vshll.u32 %v6513_v11, 16 }
  0x48   :  { %1307 = vrot.lane.b32.xlu1 %v6597_v63, %s6300_s18  ;;  %v1820_v63 = vsel %vm1818_vm8, %v6284_v35, 0  ;;  %v679_v52 = vsel %vm6975_vm7, %v589_v22, 0  ;;  %v608_v35 = vrot.slane %v12363_v42, 1  ;;  %v682_v22 = vsel %vm6975_vm7, %v6637_v15, 0 }
  0x49   :  { %1180 = vrot.lane.b32.xlu0 %v678_v46, %s6299_s15  ;;  %6054 = vmatpush3.bf16.msra.mxu0 %v1820_v63 }
  0x4a   :  { %6264 = vmatpush3.bf16.msra.mxu1 %v1820_v63 }
  0x4c   :  { %1428 = vrot.lane.b32.xlu1 %v6375_v13, %s6301_s21  ;;  %v12362_v13 = vshrl.u32 %v6486_v57, 16 }
  0x4d   :  { %1309 = vrot.lane.b32.xlu0 %v6601_v0, %s6300_s18 }
  0x4e   :  { %v7045_v41 = vor.u32 %v606_v55, %v12362_v13  ;;  %v12364_v13 = vshrl.u32 %v6513_v11, 16 }
  0x50   :  { %1549 = vrot.lane.b32.xlu1 %v678_v46, %s6302_s1  ;;  %v7060_v63 = vor.u32 %v608_v35, %v12364_v13  ;;  %v683_v35 = vsel %vm6975_vm7, %v6716_v48, 0 }
  0x51   :  { %1430 = vrot.lane.b32.xlu0 %v6346_v3, %s6301_s21 }
  0x54   :  { %739 = vrot.lane.b32.xlu1 %v678_v46, %s6297_s11 }
  0x55   :  { %1551 = vrot.lane.b32.xlu0 %v679_v52, %s6302_s1 }
  0x58   :  { %912 = vrot.lane.b32.xlu1 %v6601_v0, %s6296_s10  ;;  %v680_v0 = vsel %vm6975_vm7, %v6526_v18, 0  ;;  %v681_v18 = vsel %vm6975_vm7, %v6537_v23, 0 }
  0x59   :  { %741 = vrot.lane.b32.xlu0 %v679_v52, %s6297_s11 }
  0x5c   :  { %1043 = vrot.lane.b32.xlu1 %v6346_v3, %s6298_s12 }
  0x5d   :  { %914 = vrot.lane.b32.xlu0 %v6605_v1, %s6296_s10 }
  0x60   :  { %1182 = vrot.lane.b32.xlu1 %v679_v52, %s6299_s15 }
  0x61   :  { %1045 = vrot.lane.b32.xlu0 %v6367_v10, %s6298_s12 }
  0x64   :  { %1311 = vrot.lane.b32.xlu1 %v6605_v1, %s6300_s18 }
  0x65   :  { %1184 = vrot.lane.b32.xlu0 %v680_v0, %s6299_s15 }
  0x68   :  { %1432 = vrot.lane.b32.xlu1 %v6367_v10, %s6301_s21 }
  0x69   :  { %1313 = vrot.lane.b32.xlu0 %v6627_v54, %s6300_s18 }
  0x6c   :  { %1553 = vrot.lane.b32.xlu1 %v680_v0, %s6302_s1 }
  0x6d   :  { %1434 = vrot.lane.b32.xlu0 %v6424_v31, %s6301_s21 }
  0x70   :  { %743 = vrot.lane.b32.xlu1 %v680_v0, %s6297_s11 }
  0x71   :  { %1555 = vrot.lane.b32.xlu0 %v681_v18, %s6302_s1 }
  0x74   :  { %916 = vrot.lane.b32.xlu1 %v6627_v54, %s6296_s10 }
  0x75   :  { %745 = vrot.lane.b32.xlu0 %v681_v18, %s6297_s11 }
  0x76   :  { %v468_v1 = vpop.permute.xlu1 %467 }
  0x77   :  { %556 = vst.msk [vmem:[#allocation2 + $0x18] sm:$0xff] %vm553_vm9, %v468_v1  ;;  %v464_v46 = vpop.permute.xlu0 %463 }
  0x78   :  { %554 = vst.msk [vmem:[#allocation2 + $0x8] sm:$0xff] %vm553_vm9, %v464_v46  ;;  %1047 = vrot.lane.b32.xlu1 %v6424_v31, %s6298_s12 }
  0x79   :  { %918 = vrot.lane.b32.xlu0 %v6631_v14, %s6296_s10 }
  0x7a   :  { %v470_v23 = vpop.permute.xlu1 %469 }
  0x7b   :  { %557 = vst.msk [vmem:[#allocation2 + $0x20] sm:$0xff] %vm553_vm9, %v470_v23  ;;  %v466_v32 = vpop.permute.xlu0 %465 }
  0x7c   :  { %555 = vst.msk [vmem:[#allocation2 + $0x10] sm:$0xff] %vm553_vm9, %v466_v32  ;;  %1186 = vrot.lane.b32.xlu1 %v681_v18, %s6299_s15  ;;  %v684_v32 = vsel %vm6975_vm7, %v6841_v24, 0 }
  0x7d   :  { %1049 = vrot.lane.b32.xlu0 %v6408_v25, %s6298_s12 }
  0x7e   :  { %v474_v54 = vpop.permute.xlu1 %473 }
  0x7f   :  { %559 = vst.msk [vmem:[#allocation2 + $0x30] sm:$0xff] %vm553_vm9, %v474_v54  ;;  %v472_v62 = vpop.permute.xlu0 %471 }
  0x80   :  { %558 = vst.msk [vmem:[#allocation2 + $0x28] sm:$0xff] %vm553_vm9, %v472_v62  ;;  %1315 = vrot.lane.b32.xlu1 %v6631_v14, %s6300_s18 }
  0x81   :  { %1188 = vrot.lane.b32.xlu0 %v682_v22, %s6299_s15 }
  0x82   :  { %v478_v55 = vpop.permute.xlu1 %477 }
  0x83   :  { %561 = vst.msk [vmem:[#allocation2 + $0x40] sm:$0xff] %vm553_vm9, %v478_v55  ;;  %v476_v52 = vpop.permute.xlu0 %475 }
  0x84   :  { %560 = vst.msk [vmem:[#allocation2 + $0x38] sm:$0xff] %vm553_vm9, %v476_v52  ;;  %1436 = vrot.lane.b32.xlu1 %v6408_v25, %s6301_s21  ;;  %v685_v52 = vsel %vm6975_vm7, %v6925_v39, 0 }
  0x85   :  { %1317 = vrot.lane.b32.xlu0 %v6670_v51, %s6300_s18 }
  0x86   :  { %v482_v15 = vpop.permute.xlu1 %481 }
  0x87   :  { %563 = vst.msk [vmem:[#allocation2 + $0x50] sm:$0xff] %vm553_vm9, %v482_v15  ;;  %v480_v42 = vpop.permute.xlu0 %479 }
  0x88   :  { %562 = vst.msk [vmem:[#allocation2 + $0x48] sm:$0xff] %vm553_vm9, %v480_v42  ;;  %1557 = vrot.lane.b32.xlu1 %v682_v22, %s6302_s1 }
  0x89   :  { %1438 = vrot.lane.b32.xlu0 %v6438_v37, %s6301_s21 }
  0x8a   :  { %v486_v14 = vpop.permute.xlu1 %485 }
  0x8b   :  { %565 = vst.msk [vmem:[#allocation2 + $0x60] sm:$0xff] %vm553_vm9, %v486_v14  ;;  %v484_v13 = vpop.permute.xlu0 %483 }
  0x8c   :  { %564 = vst.msk [vmem:[#allocation2 + $0x58] sm:$0xff] %vm553_vm9, %v484_v13  ;;  %747 = vrot.lane.b32.xlu1 %v682_v22, %s6297_s11 }
  0x8d   :  { %1559 = vrot.lane.b32.xlu0 %v683_v35, %s6302_s1 }
  0x8e   :  { %v490_v0 = vpop.permute.xlu1 %489 }
  0x8f   :  { %567 = vst.msk [vmem:[#allocation2 + $0x70] sm:$0xff] %vm553_vm9, %v490_v0  ;;  %v488_v18 = vpop.permute.xlu0 %487 }
  0x90   :  { %566 = vst.msk [vmem:[#allocation2 + $0x68] sm:$0xff] %vm553_vm9, %v488_v18  ;;  %920 = vrot.lane.b32.xlu1 %v6670_v51, %s6296_s10  ;;  %v686_v18 = vsel %vm6975_vm7, %v6973_v26, 0 }
  0x91   :  { %749 = vrot.lane.b32.xlu0 %v683_v35, %s6297_s11 }
  0x92   :  { %v494_v48 = vpop.permute.xlu1 %493 }
  0x93   :  { %569 = vst.msk [vmem:[#allocation2 + $0x88] sm:$0xff] %vm553_vm9, %v494_v48  ;;  %v492_v1 = vpop.permute.xlu0 %491 }
  0x94   :  { %568 = vst.msk [vmem:[#allocation2 + $0x78] sm:$0xff] %vm553_vm9, %v492_v1  ;;  %1051 = vrot.lane.b32.xlu1 %v6438_v37, %s6298_s12 }
  0x95   :  { %922 = vrot.lane.b32.xlu0 %v6666_v49, %s6296_s10 }
  0x96   :  { %v498_v46 = vpop.permute.xlu1 %497 }
  0x97   :  { %571 = vst.msk [vmem:[#allocation2 + $0x98] sm:$0xff] %vm553_vm9, %v498_v46  ;;  %v496_v23 = vpop.permute.xlu0 %495 }
  0x98   :  { %570 = vst.msk [vmem:[#allocation2 + $0x90] sm:$0xff] %vm553_vm9, %v496_v23  ;;  %1190 = vrot.lane.b32.xlu1 %v683_v35, %s6299_s15 }
  0x99   :  { %1053 = vrot.lane.b32.xlu0 %v6436_v36, %s6298_s12 }
  0x9a   :  { %v502_v51 = vpop.permute.xlu1 %501 }
  0x9b   :  { %573 = vst.msk [vmem:[#allocation2 + $0xa8] sm:$0xff] %vm553_vm9, %v502_v51  ;;  %v500_v54 = vpop.permute.xlu0 %499  ;;  %v687_v51 = vsel %vm6975_vm7, %v7009_v44, 0 }
  0x9c   :  { %572 = vst.msk [vmem:[#allocation2 + $0xa0] sm:$0xff] %vm553_vm9, %v500_v54  ;;  %1319 = vrot.lane.b32.xlu1 %v6666_v49, %s6300_s18 }
  0x9d   :  { %1192 = vrot.lane.b32.xlu0 %v684_v32, %s6299_s15 }
  0x9e   :  { %v506_v22 = vpop.permute.xlu1 %505 }
  0x9f   :  { %575 = vst.msk [vmem:[#allocation2 + $0xb8] sm:$0xff] %vm553_vm9, %v506_v22  ;;  %v504_v62 = vpop.permute.xlu0 %503 }
  0xa0   :  { %574 = vst.msk [vmem:[#allocation2 + $0xb0] sm:$0xff] %vm553_vm9, %v504_v62  ;;  %1440 = vrot.lane.b32.xlu1 %v6436_v36, %s6301_s21 }
  0xa1   :  { %1321 = vrot.lane.b32.xlu0 %v6706_v12, %s6300_s18 }
  0xa2   :  { %v510_v24 = vpop.permute.xlu1 %509 }
  0xa3   :  { %577 = vst.msk [vmem:[#allocation2 + $0xc8] sm:$0xff] %vm553_vm9, %v510_v24  ;;  %v508_v55 = vpop.permute.xlu0 %507 }
  0xa4   :  { %576 = vst.msk [vmem:[#allocation2 + $0xc0] sm:$0xff] %vm553_vm9, %v508_v55  ;;  %1561 = vrot.lane.b32.xlu1 %v684_v32, %s6302_s1 }
  0xa5   :  { %1442 = vrot.lane.b32.xlu0 %v6469_v50, %s6301_s21 }
  0xa6   :  { %v514_v49 = vpop.permute.xlu1 %513 }
  0xa7   :  { %579 = vst.msk [vmem:[#allocation2 + $0xd8] sm:$0xff] %vm553_vm9, %v514_v49  ;;  %v512_v15 = vpop.permute.xlu0 %511 }
  0xa8   :  { %578 = vst.msk [vmem:[#allocation2 + $0xd0] sm:$0xff] %vm553_vm9, %v512_v15  ;;  %751 = vrot.lane.b32.xlu1 %v684_v32, %s6297_s11  ;;  %v688_v15 = vsel %vm6975_vm7, %v7045_v41, 0 }
  0xa9   :  { %1563 = vrot.lane.b32.xlu0 %v685_v52, %s6302_s1 }
  0xaa   :  { %v518_v42 = vpop.permute.xlu1 %517 }
  0xab   :  { %581 = vst.msk [vmem:[#allocation2 + $0xe8] sm:$0xff] %vm553_vm9, %v518_v42  ;;  %v516_v14 = vpop.permute.xlu0 %515 }
  0xac   :  { %580 = vst.msk [vmem:[#allocation2 + $0xe0] sm:$0xff] %vm553_vm9, %v516_v14  ;;  %924 = vrot.lane.b32.xlu1 %v6706_v12, %s6296_s10 }
  0xad   :  { %753 = vrot.lane.b32.xlu0 %v685_v52, %s6297_s11 }
  0xae   :  { %v909_v39 = vpop.permute.xlu1 %908 }
  0xaf   :  { %v738_v35 = vpop.permute.xlu0 %737  ;;  %1005 = vst.msk [vmem:[#allocation2] sm:$0xff] %vm1004_vm10, %v909_v39 }
  0xb0   :  { %828 = vst.msk [vmem:[#allocation2 + $0x8] sm:$0xff] %vm827_vm11, %v738_v35  ;;  %1055 = vrot.lane.b32.xlu1 %v6469_v50, %s6298_s12 }
  0xb1   :  { %926 = vrot.lane.b32.xlu0 %v6697_v45, %s6296_s10 }
  0xb2   :  { %v1040_v13 = vpop.permute.xlu1 %1039 }
  0xb3   :  { %v911_v0 = vpop.permute.xlu0 %910  ;;  %1136 = vst.msk [vmem:[#allocation2] sm:$0xff] %vm1135_vm12, %v1040_v13  ;;  %v689_v13 = vsel %vm6975_vm7, %v7060_v63, 0 }
  0xb4   :  { %1006 = vst.msk [vmem:[#allocation2 + $0x8] sm:$0xff] %vm1004_vm10, %v911_v0  ;;  %1194 = vrot.lane.b32.xlu1 %v685_v52, %s6299_s15 }
  0xb5   :  { %1057 = vrot.lane.b32.xlu0 %v6452_v43, %s6298_s12 }
  0xb6   :  { %v1179_v12 = vpop.permute.xlu1 %1178 }
  0xb7   :  { %v1042_v48 = vpop.permute.xlu0 %1041  ;;  %1275 = vst.msk [vmem:[#allocation2] sm:$0xff] %vm1274_vm13, %v1179_v12 }
  0xb8   :  { %1137 = vst.msk [vmem:[#allocation2 + $0x8] sm:$0xff] %vm1135_vm12, %v1042_v48  ;;  %1323 = vrot.lane.b32.xlu1 %v6697_v45, %s6300_s18 }
  0xb9   :  { %1196 = vrot.lane.b32.xlu0 %v686_v18, %s6299_s15 }
  0xba   :  { %v1308_v1 = vpop.permute.xlu1 %1307 }
  0xbb   :  { %v1181_v46 = vpop.permute.xlu0 %1180  ;;  %1398 = vst.msk [vmem:[#allocation2] sm:$0xff] %vm1397_vm14, %v1308_v1  ;;  %v12365_v1 = vshll.u32 %v6511_v9, 16 }
  0xbc   :  { %1276 = vst.msk [vmem:[#allocation2 + $0x8] sm:$0xff] %vm1274_vm13, %v1181_v46  ;;  %1444 = vrot.lane.b32.xlu1 %v6452_v43, %s6301_s21 }
  0xbd   :  { %1325 = vrot.lane.b32.xlu0 %v6734_v38, %s6300_s18  ;;  %v610_v46 = vrot.slane %v12365_v1, 1 }
  0xbe   :  { %v1429_v26 = vpop.permute.xlu1 %1428 }
  0xbf   :  { %v1310_v23 = vpop.permute.xlu0 %1309  ;;  %1519 = vst.msk [vmem:[#allocation2] sm:$0xff] %vm1518_vm15, %v1429_v26 }
  0xc0   :  { %1399 = vst.msk [vmem:[#allocation2 + $0x8] sm:$0xff] %vm1397_vm14, %v1310_v23  ;;  %1565 = vrot.lane.b32.xlu1 %v686_v18, %s6302_s1  ;;  %v12366_v23 = vshrl.u32 %v6511_v9, 16 }
  0xc1   :  { %1446 = vrot.lane.b32.xlu0 %v6488_v58, %s6301_s21 }
  0xc2   :  { %v1550_v45 = vpop.permute.xlu1 %1549 }
  0xc3   :  { %v1431_v32 = vpop.permute.xlu0 %1430  ;;  %1640 = vst.msk [vmem:[#allocation2] sm:$0xff] %vm1639_vm0, %v1550_v45  ;;  %v611_v45 = vor.u32 %v610_v46, %v12366_v23 }
  0xc4   :  { %1520 = vst.msk [vmem:[#allocation2 + $0x8] sm:$0xff] %vm1518_vm15, %v1431_v32  ;;  %755 = vrot.lane.b32.xlu1 %v686_v18, %s6297_s11 }
  0xc5   :  { %1567 = vrot.lane.b32.xlu0 %v687_v51, %s6302_s1 }
  0xc6   :  { %v740_v54 = vpop.permute.xlu1 %739 }
  0xc7   :  { %v1552_v22 = vpop.permute.xlu0 %1551  ;;  %829 = vst.msk [vmem:[#allocation2 + $0x10] sm:$0xff] %vm827_vm11, %v740_v54 }
  0xc8   :  { %1641 = vst.msk [vmem:[#allocation2 + $0x8] sm:$0xff] %vm1639_vm0, %v1552_v22  ;;  %928 = vrot.lane.b32.xlu1 %v6734_v38, %s6296_s10  ;;  %v690_v22 = vsel %vm6975_vm7, %v611_v45, 0 }
  0xc9   :  { %757 = vrot.lane.b32.xlu0 %v687_v51, %s6297_s11 }
  0xca   :  { %v913_v44 = vpop.permute.xlu1 %912  ;;  %v1670_v62 = vld [vmem:[#allocation2] sm:$0xff] }
  0xcb   :  { %v742_v24 = vpop.permute.xlu0 %741  ;;  %1007 = vst.msk [vmem:[#allocation2 + $0x10] sm:$0xff] %vm1004_vm10, %v913_v44  ;;  %6055 = vmatprep.mubr.msk.bf16.mxu0 %vm122_vm4, %v1670_v62 }
  0xcc   :  { %830 = vst.msk [vmem:[#allocation2 + $0x18] sm:$0xff] %vm827_vm11, %v742_v24  ;;  %1059 = vrot.lane.b32.xlu1 %v6488_v58, %s6298_s12  ;;  %v12367_v24 = vshll.u32 %v6532_v21, 16 }
  0xcd   :  { %930 = vrot.lane.b32.xlu0 %v6710_v30, %s6296_s10 }
  0xce   :  { %v1044_v55 = vpop.permute.xlu1 %1043 }
  0xcf   :  { %v915_v49 = vpop.permute.xlu0 %914  ;;  %1138 = vst.msk [vmem:[#allocation2 + $0x10] sm:$0xff] %vm1135_vm12, %v1044_v55  ;;  %v1671_v38 = vld [vmem:[#allocation2 + $0x8] sm:$0xff]  ;;  %v612_v55 = vrot.slane %v12367_v24, 1 }
  0xd0   :  { %1008 = vst.msk [vmem:[#allocation2 + $0x18] sm:$0xff] %vm1004_vm10, %v915_v49  ;;  %6056 = vmatmul.mubr.msk.bf16.vlgmr.msra.gmra.mrb[0].mxu0 %vm122_vm4, %v1671_v38  ;;  %1198 = vrot.lane.b32.xlu1 %v687_v51, %s6299_s15  ;;  %v56_v49 = vld [vmem:[%s11991_s0 + $0xf0] sm:$0xff]  ;;  %v57_v38 = vld [vmem:[%s11991_s0 + $0xf8] sm:$0xff] }
  0xd1   :  { %1061 = vrot.lane.b32.xlu0 %v6486_v57, %s6298_s12 }
  0xd2   :  { %v1183_v52 = vpop.permute.xlu1 %1182 }
  0xd3   :  { %v1046_v42 = vpop.permute.xlu0 %1045  ;;  %1277 = vst.msk [vmem:[#allocation2 + $0x10] sm:$0xff] %vm1274_vm13, %v1183_v52 }
  0xd4   :  { %1139 = vst.msk [vmem:[#allocation2 + $0x18] sm:$0xff] %vm1135_vm12, %v1046_v42  ;;  %1327 = vrot.lane.b32.xlu1 %v6710_v30, %s6300_s18  ;;  %v12369_v42 = vshrl.u32 %v6532_v21, 16 }
  0xd5   :  { %1200 = vrot.lane.b32.xlu0 %v688_v15, %s6299_s15 }
  0xd6   :  { %v1312_v14 = vpop.permute.xlu1 %1311 }
  0xd7   :  { %v1185_v39 = vpop.permute.xlu0 %1184  ;;  %1400 = vst.msk [vmem:[#allocation2 + $0x10] sm:$0xff] %vm1397_vm14, %v1312_v14  ;;  %v613_v14 = vor.u32 %v612_v55, %v12369_v42 }
  0xd8   :  { %1278 = vst.msk [vmem:[#allocation2 + $0x18] sm:$0xff] %vm1274_vm13, %v1185_v39  ;;  %1448 = vrot.lane.b32.xlu1 %v6486_v57, %s6301_s21 }
  0xd9   :  { %1329 = vrot.lane.b32.xlu0 %v6765_v47, %s6300_s18 }
  0xda   :  { %v1433_v41 = vpop.permute.xlu1 %1432 }
  0xdb   :  { %v1314_v35 = vpop.permute.xlu0 %1313  ;;  %1521 = vst.msk [vmem:[#allocation2 + $0x10] sm:$0xff] %vm1518_vm15, %v1433_v41 }
  0xdc   :  { %1401 = vst.msk [vmem:[#allocation2 + $0x18] sm:$0xff] %vm1397_vm14, %v1314_v35  ;;  %1569 = vrot.lane.b32.xlu1 %v688_v15, %s6302_s1 }
  0xdd   :  { %1450 = vrot.lane.b32.xlu0 %v6513_v11, %s6301_s21 }
  0xde   :  { %v1554_v30 = vpop.permute.xlu1 %1553 }
  0xdf   :  { %v1435_v0 = vpop.permute.xlu0 %1434  ;;  %1642 = vst.msk [vmem:[#allocation2 + $0x10] sm:$0xff] %vm1639_vm0, %v1554_v30  ;;  %v691_v30 = vsel %vm6975_vm7, %v613_v14, 0 }
  0xe0   :  { %1522 = vst.msk [vmem:[#allocation2 + $0x18] sm:$0xff] %vm1518_vm15, %v1435_v0  ;;  %759 = vrot.lane.b32.xlu1 %v688_v15, %s6297_s11 }
  0xe1   :  { %1571 = vrot.lane.b32.xlu0 %v689_v13, %s6302_s1 }
  0xe2   :  { %v744_v12 = vpop.permute.xlu1 %743 }
  0xe3   :  { %v1556_v18 = vpop.permute.xlu0 %1555  ;;  %831 = vst.msk [vmem:[#allocation2 + $0x20] sm:$0xff] %vm827_vm11, %v744_v12 }
  0xe4   :  { %1643 = vst.msk [vmem:[#allocation2 + $0x18] sm:$0xff] %vm1639_vm0, %v1556_v18  ;;  %932 = vrot.lane.b32.xlu1 %v6765_v47, %s6296_s10 }
  0xe5   :  { %761 = vrot.lane.b32.xlu0 %v689_v13, %s6297_s11 }
  0xe6   :  { %v917_v63 = vpop.permute.xlu1 %916  ;;  %v1672_v48 = vld [vmem:[#allocation2 + $0x10] sm:$0xff] }
  0xe7   :  { %v746_v26 = vpop.permute.xlu0 %745  ;;  %1009 = vst.msk [vmem:[#allocation2 + $0x20] sm:$0xff] %vm1004_vm10, %v917_v63  ;;  %6059 = vmatprep.mubr.msk.bf16.mxu0 %vm122_vm4, %v1672_v48 }
  0xe8   :  { %832 = vst.msk [vmem:[#allocation2 + $0x28] sm:$0xff] %vm827_vm11, %v746_v26  ;;  %1063 = vrot.lane.b32.xlu1 %v6513_v11, %s6298_s12 }
  0xe9   :  { %934 = vrot.lane.b32.xlu0 %v6761_v34, %s6296_s10 }
  0xea   :  { %v1048_v47 = vpop.permute.xlu1 %1047 }
  0xeb   :  { %v919_v51 = vpop.permute.xlu0 %918  ;;  %1140 = vst.msk [vmem:[#allocation2 + $0x20] sm:$0xff] %vm1135_vm12, %v1048_v47  ;;  %v1673_v32 = vld [vmem:[#allocation2 + $0x18] sm:$0xff] }
  0xec   :  { %1010 = vst.msk [vmem:[#allocation2 + $0x28] sm:$0xff] %vm1004_vm10, %v919_v51  ;;  %6060 = vmatmul.mubr.msk.bf16.gmra.mrb[4].mxu0 %vm122_vm4, %v1673_v32  ;;  %1202 = vrot.lane.b32.xlu1 %v689_v13, %s6299_s15 }
  0xed   :  { %1065 = vrot.lane.b32.xlu0 %v6511_v9, %s6298_s12 }
  0xee   :  { %v1187_v54 = vpop.permute.xlu1 %1186 }
  0xef   :  { %v1050_v44 = vpop.permute.xlu0 %1049  ;;  %1279 = vst.msk [vmem:[#allocation2 + $0x20] sm:$0xff] %vm1274_vm13, %v1187_v54 }
  0xf0   :  { %1141 = vst.msk [vmem:[#allocation2 + $0x28] sm:$0xff] %vm1135_vm12, %v1050_v44  ;;  %1331 = vrot.lane.b32.xlu1 %v6761_v34, %s6300_s18  ;;  %v7294_v34 = vpack.c.bf16 %v57_v38, %v56_v49  ;;  %v12371_v49 = vshrl.u32 %v6530_v19, 16 }
  0xf1   :  { %1204 = vrot.lane.b32.xlu0 %v690_v22, %s6299_s15 }
  0xf2   :  { %v1316_v62 = vpop.permute.xlu1 %1315  ;;  %12368 = vst [vmem:[#allocation37_spill] sm:$0xff] %v7294_v34  ;;  %v859_v41 = vshrl.u32 %v7294_v34, 16  ;;  %v862_v12 = vshll.u32 %v7294_v34, 16 }
  0xf3   :  { %v1189_v52 = vpop.permute.xlu0 %1188  ;;  %1402 = vst.msk [vmem:[#allocation2 + $0x20] sm:$0xff] %vm1397_vm14, %v1316_v62 }
  0xf4   :  { %1280 = vst.msk [vmem:[#allocation2 + $0x28] sm:$0xff] %vm1274_vm13, %v1189_v52  ;;  %1452 = vrot.lane.b32.xlu1 %v6511_v9, %s6301_s21  ;;  %v861_v0 = vrot.slane %v859_v41, 7  ;;  %v1168_v23 = vrot.slane %v862_v12, 1 }
  0xf5   :  { %1333 = vrot.lane.b32.xlu0 %v6818_v20, %s6300_s18 }
  0xf6   :  { %v1437_v15 = vpop.permute.xlu1 %1436  ;;  %v864_v48 = vor.u32 %v862_v12, %v861_v0  ;;  %v1169_v32 = vor.u32 %v1168_v23, %v859_v41  ;;  %v12372_v41 = vshll.u32 %v6543_v28, 16 }
  0xf7   :  { %v1318_v39 = vpop.permute.xlu0 %1317  ;;  %1523 = vst.msk [vmem:[#allocation2 + $0x20] sm:$0xff] %vm1518_vm15, %v1437_v15 }
  0xf8   :  { %1403 = vst.msk [vmem:[#allocation2 + $0x28] sm:$0xff] %vm1397_vm14, %v1318_v39  ;;  %1573 = vrot.lane.b32.xlu1 %v690_v22, %s6302_s1  ;;  %v874_v47 = vsel %vm6583_vm3, 0, %v864_v48  ;;  %v1174_v24 = vsel %vm6975_vm7, %v1169_v32, 0 }
  0xf9   :  { %1454 = vrot.lane.b32.xlu0 %v6532_v21, %s6301_s21 }
  0xfa   :  { %v1558_v35 = vpop.permute.xlu1 %1557 }
  0xfb   :  { %v1439_v13 = vpop.permute.xlu0 %1438  ;;  %1644 = vst.msk [vmem:[#allocation2 + $0x20] sm:$0xff] %vm1639_vm0, %v1558_v35  ;;  %v616_v35 = vrot.slane %v12372_v41, 1 }
  0xfc   :  { %1524 = vst.msk [vmem:[#allocation2 + $0x28] sm:$0xff] %vm1518_vm15, %v1439_v13  ;;  %763 = vrot.lane.b32.xlu1 %v690_v22, %s6297_s11  ;;  %v12370_v22 = vshll.u32 %v6530_v19, 16 }
  0xfd   :  { %1575 = vrot.lane.b32.xlu0 %v691_v30, %s6302_s1 }
  0xfe   :  { %v748_v18 = vpop.permute.xlu1 %747  ;;  %v614_v44 = vrot.slane %v12370_v22, 1 }
  0xff   :  { %v1560_v63 = vpop.permute.xlu0 %1559  ;;  %833 = vst.msk [vmem:[#allocation2 + $0x30] sm:$0xff] %vm827_vm11, %v748_v18 }
 0x100   :  { %1645 = vst.msk [vmem:[#allocation2 + $0x28] sm:$0xff] %vm1639_vm0, %v1560_v63  ;;  %1067 = vrot.lane.b32.xlu1 %v6532_v21, %s6298_s12  ;;  %v615_v38 = vor.u32 %v614_v44, %v12371_v49  ;;  %v12376_v49 = vld [vmem:[#allocation21_spill] sm:$0xff] }
 0x101   :  { %936 = vrot.lane.b32.xlu0 %v6818_v20, %s6296_s10 }
 0x102   :  { %v921_v1 = vpop.permute.xlu1 %920  ;;  %v1674_v46 = vld [vmem:[#allocation2 + $0x20] sm:$0xff]  ;;  %v692_v42 = vsel %vm6975_vm7, %v615_v38, 0  ;;  %v12377_v38 = vshll.u32 %v12376_v49, 16 }
 0x103   :  { %v750_v26 = vpop.permute.xlu0 %749  ;;  %1011 = vst.msk [vmem:[#allocation2 + $0x30] sm:$0xff] %vm1004_vm10, %v921_v1  ;;  %6063 = vmatprep.mubr.msk.bf16.mxu0 %vm122_vm4, %v1674_v46 }
 0x104   :  { %834 = vst.msk [vmem:[#allocation2 + $0x38] sm:$0xff] %vm827_vm11, %v750_v26  ;;  %765 = vrot.lane.b32.xlu1 %v691_v30, %s6297_s11  ;;  %v12374_v26 = vshll.u32 %v6541_v27, 16 }
 0x105   :  { %1206 = vrot.lane.b32.xlu0 %v691_v30, %s6299_s15 }
 0x106   :  { %v1052_v45 = vpop.permute.xlu1 %1051 }
 0x107   :  { %v923_v20 = vpop.permute.xlu0 %922  ;;  %1142 = vst.msk [vmem:[#allocation2 + $0x30] sm:$0xff] %vm1135_vm12, %v1052_v45  ;;  %v1675_v51 = vld [vmem:[#allocation2 + $0x28] sm:$0xff] }
 0x108   :  { %1012 = vst.msk [vmem:[#allocation2 + $0x38] sm:$0xff] %vm1004_vm10, %v923_v20  ;;  %6064 = vmatmul.mubr.msk.bf16.gmra.mrb[8].mxu0 %vm122_vm4, %v1675_v51  ;;  %938 = vrot.lane.b32.xlu1 %v874_v47, %s6296_s10  ;;  %v12375_v20 = vshrl.u32 %v6541_v27, 16 }
 0x109   :  { %1335 = vrot.lane.b32.xlu0 %v874_v47, %s6300_s18  ;;  %v618_v47 = vrot.slane %v12374_v26, 1  ;;  %v12381_v26 = vld [vmem:[#allocation20_spill] sm:$0xff] }
 0x10a   :  { %v1191_v54 = vpop.permute.xlu1 %1190 }
 0x10b   :  { %v1054_v62 = vpop.permute.xlu0 %1053  ;;  %1281 = vst.msk [vmem:[#allocation2 + $0x30] sm:$0xff] %vm1274_vm13, %v1191_v54  ;;  %v619_v51 = vor.u32 %v618_v47, %v12375_v20  ;;  %v12382_v47 = vshll.u32 %v12381_v26, 16 }
 0x10c   :  { %1143 = vst.msk [vmem:[#allocation2 + $0x38] sm:$0xff] %vm1135_vm12, %v1054_v62  ;;  %1069 = vrot.lane.b32.xlu1 %v7294_v34, %s6298_s12 }
 0x10d   :  { %1456 = vrot.lane.b32.xlu0 %v7294_v34, %s6301_s21  ;;  %v694_v22 = vsel %vm6975_vm7, %v619_v51, 0 }
 0x10e   :  { %v1320_v55 = vpop.permute.xlu1 %1319 }
 0x10f   :  { %v1193_v52 = vpop.permute.xlu0 %1192  ;;  %1404 = vst.msk [vmem:[#allocation2 + $0x30] sm:$0xff] %vm1397_vm14, %v1320_v55 }
 0x110   :  { %1282 = vst.msk [vmem:[#allocation2 + $0x38] sm:$0xff] %vm1274_vm13, %v1193_v52  ;;  %1208 = vrot.lane.b32.xlu1 %v1174_v24, %s6299_s15  ;;  %v620_v52 = vrot.slane %v12377_v38, 1 }
 0x111   :  { %1577 = vrot.lane.b32.xlu0 %v1174_v24, %s6302_s1 }
 0x112   :  { %v1441_v15 = vpop.permute.xlu1 %1440 }
 0x113   :  { %v1322_v14 = vpop.permute.xlu0 %1321  ;;  %1525 = vst.msk [vmem:[#allocation2 + $0x30] sm:$0xff] %vm1518_vm15, %v1441_v15 }
 0x114   :  { %1405 = vst.msk [vmem:[#allocation2 + $0x38] sm:$0xff] %vm1397_vm14, %v1322_v14  ;;  %940 = vrot.lane.b32.xlu1 %v6786_v6, %s6296_s10  ;;  %v12373_v6 = vshrl.u32 %v6543_v28, 16 }
 0x115   :  { %767 = vrot.lane.b32.xlu0 %v692_v42, %s6297_s11 }
 0x116   :  { %v1562_v39 = vpop.permute.xlu1 %1561  ;;  %v617_v0 = vor.u32 %v616_v35, %v12373_v6  ;;  %v84_v35 = vld [vmem:[%s11991_s0 + $0x1d0] sm:$0xff] }
 0x117   :  { %v1443_v30 = vpop.permute.xlu0 %1442  ;;  %1646 = vst.msk [vmem:[#allocation2 + $0x30] sm:$0xff] %vm1639_vm0, %v1562_v39 }
 0x118   :  { %1526 = vst.msk [vmem:[#allocation2 + $0x38] sm:$0xff] %vm1518_vm15, %v1443_v30  ;;  %1071 = vrot.lane.b32.xlu1 %v6530_v19, %s6298_s12  ;;  %v693_v63 = vsel %vm6975_vm7, %v617_v0, 0  ;;  %v85_v30 = vld [vmem:[%s11991_s0 + $0x1d8] sm:$0xff] }
 0x119   :  { %942 = vrot.lane.b32.xlu0 %v6835_v16, %s6296_s10 }
 0x11a   :  { %v752_v13 = vpop.permute.xlu1 %751 }
 0x11b   :  { %v1564_v12 = vpop.permute.xlu0 %1563  ;;  %835 = vst.msk [vmem:[#allocation2 + $0x40] sm:$0xff] %vm827_vm11, %v752_v13  ;;  %v7421_v13 = vpack.c.bf16 %v85_v30, %v84_v35 }
 0x11c   :  { %1647 = vst.msk [vmem:[#allocation2 + $0x38] sm:$0xff] %vm1639_vm0, %v1564_v12  ;;  %1210 = vrot.lane.b32.xlu1 %v692_v42, %s6299_s15  ;;  %v12378_v42 = vld [vmem:[#allocation32_spill] sm:$0xff] }
 0x11d   :  { %1073 = vrot.lane.b32.xlu0 %v6543_v28, %s6298_s12  ;;  %12380 = vst [vmem:[#allocation32_spill] sm:$0xff] %v7421_v13 }
 0x11e   :  { %v925_v18 = vpop.permute.xlu1 %924  ;;  %v1676_v48 = vld [vmem:[#allocation2 + $0x30] sm:$0xff] }
 0x11f   :  { %v754_v1 = vpop.permute.xlu0 %753  ;;  %1013 = vst.msk [vmem:[#allocation2 + $0x40] sm:$0xff] %vm1004_vm10, %v925_v18  ;;  %6067 = vmatprep.mubr.msk.bf16.mxu0 %vm122_vm4, %v1676_v48  ;;  %v325_v18 = vshrl.u32 %v7421_v13, 16 }
 0x120   :  { %836 = vst.msk [vmem:[#allocation2 + $0x48] sm:$0xff] %vm827_vm11, %v754_v1  ;;  %1337 = vrot.lane.b32.xlu1 %v6835_v16, %s6300_s18  ;;  %v328_v1 = vshll.u32 %v7421_v13, 16 }
 0x121   :  { %1212 = vrot.lane.b32.xlu0 %v693_v63, %s6299_s15  ;;  %v327_v48 = vrot.slane %v325_v18, 7 }
 0x122   :  { %v1056_v46 = vpop.permute.xlu1 %1055  ;;  %v640_v38 = vrot.slane %v328_v1, 1 }
 0x123   :  { %v927_v23 = vpop.permute.xlu0 %926  ;;  %1144 = vst.msk [vmem:[#allocation2 + $0x40] sm:$0xff] %vm1135_vm12, %v1056_v46  ;;  %v1677_v45 = vld [vmem:[#allocation2 + $0x38] sm:$0xff] }
 0x124   :  { %1014 = vst.msk [vmem:[#allocation2 + $0x48] sm:$0xff] %vm1004_vm10, %v927_v23  ;;  %6068 = vmatmul.mubr.msk.bf16.gmra.mrb[12].mxu0 %vm122_vm4, %v1677_v45  ;;  %1458 = vrot.lane.b32.xlu1 %v6543_v28, %s6301_s21  ;;  %v622_v23 = vrot.slane %v12382_v47, 1  ;;  %v330_v45 = vor.u32 %v328_v1, %v327_v48 }
 0x125   :  { %1339 = vrot.lane.b32.xlu0 %v6822_v60, %s6300_s18 }
 0x126   :  { %v1195_v16 = vpop.permute.xlu1 %1194  ;;  %v7444_v51 = vsel %vm6583_vm3, 0, %v330_v45 }
 0x127   :  { %v1058_v32 = vpop.permute.xlu0 %1057  ;;  %1283 = vst.msk [vmem:[#allocation2 + $0x40] sm:$0xff] %vm1274_vm13, %v1195_v16 }
 0x128   :  { %1145 = vst.msk [vmem:[#allocation2 + $0x48] sm:$0xff] %vm1135_vm12, %v1058_v32  ;;  %1579 = vrot.lane.b32.xlu1 %v693_v63, %s6302_s1  ;;  %v12383_v32 = vld [vmem:[#allocation30_spill] sm:$0xff] }
 0x129   :  { %1460 = vrot.lane.b32.xlu0 %v6541_v27, %s6301_s21  ;;  %431 = vst.msk [vmem:[#allocation2 + $0xf0] sm:$0xff] %vm402_vm2, %v7444_v51 }
 0x12a   :  { %v1324_v54 = vpop.permute.xlu1 %1323 }
 0x12b   :  { %v1197_v44 = vpop.permute.xlu0 %1196  ;;  %1406 = vst.msk [vmem:[#allocation2 + $0x40] sm:$0xff] %vm1397_vm14, %v1324_v54 }
 0x12c   :  { %1284 = vst.msk [vmem:[#allocation2 + $0x48] sm:$0xff] %vm1274_vm13, %v1197_v44  ;;  %769 = vrot.lane.b32.xlu1 %v693_v63, %s6297_s11 }
 0x12d   :  { %1581 = vrot.lane.b32.xlu0 %v694_v22, %s6302_s1 }
 0x12e   :  { %v1445_v62 = vpop.permute.xlu1 %1444 }
 0x12f   :  { %v1326_v24 = vpop.permute.xlu0 %1325  ;;  %1527 = vst.msk [vmem:[#allocation2 + $0x40] sm:$0xff] %vm1518_vm15, %v1445_v62 }
 0x130   :  { %1407 = vst.msk [vmem:[#allocation2 + $0x48] sm:$0xff] %vm1397_vm14, %v1326_v24  ;;  %944 = vrot.lane.b32.xlu1 %v6822_v60, %s6296_s10  ;;  %v12379_v60 = vshrl.u32 %v12376_v49, 16  ;;  %v86_v24 = vld [vmem:[%s11991_s0 + $0x1e0] sm:$0xff] }
 0x131   :  { %771 = vrot.lane.b32.xlu0 %v694_v22, %s6297_s11 }
 0x132   :  { %v1566_v55 = vpop.permute.xlu1 %1565  ;;  %v621_v39 = vor.u32 %v620_v52, %v12379_v60 }
 0x133   :  { %v1447_v15 = vpop.permute.xlu0 %1446  ;;  %1648 = vst.msk [vmem:[#allocation2 + $0x40] sm:$0xff] %vm1639_vm0, %v1566_v55  ;;  %v87_v55 = vld [vmem:[%s11991_s0 + $0x1e8] sm:$0xff] }
 0x134   :  { %1528 = vst.msk [vmem:[#allocation2 + $0x48] sm:$0xff] %vm1518_vm15, %v1447_v15  ;;  %1075 = vrot.lane.b32.xlu1 %v6541_v27, %s6298_s12  ;;  %v695_v0 = vsel %vm6975_vm7, %v621_v39, 0  ;;  %v7461_v52 = vpack.c.bf16 %v87_v55, %v86_v24  ;;  %v12389_v55 = vld [vmem:[#allocation22_spill] sm:$0xff] }
 0x135   :  { %946 = vrot.lane.b32.xlu0 %v12378_v42, %s6296_s10 }
 0x136   :  { %v756_v14 = vpop.permute.xlu1 %755  ;;  %12385 = vst [vmem:[#allocation30_spill] sm:$0xff] %v7461_v52  ;;  %v332_v60 = vshrl.u32 %v7461_v52, 16  ;;  %v335_v35 = vshll.u32 %v7461_v52, 16 }
 0x137   :  { %v1568_v41 = vpop.permute.xlu0 %1567  ;;  %837 = vst.msk [vmem:[#allocation2 + $0x50] sm:$0xff] %vm827_vm11, %v756_v14  ;;  %v7467_v14 = vor.u32 %v640_v38, %v325_v18  ;;  %v12390_v38 = vshll.u32 %v12389_v55, 16 }
 0x138   :  { %1649 = vst.msk [vmem:[#allocation2 + $0x48] sm:$0xff] %vm1639_vm0, %v1568_v41  ;;  %1214 = vrot.lane.b32.xlu1 %v694_v22, %s6299_s15  ;;  %v12384_v22 = vshrl.u32 %v12381_v26, 16  ;;  %v334_v41 = vrot.slane %v332_v60, 7  ;;  %v642_v47 = vrot.slane %v335_v35, 1 }
 0x139   :  { %1077 = vrot.lane.b32.xlu0 %v12376_v49, %s6298_s12 }
 0x13a   :  { %v929_v6 = vpop.permute.xlu1 %928  ;;  %v1678_v12 = vld [vmem:[#allocation2 + $0x40] sm:$0xff]  ;;  %v623_v44 = vor.u32 %v622_v23, %v12384_v22 }
 0x13b   :  { %v758_v63 = vpop.permute.xlu0 %757  ;;  %1015 = vst.msk [vmem:[#allocation2 + $0x50] sm:$0xff] %vm1004_vm10, %v929_v6  ;;  %6071 = vmatprep.mubr.msk.bf16.mxu0 %vm122_vm4, %v1678_v12  ;;  %v337_v6 = vor.u32 %v335_v35, %v334_v41  ;;  %v12392_v41 = vshrl.u32 %v12389_v55, 16 }
 0x13c   :  { %838 = vst.msk [vmem:[#allocation2 + $0x58] sm:$0xff] %vm827_vm11, %v758_v63  ;;  %1341 = vrot.lane.b32.xlu1 %v12378_v42, %s6300_s18  ;;  %v696_v42 = vsel %vm6975_vm7, %v623_v44, 0  ;;  %v12386_v63 = vld [vmem:[#allocation23_spill] sm:$0xff] }
 0x13d   :  { %1216 = vrot.lane.b32.xlu0 %v695_v0, %s6299_s15  ;;  %v7481_v18 = vsel %vm6583_vm3, 0, %v337_v6  ;;  %v12387_v48 = vshll.u32 %v12386_v63, 16  ;;  %v12388_v45 = vshrl.u32 %v12386_v63, 16 }
 0x13e   :  { %v1060_v46 = vpop.permute.xlu1 %1059  ;;  %432 = vst.msk [vmem:[#allocation2 + $0xf8] sm:$0xff] %vm402_vm2, %v7481_v18 }
 0x13f   :  { %v931_v16 = vpop.permute.xlu0 %930  ;;  %1146 = vst.msk [vmem:[#allocation2 + $0x50] sm:$0xff] %vm1135_vm12, %v1060_v46  ;;  %v1679_v20 = vld [vmem:[#allocation2 + $0x48] sm:$0xff]  ;;  %v624_v1 = vrot.slane %v12387_v48, 1 }
 0x140   :  { %1016 = vst.msk [vmem:[#allocation2 + $0x58] sm:$0xff] %vm1004_vm10, %v931_v16  ;;  %6072 = vmatmul.mubr.msk.bf16.gmra.mrb[16].mxu0 %vm122_vm4, %v1679_v20  ;;  %1462 = vrot.lane.b32.xlu1 %v12376_v49, %s6301_s21  ;;  %v7496_v20 = vor.u32 %v642_v47, %v332_v60  ;;  %v12393_v47 = vshll.u32 %v6607_v2, 16 }
 0x141   :  { %1343 = vrot.lane.b32.xlu0 %v12383_v32, %s6300_s18  ;;  %v625_v16 = vor.u32 %v624_v1, %v12388_v45 }
 0x142   :  { %v1199_v54 = vpop.permute.xlu1 %1198 }
 0x143   :  { %v1062_v62 = vpop.permute.xlu0 %1061  ;;  %1285 = vst.msk [vmem:[#allocation2 + $0x50] sm:$0xff] %vm1274_vm13, %v1199_v54  ;;  %v697_v22 = vsel %vm6975_vm7, %v625_v16, 0 }
 0x144   :  { %1147 = vst.msk [vmem:[#allocation2 + $0x58] sm:$0xff] %vm1135_vm12, %v1062_v62  ;;  %1583 = vrot.lane.b32.xlu1 %v695_v0, %s6302_s1 }
 0x145   :  { %1464 = vrot.lane.b32.xlu0 %v12381_v26, %s6301_s21 }
 0x146   :  { %v1328_v15 = vpop.permute.xlu1 %1327 }
 0x147   :  { %v1201_v39 = vpop.permute.xlu0 %1200  ;;  %1408 = vst.msk [vmem:[#allocation2 + $0x50] sm:$0xff] %vm1397_vm14, %v1328_v15  ;;  %v626_v15 = vrot.slane %v12390_v38, 1 }
 0x148   :  { %1286 = vst.msk [vmem:[#allocation2 + $0x58] sm:$0xff] %vm1274_vm13, %v1201_v39  ;;  %773 = vrot.lane.b32.xlu1 %v695_v0, %s6297_s11  ;;  %v12391_v39 = vld [vmem:[#allocation33_spill] sm:$0xff] }
 0x149   :  { %1585 = vrot.lane.b32.xlu0 %v696_v42, %s6302_s1  ;;  %v627_v35 = vor.u32 %v626_v15, %v12392_v41 }
 0x14a   :  { %v1449_v30 = vpop.permute.xlu1 %1448 }
 0x14b   :  { %v1330_v12 = vpop.permute.xlu0 %1329  ;;  %1529 = vst.msk [vmem:[#allocation2 + $0x50] sm:$0xff] %vm1518_vm15, %v1449_v30 }
 0x14c   :  { %1409 = vst.msk [vmem:[#allocation2 + $0x58] sm:$0xff] %vm1397_vm14, %v1330_v12  ;;  %948 = vrot.lane.b32.xlu1 %v12383_v32, %s6296_s10  ;;  %v698_v12 = vsel %vm6975_vm7, %v627_v35, 0 }
 0x14d   :  { %775 = vrot.lane.b32.xlu0 %v696_v42, %s6297_s11 }
 0x14e   :  { %v1570_v0 = vpop.permute.xlu1 %1569 }
 0x14f   :  { %v1451_v46 = vpop.permute.xlu0 %1450  ;;  %1650 = vst.msk [vmem:[#allocation2 + $0x50] sm:$0xff] %vm1639_vm0, %v1570_v0 }
 0x150   :  { %1530 = vst.msk [vmem:[#allocation2 + $0x58] sm:$0xff] %vm1518_vm15, %v1451_v46  ;;  %1079 = vrot.lane.b32.xlu1 %v12381_v26, %s6298_s12 }
 0x151   :  { %950 = vrot.lane.b32.xlu0 %v6904_v17, %s6296_s10 }
 0x152   :  { %v760_v23 = vpop.permute.xlu1 %759 }
 0x153   :  { %v1572_v32 = vpop.permute.xlu0 %1571  ;;  %839 = vst.msk [vmem:[#allocation2 + $0x60] sm:$0xff] %vm827_vm11, %v760_v23  ;;  %v628_v23 = vrot.slane %v12393_v47, 1 }
 0x154   :  { %1651 = vst.msk [vmem:[#allocation2 + $0x58] sm:$0xff] %vm1639_vm0, %v1572_v32  ;;  %1218 = vrot.lane.b32.xlu1 %v696_v42, %s6299_s15  ;;  %v12394_v32 = vshrl.u32 %v6607_v2, 16 }
 0x155   :  { %1081 = vrot.lane.b32.xlu0 %v12386_v63, %s6298_s12 }
 0x156   :  { %v933_v54 = vpop.permute.xlu1 %932  ;;  %v1680_v44 = vld [vmem:[#allocation2 + $0x50] sm:$0xff] }
 0x157   :  { %v762_v62 = vpop.permute.xlu0 %761  ;;  %1017 = vst.msk [vmem:[#allocation2 + $0x60] sm:$0xff] %vm1004_vm10, %v933_v54  ;;  %6075 = vmatprep.mubr.msk.bf16.mxu0 %vm122_vm4, %v1680_v44  ;;  %v629_v54 = vor.u32 %v628_v23, %v12394_v32 }
 0x158   :  { %840 = vst.msk [vmem:[#allocation2 + $0x68] sm:$0xff] %vm827_vm11, %v762_v62  ;;  %1345 = vrot.lane.b32.xlu1 %v6904_v17, %s6300_s18 }
 0x159   :  { %1220 = vrot.lane.b32.xlu0 %v697_v22, %s6299_s15  ;;  %v699_v62 = vsel %vm6975_vm7, %v629_v54, 0 }
 0x15a   :  { %v1064_v24 = vpop.permute.xlu1 %1063 }
 0x15b   :  { %v935_v42 = vpop.permute.xlu0 %934  ;;  %1148 = vst.msk [vmem:[#allocation2 + $0x60] sm:$0xff] %vm1135_vm12, %v1064_v24  ;;  %v1681_v60 = vld [vmem:[#allocation2 + $0x58] sm:$0xff] }
 0x15c   :  { %1018 = vst.msk [vmem:[#allocation2 + $0x68] sm:$0xff] %vm1004_vm10, %v935_v42  ;;  %6076 = vmatmul.mubr.msk.bf16.gmra.mrb[20].mxu0 %vm122_vm4, %v1681_v60  ;;  %1466 = vrot.lane.b32.xlu1 %v12386_v63, %s6301_s21  ;;  %v12395_v42 = vld [vmem:[#allocation24_spill] sm:$0xff] }
 0x15d   :  { %1347 = vrot.lane.b32.xlu0 %v12391_v39, %s6300_s18  ;;  %v12396_v60 = vshll.u32 %v12395_v42, 16 }
 0x15e   :  { %v1203_v17 = vpop.permute.xlu1 %1202 }
 0x15f   :  { %v1066_v30 = vpop.permute.xlu0 %1065  ;;  %1287 = vst.msk [vmem:[#allocation2 + $0x60] sm:$0xff] %vm1274_vm13, %v1203_v17 }
 0x160   :  { %1149 = vst.msk [vmem:[#allocation2 + $0x68] sm:$0xff] %vm1135_vm12, %v1066_v30  ;;  %1587 = vrot.lane.b32.xlu1 %v697_v22, %s6302_s1  ;;  %v12398_v30 = vshrl.u32 %v12395_v42, 16 }
 0x161   :  { %1468 = vrot.lane.b32.xlu0 %v12389_v55, %s6301_s21 }
 0x162   :  { %v1332_v6 = vpop.permute.xlu1 %1331 }
 0x163   :  { %v1205_v0 = vpop.permute.xlu0 %1204  ;;  %1410 = vst.msk [vmem:[#allocation2 + $0x60] sm:$0xff] %vm1397_vm14, %v1332_v6 }
 0x164   :  { %1288 = vst.msk [vmem:[#allocation2 + $0x68] sm:$0xff] %vm1274_vm13, %v1205_v0  ;;  %777 = vrot.lane.b32.xlu1 %v697_v22, %s6297_s11 }
 0x165   :  { %1589 = vrot.lane.b32.xlu0 %v698_v12, %s6302_s1 }
 0x166   :  { %v1453_v48 = vpop.permute.xlu1 %1452 }
 0x167   :  { %v1334_v1 = vpop.permute.xlu0 %1333  ;;  %1531 = vst.msk [vmem:[#allocation2 + $0x60] sm:$0xff] %vm1518_vm15, %v1453_v48 }
 0x168   :  { %1411 = vst.msk [vmem:[#allocation2 + $0x68] sm:$0xff] %vm1397_vm14, %v1334_v1  ;;  %952 = vrot.lane.b32.xlu1 %v12391_v39, %s6296_s10  ;;  %v630_v39 = vrot.slane %v12396_v60, 1 }
 0x169   :  { %779 = vrot.lane.b32.xlu0 %v698_v12, %s6297_s11 }
 0x16a   :  { %v1574_v46 = vpop.permute.xlu1 %1573  ;;  %v631_v6 = vor.u32 %v630_v39, %v12398_v30 }
 0x16b   :  { %v1455_v45 = vpop.permute.xlu0 %1454  ;;  %1652 = vst.msk [vmem:[#allocation2 + $0x60] sm:$0xff] %vm1639_vm0, %v1574_v46 }
 0x16c   :  { %1532 = vst.msk [vmem:[#allocation2 + $0x68] sm:$0xff] %vm1518_vm15, %v1455_v45  ;;  %1083 = vrot.lane.b32.xlu1 %v12389_v55, %s6298_s12  ;;  %v700_v48 = vsel %vm6975_vm7, %v631_v6, 0  ;;  %v12399_v45 = vshll.u32 %v6652_v33, 16 }
 0x16d   :  { %954 = vrot.lane.b32.xlu0 %v6933_v56, %s6296_s10 }
 0x16e   :  { %v764_v16 = vpop.permute.xlu1 %763 }
 0x16f   :  { %v1576_v22 = vpop.permute.xlu0 %1575  ;;  %841 = vst.msk [vmem:[#allocation2 + $0x70] sm:$0xff] %vm827_vm11, %v764_v16  ;;  %v632_v16 = vrot.slane %v12399_v45, 1  ;;  %v12403_v45 = vshll.u32 %v6854_v29, 16 }
 0x170   :  { %1653 = vst.msk [vmem:[#allocation2 + $0x68] sm:$0xff] %vm1639_vm0, %v1576_v22  ;;  %1222 = vrot.lane.b32.xlu1 %v698_v12, %s6299_s15 }
 0x171   :  { %1085 = vrot.lane.b32.xlu0 %v6607_v2, %s6298_s12 }
 0x172   :  { %v1068_v44 = vpop.permute.xlu1 %1067  ;;  %v1682_v24 = vld [vmem:[#allocation2 + $0x60] sm:$0xff] }
 0x173   :  { %v937_v38 = vpop.permute.xlu0 %936  ;;  %6079 = vmatprep.mubr.msk.bf16.mxu0 %vm122_vm4, %v1682_v24 }
 0x174   :  { %1019 = vst.msk [vmem:[#allocation2 + $0x70] sm:$0xff] %vm1004_vm10, %v937_v38  ;;  %1349 = vrot.lane.b32.xlu1 %v6933_v56, %s6300_s18  ;;  %v12397_v56 = vld [vmem:[#allocation34_spill] sm:$0xff] }
 0x175   :  { %1150 = vst.msk [vmem:[#allocation2 + $0x70] sm:$0xff] %vm1135_vm12, %v1068_v44  ;;  %1224 = vrot.lane.b32.xlu0 %v699_v62, %s6299_s15  ;;  %v12400_v44 = vshrl.u32 %v6652_v33, 16 }
 0x176   :  { %v766_v15 = vpop.permute.xlu1 %765 }
 0x177   :  { %v1207_v17 = vpop.permute.xlu0 %1206  ;;  %842 = vst.msk [vmem:[#allocation2 + $0x78] sm:$0xff] %vm827_vm11, %v766_v15  ;;  %v1683_v41 = vld [vmem:[#allocation2 + $0x68] sm:$0xff] }
 0x178   :  { %1289 = vst.msk [vmem:[#allocation2 + $0x70] sm:$0xff] %vm1274_vm13, %v1207_v17  ;;  %6080 = vmatmul.mubr.msk.bf16.gmra.mrb[24].mxu0 %vm122_vm4, %v1683_v41  ;;  %1470 = vrot.lane.b32.xlu1 %v6607_v2, %s6301_s21  ;;  %v12401_v41 = vshll.u32 %v6609_v5, 16 }
 0x179   :  { %1351 = vrot.lane.b32.xlu0 %v12397_v56, %s6300_s18 }
 0x17a   :  { %v939_v35 = vpop.permute.xlu1 %938 }
 0x17b   :  { %v1336_v12 = vpop.permute.xlu0 %1335  ;;  %1020 = vst.msk [vmem:[#allocation2 + $0x78] sm:$0xff] %vm1004_vm10, %v939_v35 }
 0x17c   :  { %1412 = vst.msk [vmem:[#allocation2 + $0x70] sm:$0xff] %vm1397_vm14, %v1336_v12  ;;  %1591 = vrot.lane.b32.xlu1 %v699_v62, %s6302_s1 }
 0x17d   :  { %1472 = vrot.lane.b32.xlu0 %v12395_v42, %s6301_s21 }
 0x17e   :  { %v1070_v0 = vpop.permute.xlu1 %1069 }
 0x17f   :  { %v1457_v1 = vpop.permute.xlu0 %1456  ;;  %1151 = vst.msk [vmem:[#allocation2 + $0x78] sm:$0xff] %vm1135_vm12, %v1070_v0 }
 0x180   :  { %1533 = vst.msk [vmem:[#allocation2 + $0x70] sm:$0xff] %vm1518_vm15, %v1457_v1  ;;  %781 = vrot.lane.b32.xlu1 %v699_v62, %s6297_s11  ;;  %v633_v62 = vor.u32 %v632_v16, %v12400_v44  ;;  %v636_v16 = vrot.slane %v12403_v45, 1 }
 0x181   :  { %1593 = vrot.lane.b32.xlu0 %v700_v48, %s6302_s1 }
 0x182   :  { %v1209_v46 = vpop.permute.xlu1 %1208  ;;  %v701_v60 = vsel %vm6975_vm7, %v633_v62, 0 }
 0x183   :  { %v1578_v47 = vpop.permute.xlu0 %1577  ;;  %1290 = vst.msk [vmem:[#allocation2 + $0x78] sm:$0xff] %vm1274_vm13, %v1209_v46 }
 0x184   :  { %1654 = vst.msk [vmem:[#allocation2 + $0x70] sm:$0xff] %vm1639_vm0, %v1578_v47  ;;  %956 = vrot.lane.b32.xlu1 %v12397_v56, %s6296_s10  ;;  %v634_v56 = vrot.slane %v12401_v41, 1 }
 0x185   :  { %783 = vrot.lane.b32.xlu0 %v700_v48, %s6297_s11 }
 0x186   :  { %v941_v23 = vpop.permute.xlu1 %940 }
 0x187   :  { %v768_v32 = vpop.permute.xlu0 %767  ;;  %1021 = vst.msk [vmem:[#allocation2 + $0x80] sm:$0xff] %vm1004_vm10, %v941_v23 }
 0x188   :  { %843 = vst.msk [vmem:[#allocation2 + $0x88] sm:$0xff] %vm827_vm11, %v768_v32  ;;  %1087 = vrot.lane.b32.xlu1 %v12395_v42, %s6298_s12 }
 0x189   :  { %958 = vrot.lane.b32.xlu0 %v6945_v4, %s6296_s10 }
 0x18a   :  { %v1072_v54 = vpop.permute.xlu1 %1071  ;;  %v1685_v22 = vld [vmem:[#allocation2 + $0x78] sm:$0xff] }
 0x18b   :  { %v943_v24 = vpop.permute.xlu0 %942  ;;  %1152 = vst.msk [vmem:[#allocation2 + $0x80] sm:$0xff] %vm1135_vm12, %v1072_v54  ;;  %v1684_v38 = vld [vmem:[#allocation2 + $0x70] sm:$0xff] }
 0x18c   :  { %1022 = vst.msk [vmem:[#allocation2 + $0x88] sm:$0xff] %vm1004_vm10, %v943_v24  ;;  %6083 = vmatprep.mubr.msk.bf16.mxu0 %vm122_vm4, %v1684_v38  ;;  %1226 = vrot.lane.b32.xlu1 %v700_v48, %s6299_s15  ;;  %v12404_v38 = vshrl.u32 %v6854_v29, 16 }
 0x18d   :  { %1089 = vrot.lane.b32.xlu0 %v6652_v33, %s6298_s12  ;;  %6084 = vmatmul.mubr.msk.bf16.gmra.mrb[28].mxu0 %vm122_vm4, %v1685_v22 }
 0x18e   :  { %v1211_v15 = vpop.permute.xlu1 %1210  ;;  %6195 = vmatprep.mubr.msk.bf16.mxu0 %vm402_vm2, %v6357_v7 }
 0x18f   :  { %v1074_v39 = vpop.permute.xlu0 %1073  ;;  %1291 = vst.msk [vmem:[#allocation2 + $0x80] sm:$0xff] %vm1274_vm13, %v1211_v15  ;;  %v637_v15 = vor.u32 %v636_v16, %v12404_v38  ;;  %v12405_v38 = vshll.u32 %v6730_v53, 16 }
 0x190   :  { %1153 = vst.msk [vmem:[#allocation2 + $0x88] sm:$0xff] %vm1135_vm12, %v1074_v39  ;;  %1353 = vrot.lane.b32.xlu1 %v6945_v4, %s6300_s18  ;;  %v12402_v4 = vshrl.u32 %v6609_v5, 16 }
 0x191   :  { %1228 = vrot.lane.b32.xlu0 %v701_v60, %s6299_s15 }
 0x192   :  { %v1338_v17 = vpop.permute.xlu1 %1337  ;;  %v635_v30 = vor.u32 %v634_v56, %v12402_v4 }
 0x193   :  { %v1213_v35 = vpop.permute.xlu0 %1212  ;;  %1413 = vst.msk [vmem:[#allocation2 + $0x80] sm:$0xff] %vm1397_vm14, %v1338_v17 }
 0x194   :  { %1292 = vst.msk [vmem:[#allocation2 + $0x88] sm:$0xff] %vm1274_vm13, %v1213_v35  ;;  %1474 = vrot.lane.b32.xlu1 %v6652_v33, %s6301_s21  ;;  %v702_v0 = vsel %vm6975_vm7, %v635_v30, 0 }
 0x195   :  { %1355 = vrot.lane.b32.xlu0 %v6941_v61, %s6300_s18 }
 0x196   :  { %v1459_v7 = vpop.permute.xlu1 %1458 }
 0x197   :  { %v1340_v6 = vpop.permute.xlu0 %1339  ;;  %1534 = vst.msk [vmem:[#allocation2 + $0x80] sm:$0xff] %vm1518_vm15, %v1459_v7 }
 0x198   :  { %1414 = vst.msk [vmem:[#allocation2 + $0x88] sm:$0xff] %vm1397_vm14, %v1340_v6  ;;  %1595 = vrot.lane.b32.xlu1 %v701_v60, %s6302_s1 }
 0x199   :  { %1476 = vrot.lane.b32.xlu0 %v6609_v5, %s6301_s21 }
 0x19a   :  { %v1580_v12 = vpop.permute.xlu1 %1579 }
 0x19b   :  { %v1461_v48 = vpop.permute.xlu0 %1460  ;;  %1655 = vst.msk [vmem:[#allocation2 + $0x80] sm:$0xff] %vm1639_vm0, %v1580_v12 }
 0x19c   :  { %1535 = vst.msk [vmem:[#allocation2 + $0x88] sm:$0xff] %vm1518_vm15, %v1461_v48  ;;  %785 = vrot.lane.b32.xlu1 %v701_v60, %s6297_s11 }
 0x19d   :  { %1597 = vrot.lane.b32.xlu0 %v702_v0, %s6302_s1 }
 0x19e   :  { %v770_v1 = vpop.permute.xlu1 %769 }
 0x19f   :  { %v1582_v46 = vpop.permute.xlu0 %1581  ;;  %844 = vst.msk [vmem:[#allocation2 + $0x90] sm:$0xff] %vm827_vm11, %v770_v1 }
 0x1a0   :  { %1656 = vst.msk [vmem:[#allocation2 + $0x88] sm:$0xff] %vm1639_vm0, %v1582_v46  ;;  %960 = vrot.lane.b32.xlu1 %v6941_v61, %s6296_s10 }
 0x1a1   :  { %787 = vrot.lane.b32.xlu0 %v702_v0, %s6297_s11 }
 0x1a2   :  { %v945_v47 = vpop.permute.xlu1 %944  ;;  %v1686_v23 = vld [vmem:[#allocation2 + $0x80] sm:$0xff] }
 0x1a3   :  { %v772_v32 = vpop.permute.xlu0 %771  ;;  %1023 = vst.msk [vmem:[#allocation2 + $0x90] sm:$0xff] %vm1004_vm10, %v945_v47  ;;  %v7643_v54 = vpop.f32.mrb[0].mxu0  ;;  %6087 = vmatprep.mubr.msk.bf16.mxu1 %vm122_vm4, %v1686_v23  ;;  %v703_v47 = vsel %vm6975_vm7, %v637_v15, 0  ;;  %v638_v15 = vrot.slane %v12405_v38, 1 }
 0x1a4   :  { %845 = vst.msk [vmem:[#allocation2 + $0x98] sm:$0xff] %vm827_vm11, %v772_v32  ;;  %v7647_v22 = vpop.f32.mrb[1].mxu0  ;;  %1091 = vrot.lane.b32.xlu1 %v6609_v5, %s6298_s12  ;;  %v2248_v60 = vmul.f32 %v7643_v54, %v7643_v54  ;;  %v2115_v4 = vsel %vm2111_vm1, %v7643_v54, 0.0 }
 0x1a5   :  { %v2246_v61 = vmul.f32 %v7647_v22, %v7647_v22  ;;  %962 = vrot.lane.b32.xlu0 %v6983_v8, %s6296_s10  ;;  %v7655_v44 = vpop.f32.mrb[2].mxu0  ;;  %v2112_v39 = vsel %vm2111_vm1, %v7647_v22, 0.0 }
 0x1a6   :  { %v7657_v62 = vpop.f32.mrb[3].mxu0  ;;  %v1076_v24 = vpop.permute.xlu1 %1075  ;;  %v2249_v6 = vmul.f32 %v7655_v44, %v7655_v44  ;;  %v2117_v23 = vsel %vm2111_vm1, %v7655_v44, 0.0 }
 0x1a7   :  { %v2113_v17 = vsel %vm2111_vm1, %v7657_v62, 0.0  ;;  %v2247_v41 = vmul.f32 %v7657_v62, %v7657_v62  ;;  %v947_v56 = vpop.permute.xlu0 %946  ;;  %1154 = vst.msk [vmem:[#allocation2 + $0x90] sm:$0xff] %vm1135_vm12, %v1076_v24  ;;  %v1687_v35 = vld [vmem:[#allocation2 + $0x88] sm:$0xff]  ;;  %v2310_v30 = vsel %vm2111_vm1, %v2246_v61, 0.0 }
 0x1a8   :  { %v2114_v7 = vadd.f32 %v2113_v17, %v2112_v39  ;;  %1024 = vst.msk [vmem:[#allocation2 + $0x98] sm:$0xff] %vm1004_vm10, %v947_v56  ;;  %6088 = vmatmul.mubr.msk.bf16.vlgmr.msra.gmra.mrb[0].mxu1 %vm122_vm4, %v1687_v35  ;;  %1230 = vrot.lane.b32.xlu1 %v702_v0, %s6299_s15  ;;  %v2313_v0 = vsel %vm2111_vm1, %v2248_v60, 0.0  ;;  %v2315_v61 = vsel %vm2111_vm1, %v2249_v6, 0.0 }
 0x1a9   :  { %v2311_v12 = vsel %vm2111_vm1, %v2247_v41, 0.0  ;;  %1093 = vrot.lane.b32.xlu0 %v6854_v29, %s6298_s12  ;;  %v12407_v41 = vshrl.u32 %v6730_v53, 16 }
 0x1aa   :  { %v2116_v48 = vadd.f32 %v2115_v4, %v2114_v7  ;;  %v2312_v1 = vadd.f32 %v2311_v12, %v2310_v30  ;;  %v1215_v46 = vpop.permute.xlu1 %1214 }
 0x1ab   :  { %v1078_v45 = vpop.permute.xlu0 %1077  ;;  %1293 = vst.msk [vmem:[#allocation2 + $0x90] sm:$0xff] %vm1274_vm13, %v1215_v46  ;;  %v639_v56 = vor.u32 %v638_v15, %v12407_v41 }
 0x1ac   :  { %v2314_v16 = vadd.f32 %v2313_v0, %v2312_v1  ;;  %1155 = vst.msk [vmem:[#allocation2 + $0x98] sm:$0xff] %vm1135_vm12, %v1078_v45  ;;  %1357 = vrot.lane.b32.xlu1 %v6983_v8, %s6300_s18  ;;  %v2118_v32 = vadd.f32 %v2117_v23, %v2116_v48  ;;  %v12406_v8 = vld [vmem:[#allocation35_spill] sm:$0xff] }
 0x1ad   :  { %1232 = vrot.lane.b32.xlu0 %v703_v47, %s6299_s15  ;;  %v704_v4 = vsel %vm6975_vm7, %v639_v56, 0 }
 0x1ae   :  { %v1342_v24 = vpop.permute.xlu1 %1341  ;;  %v2316_v60 = vadd.f32 %v2315_v61, %v2314_v16 }
 0x1af   :  { %v1217_v39 = vpop.permute.xlu0 %1216  ;;  %1415 = vst.msk [vmem:[#allocation2 + $0x90] sm:$0xff] %vm1397_vm14, %v1342_v24 }
 0x1b0   :  { %1294 = vst.msk [vmem:[#allocation2 + $0x98] sm:$0xff] %vm1274_vm13, %v1217_v39  ;;  %1478 = vrot.lane.b32.xlu1 %v6854_v29, %s6301_s21 }
 0x1b1   :  { %1359 = vrot.lane.b32.xlu0 %v12406_v8, %s6300_s18 }
 0x1b2   :  { %v1463_v17 = vpop.permute.xlu1 %1462 }
 0x1b3   :  { %v1344_v35 = vpop.permute.xlu0 %1343  ;;  %1536 = vst.msk [vmem:[#allocation2 + $0x90] sm:$0xff] %vm1518_vm15, %v1463_v17 }
 0x1b4   :  { %1416 = vst.msk [vmem:[#allocation2 + $0x98] sm:$0xff] %vm1397_vm14, %v1344_v35  ;;  %1599 = vrot.lane.b32.xlu1 %v703_v47, %s6302_s1 }
 0x1b5   :  { %1480 = vrot.lane.b32.xlu0 %v6730_v53, %s6301_s21 }
 0x1b6   :  { %v1584_v7 = vpop.permute.xlu1 %1583 }
 0x1b7   :  { %v1465_v30 = vpop.permute.xlu0 %1464  ;;  %1657 = vst.msk [vmem:[#allocation2 + $0x90] sm:$0xff] %vm1639_vm0, %v1584_v7 }
 0x1b8   :  { %1537 = vst.msk [vmem:[#allocation2 + $0x98] sm:$0xff] %vm1518_vm15, %v1465_v30  ;;  %789 = vrot.lane.b32.xlu1 %v703_v47, %s6297_s11 }
 0x1b9   :  { %1601 = vrot.lane.b32.xlu0 %v704_v4, %s6302_s1 }
 0x1ba   :  { %v774_v6 = vpop.permute.xlu1 %773 }
 0x1bb   :  { %v1586_v12 = vpop.permute.xlu0 %1585  ;;  %846 = vst.msk [vmem:[#allocation2 + $0xa0] sm:$0xff] %vm827_vm11, %v774_v6 }
 0x1bc   :  { %1658 = vst.msk [vmem:[#allocation2 + $0x98] sm:$0xff] %vm1639_vm0, %v1586_v12  ;;  %964 = vrot.lane.b32.xlu1 %v12406_v8, %s6296_s10 }
 0x1bd   :  { %791 = vrot.lane.b32.xlu0 %v704_v4, %s6297_s11 }
 0x1be   :  { %v949_v48 = vpop.permute.xlu1 %948  ;;  %v1688_v1 = vld [vmem:[#allocation2 + $0x90] sm:$0xff] }
 0x1bf   :  { %v776_v46 = vpop.permute.xlu0 %775  ;;  %1025 = vst.msk [vmem:[#allocation2 + $0xa0] sm:$0xff] %vm1004_vm10, %v949_v48  ;;  %v7719_v0 = vpop.f32.mrb[4].mxu0  ;;  %6091 = vmatprep.mubr.msk.bf16.mxu1 %vm122_vm4, %v1688_v1  ;;  %v705_v1 = vsel %vm6975_vm7, %v7467_v14, 0 }
 0x1c0   :  { %847 = vst.msk [vmem:[#allocation2 + $0xa8] sm:$0xff] %vm827_vm11, %v776_v46  ;;  %v7723_v47 = vpop.f32.mrb[5].mxu0  ;;  %1095 = vrot.lane.b32.xlu1 %v6730_v53, %s6298_s12  ;;  %v2252_v15 = vmul.f32 %v7719_v0, %v7719_v0  ;;  %v2123_v7 = vsel %vm2111_vm1, %v7719_v0, 0.0 }
 0x1c1   :  { %v2119_v23 = vsel %vm2111_vm1, %v7723_v47, 0.0  ;;  %v2250_v45 = vmul.f32 %v7723_v47, %v7723_v47  ;;  %966 = vrot.lane.b32.xlu0 %v7444_v51, %s6296_s10  ;;  %v7733_v16 = vpop.f32.mrb[6].mxu0 }
 0x1c2   :  { %v2120_v61 = vadd.f32 %v2119_v23, %v2118_v32  ;;  %v7735_v24 = vpop.f32.mrb[7].mxu0  ;;  %v1080_v38 = vpop.permute.xlu1 %1079  ;;  %v2253_v30 = vmul.f32 %v7733_v16, %v7733_v16  ;;  %v2125_v46 = vsel %vm2111_vm1, %v7733_v16, 0.0 }
 0x1c3   :  { %v2317_v39 = vsel %vm2111_vm1, %v2250_v45, 0.0  ;;  %v2121_v8 = vsel %vm2111_vm1, %v7735_v24, 0.0  ;;  %v2251_v17 = vmul.f32 %v7735_v24, %v7735_v24  ;;  %v951_v41 = vpop.permute.xlu0 %950  ;;  %1156 = vst.msk [vmem:[#allocation2 + $0xa0] sm:$0xff] %vm1135_vm12, %v1080_v38  ;;  %v1689_v56 = vld [vmem:[#allocation2 + $0x98] sm:$0xff] }
 0x1c4   :  { %v2318_v35 = vadd.f32 %v2317_v39, %v2316_v60  ;;  %v2122_v32 = vadd.f32 %v2121_v8, %v2120_v61  ;;  %1026 = vst.msk [vmem:[#allocation2 + $0xa8] sm:$0xff] %vm1004_vm10, %v951_v41  ;;  %6092 = vmatmul.mubr.msk.bf16.gmra.mrb[4].mxu1 %vm122_vm4, %v1689_v56  ;;  %1234 = vrot.lane.b32.xlu1 %v704_v4, %s6299_s15  ;;  %v2321_v4 = vsel %vm2111_vm1, %v2252_v15, 0.0  ;;  %v2323_v38 = vsel %vm2111_vm1, %v2253_v30, 0.0  ;;  %v89_v8 = vld [vmem:[%s11991_s0 + $0x1f8] sm:$0xff] }
 0x1c5   :  { %v2319_v6 = vsel %vm2111_vm1, %v2251_v17, 0.0  ;;  %1097 = vrot.lane.b32.xlu0 %v7421_v13, %s6298_s12 }
 0x1c6   :  { %v2124_v12 = vadd.f32 %v2123_v7, %v2122_v32  ;;  %v2320_v60 = vadd.f32 %v2319_v6, %v2318_v35  ;;  %v1219_v48 = vpop.permute.xlu1 %1218  ;;  %v706_v35 = vsel %vm6975_vm7, %v7496_v20, 0 }
 0x1c7   :  { %v1082_v23 = vpop.permute.xlu0 %1081  ;;  %1295 = vst.msk [vmem:[#allocation2 + $0xa0] sm:$0xff] %vm1274_vm13, %v1219_v48 }
 0x1c8   :  { %v2322_v45 = vadd.f32 %v2321_v4, %v2320_v60  ;;  %1157 = vst.msk [vmem:[#allocation2 + $0xa8] sm:$0xff] %vm1135_vm12, %v1082_v23  ;;  %1361 = vrot.lane.b32.xlu1 %v7444_v51, %s6300_s18  ;;  %v2126_v61 = vadd.f32 %v2125_v46, %v2124_v12  ;;  %v88_v51 = vld [vmem:[%s11991_s0 + $0x1f0] sm:$0xff] }
 0x1c9   :  { %1236 = vrot.lane.b32.xlu0 %v705_v1, %s6299_s15  ;;  %v7782_v56 = vpack.c.bf16 %v89_v8, %v88_v51 }
 0x1ca   :  { %v1346_v14 = vpop.permute.xlu1 %1345  ;;  %v2324_v39 = vadd.f32 %v2323_v38, %v2322_v45 }
 0x1cb   :  { %v1221_v15 = vpop.permute.xlu0 %1220  ;;  %1417 = vst.msk [vmem:[#allocation2 + $0xa0] sm:$0xff] %vm1397_vm14, %v1346_v14  ;;  %12408 = vst [vmem:[#allocation33_spill] sm:$0xff] %v7782_v56  ;;  %v866_v30 = vshrl.u32 %v7782_v56, 16  ;;  %v869_v60 = vshll.u32 %v7782_v56, 16 }
 0x1cc   :  { %1296 = vst.msk [vmem:[#allocation2 + $0xa8] sm:$0xff] %vm1274_vm13, %v1221_v15  ;;  %1482 = vrot.lane.b32.xlu1 %v7421_v13, %s6301_s21 }
 0x1cd   :  { %1363 = vrot.lane.b32.xlu0 %v7481_v18, %s6300_s18  ;;  %v868_v20 = vrot.slane %v866_v30, 7 }
 0x1ce   :  { %v1467_v17 = vpop.permute.xlu1 %1466 }
 0x1cf   :  { %v1348_v41 = vpop.permute.xlu0 %1347  ;;  %1538 = vst.msk [vmem:[#allocation2 + $0xa0] sm:$0xff] %vm1518_vm15, %v1467_v17 }
 0x1d0   :  { %1418 = vst.msk [vmem:[#allocation2 + $0xa8] sm:$0xff] %vm1397_vm14, %v1348_v41  ;;  %1603 = vrot.lane.b32.xlu1 %v705_v1, %s6302_s1 }
 0x1d1   :  { %1484 = vrot.lane.b32.xlu0 %v7461_v52, %s6301_s21 }
 0x1d2   :  { %v1588_v32 = vpop.permute.xlu1 %1587 }
 0x1d3   :  { %v1469_v7 = vpop.permute.xlu0 %1468  ;;  %1659 = vst.msk [vmem:[#allocation2 + $0xa0] sm:$0xff] %vm1639_vm0, %v1588_v32 }
 0x1d4   :  { %1539 = vst.msk [vmem:[#allocation2 + $0xa8] sm:$0xff] %vm1518_vm15, %v1469_v7  ;;  %1605 = vrot.lane.b32.xlu1 %v706_v35, %s6302_s1 }
 0x1d5   :  { %519 = vrot.lane.b32.xlu0 %v7421_v13, %s6294_s9 }
 0x1d6   :  { %v778_v6 = vpop.permute.xlu1 %777 }
 0x1d7   :  { %v1590_v12 = vpop.permute.xlu0 %1589  ;;  %848 = vst.msk [vmem:[#allocation2 + $0xb0] sm:$0xff] %vm827_vm11, %v778_v6 }
 0x1d8   :  { %1660 = vst.msk [vmem:[#allocation2 + $0xa8] sm:$0xff] %vm1639_vm0, %v1590_v12  ;;  %968 = vrot.lane.b32.xlu1 %v7481_v18, %s6296_s10  ;;  %v871_v18 = vor.u32 %v869_v60, %v868_v20 }
 0x1d9   :  { %793 = vrot.lane.b32.xlu0 %v705_v1, %s6297_s11 }
 0x1da   :  { %v953_v48 = vpop.permute.xlu1 %952  ;;  %v1690_v4 = vld [vmem:[#allocation2 + $0xa0] sm:$0xff] }
 0x1db   :  { %v780_v46 = vpop.permute.xlu0 %779  ;;  %1027 = vst.msk [vmem:[#allocation2 + $0xb0] sm:$0xff] %vm1004_vm10, %v953_v48  ;;  %v7802_v23 = vpop.f32.mrb[8].mxu0  ;;  %6095 = vmatprep.mubr.msk.bf16.mxu1 %vm122_vm4, %v1690_v4  ;;  %v875_v48 = vsel %vm6583_vm3, 0, %v871_v18 }
 0x1dc   :  { %849 = vst.msk [vmem:[#allocation2 + $0xb8] sm:$0xff] %vm827_vm11, %v780_v46  ;;  %v7806_v45 = vpop.f32.mrb[9].mxu0  ;;  %521 = vrot.lane.b32.xlu1 %v7461_v52, %s6294_s9  ;;  %v2256_v17 = vmul.f32 %v7802_v23, %v7802_v23  ;;  %v2131_v4 = vsel %vm2111_vm1, %v7802_v23, 0.0 }
 0x1dd   :  { %v2127_v1 = vsel %vm2111_vm1, %v7806_v45, 0.0  ;;  %v2254_v38 = vmul.f32 %v7806_v45, %v7806_v45  ;;  %1099 = vrot.lane.b32.xlu0 %v7461_v52, %s6298_s12  ;;  %v7816_v14 = vpop.f32.mrb[10].mxu0 }
 0x1de   :  { %v2128_v15 = vadd.f32 %v2127_v1, %v2126_v61  ;;  %v7818_v51 = vpop.f32.mrb[11].mxu0  ;;  %v1084_v8 = vpop.permute.xlu1 %1083  ;;  %v2257_v46 = vmul.f32 %v7816_v14, %v7816_v14 }
 0x1df   :  { %v2325_v41 = vsel %vm2111_vm1, %v2254_v38, 0.0  ;;  %v2129_v32 = vsel %vm2111_vm1, %v7818_v51, 0.0  ;;  %v2255_v7 = vmul.f32 %v7818_v51, %v7818_v51  ;;  %v955_v6 = vpop.permute.xlu0 %954  ;;  %1158 = vst.msk [vmem:[#allocation2 + $0xb0] sm:$0xff] %vm1135_vm12, %v1084_v8  ;;  %v1691_v12 = vld [vmem:[#allocation2 + $0xa8] sm:$0xff] }
 0x1e0   :  { %v2326_v20 = vadd.f32 %v2325_v41, %v2324_v39  ;;  %v2130_v61 = vadd.f32 %v2129_v32, %v2128_v15  ;;  %1028 = vst.msk [vmem:[#allocation2 + $0xb8] sm:$0xff] %vm1004_vm10, %v955_v6  ;;  %6096 = vmatmul.mubr.msk.bf16.gmra.mrb[8].mxu1 %vm122_vm4, %v1691_v12  ;;  %795 = vrot.lane.b32.xlu1 %v706_v35, %s6297_s11  ;;  %v1170_v39 = vrot.slane %v869_v60, 1  ;;  %v2329_v41 = vsel %vm2111_vm1, %v2256_v17, 0.0 }
 0x1e1   :  { %v2327_v1 = vsel %vm2111_vm1, %v2255_v7, 0.0  ;;  %1238 = vrot.lane.b32.xlu0 %v706_v35, %s6299_s15  ;;  %v2133_v32 = vsel %vm2111_vm1, %v7816_v14, 0.0  ;;  %v2331_v35 = vsel %vm2111_vm1, %v2257_v46, 0.0 }
 0x1e2   :  { %v2132_v38 = vadd.f32 %v2131_v4, %v2130_v61  ;;  %v2328_v15 = vadd.f32 %v2327_v1, %v2326_v20  ;;  %v1223_v8 = vpop.permute.xlu1 %1222  ;;  %v1171_v60 = vor.u32 %v1170_v39, %v866_v30 }
 0x1e3   :  { %v1086_v18 = vpop.permute.xlu0 %1085  ;;  %1297 = vst.msk [vmem:[#allocation2 + $0xb0] sm:$0xff] %vm1274_vm13, %v1223_v8 }
 0x1e4   :  { %v2330_v6 = vadd.f32 %v2329_v41, %v2328_v15  ;;  %1159 = vst.msk [vmem:[#allocation2 + $0xb8] sm:$0xff] %vm1135_vm12, %v1086_v18  ;;  %970 = vrot.lane.b32.xlu1 %v875_v48, %s6296_s10  ;;  %v2134_v7 = vadd.f32 %v2133_v32, %v2132_v38  ;;  %v1175_v61 = vsel %vm6975_vm7, %v1171_v60, 0 }
 0x1e5   :  { %1365 = vrot.lane.b32.xlu0 %v875_v48, %s6300_s18 }
 0x1e6   :  { %v1350_v12 = vpop.permute.xlu1 %1349  ;;  %v2332_v20 = vadd.f32 %v2331_v35, %v2330_v6 }
 0x1e7   :  { %v1225_v17 = vpop.permute.xlu0 %1224  ;;  %1419 = vst.msk [vmem:[#allocation2 + $0xb0] sm:$0xff] %vm1397_vm14, %v1350_v12 }
 0x1e8   :  { %1298 = vst.msk [vmem:[#allocation2 + $0xb8] sm:$0xff] %vm1274_vm13, %v1225_v17  ;;  %1101 = vrot.lane.b32.xlu1 %v7782_v56, %s6298_s12 }
 0x1e9   :  { %1486 = vrot.lane.b32.xlu0 %v7782_v56, %s6301_s21 }
 0x1ea   :  { %v1471_v4 = vpop.permute.xlu1 %1470 }
 0x1eb   :  { %v1352_v46 = vpop.permute.xlu0 %1351  ;;  %1540 = vst.msk [vmem:[#allocation2 + $0xb0] sm:$0xff] %vm1518_vm15, %v1471_v4 }
 0x1ec   :  { %1420 = vst.msk [vmem:[#allocation2 + $0xb8] sm:$0xff] %vm1397_vm14, %v1352_v46  ;;  %1240 = vrot.lane.b32.xlu1 %v1175_v61, %s6299_s15 }
 0x1ed   :  { %1607 = vrot.lane.b32.xlu0 %v1175_v61, %s6302_s1 }
 0x1ee   :  { %v1592_v30 = vpop.permute.xlu1 %1591 }
 0x1ef   :  { %v1473_v48 = vpop.permute.xlu0 %1472  ;;  %1661 = vst.msk [vmem:[#allocation2 + $0xb0] sm:$0xff] %vm1639_vm0, %v1592_v30 }
 0x1f0   :  { %1541 = vst.msk [vmem:[#allocation2 + $0xb8] sm:$0xff] %vm1518_vm15, %v1473_v48 }
 0x1f2   :  { %v782_v1 = vpop.permute.xlu1 %781 }
 0x1f3   :  { %v1594_v39 = vpop.permute.xlu0 %1593  ;;  %850 = vst.msk [vmem:[#allocation2 + $0xc0] sm:$0xff] %vm827_vm11, %v782_v1 }
 0x1f4   :  { %1662 = vst.msk [vmem:[#allocation2 + $0xb8] sm:$0xff] %vm1639_vm0, %v1594_v39 }
 0x1f6   :  { %v957_v38 = vpop.permute.xlu1 %956  ;;  %v1692_v15 = vld [vmem:[#allocation2 + $0xb0] sm:$0xff] }
 0x1f7   :  { %v784_v8 = vpop.permute.xlu0 %783  ;;  %1029 = vst.msk [vmem:[#allocation2 + $0xc0] sm:$0xff] %vm1004_vm10, %v957_v38  ;;  %v7864_v41 = vpop.f32.mrb[12].mxu0  ;;  %6099 = vmatprep.mubr.msk.bf16.mxu1 %vm122_vm4, %v1692_v15 }
 0x1f8   :  { %851 = vst.msk [vmem:[#allocation2 + $0xc8] sm:$0xff] %vm827_vm11, %v784_v8  ;;  %v7868_v32 = vpop.f32.mrb[13].mxu0  ;;  %v2260_v61 = vmul.f32 %v7864_v41, %v7864_v41  ;;  %v2139_v38 = vsel %vm2111_vm1, %v7864_v41, 0.0 }
 0x1f9   :  { %v2135_v18 = vsel %vm2111_vm1, %v7868_v32, 0.0  ;;  %v2258_v6 = vmul.f32 %v7868_v32, %v7868_v32  ;;  %v7874_v35 = vpop.f32.mrb[14].mxu0 }
 0x1fa   :  { %v2136_v60 = vadd.f32 %v2135_v18, %v2134_v7  ;;  %v7876_v12 = vpop.f32.mrb[15].mxu0  ;;  %v1088_v17 = vpop.permute.xlu1 %1087  ;;  %v2261_v15 = vmul.f32 %v7874_v35, %v7874_v35 }
 0x1fb   :  { %v2333_v4 = vsel %vm2111_vm1, %v2258_v6, 0.0  ;;  %v2137_v46 = vsel %vm2111_vm1, %v7876_v12, 0.0  ;;  %v2259_v30 = vmul.f32 %v7876_v12, %v7876_v12  ;;  %v959_v48 = vpop.permute.xlu0 %958  ;;  %1160 = vst.msk [vmem:[#allocation2 + $0xc0] sm:$0xff] %vm1135_vm12, %v1088_v17  ;;  %v1693_v1 = vld [vmem:[#allocation2 + $0xb8] sm:$0xff]  ;;  %v2337_v17 = vsel %vm2111_vm1, %v2260_v61, 0.0 }
 0x1fc   :  { %v2334_v39 = vadd.f32 %v2333_v4, %v2332_v20  ;;  %v2138_v7 = vadd.f32 %v2137_v46, %v2136_v60  ;;  %1030 = vst.msk [vmem:[#allocation2 + $0xc8] sm:$0xff] %vm1004_vm10, %v959_v48  ;;  %6100 = vmatmul.mubr.msk.bf16.gmra.mrb[12].mxu1 %vm122_vm4, %v1693_v1  ;;  %v2141_v20 = vsel %vm2111_vm1, %v7874_v35, 0.0  ;;  %v2339_v48 = vsel %vm2111_vm1, %v2261_v15, 0.0 }
 0x1fd   :  { %v2335_v8 = vsel %vm2111_vm1, %v2259_v30, 0.0 }
 0x1fe   :  { %v2140_v18 = vadd.f32 %v2139_v38, %v2138_v7  ;;  %v2336_v6 = vadd.f32 %v2335_v8, %v2334_v39  ;;  %v1227_v56 = vpop.permute.xlu1 %1226 }
 0x1ff   :  { %v1090_v60 = vpop.permute.xlu0 %1089  ;;  %1299 = vst.msk [vmem:[#allocation2 + $0xc0] sm:$0xff] %vm1274_vm13, %v1227_v56 }
 0x200   :  { %v2338_v4 = vadd.f32 %v2337_v17, %v2336_v6  ;;  %1161 = vst.msk [vmem:[#allocation2 + $0xc8] sm:$0xff] %vm1135_vm12, %v1090_v60  ;;  %v2142_v46 = vadd.f32 %v2141_v20, %v2140_v18 }
 0x202   :  { %v1354_v1 = vpop.permute.xlu1 %1353  ;;  %v2340_v52 = vadd.f32 %v2339_v48, %v2338_v4 }
 0x203   :  { %v1229_v30 = vpop.permute.xlu0 %1228  ;;  %1421 = vst.msk [vmem:[#allocation2 + $0xc0] sm:$0xff] %vm1397_vm14, %v1354_v1 }
 0x204   :  { %1300 = vst.msk [vmem:[#allocation2 + $0xc8] sm:$0xff] %vm1274_vm13, %v1229_v30 }
 0x206   :  { %v1475_v61 = vpop.permute.xlu1 %1474 }
 0x207   :  { %v1356_v39 = vpop.permute.xlu0 %1355  ;;  %1542 = vst.msk [vmem:[#allocation2 + $0xc0] sm:$0xff] %vm1518_vm15, %v1475_v61 }
 0x208   :  { %1422 = vst.msk [vmem:[#allocation2 + $0xc8] sm:$0xff] %vm1397_vm14, %v1356_v39 }
 0x20a   :  { %v1596_v56 = vpop.permute.xlu1 %1595 }
 0x20b   :  { %v1477_v7 = vpop.permute.xlu0 %1476  ;;  %1663 = vst.msk [vmem:[#allocation2 + $0xc0] sm:$0xff] %vm1639_vm0, %v1596_v56 }
 0x20c   :  { %1543 = vst.msk [vmem:[#allocation2 + $0xc8] sm:$0xff] %vm1518_vm15, %v1477_v7 }
 0x20e   :  { %v786_v38 = vpop.permute.xlu1 %785 }
 0x20f   :  { %v1598_v15 = vpop.permute.xlu0 %1597  ;;  %852 = vst.msk [vmem:[#allocation2 + $0xd0] sm:$0xff] %vm827_vm11, %v786_v38 }
 0x210   :  { %1664 = vst.msk [vmem:[#allocation2 + $0xc8] sm:$0xff] %vm1639_vm0, %v1598_v15 }
 0x212   :  { %v961_v8 = vpop.permute.xlu1 %960  ;;  %v1694_v18 = vld [vmem:[#allocation2 + $0xc0] sm:$0xff] }
 0x213   :  { %v788_v6 = vpop.permute.xlu0 %787  ;;  %1031 = vst.msk [vmem:[#allocation2 + $0xd0] sm:$0xff] %vm1004_vm10, %v961_v8  ;;  %v7908_v17 = vpop.f32.mrb[16].mxu0  ;;  %6103 = vmatprep.mubr.msk.bf16.mxu1 %vm122_vm4, %v1694_v18 }
 0x214   :  { %853 = vst.msk [vmem:[#allocation2 + $0xd8] sm:$0xff] %vm827_vm11, %v788_v6  ;;  %v7912_v20 = vpop.f32.mrb[17].mxu0  ;;  %v2264_v39 = vmul.f32 %v7908_v17, %v7908_v17  ;;  %v2147_v6 = vsel %vm2111_vm1, %v7908_v17, 0.0 }
 0x215   :  { %v2143_v60 = vsel %vm2111_vm1, %v7912_v20, 0.0  ;;  %v2262_v4 = vmul.f32 %v7912_v20, %v7912_v20  ;;  %v7918_v48 = vpop.f32.mrb[18].mxu0 }
 0x216   :  { %v2144_v1 = vadd.f32 %v2143_v60, %v2142_v46  ;;  %v7920_v30 = vpop.f32.mrb[19].mxu0  ;;  %v1092_v61 = vpop.permute.xlu1 %1091  ;;  %v2265_v60 = vmul.f32 %v7918_v48, %v7918_v48 }
 0x217   :  { %v2341_v56 = vsel %vm2111_vm1, %v2262_v4, 0.0  ;;  %v2145_v7 = vsel %vm2111_vm1, %v7920_v30, 0.0  ;;  %v2263_v38 = vmul.f32 %v7920_v30, %v7920_v30  ;;  %v963_v15 = vpop.permute.xlu0 %962  ;;  %1162 = vst.msk [vmem:[#allocation2 + $0xd0] sm:$0xff] %vm1135_vm12, %v1092_v61  ;;  %v1695_v8 = vld [vmem:[#allocation2 + $0xc8] sm:$0xff]  ;;  %v2345_v61 = vsel %vm2111_vm1, %v2264_v39, 0.0 }
 0x218   :  { %v2342_v18 = vadd.f32 %v2341_v56, %v2340_v52  ;;  %v2146_v46 = vadd.f32 %v2145_v7, %v2144_v1  ;;  %1032 = vst.msk [vmem:[#allocation2 + $0xd8] sm:$0xff] %vm1004_vm10, %v963_v15  ;;  %6104 = vmatmul.mubr.msk.bf16.gmra.mrb[16].mxu1 %vm122_vm4, %v1695_v8  ;;  %v2149_v52 = vsel %vm2111_vm1, %v7918_v48, 0.0  ;;  %v2347_v15 = vsel %vm2111_vm1, %v2265_v60, 0.0 }
 0x219   :  { %v2343_v4 = vsel %vm2111_vm1, %v2263_v38, 0.0 }
 0x21a   :  { %v2148_v13 = vadd.f32 %v2147_v6, %v2146_v46  ;;  %v2344_v53 = vadd.f32 %v2343_v4, %v2342_v18  ;;  %v1231_v29 = vpop.permute.xlu1 %1230 }
 0x21b   :  { %v1094_v1 = vpop.permute.xlu0 %1093  ;;  %1301 = vst.msk [vmem:[#allocation2 + $0xd0] sm:$0xff] %vm1274_vm13, %v1231_v29 }
 0x21c   :  { %v2346_v56 = vadd.f32 %v2345_v61, %v2344_v53  ;;  %1163 = vst.msk [vmem:[#allocation2 + $0xd8] sm:$0xff] %vm1135_vm12, %v1094_v1  ;;  %v2150_v7 = vadd.f32 %v2149_v52, %v2148_v13 }
 0x21e   :  { %v1358_v8 = vpop.permute.xlu1 %1357  ;;  %v2348_v5 = vadd.f32 %v2347_v15, %v2346_v56 }
 0x21f   :  { %v1233_v38 = vpop.permute.xlu0 %1232  ;;  %1423 = vst.msk [vmem:[#allocation2 + $0xd0] sm:$0xff] %vm1397_vm14, %v1358_v8 }
 0x220   :  { %1302 = vst.msk [vmem:[#allocation2 + $0xd8] sm:$0xff] %vm1274_vm13, %v1233_v38 }
 0x222   :  { %v1479_v39 = vpop.permute.xlu1 %1478 }
 0x223   :  { %v1360_v18 = vpop.permute.xlu0 %1359  ;;  %1544 = vst.msk [vmem:[#allocation2 + $0xd0] sm:$0xff] %vm1518_vm15, %v1479_v39 }
 0x224   :  { %1424 = vst.msk [vmem:[#allocation2 + $0xd8] sm:$0xff] %vm1397_vm14, %v1360_v18 }
 0x226   :  { %v1600_v29 = vpop.permute.xlu1 %1599 }
 0x227   :  { %v1481_v53 = vpop.permute.xlu0 %1480  ;;  %1665 = vst.msk [vmem:[#allocation2 + $0xd0] sm:$0xff] %vm1639_vm0, %v1600_v29 }
 0x228   :  { %1545 = vst.msk [vmem:[#allocation2 + $0xd8] sm:$0xff] %vm1518_vm15, %v1481_v53 }
 0x22a   :  { %v790_v13 = vpop.permute.xlu1 %789 }
 0x22b   :  { %v1602_v46 = vpop.permute.xlu0 %1601  ;;  %854 = vst.msk [vmem:[#allocation2 + $0xe0] sm:$0xff] %vm827_vm11, %v790_v13 }
 0x22c   :  { %1666 = vst.msk [vmem:[#allocation2 + $0xd8] sm:$0xff] %vm1639_vm0, %v1602_v46 }
 0x22e   :  { %v965_v6 = vpop.permute.xlu1 %964  ;;  %v1696_v60 = vld [vmem:[#allocation2 + $0xd0] sm:$0xff] }
 0x22f   :  { %v792_v4 = vpop.permute.xlu0 %791  ;;  %1033 = vst.msk [vmem:[#allocation2 + $0xe0] sm:$0xff] %vm1004_vm10, %v965_v6  ;;  %v7952_v61 = vpop.f32.mrb[20].mxu0  ;;  %6107 = vmatprep.mubr.msk.bf16.mxu1 %vm122_vm4, %v1696_v60 }
 0x230   :  { %855 = vst.msk [vmem:[#allocation2 + $0xe8] sm:$0xff] %vm827_vm11, %v792_v4  ;;  %v7956_v52 = vpop.f32.mrb[21].mxu0  ;;  %v2268_v18 = vmul.f32 %v7952_v61, %v7952_v61  ;;  %v2155_v4 = vsel %vm2111_vm1, %v7952_v61, 0.0 }
 0x231   :  { %v2151_v1 = vsel %vm2111_vm1, %v7956_v52, 0.0  ;;  %v2266_v56 = vmul.f32 %v7956_v52, %v7956_v52  ;;  %v7962_v15 = vpop.f32.mrb[22].mxu0 }
 0x232   :  { %v2152_v8 = vadd.f32 %v2151_v1, %v2150_v7  ;;  %v7964_v38 = vpop.f32.mrb[23].mxu0  ;;  %v1096_v39 = vpop.permute.xlu1 %1095  ;;  %v2269_v1 = vmul.f32 %v7962_v15, %v7962_v15 }
 0x233   :  { %v2349_v29 = vsel %vm2111_vm1, %v2266_v56, 0.0  ;;  %v2153_v53 = vsel %vm2111_vm1, %v7964_v38, 0.0  ;;  %v2267_v13 = vmul.f32 %v7964_v38, %v7964_v38  ;;  %v967_v46 = vpop.permute.xlu0 %966  ;;  %1164 = vst.msk [vmem:[#allocation2 + $0xe0] sm:$0xff] %vm1135_vm12, %v1096_v39  ;;  %v1697_v6 = vld [vmem:[#allocation2 + $0xd8] sm:$0xff]  ;;  %v2353_v39 = vsel %vm2111_vm1, %v2268_v18, 0.0 }
 0x234   :  { %v2350_v60 = vadd.f32 %v2349_v29, %v2348_v5  ;;  %v2154_v7 = vadd.f32 %v2153_v53, %v2152_v8  ;;  %1034 = vst.msk [vmem:[#allocation2 + $0xe8] sm:$0xff] %vm1004_vm10, %v967_v46  ;;  %6108 = vmatmul.mubr.msk.bf16.gmra.mrb[20].mxu1 %vm122_vm4, %v1697_v6  ;;  %v2157_v5 = vsel %vm2111_vm1, %v7962_v15, 0.0  ;;  %v2355_v46 = vsel %vm2111_vm1, %v2269_v1, 0.0 }
 0x235   :  { %v2351_v56 = vsel %vm2111_vm1, %v2267_v13, 0.0 }
 0x236   :  { %v2156_v33 = vadd.f32 %v2155_v4, %v2154_v7  ;;  %v2352_v42 = vadd.f32 %v2351_v56, %v2350_v60  ;;  %v1235_v2 = vpop.permute.xlu1 %1234 }
 0x237   :  { %v1098_v8 = vpop.permute.xlu0 %1097  ;;  %1303 = vst.msk [vmem:[#allocation2 + $0xe0] sm:$0xff] %vm1274_vm13, %v1235_v2 }
 0x238   :  { %v2354_v29 = vadd.f32 %v2353_v39, %v2352_v42  ;;  %1165 = vst.msk [vmem:[#allocation2 + $0xe8] sm:$0xff] %vm1135_vm12, %v1098_v8  ;;  %v2158_v53 = vadd.f32 %v2157_v5, %v2156_v33 }
 0x23a   :  { %v1362_v6 = vpop.permute.xlu1 %1361  ;;  %v2356_v55 = vadd.f32 %v2355_v46, %v2354_v29 }
 0x23b   :  { %v1237_v13 = vpop.permute.xlu0 %1236  ;;  %1425 = vst.msk [vmem:[#allocation2 + $0xe0] sm:$0xff] %vm1397_vm14, %v1362_v6 }
 0x23c   :  { %1304 = vst.msk [vmem:[#allocation2 + $0xe8] sm:$0xff] %vm1274_vm13, %v1237_v13 }
 0x23e   :  { %v1483_v18 = vpop.permute.xlu1 %1482 }
 0x23f   :  { %v1364_v60 = vpop.permute.xlu0 %1363  ;;  %1546 = vst.msk [vmem:[#allocation2 + $0xe0] sm:$0xff] %vm1518_vm15, %v1483_v18 }
 0x240   :  { %1426 = vst.msk [vmem:[#allocation2 + $0xe8] sm:$0xff] %vm1397_vm14, %v1364_v60 }
 0x242   :  { %v1604_v2 = vpop.permute.xlu1 %1603 }
 0x243   :  { %v1485_v42 = vpop.permute.xlu0 %1484  ;;  %1667 = vst.msk [vmem:[#allocation2 + $0xe0] sm:$0xff] %vm1639_vm0, %v1604_v2 }
 0x244   :  { %1547 = vst.msk [vmem:[#allocation2 + $0xe8] sm:$0xff] %vm1518_vm15, %v1485_v42 }
 0x246   :  { %v1606_v33 = vpop.permute.xlu1 %1605 }
 0x247   :  { %v520_v7 = vpop.permute.xlu0 %519  ;;  %1668 = vst.msk [vmem:[#allocation2 + $0xe8] sm:$0xff] %vm1639_vm0, %v1606_v33 }
 0x248   :  { %582 = vst.msk [vmem:[#allocation2 + $0xf0] sm:$0xff] %vm553_vm9, %v520_v7 }
 0x24a   :  { %v969_v4 = vpop.permute.xlu1 %968  ;;  %v1698_v1 = vld [vmem:[#allocation2 + $0xe0] sm:$0xff] }
 0x24b   :  { %v794_v56 = vpop.permute.xlu0 %793  ;;  %v7995_v39 = vpop.f32.mrb[24].mxu0  ;;  %6111 = vmatprep.mubr.msk.bf16.mxu1 %vm122_vm4, %v1698_v1 }
 0x24c   :  { %856 = vst.msk [vmem:[#allocation2 + $0xf0] sm:$0xff] %vm827_vm11, %v794_v56  ;;  %v7999_v5 = vpop.f32.mrb[25].mxu0  ;;  %v2272_v2 = vmul.f32 %v7995_v39, %v7995_v39  ;;  %v2163_v56 = vsel %vm2111_vm1, %v7995_v39, 0.0 }
 0x24d   :  { %1035 = vst.msk [vmem:[#allocation2 + $0xf0] sm:$0xff] %vm1004_vm10, %v969_v4  ;;  %v2159_v8 = vsel %vm2111_vm1, %v7999_v5, 0.0  ;;  %v2270_v29 = vmul.f32 %v7999_v5, %v7999_v5  ;;  %v8006_v46 = vpop.f32.mrb[26].mxu0 }
 0x24e   :  { %v2160_v6 = vadd.f32 %v2159_v8, %v2158_v53  ;;  %v8008_v13 = vpop.f32.mrb[27].mxu0  ;;  %v1699_v18 = vld [vmem:[#allocation2 + $0xe8] sm:$0xff]  ;;  %v522_v60 = vpop.permute.xlu1 %521  ;;  %v2273_v8 = vmul.f32 %v8006_v46, %v8006_v46  ;;  %v2361_v27 = vsel %vm2111_vm1, %v2272_v2, 0.0 }
 0x24f   :  { %v2357_v42 = vsel %vm2111_vm1, %v2270_v29, 0.0  ;;  %v2161_v33 = vsel %vm2111_vm1, %v8008_v13, 0.0  ;;  %v2271_v7 = vmul.f32 %v8008_v13, %v8008_v13  ;;  %v1100_v4 = vpop.permute.xlu0 %1099  ;;  %6112 = vmatmul.mubr.msk.bf16.gmra.mrb[24].mxu1 %vm122_vm4, %v1699_v18  ;;  %583 = vst.msk [vmem:[#allocation2 + $0xf8] sm:$0xff] %vm553_vm9, %v522_v60  ;;  %v2165_v18 = vsel %vm2111_vm1, %v8006_v46, 0.0 }
 0x250   :  { %v2358_v53 = vadd.f32 %v2357_v42, %v2356_v55  ;;  %v2162_v1 = vadd.f32 %v2161_v33, %v2160_v6  ;;  %1166 = vst.msk [vmem:[#allocation2 + $0xf0] sm:$0xff] %vm1135_vm12, %v1100_v4  ;;  %v2363_v42 = vsel %vm2111_vm1, %v2273_v8, 0.0  ;;  %vm3620_vm9 = vcmask 261312  }
 0x251   :  { %v2359_v29 = vsel %vm2111_vm1, %v2271_v7, 0.0 }
 0x252   :  { %v2164_v63 = vadd.f32 %v2163_v56, %v2162_v1  ;;  %v2360_v26 = vadd.f32 %v2359_v29, %v2358_v53  ;;  %v796_v49 = vpop.permute.xlu1 %795 }
 0x253   :  { %v1239_v55 = vpop.permute.xlu0 %1238  ;;  %857 = vst.msk [vmem:[#allocation2 + $0xf8] sm:$0xff] %vm827_vm11, %v796_v49  ;;  %vm3443_vm11 = vcmask 195712  }
 0x254   :  { %v2362_v6 = vadd.f32 %v2361_v27, %v2360_v26  ;;  %1305 = vst.msk [vmem:[#allocation2 + $0xf0] sm:$0xff] %vm1274_vm13, %v1239_v55  ;;  %v2166_v60 = vadd.f32 %v2165_v18, %v2164_v63 }
 0x256   :  { %v971_v33 = vpop.permute.xlu1 %970  ;;  %v2364_v4 = vadd.f32 %v2363_v42, %v2362_v6 }
 0x257   :  { %v1366_v7 = vpop.permute.xlu0 %1365  ;;  %1036 = vst.msk [vmem:[#allocation2 + $0xf8] sm:$0xff] %vm1004_vm10, %v971_v33  ;;  %vm3751_vm10 = vcmask 326912  }
 0x258   :  { %1427 = vst.msk [vmem:[#allocation2 + $0xf0] sm:$0xff] %vm1397_vm14, %v1366_v7  ;;  %vm4134_vm14 = vcmask 523712  }
 0x25a   :  { %v1102_v2 = vpop.permute.xlu1 %1101 }
 0x25b   :  { %v1487_v53 = vpop.permute.xlu0 %1486  ;;  %1167 = vst.msk [vmem:[#allocation2 + $0xf8] sm:$0xff] %vm1135_vm12, %v1102_v2  ;;  %vm3890_vm12 = vcmask 392512  }
 0x25c   :  { %1548 = vst.msk [vmem:[#allocation2 + $0xf0] sm:$0xff] %vm1518_vm15, %v1487_v53  ;;  %vm4255_vm15 = vcmask 589312  }
 0x25e   :  { %v1241_v49 = vpop.permute.xlu1 %1240 }
 0x25f   :  { %v1608_v27 = vpop.permute.xlu0 %1607  ;;  %1306 = vst.msk [vmem:[#allocation2 + $0xf8] sm:$0xff] %vm1274_vm13, %v1241_v49  ;;  %vm4013_vm13 = vcmask 458112  }
 0x260   :  { %1669 = vst.msk [vmem:[#allocation2 + $0xf0] sm:$0xff] %vm1639_vm0, %v1608_v27  ;;  %v8037_v26 = vpop.f32.mrb[28].mxu0 }
 0x261   :  { %v8039_v63 = vpop.f32.mrb[29].mxu0  ;;  %v2276_v55 = vmul.f32 %v8037_v26, %v8037_v26  ;;  %v2171_v53 = vsel %vm2111_vm1, %v8037_v26, 0.0 }
 0x262   :  { %v2167_v1 = vsel %vm2111_vm1, %v8039_v63, 0.0  ;;  %v2274_v56 = vmul.f32 %v8039_v63, %v8039_v63  ;;  %v8045_v8 = vpop.f32.mrb[30].mxu0 }
 0x263   :  { %v2168_v29 = vadd.f32 %v2167_v1, %v2166_v60  ;;  %v8047_v18 = vpop.f32.mrb[31].mxu0  ;;  %v2277_v60 = vmul.f32 %v8045_v8, %v8045_v8  ;;  %v2369_v19 = vsel %vm2111_vm1, %v2276_v55, 0.0  ;;  %v2173_v34 = vsel %vm2111_vm1, %v8045_v8, 0.0 }
 0x264   :  { %v2365_v6 = vsel %vm2111_vm1, %v2274_v56, 0.0  ;;  %v2169_v42 = vsel %vm2111_vm1, %v8047_v18, 0.0  ;;  %v2275_v33 = vmul.f32 %v8047_v18, %v8047_v18 }
 0x265   :  { %v2366_v7 = vadd.f32 %v2365_v6, %v2364_v4  ;;  %v2170_v2 = vadd.f32 %v2169_v42, %v2168_v29  ;;  %v2371_v6 = vsel %vm2111_vm1, %v2277_v60, 0.0 }
 0x266   :  { %v2367_v49 = vsel %vm2111_vm1, %v2275_v33, 0.0  ;;  %v1701_v27 = vld [vmem:[#allocation2 + $0xf8] sm:$0xff] }
 0x267   :  { %v2172_v1 = vadd.f32 %v2171_v53, %v2170_v2  ;;  %v2368_v28 = vadd.f32 %v2367_v49, %v2366_v7  ;;  %v1700_v56 = vld [vmem:[#allocation2 + $0xf0] sm:$0xff] }
 0x268   :  { %6115 = vmatprep.mubr.msk.bf16.mxu1 %vm122_vm4, %v1700_v56 }
 0x269   :  { %v2370_v4 = vadd.f32 %v2369_v19, %v2368_v28  ;;  %6116 = vmatmul.mubr.msk.bf16.gmra.mrb[28].mxu1 %vm122_vm4, %v1701_v27  ;;  %v2174_v29 = vadd.f32 %v2173_v34, %v2172_v1  ;;  %vm2747_vm4 = vcmask 588800  }
 0x26b   :  { %v2372_v42 = vadd.f32 %v2371_v6, %v2370_v4 }
 0x27b   :  { %v8067_v21 = vpop.f32.mrb[0].mxu1 }
 0x27c   :  { %v8069_v33 = vpop.f32.mrb[1].mxu1  ;;  %v2280_v28 = vmul.f32 %v8067_v21, %v8067_v21  ;;  %v2179_v56 = vsel %vm2111_vm1, %v8067_v21, 0.0 }
 0x27d   :  { %v2175_v7 = vsel %vm2111_vm1, %v8069_v33, 0.0  ;;  %v2278_v55 = vmul.f32 %v8069_v33, %v8069_v33  ;;  %v8075_v2 = vpop.f32.mrb[2].mxu1 }
 0x27e   :  { %v2176_v53 = vadd.f32 %v2175_v7, %v2174_v29  ;;  %v8077_v19 = vpop.f32.mrb[3].mxu1  ;;  %v2281_v4 = vmul.f32 %v8075_v2, %v8075_v2  ;;  %v2181_v9 = vsel %vm2111_vm1, %v8075_v2, 0.0 }
 0x27f   :  { %v2373_v34 = vsel %vm2111_vm1, %v2278_v55, 0.0  ;;  %v2177_v60 = vsel %vm2111_vm1, %v8077_v19, 0.0  ;;  %v2279_v49 = vmul.f32 %v8077_v19, %v8077_v19  ;;  %v2377_v55 = vsel %vm2111_vm1, %v2280_v28, 0.0 }
 0x280   :  { %v2374_v27 = vadd.f32 %v2373_v34, %v2372_v42  ;;  %v2178_v1 = vadd.f32 %v2177_v60, %v2176_v53  ;;  %v2379_v42 = vsel %vm2111_vm1, %v2281_v4, 0.0 }
 0x281   :  { %v2375_v29 = vsel %vm2111_vm1, %v2279_v49, 0.0 }
 0x282   :  { %v2180_v6 = vadd.f32 %v2179_v56, %v2178_v1  ;;  %v2376_v7 = vadd.f32 %v2375_v29, %v2374_v27 }
 0x284   :  { %v2378_v11 = vadd.f32 %v2377_v55, %v2376_v7  ;;  %v2182_v57 = vadd.f32 %v2181_v9, %v2180_v6 }
 0x286   :  { %v2380_v53 = vadd.f32 %v2379_v42, %v2378_v11 }
 0x297   :  { %v8095_v34 = vpop.f32.mrb[4].mxu1 }
 0x298   :  { %v8097_v60 = vpop.f32.mrb[5].mxu1  ;;  %v2284_v9 = vmul.f32 %v8095_v34, %v8095_v34  ;;  %v2187_v7 = vsel %vm2111_vm1, %v8095_v34, 0.0 }
 0x299   :  { %v2183_v58 = vsel %vm2111_vm1, %v8097_v60, 0.0  ;;  %v2282_v49 = vmul.f32 %v8097_v60, %v8097_v60  ;;  %v8103_v27 = vpop.f32.mrb[6].mxu1 }
 0x29a   :  { %12409 = vst [vmem:[#allocation34_spill] sm:$0xff] %v8103_v27  ;;  %v2184_v28 = vadd.f32 %v2183_v58, %v2182_v57  ;;  %v8105_v1 = vpop.f32.mrb[7].mxu1  ;;  %v2285_v57 = vmul.f32 %v8103_v27, %v8103_v27  ;;  %v2189_v43 = vsel %vm2111_vm1, %v8103_v27, 0.0 }
 0x29b   :  { %v2381_v11 = vsel %vm2111_vm1, %v2282_v49, 0.0  ;;  %v2185_v56 = vsel %vm2111_vm1, %v8105_v1, 0.0  ;;  %v2283_v4 = vmul.f32 %v8105_v1, %v8105_v1  ;;  %v2385_v49 = vsel %vm2111_vm1, %v2284_v9, 0.0 }
 0x29c   :  { %v2382_v29 = vadd.f32 %v2381_v11, %v2380_v53  ;;  %v2186_v6 = vadd.f32 %v2185_v56, %v2184_v28  ;;  %v2387_v53 = vsel %vm2111_vm1, %v2285_v57, 0.0 }
 0x29d   :  { %v2383_v58 = vsel %vm2111_vm1, %v2283_v4, 0.0 }
 0x29e   :  { %v2188_v55 = vadd.f32 %v2187_v7, %v2186_v6  ;;  %v2384_v42 = vadd.f32 %v2383_v58, %v2382_v29 }
 0x2a0   :  { %v2386_v50 = vadd.f32 %v2385_v49, %v2384_v42  ;;  %v2190_v36 = vadd.f32 %v2189_v43, %v2188_v55 }
 0x2a2   :  { %v2388_v28 = vadd.f32 %v2387_v53, %v2386_v50 }
 0x2b3   :  { %v8123_v11 = vpop.f32.mrb[8].mxu1 }
 0x2b4   :  { %12410 = vst [vmem:[#allocation35_spill] sm:$0xff] %v8123_v11  ;;  %v8125_v56 = vpop.f32.mrb[9].mxu1  ;;  %v2288_v43 = vmul.f32 %v8123_v11, %v8123_v11  ;;  %v2195_v42 = vsel %vm2111_vm1, %v8123_v11, 0.0 }
 0x2b5   :  { %12411 = vst [vmem:[#allocation38_spill] sm:$0xff] %v8125_v56  ;;  %v2191_v37 = vsel %vm2111_vm1, %v8125_v56, 0.0  ;;  %v2286_v4 = vmul.f32 %v8125_v56, %v8125_v56  ;;  %v8131_v29 = vpop.f32.mrb[10].mxu1 }
 0x2b6   :  { %12412 = vst [vmem:[#allocation39_spill] sm:$0xff] %v8131_v29  ;;  %v2192_v9 = vadd.f32 %v2191_v37, %v2190_v36  ;;  %v8133_v6 = vpop.f32.mrb[11].mxu1  ;;  %v2289_v36 = vmul.f32 %v8131_v29, %v8131_v29  ;;  %v2197_v25 = vsel %vm2111_vm1, %v8131_v29, 0.0 }
 0x2b7   :  { %12413 = vst [vmem:[#allocation40_spill] sm:$0xff] %v8133_v6  ;;  %v2389_v50 = vsel %vm2111_vm1, %v2286_v4, 0.0  ;;  %v2193_v7 = vsel %vm2111_vm1, %v8133_v6, 0.0  ;;  %v2287_v57 = vmul.f32 %v8133_v6, %v8133_v6  ;;  %v2393_v4 = vsel %vm2111_vm1, %v2288_v43, 0.0 }
 0x2b8   :  { %v2390_v58 = vadd.f32 %v2389_v50, %v2388_v28  ;;  %v2194_v55 = vadd.f32 %v2193_v7, %v2192_v9  ;;  %v2395_v28 = vsel %vm2111_vm1, %v2289_v36, 0.0 }
 0x2b9   :  { %v2391_v37 = vsel %vm2111_vm1, %v2287_v57, 0.0 }
 0x2ba   :  { %v2196_v49 = vadd.f32 %v2195_v42, %v2194_v55  ;;  %v2392_v53 = vadd.f32 %v2391_v37, %v2390_v58 }
 0x2bc   :  { %v2394_v31 = vadd.f32 %v2393_v4, %v2392_v53  ;;  %v2198_v10 = vadd.f32 %v2197_v25, %v2196_v49 }
 0x2be   :  { %v2396_v9 = vadd.f32 %v2395_v28, %v2394_v31 }
 0x2cf   :  { %v8151_v50 = vpop.f32.mrb[12].mxu1 }
 0x2d0   :  { %12414 = vst [vmem:[#allocation41_spill] sm:$0xff] %v8151_v50  ;;  %v8153_v7 = vpop.f32.mrb[13].mxu1  ;;  %v2292_v25 = vmul.f32 %v8151_v50, %v8151_v50  ;;  %v2203_v53 = vsel %vm2111_vm1, %v8151_v50, 0.0 }
 0x2d1   :  { %12415 = vst [vmem:[#allocation42_spill] sm:$0xff] %v8153_v7  ;;  %v2199_v3 = vsel %vm2111_vm1, %v8153_v7, 0.0  ;;  %v2290_v57 = vmul.f32 %v8153_v7, %v8153_v7  ;;  %v8159_v58 = vpop.f32.mrb[14].mxu1 }
 0x2d2   :  { %12416 = vst [vmem:[#allocation43_spill] sm:$0xff] %v8159_v58  ;;  %v2200_v43 = vadd.f32 %v2199_v3, %v2198_v10  ;;  %v8161_v55 = vpop.f32.mrb[15].mxu1  ;;  %v2293_v3 = vmul.f32 %v8159_v58, %v8159_v58  ;;  %v2205_v40 = vsel %vm2111_vm1, %v8159_v58, 0.0 }
 0x2d3   :  { %12417 = vst [vmem:[#allocation44_spill] sm:$0xff] %v8161_v55  ;;  %v2397_v31 = vsel %vm2111_vm1, %v2290_v57, 0.0  ;;  %v2201_v42 = vsel %vm2111_vm1, %v8161_v55, 0.0  ;;  %v2291_v36 = vmul.f32 %v8161_v55, %v8161_v55  ;;  %v2401_v57 = vsel %vm2111_vm1, %v2292_v25, 0.0 }
 0x2d4   :  { %v2398_v37 = vadd.f32 %v2397_v31, %v2396_v9  ;;  %v2202_v49 = vadd.f32 %v2201_v42, %v2200_v43  ;;  %v2403_v9 = vsel %vm2111_vm1, %v2293_v3, 0.0 }
 0x2d5   :  { %v2399_v10 = vsel %vm2111_vm1, %v2291_v36, 0.0 }
 0x2d6   :  { %v2204_v4 = vadd.f32 %v2203_v53, %v2202_v49  ;;  %v2400_v28 = vadd.f32 %v2399_v10, %v2398_v37 }
 0x2d8   :  { %v2402_v59 = vadd.f32 %v2401_v57, %v2400_v28  ;;  %v2206_v7 = vadd.f32 %v2205_v40, %v2204_v4 }
 0x2da   :  { %v2404_v43 = vadd.f32 %v2403_v9, %v2402_v59 }
 0x2eb   :  { %v8179_v31 = vpop.f32.mrb[16].mxu1 }
 0x2ec   :  { %12418 = vst [vmem:[#allocation45_spill] sm:$0xff] %v8179_v31  ;;  %v8181_v42 = vpop.f32.mrb[17].mxu1  ;;  %v2296_v40 = vmul.f32 %v8179_v31, %v8179_v31  ;;  %v2211_v28 = vsel %vm2111_vm1, %v8179_v31, 0.0 }
 0x2ed   :  { %12419 = vst [vmem:[#allocation46_spill] sm:$0xff] %v8181_v42  ;;  %v2207_v50 = vsel %vm2111_vm1, %v8181_v42, 0.0  ;;  %v2294_v36 = vmul.f32 %v8181_v42, %v8181_v42  ;;  %v8187_v37 = vpop.f32.mrb[18].mxu1 }
 0x2ee   :  { %12420 = vst [vmem:[#allocation47_spill] sm:$0xff] %v8187_v37  ;;  %v2208_v25 = vadd.f32 %v2207_v50, %v2206_v7  ;;  %v8189_v49 = vpop.f32.mrb[19].mxu1  ;;  %v2297_v50 = vmul.f32 %v8187_v37, %v8187_v37  ;;  %v2213_v42 = vsel %vm2111_vm1, %v8187_v37, 0.0 }
 0x2ef   :  { %12421 = vst [vmem:[#allocation48_spill] sm:$0xff] %v8189_v49  ;;  %v2405_v59 = vsel %vm2111_vm1, %v2294_v36, 0.0  ;;  %v2209_v53 = vsel %vm2111_vm1, %v8189_v49, 0.0  ;;  %v2295_v3 = vmul.f32 %v8189_v49, %v8189_v49  ;;  %v2409_v36 = vsel %vm2111_vm1, %v2296_v40, 0.0 }
 0x2f0   :  { %v2406_v10 = vadd.f32 %v2405_v59, %v2404_v43  ;;  %v2210_v4 = vadd.f32 %v2209_v53, %v2208_v25  ;;  %v2411_v43 = vsel %vm2111_vm1, %v2297_v50, 0.0 }
 0x2f1   :  { %v2407_v7 = vsel %vm2111_vm1, %v2295_v3, 0.0 }
 0x2f2   :  { %v2212_v57 = vadd.f32 %v2211_v28, %v2210_v4  ;;  %v2408_v9 = vadd.f32 %v2407_v7, %v2406_v10 }
 0x2f4   :  { %v2410_v58 = vadd.f32 %v2409_v36, %v2408_v9  ;;  %v2214_v55 = vadd.f32 %v2213_v42, %v2212_v57 }
 0x2f6   :  { %v2412_v25 = vadd.f32 %v2411_v43, %v2410_v58 }
 0x307   :  { %v8207_v59 = vpop.f32.mrb[20].mxu1 }
 0x308   :  { %12422 = vst [vmem:[#allocation49_spill] sm:$0xff] %v8207_v59  ;;  %v8209_v53 = vpop.f32.mrb[21].mxu1  ;;  %v2300_v42 = vmul.f32 %v8207_v59, %v8207_v59  ;;  %v2219_v9 = vsel %vm2111_vm1, %v8207_v59, 0.0 }
 0x309   :  { %12423 = vst [vmem:[#allocation50_spill] sm:$0xff] %v8209_v53  ;;  %v2215_v31 = vsel %vm2111_vm1, %v8209_v53, 0.0  ;;  %v2298_v3 = vmul.f32 %v8209_v53, %v8209_v53  ;;  %v8215_v10 = vpop.f32.mrb[22].mxu1 }
 0x30a   :  { %12424 = vst [vmem:[#allocation51_spill] sm:$0xff] %v8215_v10  ;;  %v2216_v40 = vadd.f32 %v2215_v31, %v2214_v55  ;;  %v8217_v4 = vpop.f32.mrb[23].mxu1  ;;  %v2301_v55 = vmul.f32 %v8215_v10, %v8215_v10  ;;  %v2221_v53 = vsel %vm2111_vm1, %v8215_v10, 0.0 }
 0x30b   :  { %12425 = vst [vmem:[#allocation52_spill] sm:$0xff] %v8217_v4  ;;  %v2413_v58 = vsel %vm2111_vm1, %v2298_v3, 0.0  ;;  %v2217_v28 = vsel %vm2111_vm1, %v8217_v4, 0.0  ;;  %v2299_v50 = vmul.f32 %v8217_v4, %v8217_v4  ;;  %v2417_v3 = vsel %vm2111_vm1, %v2300_v42, 0.0 }
 0x30c   :  { %v2414_v7 = vadd.f32 %v2413_v58, %v2412_v25  ;;  %v2218_v57 = vadd.f32 %v2217_v28, %v2216_v40  ;;  %v2419_v25 = vsel %vm2111_vm1, %v2301_v55, 0.0 }
 0x30d   :  { %v2415_v31 = vsel %vm2111_vm1, %v2299_v50, 0.0 }
 0x30e   :  { %v2220_v36 = vadd.f32 %v2219_v9, %v2218_v57  ;;  %v2416_v43 = vadd.f32 %v2415_v31, %v2414_v7 }
 0x310   :  { %v2418_v37 = vadd.f32 %v2417_v3, %v2416_v43  ;;  %v2222_v49 = vadd.f32 %v2221_v53, %v2220_v36 }
 0x312   :  { %v2420_v40 = vadd.f32 %v2419_v25, %v2418_v37 }
 0x322   :  { %v8235_v58 = vpop.f32.mrb[24].mxu1 }
 0x323   :  { %12426 = vst [vmem:[#allocation53_spill] sm:$0xff] %v8235_v58  ;;  %v8237_v28 = vpop.f32.mrb[25].mxu1  ;;  %v2304_v53 = vmul.f32 %v8235_v58, %v8235_v58  ;;  %v2227_v43 = vsel %vm2111_vm1, %v8235_v58, 0.0 }
 0x324   :  { %12427 = vst [vmem:[#allocation54_spill] sm:$0xff] %v8237_v28  ;;  %v2223_v59 = vsel %vm2111_vm1, %v8237_v28, 0.0  ;;  %v2302_v50 = vmul.f32 %v8237_v28, %v8237_v28  ;;  %v8243_v7 = vpop.f32.mrb[26].mxu1 }
 0x325   :  { %12428 = vst [vmem:[#allocation55_spill] sm:$0xff] %v8243_v7  ;;  %v2224_v42 = vadd.f32 %v2223_v59, %v2222_v49  ;;  %v8245_v57 = vpop.f32.mrb[27].mxu1  ;;  %v2305_v49 = vmul.f32 %v8243_v7, %v8243_v7  ;;  %v2229_v28 = vsel %vm2111_vm1, %v8243_v7, 0.0 }
 0x326   :  { %12429 = vst [vmem:[#allocation56_spill] sm:$0xff] %v8245_v57  ;;  %v2421_v37 = vsel %vm2111_vm1, %v2302_v50, 0.0  ;;  %v2225_v9 = vsel %vm2111_vm1, %v8245_v57, 0.0  ;;  %v2303_v55 = vmul.f32 %v8245_v57, %v8245_v57  ;;  %v2425_v50 = vsel %vm2111_vm1, %v2304_v53, 0.0 }
 0x327   :  { %v2422_v31 = vadd.f32 %v2421_v37, %v2420_v40  ;;  %v2226_v36 = vadd.f32 %v2225_v9, %v2224_v42  ;;  %v2427_v40 = vsel %vm2111_vm1, %v2305_v49, 0.0 }
 0x328   :  { %v2423_v59 = vsel %vm2111_vm1, %v2303_v55, 0.0 }
 0x329   :  { %v2228_v3 = vadd.f32 %v2227_v43, %v2226_v36  ;;  %v2424_v25 = vadd.f32 %v2423_v59, %v2422_v31 }
 0x32b   :  { %v2426_v10 = vadd.f32 %v2425_v50, %v2424_v25  ;;  %v2230_v4 = vadd.f32 %v2229_v28, %v2228_v3 }
 0x32d   :  { %v2428_v42 = vadd.f32 %v2427_v40, %v2426_v10 }
 0x33c   :  { %v8263_v37 = vpop.f32.mrb[28].mxu1 }
 0x33d   :  { %12430 = vst [vmem:[#allocation57_spill] sm:$0xff] %v8263_v37  ;;  %v2096_v9 = vpop.f32.mrb[29].mxu1  ;;  %v2308_v53 = vmul.f32 %v8263_v37, %v8263_v37  ;;  %v2235_v59 = vsel %vm2111_vm1, %v8263_v37, 0.0 }
 0x33e   :  { %v2231_v58 = vsel %vm2111_vm1, %v2096_v9, 0.0  ;;  %v2306_v57 = vmul.f32 %v2096_v9, %v2096_v9  ;;  %v8266_v29 = vpop.f32.mrb[30].mxu1 }
 0x33f   :  { %v2232_v55 = vadd.f32 %v2231_v58, %v2230_v4  ;;  %v2099_v31 = vpop.f32.mrb[31].mxu1  ;;  %v2309_v3 = vmul.f32 %v8266_v29, %v8266_v29  ;;  %v2433_v50 = vsel %vm2111_vm1, %v2308_v53, 0.0 }
 0x340   :  { %v2429_v36 = vsel %vm2111_vm1, %v2306_v57, 0.0  ;;  %v2233_v28 = vsel %vm2111_vm1, %v2099_v31, 0.0  ;;  %v2307_v43 = vmul.f32 %v2099_v31, %v2099_v31  ;;  %v2237_v57 = vsel %vm2111_vm1, %v8266_v29, 0.0 }
 0x341   :  { %v2430_v49 = vadd.f32 %v2429_v36, %v2428_v42  ;;  %v2234_v10 = vadd.f32 %v2233_v28, %v2232_v55  ;;  %v2435_v42 = vsel %vm2111_vm1, %v2309_v3, 0.0 }
 0x342   :  { %v2431_v25 = vsel %vm2111_vm1, %v2307_v43, 0.0 }
 0x343   :  { %v2236_v4 = vadd.f32 %v2235_v59, %v2234_v10  ;;  %v2432_v58 = vadd.f32 %v2431_v25, %v2430_v49  ;;  %v12431_v59 = vmov 0  }
 0x344   :  { %2750 = vst.msk [vmem:[#allocation2 + $0x78] sm:$0xff] %vm2747_vm4, %v12431_v59  ;;  %2748 = vst.msk [vmem:[#allocation2] sm:$0xff] %vm2747_vm4, %v12431_v59 }
 0x345   :  { %v2238_v40 = vadd.f32 %v2237_v57, %v2236_v4  ;;  %v2434_v7 = vadd.f32 %v2433_v50, %v2432_v58  ;;  %2749 = vst.msk [vmem:[#allocation2 + $0x80] sm:$0xff] %vm2747_vm4, %v12431_v59  ;;  %2751 = vst.msk [vmem:[#allocation2 + $0xf8] sm:$0xff] %vm2747_vm4, %v12431_v59  ;;  %v21_v4 = vld [vmem:[%s11993_s4] sm:$0x1] }
 0x347   :  { %v2239_v55 = vrot.slane %v2238_v40, 4  ;;  %v2436_v36 = vadd.f32 %v2435_v42, %v2434_v7 }
 0x349   :  { %v2240_v28 = vadd.f32 %v2239_v55, %v2238_v40  ;;  %v2437_v37 = vrot.slane %v2436_v36, 4  ;;  %v22_v40 = vld [vmem:[%s11993_s4 + $0x1] sm:$0x1] }
 0x34b   :  { %v2241_v11 = vrot.slane %v2240_v28, 2  ;;  %v2438_v6 = vadd.f32 %v2437_v37, %v2436_v36 }
 0x34d   :  { %v2242_v56 = vadd.f32 %v2241_v11, %v2240_v28  ;;  %v2439_v27 = vrot.slane %v2438_v6, 2 }
 0x34f   :  { %v2243_v43 = vrot.slane %v2242_v56, 1  ;;  %v2440_v10 = vadd.f32 %v2439_v27, %v2438_v6 }
 0x351   :  { %v2244_v49 = vadd.f32 %v2243_v43, %v2242_v56  ;;  %v2441_v53 = vrot.slane %v2440_v10, 1  ;;  %v2451_v56 = vlaneseq }
 0x353   :  { %v2245_v7 = vmul.f32 0.001953125, %v2244_v49  ;;  %v2442_v11 = vadd.f32 %v2441_v53, %v2440_v10  ;;  %v2452_v25 = vshrl.u32 %v2451_v56, 7 }
 0x355   :  { %v2443_v37 = vmul.f32 0.001953125, %v2442_v11  ;;  %v2444_v3 = vmul.f32 %v2245_v7, %v2245_v7  ;;  %v8292_v58 = vsub.s32 0, %v2452_v25  ;;  %v12434_v25 = vld [vmem:[#allocation34_spill] sm:$0xff] }
 0x357   :  { %v2445_v27 = vsub.f32 %v2443_v37, %v2444_v3  ;;  %12432 = vst [vmem:[#allocation58_spill] sm:$0xff] %v8292_v58 }
 0x359   :  { %v2446_v6 = vadd.f32 0.8, %v2445_v27 }
 0x35b   :  { %6290 = vrsqrt.f32 %v2446_v6 }
 0x365   :  { %v6291_v50 = vpop.eup %6290 }
 0x366   :  { %v2448_v57 = vmul.f32 %v6291_v50, %v21_v4  ;;  %v12435_v4 = vld [vmem:[#allocation38_spill] sm:$0xff]  ;;  %v12436_v50 = vld [vmem:[#allocation40_spill] sm:$0xff] }
 0x368   :  { %v2449_v42 = vmul.f32 %v2448_v57, %v2245_v7  ;;  %v8298_v55 = vrot.slane %v2448_v57, %v8292_v58  ;;  %v12437_v57 = vld [vmem:[#allocation35_spill] sm:$0xff] }
 0x36a   :  { %v2450_v36 = vsub.f32 %v22_v40, %v2449_v42  ;;  %v2515_v28 = vmul.f32 %v8298_v55, %v2096_v9  ;;  %v2516_v43 = vmul.f32 %v8298_v55, %v2099_v31  ;;  %v8304_v10 = vmul.f32 %v8298_v55, %v7647_v22  ;;  %v12438_v40 = vld [vmem:[#allocation39_spill] sm:$0xff]  ;;  %v12439_v42 = vld [vmem:[#allocation42_spill] sm:$0xff] }
 0x36b   :  { %v8308_v49 = vmul.f32 %v8298_v55, %v7657_v62  ;;  %v8312_v53 = vmul.f32 %v7643_v54, %v8298_v55  ;;  %v8316_v59 = vmul.f32 %v7655_v44, %v8298_v55  ;;  %v8320_v9 = vmul.f32 %v8298_v55, %v7723_v47 }
 0x36c   :  { %v8323_v31 = vrot.slane %v2450_v36, %v8292_v58  ;;  %v8327_v22 = vmul.f32 %v8298_v55, %v7735_v24  ;;  %v8331_v62 = vmul.f32 %v7719_v0, %v8298_v55  ;;  %v8335_v54 = vmul.f32 %v7733_v16, %v8298_v55  ;;  %v12453_v58 = vld [vmem:[#allocation49_spill] sm:$0xff] }
 0x36d   :  { %v8339_v44 = vmul.f32 %v8298_v55, %v7806_v45  ;;  %v8343_v47 = vmul.f32 %v8298_v55, %v7818_v51  ;;  %v8347_v24 = vmul.f32 %v7802_v23, %v8298_v55  ;;  %v8351_v0 = vmul.f32 %v7816_v14, %v8298_v55 }
 0x36e   :  { %v2583_v7 = vadd.f32 %v8323_v31, %v2515_v28  ;;  %v2584_v16 = vadd.f32 %v8323_v31, %v2516_v43  ;;  %v8357_v45 = vmul.f32 %v8298_v55, %v7868_v32  ;;  %v8361_v51 = vmul.f32 %v8298_v55, %v7876_v12  ;;  %v12440_v28 = vld [vmem:[#allocation44_spill] sm:$0xff] }
 0x36f   :  { %v8365_v23 = vmul.f32 %v7864_v41, %v8298_v55  ;;  %v8369_v14 = vmul.f32 %v7874_v35, %v8298_v55  ;;  %v8373_v11 = vmul.f32 %v8298_v55, %v7912_v20  ;;  %v8377_v32 = vmul.f32 %v8298_v55, %v7920_v30 }
 0x370   :  { %v2647_v37 = vmul.f32 0.2, %v2583_v7  ;;  %v2648_v3 = vmul.f32 0.2, %v2584_v16  ;;  %v8381_v12 = vmul.f32 %v7908_v17, %v8298_v55  ;;  %v8385_v41 = vmul.f32 %v7918_v48, %v8298_v55 }
 0x371   :  { %v8389_v35 = vmul.f32 %v8298_v55, %v7956_v52  ;;  %v8393_v20 = vmul.f32 %v8298_v55, %v7964_v38  ;;  %v8397_v30 = vmul.f32 %v7952_v61, %v8298_v55  ;;  %v8401_v17 = vmul.f32 %v7962_v15, %v8298_v55 }
 0x372   :  { %v2711_v27 = vmax.f32 %v2583_v7, %v2647_v37  ;;  %v2712_v6 = vmax.f32 %v2584_v16, %v2648_v3  ;;  %v8405_v48 = vmul.f32 %v8298_v55, %v7999_v5  ;;  %v8409_v52 = vmul.f32 %v8298_v55, %v8008_v13  ;;  %v12441_v7 = vld [vmem:[#allocation41_spill] sm:$0xff]  ;;  %v12442_v37 = vld [vmem:[#allocation43_spill] sm:$0xff] }
 0x373   :  { %v8413_v38 = vmul.f32 %v7995_v39, %v8298_v55  ;;  %v8417_v61 = vmul.f32 %v8006_v46, %v8298_v55  ;;  %v8421_v15 = vmul.f32 %v8298_v55, %v8039_v63  ;;  %v8425_v5 = vmul.f32 %v8298_v55, %v8047_v18 }
 0x374   :  { %v8427_v56 = vpack.c.bf16 %v2712_v6, %v2711_v27  ;;  %v8431_v13 = vmul.f32 %v8037_v26, %v8298_v55  ;;  %v8435_v39 = vmul.f32 %v8045_v8, %v8298_v55  ;;  %v8439_v46 = vmul.f32 %v8298_v55, %v8069_v33  ;;  %v12443_v27 = vld [vmem:[#allocation46_spill] sm:$0xff] }
 0x375   :  { %v8443_v63 = vmul.f32 %v8298_v55, %v8077_v19  ;;  %v8447_v18 = vmul.f32 %v8067_v21, %v8298_v55  ;;  %v8451_v26 = vmul.f32 %v8075_v2, %v8298_v55  ;;  %v8455_v8 = vmul.f32 %v8298_v55, %v8097_v60 }
 0x376   :  { %12433 = vst [vmem:[#allocation59_spill] sm:$0xff] %v8427_v56  ;;  %v8459_v33 = vmul.f32 %v8298_v55, %v8105_v1  ;;  %v8463_v19 = vmul.f32 %v8095_v34, %v8298_v55  ;;  %v8467_v21 = vmul.f32 %v12434_v25, %v8298_v55  ;;  %v8471_v2 = vmul.f32 %v8298_v55, %v12435_v4  ;;  %v12444_v25 = vld [vmem:[#allocation48_spill] sm:$0xff]  ;;  %v12455_v56 = vld [vmem:[#allocation51_spill] sm:$0xff] }
 0x377   :  { %v8475_v60 = vmul.f32 %v8298_v55, %v12436_v50  ;;  %v8479_v1 = vmul.f32 %v12437_v57, %v8298_v55  ;;  %v8483_v34 = vmul.f32 %v12438_v40, %v8298_v55  ;;  %v8487_v36 = vmul.f32 %v8298_v55, %v12439_v42  ;;  %v12445_v50 = vld [vmem:[#allocation45_spill] sm:$0xff]  ;;  %v12447_v40 = vld [vmem:[#allocation47_spill] sm:$0xff] }
 0x378   :  { %v8491_v43 = vmul.f32 %v8298_v55, %v12440_v28  ;;  %v8495_v16 = vmul.f32 %v12441_v7, %v8298_v55  ;;  %v8499_v3 = vmul.f32 %v12442_v37, %v8298_v55  ;;  %v8503_v6 = vmul.f32 %v8298_v55, %v12443_v27  ;;  %v12449_v28 = vld [vmem:[#allocation50_spill] sm:$0xff]  ;;  %v12451_v37 = vld [vmem:[#allocation52_spill] sm:$0xff] }
 0x379   :  { %v8507_v4 = vmul.f32 %v8298_v55, %v12444_v25  ;;  %v8511_v57 = vmul.f32 %v12445_v50, %v8298_v55  ;;  %v8515_v42 = vmul.f32 %v12447_v40, %v8298_v55  ;;  %v8519_v7 = vmul.f32 %v8298_v55, %v12449_v28 }
 0x37a   :  { %v8523_v27 = vmul.f32 %v8298_v55, %v12451_v37  ;;  %v8527_v25 = vmul.f32 %v12453_v58, %v8298_v55  ;;  %v8531_v50 = vmul.f32 %v12455_v56, %v8298_v55 }
 0x37b   :  { %12446 = vst [vmem:[#allocation34_spill] sm:$0xff] %v8511_v57  ;;  %12448 = vst [vmem:[#allocation38_spill] sm:$0xff] %v8515_v42  ;;  %v12456_v57 = vld [vmem:[#allocation54_spill] sm:$0xff]  ;;  %v12457_v42 = vld [vmem:[#allocation56_spill] sm:$0xff] }
 0x37c   :  { %12450 = vst [vmem:[#allocation40_spill] sm:$0xff] %v8519_v7  ;;  %12452 = vst [vmem:[#allocation35_spill] sm:$0xff] %v8523_v27  ;;  %v8535_v40 = vmul.f32 %v8298_v55, %v12456_v57  ;;  %v8539_v28 = vmul.f32 %v8298_v55, %v12457_v42  ;;  %v12459_v7 = vld [vmem:[#allocation53_spill] sm:$0xff]  ;;  %v12460_v27 = vld [vmem:[#allocation55_spill] sm:$0xff]  ;;  %v8555_v57 = vmul.f32 %v8266_v29, %v8298_v55 }
 0x37d   :  { %12454 = vst [vmem:[#allocation39_spill] sm:$0xff] %v8527_v25  ;;  %v8543_v37 = vmul.f32 %v12459_v7, %v8298_v55  ;;  %v8547_v58 = vmul.f32 %v12460_v27, %v8298_v55  ;;  %v12461_v25 = vld [vmem:[#allocation57_spill] sm:$0xff]  ;;  %v2525_v42 = vadd.f32 %v8323_v31, %v8312_v53  ;;  %v8563_v7 = vadd.f32 %v8323_v31, %v8304_v10 }
 0x37e   :  { %12458 = vst [vmem:[#allocation42_spill] sm:$0xff] %v8539_v28  ;;  %v8551_v56 = vmul.f32 %v12461_v25, %v8298_v55  ;;  %v2526_v28 = vadd.f32 %v8323_v31, %v8316_v59  ;;  %v8567_v27 = vadd.f32 %v8323_v31, %v8308_v49  ;;  %v8571_v25 = vadd.f32 %v8323_v31, %v8320_v9 }
 0x37f   :  { %v8575_v29 = vadd.f32 %v8323_v31, %v8327_v22  ;;  %v8579_v55 = vadd.f32 %v8323_v31, %v8331_v62  ;;  %v2589_v53 = vmul.f32 0.2, %v2525_v42  ;;  %v8583_v10 = vadd.f32 %v8323_v31, %v8335_v54 }
 0x380   :  { %12462 = vst [vmem:[#allocation44_spill] sm:$0xff] %v8571_v25  ;;  %v2590_v59 = vmul.f32 0.2, %v2526_v28  ;;  %v8587_v49 = vadd.f32 %v8323_v31, %v8339_v44  ;;  %v8591_v9 = vadd.f32 %v8323_v31, %v8343_v47  ;;  %v8595_v22 = vadd.f32 %v8323_v31, %v8347_v24 }
 0x381   :  { %12463 = vst [vmem:[#allocation41_spill] sm:$0xff] %v8575_v29  ;;  %12464 = vst [vmem:[#allocation43_spill] sm:$0xff] %v8579_v55  ;;  %v8599_v62 = vadd.f32 %v8323_v31, %v8351_v0  ;;  %v8603_v54 = vadd.f32 %v8323_v31, %v8357_v45  ;;  %v8607_v44 = vadd.f32 %v8323_v31, %v8361_v51 }
 0x382   :  { %12465 = vst [vmem:[#allocation46_spill] sm:$0xff] %v8583_v10  ;;  %12466 = vst [vmem:[#allocation48_spill] sm:$0xff] %v8587_v49  ;;  %v2653_v10 = vmax.f32 %v2525_v42, %v2589_v53  ;;  %v2654_v55 = vmax.f32 %v2526_v28, %v2590_v59  ;;  %v8611_v47 = vadd.f32 %v8323_v31, %v8365_v23  ;;  %v12489_v42 = vld [vmem:[#allocation34_spill] sm:$0xff] }
 0x383   :  { %12467 = vst [vmem:[#allocation45_spill] sm:$0xff] %v8591_v9  ;;  %12468 = vst [vmem:[#allocation47_spill] sm:$0xff] %v8595_v22  ;;  %v8615_v24 = vadd.f32 %v8323_v31, %v8369_v14  ;;  %v8619_v0 = vadd.f32 %v8323_v31, %v8373_v11  ;;  %v8623_v45 = vadd.f32 %v8323_v31, %v8377_v32  ;;  %v12493_v53 = vld [vmem:[#allocation40_spill] sm:$0xff]  ;;  %v12495_v59 = vld [vmem:[#allocation35_spill] sm:$0xff] }
 0x384   :  { %12469 = vst [vmem:[#allocation50_spill] sm:$0xff] %v8599_v62  ;;  %12470 = vst [vmem:[#allocation52_spill] sm:$0xff] %v8603_v54  ;;  %v8627_v51 = vadd.f32 %v8323_v31, %v8381_v12  ;;  %v8629_v28 = vpack.c.bf16 %v2654_v55, %v2653_v10  ;;  %v8633_v23 = vadd.f32 %v8323_v31, %v8385_v41  ;;  %v12491_v55 = vld [vmem:[#allocation38_spill] sm:$0xff]  ;;  %v12497_v10 = vld [vmem:[#allocation39_spill] sm:$0xff] }
 0x385   :  { %12471 = vst [vmem:[#allocation49_spill] sm:$0xff] %v8607_v44  ;;  %12472 = vst [vmem:[#allocation51_spill] sm:$0xff] %v8611_v47  ;;  %v8637_v14 = vadd.f32 %v8323_v31, %v8389_v35  ;;  %v8641_v11 = vadd.f32 %v8323_v31, %v8393_v20  ;;  %v8645_v32 = vadd.f32 %v8323_v31, %v8397_v30 }
 0x386   :  { %12473 = vst [vmem:[#allocation54_spill] sm:$0xff] %v8623_v45  ;;  %12474 = vst [vmem:[#allocation56_spill] sm:$0xff] %v8627_v51  ;;  %v8649_v12 = vadd.f32 %v8323_v31, %v8401_v17  ;;  %v8653_v41 = vadd.f32 %v8323_v31, %v8405_v48  ;;  %v8657_v35 = vadd.f32 %v8323_v31, %v8409_v52  ;;  %3084 = vrot.lane.b32.xlu1 %v8629_v28, %s6297_s11 }
 0x387   :  { %12475 = vst [vmem:[#allocation53_spill] sm:$0xff] %v8629_v28  ;;  %12476 = vst [vmem:[#allocation55_spill] sm:$0xff] %v8637_v14  ;;  %v8663_v20 = vadd.f32 %v8323_v31, %v8413_v38  ;;  %v8667_v30 = vadd.f32 %v8323_v31, %v8417_v61  ;;  %v8671_v17 = vadd.f32 %v8323_v31, %v8421_v15  ;;  %v12501_v28 = vld [vmem:[#allocation42_spill] sm:$0xff] }
 0x388   :  { %12477 = vst [vmem:[#allocation57_spill] sm:$0xff] %v8641_v11  ;;  %v8675_v48 = vadd.f32 %v8323_v31, %v8425_v5  ;;  %v8679_v52 = vadd.f32 %v8323_v31, %v8431_v13  ;;  %v8683_v38 = vadd.f32 %v8323_v31, %v8435_v39  ;;  %v8687_v61 = vadd.f32 %v8323_v31, %v8439_v46 }
 0x389   :  { %12478 = vst [vmem:[#allocation60_spill] sm:$0xff] %v8667_v30  ;;  %v8691_v15 = vadd.f32 %v8323_v31, %v8443_v63  ;;  %v8695_v5 = vadd.f32 %v8323_v31, %v8447_v18  ;;  %v8699_v13 = vadd.f32 %v8323_v31, %v8451_v26  ;;  %v8703_v39 = vadd.f32 %v8323_v31, %v8455_v8 }
 0x38a   :  { %12479 = vst [vmem:[#allocation61_spill] sm:$0xff] %v8679_v52  ;;  %v8707_v46 = vadd.f32 %v8323_v31, %v8459_v33  ;;  %v8711_v63 = vadd.f32 %v8323_v31, %v8463_v19  ;;  %v8715_v18 = vadd.f32 %v8323_v31, %v8467_v21  ;;  %v8719_v26 = vadd.f32 %v8323_v31, %v8471_v2 }
 0x38b   :  { %12480 = vst [vmem:[#allocation62_spill] sm:$0xff] %v8691_v15  ;;  %12481 = vst [vmem:[#allocation63_spill] sm:$0xff] %v8703_v39  ;;  %v8723_v8 = vadd.f32 %v8323_v31, %v8475_v60  ;;  %v8727_v33 = vadd.f32 %v8323_v31, %v8479_v1  ;;  %v8731_v19 = vadd.f32 %v8323_v31, %v8483_v34 }
 0x38c   :  { %12482 = vst [vmem:[#allocation64_spill] sm:$0xff] %v8715_v18  ;;  %v8735_v21 = vadd.f32 %v8323_v31, %v8487_v36  ;;  %v8739_v2 = vadd.f32 %v8323_v31, %v8491_v43  ;;  %v8743_v60 = vadd.f32 %v8323_v31, %v8495_v16  ;;  %v8747_v1 = vadd.f32 %v8323_v31, %v8499_v3 }
 0x38d   :  { %12483 = vst [vmem:[#allocation65_spill] sm:$0xff] %v8727_v33  ;;  %v8751_v34 = vadd.f32 %v8323_v31, %v8503_v6  ;;  %v8755_v36 = vadd.f32 %v8323_v31, %v8507_v4  ;;  %v8759_v43 = vadd.f32 %v8323_v31, %v12489_v42  ;;  %v8763_v16 = vadd.f32 %v8323_v31, %v12491_v55 }
 0x38e   :  { %12484 = vst [vmem:[#allocation66_spill] sm:$0xff] %v8735_v21  ;;  %12485 = vst [vmem:[#allocation67_spill] sm:$0xff] %v8739_v2  ;;  %v8767_v3 = vadd.f32 %v8323_v31, %v12493_v53  ;;  %v8771_v6 = vadd.f32 %v8323_v31, %v12495_v59  ;;  %v8775_v4 = vadd.f32 %v8323_v31, %v12497_v10 }
 0x38f   :  { %12486 = vst [vmem:[#allocation68_spill] sm:$0xff] %v8747_v1  ;;  %12487 = vst [vmem:[#allocation69_spill] sm:$0xff] %v8751_v34  ;;  %v8779_v42 = vadd.f32 %v8323_v31, %v8531_v50  ;;  %v8783_v55 = vadd.f32 %v8323_v31, %v8535_v40  ;;  %v8787_v53 = vadd.f32 %v8323_v31, %v12501_v28  ;;  %v2588_v28 = vmul.f32 0.2, %v8567_v27 }
 0x390   :  { %12488 = vst [vmem:[#allocation70_spill] sm:$0xff] %v8755_v36  ;;  %12490 = vst [vmem:[#allocation34_spill] sm:$0xff] %v8759_v43  ;;  %v8791_v59 = vadd.f32 %v8323_v31, %v8543_v37  ;;  %v8795_v10 = vadd.f32 %v8323_v31, %v8547_v58  ;;  %v8799_v50 = vadd.f32 %v8323_v31, %v8551_v56  ;;  %v8811_v37 = vmul.f32 0.2, %v8575_v29  ;;  %v12509_v58 = vld [vmem:[#allocation43_spill] sm:$0xff] }
 0x391   :  { %12492 = vst [vmem:[#allocation38_spill] sm:$0xff] %v8763_v16  ;;  %12494 = vst [vmem:[#allocation40_spill] sm:$0xff] %v8767_v3  ;;  %v8803_v40 = vadd.f32 %v8323_v31, %v8555_v57  ;;  %v8818_v31 = vmul.f32 0.2, %v8587_v49  ;;  %v8821_v57 = vmul.f32 0.2, %v8591_v9 }
 0x392   :  { %12496 = vst [vmem:[#allocation35_spill] sm:$0xff] %v8771_v6  ;;  %12498 = vst [vmem:[#allocation39_spill] sm:$0xff] %v8775_v4  ;;  %v8827_v4 = vmul.f32 0.2, %v8599_v62  ;;  %v8830_v6 = vmul.f32 0.2, %v8603_v54 }
 0x393   :  { %12499 = vst [vmem:[#allocation71_spill] sm:$0xff] %v8779_v42  ;;  %12500 = vst [vmem:[#allocation72_spill] sm:$0xff] %v8783_v55  ;;  %v2587_v55 = vmul.f32 0.2, %v8563_v7  ;;  %v8845_v16 = vmul.f32 0.2, %v8619_v0 }
 0x394   :  { %12502 = vst [vmem:[#allocation42_spill] sm:$0xff] %v8787_v53  ;;  %12503 = vst [vmem:[#allocation73_spill] sm:$0xff] %v8791_v59  ;;  %v8808_v53 = vmul.f32 0.2, %v8571_v25  ;;  %v12510_v59 = vld [vmem:[#allocation46_spill] sm:$0xff] }
 0x395   :  { %12504 = vst [vmem:[#allocation74_spill] sm:$0xff] %v8795_v10  ;;  %12505 = vst [vmem:[#allocation75_spill] sm:$0xff] %v8799_v50  ;;  %v2593_v10 = vmul.f32 0.2, %v12509_v58  ;;  %v2594_v42 = vmul.f32 0.2, %v12510_v59  ;;  %v2651_v56 = vmax.f32 %v8563_v7, %v2587_v55  ;;  %v2652_v50 = vmax.f32 %v8567_v27, %v2588_v28 }
 0x396   :  { %12506 = vst [vmem:[#allocation76_spill] sm:$0xff] %v8803_v40  ;;  %12507 = vst [vmem:[#allocation77_spill] sm:$0xff] %v8808_v53  ;;  %v8824_v40 = vmul.f32 0.2, %v8595_v22  ;;  %v8836_v27 = vmul.f32 0.2, %v8607_v44 }
 0x397   :  { %12508 = vst [vmem:[#allocation78_spill] sm:$0xff] %v8811_v37  ;;  %12511 = vst [vmem:[#allocation43_spill] sm:$0xff] %v8818_v31  ;;  %v2657_v3 = vmax.f32 %v12509_v58, %v2593_v10  ;;  %v8833_v7 = vpack.c.bf16 %v2652_v50, %v2651_v56  ;;  %v8839_v55 = vmul.f32 0.2, %v8611_v47  ;;  %v8842_v28 = vmul.f32 0.2, %v8615_v24 }
 0x398   :  { %12512 = vst [vmem:[#allocation46_spill] sm:$0xff] %v8821_v57  ;;  %12513 = vst [vmem:[#allocation79_spill] sm:$0xff] %v8824_v40  ;;  %v8848_v43 = vmul.f32 0.2, %v8623_v45  ;;  %v8851_v36 = vmul.f32 0.2, %v8627_v51  ;;  %v2658_v10 = vmax.f32 %v12510_v59, %v2594_v42 }
 0x399   :  { %12514 = vst [vmem:[#allocation80_spill] sm:$0xff] %v8827_v4  ;;  %12515 = vst [vmem:[#allocation81_spill] sm:$0xff] %v8830_v6  ;;  %3082 = vrot.lane.b32.xlu0 %v8833_v7, %s6297_s11  ;;  %v8857_v50 = vmul.f32 0.2, %v8633_v23  ;;  %v8860_v58 = vmul.f32 0.2, %v8637_v14 }
 0x39a   :  { %12516 = vst [vmem:[#allocation82_spill] sm:$0xff] %v8833_v7  ;;  %12517 = vst [vmem:[#allocation83_spill] sm:$0xff] %v8836_v27  ;;  %v8863_v56 = vmul.f32 0.2, %v8641_v11  ;;  %v8868_v51 = vmul.f32 0.2, %v8645_v32  ;;  %v8876_v7 = vpack.c.bf16 %v2658_v10, %v2657_v3  ;;  %v2666_v27 = vmax.f32 %v8615_v24, %v8842_v28 }
 0x39b   :  { %12518 = vst [vmem:[#allocation84_spill] sm:$0xff] %v8839_v55  ;;  %v8871_v42 = vmul.f32 0.2, %v8649_v12  ;;  %v8874_v59 = vmul.f32 0.2, %v8653_v41  ;;  %v12525_v54 = vld [vmem:[#allocation70_spill] sm:$0xff]  ;;  %v2667_v55 = vmax.f32 %v8619_v0, %v8845_v16 }
 0x39c   :  { %12519 = vst [vmem:[#allocation85_spill] sm:$0xff] %v8863_v56  ;;  %12520 = vst [vmem:[#allocation86_spill] sm:$0xff] %v8876_v7  ;;  %v8879_v14 = vmul.f32 0.2, %v8657_v35  ;;  %v8882_v11 = vmul.f32 0.2, %v8663_v20  ;;  %3088 = vrot.lane.b32.xlu1 %v8876_v7, %s6297_s11 }
 0x39d   :  { %v8885_v56 = vmul.f32 0.2, %v8667_v30  ;;  %v8890_v53 = vmul.f32 0.2, %v8671_v17  ;;  %v8893_v25 = vmul.f32 0.2, %v8675_v48 }
 0x39e   :  { %v8896_v3 = vmul.f32 0.2, %v8679_v52  ;;  %v8903_v30 = vmul.f32 0.2, %v8683_v38  ;;  %v8906_v45 = vmul.f32 0.2, %v8687_v61 }
 0x39f   :  { %v8909_v37 = vmul.f32 0.2, %v8691_v15  ;;  %v8914_v52 = vmul.f32 0.2, %v8695_v5  ;;  %v8917_v7 = vmul.f32 0.2, %v8699_v13 }
 0x3a0   :  { %v8920_v10 = vmul.f32 0.2, %v8703_v39  ;;  %v8925_v49 = vmul.f32 0.2, %v8707_v46  ;;  %v8928_v15 = vmul.f32 0.2, %v8711_v63 }
 0x3a1   :  { %v8931_v29 = vmul.f32 0.2, %v8715_v18  ;;  %v8936_v9 = vmul.f32 0.2, %v8719_v26  ;;  %v8939_v39 = vmul.f32 0.2, %v8723_v8 }
 0x3a2   :  { %v8942_v31 = vmul.f32 0.2, %v8727_v33  ;;  %v8947_v22 = vmul.f32 0.2, %v8731_v19  ;;  %v8950_v18 = vmul.f32 0.2, %v8735_v21 }
 0x3a3   :  { %v8953_v57 = vmul.f32 0.2, %v8739_v2  ;;  %v8958_v62 = vmul.f32 0.2, %v8743_v60  ;;  %v8961_v33 = vmul.f32 0.2, %v8747_v1 }
 0x3a4   :  { %12521 = vst [vmem:[#allocation87_spill] sm:$0xff] %v8950_v18  ;;  %v8964_v40 = vmul.f32 0.2, %v8751_v34  ;;  %v8969_v21 = vmul.f32 0.2, %v12525_v54  ;;  %v12526_v2 = vld [vmem:[#allocation34_spill] sm:$0xff] }
 0x3a5   :  { %12522 = vst [vmem:[#allocation88_spill] sm:$0xff] %v8953_v57  ;;  %12523 = vst [vmem:[#allocation89_spill] sm:$0xff] %v8961_v33  ;;  %v8972_v57 = vmul.f32 0.2, %v12526_v2  ;;  %v12528_v18 = vld [vmem:[#allocation38_spill] sm:$0xff]  ;;  %v12530_v44 = vld [vmem:[#allocation40_spill] sm:$0xff] }
 0x3a6   :  { %12524 = vst [vmem:[#allocation90_spill] sm:$0xff] %v8964_v40  ;;  %v8975_v4 = vmul.f32 0.2, %v12528_v18  ;;  %v8980_v1 = vmul.f32 0.2, %v12530_v44  ;;  %v12532_v34 = vld [vmem:[#allocation35_spill] sm:$0xff] }
 0x3a7   :  { %12527 = vst [vmem:[#allocation70_spill] sm:$0xff] %v8972_v57  ;;  %v8983_v40 = vmul.f32 0.2, %v12532_v34  ;;  %v12534_v33 = vld [vmem:[#allocation39_spill] sm:$0xff]  ;;  %v12537_v18 = vld [vmem:[#allocation72_spill] sm:$0xff]  ;;  %v12539_v57 = vld [vmem:[#allocation42_spill] sm:$0xff] }
 0x3a8   :  { %12529 = vst [vmem:[#allocation91_spill] sm:$0xff] %v8975_v4  ;;  %12531 = vst [vmem:[#allocation92_spill] sm:$0xff] %v8980_v1  ;;  %v8986_v6 = vmul.f32 0.2, %v12534_v33  ;;  %v12536_v47 = vld [vmem:[#allocation71_spill] sm:$0xff]  ;;  %v12541_v28 = vld [vmem:[#allocation54_spill] sm:$0xff] }
 0x3a9   :  { %12533 = vst [vmem:[#allocation93_spill] sm:$0xff] %v8983_v40  ;;  %v8991_v2 = vmul.f32 0.2, %v12536_v47  ;;  %v8994_v4 = vmul.f32 0.2, %v12537_v18  ;;  %v2668_v44 = vmax.f32 %v12541_v28, %v8848_v43  ;;  %v12542_v34 = vld [vmem:[#allocation73_spill] sm:$0xff] }
 0x3aa   :  { %12535 = vst [vmem:[#allocation94_spill] sm:$0xff] %v8986_v6  ;;  %v8997_v24 = vmul.f32 0.2, %v12539_v57  ;;  %v9002_v40 = vmul.f32 0.2, %v12542_v34  ;;  %v12544_v33 = vld [vmem:[#allocation74_spill] sm:$0xff]  ;;  %v2670_v57 = vmax.f32 %v8633_v23, %v8857_v50  ;;  %v2677_v23 = vmax.f32 %v8663_v20, %v8882_v11 }
 0x3ab   :  { %12538 = vst [vmem:[#allocation95_spill] sm:$0xff] %v8994_v4  ;;  %v9005_v6 = vmul.f32 0.2, %v12544_v33  ;;  %v12545_v1 = vld [vmem:[#allocation75_spill] sm:$0xff]  ;;  %v12546_v16 = vld [vmem:[#allocation56_spill] sm:$0xff]  ;;  %v12549_v34 = vld [vmem:[#allocation85_spill] sm:$0xff]  ;;  %v2673_v33 = vmax.f32 %v8645_v32, %v8868_v51  ;;  %v2680_v51 = vmax.f32 %v8675_v48, %v8893_v25  ;;  %v2685_v20 = vmax.f32 %v8695_v5, %v8914_v52 }
 0x3ac   :  { %12540 = vst [vmem:[#allocation96_spill] sm:$0xff] %v8997_v24  ;;  %12543 = vst [vmem:[#allocation54_spill] sm:$0xff] %v9002_v40  ;;  %v9008_v0 = vmul.f32 0.2, %v12545_v1  ;;  %v2669_v47 = vmax.f32 %v12546_v16, %v8851_v36  ;;  %v12547_v18 = vld [vmem:[#allocation76_spill] sm:$0xff]  ;;  %v12548_v43 = vld [vmem:[#allocation55_spill] sm:$0xff]  ;;  %v2674_v1 = vmax.f32 %v8649_v12, %v8871_v42  ;;  %v2675_v36 = vmax.f32 %v8653_v41, %v8874_v59 }
 0x3ad   :  { %v9013_v4 = vmul.f32 0.2, %v12547_v18  ;;  %v2671_v28 = vmax.f32 %v12548_v43, %v8860_v58  ;;  %v12550_v40 = vld [vmem:[#allocation57_spill] sm:$0xff]  ;;  %v2676_v16 = vmax.f32 %v8657_v35, %v8879_v14  ;;  %v12551_v50 = vld [vmem:[#allocation60_spill] sm:$0xff]  ;;  %v2682_v41 = vmax.f32 %v8683_v38, %v8903_v30  ;;  %v12553_v11 = vld [vmem:[#allocation62_spill] sm:$0xff] }
 0x3ae   :  { %v2672_v24 = vmax.f32 %v12550_v40, %v12549_v34  ;;  %v2678_v58 = vmax.f32 %v12551_v50, %v8885_v56  ;;  %v2679_v34 = vmax.f32 %v8671_v17, %v8890_v53  ;;  %v12552_v32 = vld [vmem:[#allocation61_spill] sm:$0xff]  ;;  %v2683_v14 = vmax.f32 %v8687_v61, %v8906_v45  ;;  %v12554_v25 = vld [vmem:[#allocation63_spill] sm:$0xff]  ;;  %v12555_v45 = vld [vmem:[#allocation64_spill] sm:$0xff] }
 0x3af   :  { %v2681_v12 = vmax.f32 %v12552_v32, %v8896_v3  ;;  %v2684_v35 = vmax.f32 %v12553_v11, %v8909_v37  ;;  %v2686_v17 = vmax.f32 %v8699_v13, %v8917_v7  ;;  %v2687_v48 = vmax.f32 %v12554_v25, %v8920_v10  ;;  %v12556_v5 = vld [vmem:[#allocation65_spill] sm:$0xff]  ;;  %v12557_v37 = vld [vmem:[#allocation87_spill] sm:$0xff]  ;;  %v12559_v7 = vld [vmem:[#allocation88_spill] sm:$0xff] }
 0x3b0   :  { %v2688_v53 = vmax.f32 %v8707_v46, %v8925_v49  ;;  %v2689_v30 = vmax.f32 %v8711_v63, %v8928_v15  ;;  %v2690_v38 = vmax.f32 %v12555_v45, %v8931_v29  ;;  %v2691_v61 = vmax.f32 %v8719_v26, %v8936_v9  ;;  %v12558_v49 = vld [vmem:[#allocation66_spill] sm:$0xff]  ;;  %v12560_v15 = vld [vmem:[#allocation67_spill] sm:$0xff]  ;;  %v12561_v56 = vld [vmem:[#allocation89_spill] sm:$0xff] }
 0x3b1   :  { %v2692_v52 = vmax.f32 %v8723_v8, %v8939_v39  ;;  %v2693_v13 = vmax.f32 %v12556_v5, %v8942_v31  ;;  %v2694_v40 = vmax.f32 %v8731_v19, %v8947_v22  ;;  %v2695_v46 = vmax.f32 %v12558_v49, %v12557_v37  ;;  %v12562_v9 = vld [vmem:[#allocation68_spill] sm:$0xff]  ;;  %v12563_v42 = vld [vmem:[#allocation90_spill] sm:$0xff]  ;;  %v12564_v39 = vld [vmem:[#allocation69_spill] sm:$0xff] }
 0x3b2   :  { %v2696_v63 = vmax.f32 %v12560_v15, %v12559_v7  ;;  %v2697_v29 = vmax.f32 %v8743_v60, %v8958_v62  ;;  %v2698_v26 = vmax.f32 %v12562_v9, %v12561_v56  ;;  %v2699_v8 = vmax.f32 %v12564_v39, %v12563_v42  ;;  %v12565_v59 = vld [vmem:[#allocation70_spill] sm:$0xff]  ;;  %v12567_v3 = vld [vmem:[#allocation91_spill] sm:$0xff]  ;;  %v12569_v50 = vld [vmem:[#allocation92_spill] sm:$0xff] }
 0x3b3   :  { %v2700_v31 = vmax.f32 %v12525_v54, %v8969_v21  ;;  %v12566_v22 = vld [vmem:[#allocation34_spill] sm:$0xff]  ;;  %v12570_v32 = vld [vmem:[#allocation40_spill] sm:$0xff]  ;;  %v12571_v25 = vld [vmem:[#allocation93_spill] sm:$0xff] }
 0x3b4   :  { %v2701_v19 = vmax.f32 %v12566_v22, %v12565_v59  ;;  %v12568_v10 = vld [vmem:[#allocation38_spill] sm:$0xff]  ;;  %v2703_v11 = vmax.f32 %v12570_v32, %v12569_v50  ;;  %v12572_v62 = vld [vmem:[#allocation35_spill] sm:$0xff]  ;;  %v12577_v54 = vld [vmem:[#allocation72_spill] sm:$0xff] }
 0x3b5   :  { %v2702_v43 = vmax.f32 %v12568_v10, %v12567_v3  ;;  %v2704_v60 = vmax.f32 %v12572_v62, %v12571_v25  ;;  %v12573_v45 = vld [vmem:[#allocation94_spill] sm:$0xff]  ;;  %v12574_v5 = vld [vmem:[#allocation39_spill] sm:$0xff]  ;;  %v12578_v56 = vld [vmem:[#allocation96_spill] sm:$0xff]  ;;  %v2714_v25 = vmax.f32 %v12547_v18, %v9013_v4 }
 0x3b6   :  { %v2705_v37 = vmax.f32 %v12574_v5, %v12573_v45  ;;  %v12575_v49 = vld [vmem:[#allocation71_spill] sm:$0xff]  ;;  %v12579_v9 = vld [vmem:[#allocation42_spill] sm:$0xff]  ;;  %v12581_v59 = vld [vmem:[#allocation73_spill] sm:$0xff] }
 0x3b7   :  { %v2706_v7 = vmax.f32 %v12575_v49, %v8991_v2  ;;  %v12576_v15 = vld [vmem:[#allocation95_spill] sm:$0xff]  ;;  %v2708_v42 = vmax.f32 %v12579_v9, %v12578_v56  ;;  %v12580_v39 = vld [vmem:[#allocation54_spill] sm:$0xff]  ;;  %v12584_v62 = vld [vmem:[#allocation44_spill] sm:$0xff] }
 0x3b8   :  { %v2707_v21 = vmax.f32 %v12577_v54, %v12576_v15  ;;  %v2709_v22 = vmax.f32 %v12581_v59, %v12580_v39  ;;  %v12582_v3 = vld [vmem:[#allocation74_spill] sm:$0xff]  ;;  %v12583_v50 = vld [vmem:[#allocation75_spill] sm:$0xff]  ;;  %v12585_v2 = vld [vmem:[#allocation77_spill] sm:$0xff] }
 0x3b9   :  { %v2710_v10 = vmax.f32 %v12582_v3, %v9005_v6  ;;  %v2713_v32 = vmax.f32 %v12583_v50, %v9008_v0  ;;  %v12586_v45 = vmax.f32 %v12584_v62, %v12585_v2  ;;  %v12587_v5 = vld [vmem:[#allocation41_spill] sm:$0xff]  ;;  %v12588_v49 = vld [vmem:[#allocation78_spill] sm:$0xff]  ;;  %v12591_v56 = vld [vmem:[#allocation48_spill] sm:$0xff] }
 0x3ba   :  { %v12589_v15 = vmax.f32 %v12587_v5, %v12588_v49  ;;  %v12592_v9 = vld [vmem:[#allocation43_spill] sm:$0xff]  ;;  %v12594_v59 = vld [vmem:[#allocation45_spill] sm:$0xff]  ;;  %v12595_v3 = vld [vmem:[#allocation46_spill] sm:$0xff] }
 0x3bb   :  { %v12593_v39 = vmax.f32 %v12591_v56, %v12592_v9  ;;  %v12596_v6 = vmax.f32 %v12594_v59, %v12595_v3  ;;  %v12598_v50 = vld [vmem:[#allocation47_spill] sm:$0xff]  ;;  %v12601_v2 = vld [vmem:[#allocation50_spill] sm:$0xff]  ;;  %v12602_v62 = vld [vmem:[#allocation80_spill] sm:$0xff] }
 0x3bc   :  { %v9107_v54 = vpack.c.bf16 %v12589_v15, %v12586_v45  ;;  %v12599_v4 = vld [vmem:[#allocation79_spill] sm:$0xff]  ;;  %v12603_v5 = vmax.f32 %v12601_v2, %v12602_v62  ;;  %v12604_v15 = vld [vmem:[#allocation52_spill] sm:$0xff]  ;;  %v12605_v45 = vld [vmem:[#allocation81_spill] sm:$0xff]  ;;  %v9140_v2 = vpack.c.bf16 %v2670_v57, %v2669_v47  ;;  %v9142_v62 = vpack.c.bf16 %v2672_v24, %v2671_v28 }
 0x3bd   :  { %v9115_v0 = vpack.c.bf16 %v12596_v6, %v12593_v39  ;;  %v12600_v18 = vmax.f32 %v12598_v50, %v12599_v4  ;;  %v12607_v9 = vld [vmem:[#allocation49_spill] sm:$0xff]  ;;  %v12608_v56 = vld [vmem:[#allocation83_spill] sm:$0xff]  ;;  %v12611_v39 = vld [vmem:[#allocation84_spill] sm:$0xff]  ;;  %v9138_v50 = vpack.c.bf16 %v2668_v44, %v2667_v55  ;;  %v9158_v44 = vpack.c.bf16 %v2688_v53, %v2687_v48 }
 0x3be   :  { %12590 = vst [vmem:[#allocation56_spill] sm:$0xff] %v9107_v54  ;;  %v12606_v54 = vmax.f32 %v12604_v15, %v12605_v45  ;;  %v12609_v3 = vmax.f32 %v12607_v9, %v12608_v56  ;;  %v12610_v6 = vld [vmem:[#allocation51_spill] sm:$0xff]  ;;  %v9148_v15 = vpack.c.bf16 %v2676_v16, %v2675_v36  ;;  %v9152_v45 = vpack.c.bf16 %v2680_v51, %v2679_v34 }
 0x3bf   :  { %12597 = vst [vmem:[#allocation76_spill] sm:$0xff] %v9115_v0  ;;  %v9123_v49 = vpack.c.bf16 %v12603_v5, %v12600_v18  ;;  %v12612_v0 = vmax.f32 %v12610_v6, %v12611_v39  ;;  %v9146_v5 = vpack.c.bf16 %v2674_v1, %v2673_v33  ;;  %v9154_v9 = vpack.c.bf16 %v2682_v41, %v2681_v12  ;;  %v12632_v41 = vld [vmem:[#allocation82_spill] sm:$0xff] }
 0x3c0   :  { %v9131_v59 = vpack.c.bf16 %v12609_v3, %v12606_v54  ;;  %12614 = vst [vmem:[#allocation55_spill] sm:$0xff] %v9148_v15  ;;  %v9150_v54 = vpack.c.bf16 %v2678_v58, %v2677_v23  ;;  %12615 = vst [vmem:[#allocation85_spill] sm:$0xff] %v9152_v45  ;;  %v9160_v47 = vpack.c.bf16 %v2690_v38, %v2689_v30  ;;  %v12634_v30 = vld [vmem:[#allocation86_spill] sm:$0xff] }
 0x3c1   :  { %v9136_v4 = vpack.c.bf16 %v2666_v27, %v12612_v0  ;;  %12616 = vst [vmem:[#allocation57_spill] sm:$0xff] %v9154_v9  ;;  %v9156_v27 = vpack.c.bf16 %v2686_v17, %v2685_v20  ;;  %12617 = vst [vmem:[#allocation60_spill] sm:$0xff] %v9158_v44  ;;  %3092 = vrot.lane.b32.xlu1 %v9123_v49, %s6297_s11  ;;  %v9164_v57 = vpack.c.bf16 %v2692_v52, %v2691_v61  ;;  %v12633_v17 = vld [vmem:[#allocation53_spill] sm:$0xff] }
 0x3c2   :  { %12618 = vst [vmem:[#allocation61_spill] sm:$0xff] %v9160_v47  ;;  %v9166_v33 = vpack.c.bf16 %v2694_v40, %v2693_v13  ;;  %v9168_v1 = vpack.c.bf16 %v2696_v63, %v2695_v46  ;;  %v9170_v55 = vpack.c.bf16 %v2698_v26, %v2697_v29  ;;  %v9172_v24 = vpack.c.bf16 %v2700_v31, %v2699_v8 }
 0x3c3   :  { %12619 = vst [vmem:[#allocation62_spill] sm:$0xff] %v9164_v57  ;;  %v9174_v28 = vpack.c.bf16 %v2702_v43, %v2701_v19  ;;  %v9176_v36 = vpack.c.bf16 %v2704_v60, %v2703_v11  ;;  %v9178_v16 = vpack.c.bf16 %v2706_v7, %v2705_v37  ;;  %v9180_v23 = vpack.c.bf16 %v2708_v42, %v2707_v21 }
 0x3c4   :  { %12620 = vst [vmem:[#allocation63_spill] sm:$0xff] %v9166_v33  ;;  %12621 = vst [vmem:[#allocation64_spill] sm:$0xff] %v9168_v1  ;;  %v9182_v58 = vpack.c.bf16 %v2710_v10, %v2709_v22  ;;  %v9184_v34 = vpack.c.bf16 %v2714_v25, %v2713_v32  ;;  %v9188_v12 = vpack.c.bf16 %v2684_v35, %v2683_v14  ;;  %v2753_v20 = vshrl.u32 %v12632_v41, 16 }
 0x3c5   :  { %v12613_v18 = vld [vmem:[#allocation56_spill] sm:$0xff]  ;;  %12622 = vst [vmem:[#allocation65_spill] sm:$0xff] %v9170_v55  ;;  %12623 = vst [vmem:[#allocation87_spill] sm:$0xff] %v9172_v24  ;;  %3096 = vrot.lane.b32.xlu1 %v9136_v4, %s6297_s11  ;;  %v12179_v48 = vshrl.u32 %v12633_v17, 16  ;;  %v12174_v38 = vshrl.u32 %v12634_v30, 16  ;;  %v2756_v61 = vshll.u32 %v12632_v41, 16 }
 0x3c6   :  { %3086 = vrot.lane.b32.xlu0 %v12613_v18, %s6297_s11  ;;  %12624 = vst [vmem:[#allocation66_spill] sm:$0xff] %v9174_v28  ;;  %12625 = vst [vmem:[#allocation88_spill] sm:$0xff] %v9176_v36  ;;  %v12630_v51 = vld [vmem:[#allocation76_spill] sm:$0xff]  ;;  %v12176_v53 = vshrl.u32 %v12613_v18, 16  ;;  %v2755_v52 = vrot.slane %v2753_v20, 7  ;;  %v12181_v14 = vshll.u32 %v12633_v17, 16 }
 0x3c7   :  { %12626 = vst [vmem:[#allocation67_spill] sm:$0xff] %v9178_v16  ;;  %12627 = vst [vmem:[#allocation89_spill] sm:$0xff] %v9180_v23  ;;  %v2762_v13 = vrot.slane %v12179_v48, 7  ;;  %v12178_v40 = vshll.u32 %v12613_v18, 16  ;;  %v2776_v46 = vrot.slane %v12174_v38, 7  ;;  %v12175_v63 = vshll.u32 %v12634_v30, 16 }
 0x3c8   :  { %12628 = vst [vmem:[#allocation68_spill] sm:$0xff] %v9182_v58  ;;  %12629 = vst [vmem:[#allocation90_spill] sm:$0xff] %v9184_v34  ;;  %v2769_v35 = vrot.slane %v12176_v53, 7  ;;  %v2758_v29 = vor.u32 %v2756_v61, %v2755_v52  ;;  %v12173_v7 = vshrl.u32 %v12630_v51, 16  ;;  %v2788_v21 = vshrl.u32 %v9123_v49, 16 }
 0x3c9   :  { %12631 = vst [vmem:[#allocation69_spill] sm:$0xff] %v9188_v12  ;;  %3100 = vrot.lane.b32.xlu1 %v9140_v2, %s6297_s11  ;;  %v2765_v26 = vor.u32 %v12181_v14, %v2762_v13  ;;  %v2779_v31 = vor.u32 %v12175_v63, %v2776_v46  ;;  %v2791_v42 = vshll.u32 %v9123_v49, 16  ;;  %v2795_v22 = vshrl.u32 %v9131_v59, 16 }
 0x3ca   :  { %3090 = vrot.lane.b32.xlu0 %v12630_v51, %s6297_s11  ;;  %v2772_v8 = vor.u32 %v12178_v40, %v2769_v35  ;;  %v9218_v43 = vsel %vm6583_vm3, 0, %v2758_v29  ;;  %v2798_v10 = vshll.u32 %v9131_v59, 16  ;;  %v2802_v32 = vshrl.u32 %v9136_v4, 16 }
 0x3cb   :  { %v9222_v11 = vsel %vm6583_vm3, 0, %v2765_v26  ;;  %3022 = vst.msk [vmem:[#allocation2 + $0x8] sm:$0xff] %vm2111_vm1, %v9218_v43  ;;  %v9236_v37 = vsel %vm6583_vm3, 0, %v2779_v31  ;;  %v2783_v25 = vrot.slane %v12173_v7, 7  ;;  %v12177_v0 = vshll.u32 %v12630_v51, 16 }
 0x3cc   :  { %3023 = vst.msk [vmem:[#allocation2 + $0x10] sm:$0xff] %vm2111_vm1, %v9222_v11  ;;  %v9232_v60 = vsel %vm6583_vm3, 0, %v2772_v8  ;;  %3025 = vst.msk [vmem:[#allocation2 + $0x20] sm:$0xff] %vm2111_vm1, %v9236_v37  ;;  %v2790_v56 = vrot.slane %v2788_v21, 7  ;;  %v3213_v3 = vrot.slane %v2791_v42, 1  ;;  %v2797_v6 = vrot.slane %v2795_v22, 7 }
 0x3cd   :  { %3104 = vrot.lane.b32.xlu1 %v9146_v5, %s6297_s11  ;;  %3024 = vst.msk [vmem:[#allocation2 + $0x18] sm:$0xff] %vm2111_vm1, %v9232_v60  ;;  %v3215_v39 = vrot.slane %v2798_v10, 1  ;;  %v2804_v52 = vrot.slane %v2802_v32, 7  ;;  %v2805_v13 = vshll.u32 %v9136_v4, 16  ;;  %v3203_v35 = vrot.slane %v2756_v61, 1 }
 0x3ce   :  { %3094 = vrot.lane.b32.xlu0 %v9131_v59, %s6297_s11  ;;  %v2786_v46 = vor.u32 %v12177_v0, %v2783_v25  ;;  %v2793_v29 = vor.u32 %v2791_v42, %v2790_v56  ;;  %v9260_v26 = vor.u32 %v3213_v3, %v2788_v21  ;;  %v2800_v8 = vor.u32 %v2798_v10, %v2797_v6 }
 0x3cf   :  { %v9262_v31 = vor.u32 %v3215_v39, %v2795_v22  ;;  %v2807_v7 = vor.u32 %v2805_v13, %v2804_v52  ;;  %v3217_v38 = vrot.slane %v2805_v13, 1  ;;  %v3204_v22 = vor.u32 %v3203_v35, %v2753_v20 }
 0x3d0   :  { %v9266_v63 = vsel %vm6583_vm3, 0, %v2786_v46  ;;  %v9270_v53 = vsel %vm6583_vm3, 0, %v2793_v29  ;;  %v9280_v61 = vsel %vm6583_vm3, 0, %v2800_v8  ;;  %v12180_v10 = vshrl.u32 %v9140_v2, 16 }
 0x3d1   :  { %3108 = vrot.lane.b32.xlu1 %v9150_v54, %s6297_s11  ;;  %3026 = vst.msk [vmem:[#allocation2 + $0x28] sm:$0xff] %vm2111_vm1, %v9266_v63  ;;  %3027 = vst.msk [vmem:[#allocation2 + $0x30] sm:$0xff] %vm2111_vm1, %v9270_v53  ;;  %v9284_v21 = vsel %vm6583_vm3, 0, %v2807_v7  ;;  %v9286_v42 = vor.u32 %v3217_v38, %v2802_v32  ;;  %v2819_v25 = vshll.u32 %v9140_v2, 16  ;;  %v2809_v56 = vshrl.u32 %v9138_v50, 16 }
 0x3d2   :  { %3098 = vrot.lane.b32.xlu0 %v9138_v50, %s6297_s11  ;;  %3028 = vst.msk [vmem:[#allocation2 + $0x38] sm:$0xff] %vm2111_vm1, %v9280_v61  ;;  %3029 = vst.msk [vmem:[#allocation2 + $0x40] sm:$0xff] %vm2111_vm1, %v9284_v21  ;;  %v2812_v7 = vshll.u32 %v9138_v50, 16  ;;  %v12182_v38 = vshrl.u32 %v9146_v5, 16  ;;  %v2833_v32 = vshll.u32 %v9146_v5, 16  ;;  %v12184_v20 = vshrl.u32 %v9142_v62, 16 }
 0x3d3   :  { %v2818_v3 = vrot.slane %v12180_v10, 7  ;;  %v2811_v6 = vrot.slane %v2809_v56, 7  ;;  %v2826_v39 = vshll.u32 %v9142_v62, 16  ;;  %v12186_v52 = vshrl.u32 %v9150_v54, 16 }
 0x3d4   :  { %v2832_v13 = vrot.slane %v12182_v38, 7  ;;  %v2825_v35 = vrot.slane %v12184_v20, 7  ;;  %v2847_v46 = vshll.u32 %v9150_v54, 16  ;;  %v2837_v29 = vshrl.u32 %v9148_v15, 16 }
 0x3d5   :  { %3112 = vrot.lane.b32.xlu1 %v9188_v12, %s6297_s11  ;;  %v2821_v8 = vor.u32 %v2819_v25, %v2818_v3  ;;  %v2814_v0 = vor.u32 %v2812_v7, %v2811_v6  ;;  %v2846_v40 = vrot.slane %v12186_v52, 7  ;;  %v2840_v48 = vshll.u32 %v9148_v15, 16 }
 0x3d6   :  { %3102 = vrot.lane.b32.xlu0 %v9142_v62, %s6297_s11  ;;  %v2835_v10 = vor.u32 %v2833_v32, %v2832_v13  ;;  %v2828_v14 = vor.u32 %v2826_v39, %v2825_v35  ;;  %v2839_v38 = vrot.slane %v2837_v29, 7  ;;  %v3219_v34 = vrot.slane %v2812_v7, 1 }
 0x3d7   :  { %v9320_v20 = vsel %vm6583_vm3, 0, %v2821_v8  ;;  %v9324_v9 = vsel %vm6583_vm3, 0, %v2814_v0  ;;  %v2858_v3 = vshrl.u32 %v9188_v12, 16 }
 0x3d8   :  { %3031 = vst.msk [vmem:[#allocation2 + $0x50] sm:$0xff] %vm2111_vm1, %v9320_v20  ;;  %3030 = vst.msk [vmem:[#allocation2 + $0x48] sm:$0xff] %vm2111_vm1, %v9324_v9  ;;  %v9335_v7 = vsel %vm6583_vm3, 0, %v2835_v10  ;;  %v9339_v0 = vsel %vm6583_vm3, 0, %v2828_v14  ;;  %v9341_v6 = vor.u32 %v3219_v34, %v2809_v56  ;;  %v2861_v14 = vshll.u32 %v9188_v12, 16  ;;  %v6285_v34 = vld [vmem:[%s11994_s2] sm:$0xff]  }
 0x3d9   :  { %3655 = vrot.lane.b32.xlu1 %v12632_v41, %s6302_s1  ;;  %v2849_v41 = vor.u32 %v2847_v46, %v2846_v40  ;;  %12636 = vst [vmem:[#allocation70_spill] sm:$0xff] %v9335_v7  ;;  %12637 = vst [vmem:[#allocation34_spill] sm:$0xff] %v9339_v0  ;;  %v2842_v40 = vor.u32 %v2840_v48, %v2839_v38  ;;  %v2860_v13 = vrot.slane %v2858_v3, 7  ;;  %v2851_v38 = vshrl.u32 %v9152_v45, 16 }
 0x3da   :  { %3106 = vrot.lane.b32.xlu0 %v9148_v15, %s6297_s11  ;;  %3033 = vst.msk [vmem:[#allocation2 + $0x60] sm:$0xff] %vm2111_vm1, %v9335_v7  ;;  %3032 = vst.msk [vmem:[#allocation2 + $0x58] sm:$0xff] %vm2111_vm1, %v9339_v0  ;;  %v2854_v15 = vshll.u32 %v9152_v45, 16  ;;  %6119 = vmatprep.subr.bf16.mxu1 %v6285_v34  ;;  %v3225_v7 = vrot.slane %v2833_v32, 1 }
 0x3db   :  { %v9351_v10 = vsel %vm6583_vm3, 0, %v2849_v41  ;;  %v9364_v35 = vsel %vm6583_vm3, 0, %v2842_v40  ;;  %v3293_v41 = vsel %vm6975_vm7, %v3204_v22, 0  ;;  %v2863_v52 = vor.u32 %v2861_v14, %v2860_v13  ;;  %6120 = vmatpush3.bf16.msra.mxu1 %v6285_v34 }
 0x3dc   :  { %12638 = vst [vmem:[#allocation91_spill] sm:$0xff] %v9351_v10  ;;  %3035 = vst.msk [vmem:[#allocation2 + $0x70] sm:$0xff] %vm2111_vm1, %v9351_v10  ;;  %v2853_v12 = vrot.slane %v2851_v38, 7  ;;  %v3221_v10 = vrot.slane %v2819_v25, 1  ;;  %v3223_v13 = vrot.slane %v2826_v39, 1  ;;  %v3227_v25 = vrot.slane %v2840_v48, 1 }
 0x3dd   :  { %3524 = vrot.lane.b32.xlu1 %v9218_v43, %s6300_s18  ;;  %v12639_v43 = vshll.u32 %v12633_v17, 16  ;;  %12640 = vst [vmem:[#allocation38_spill] sm:$0xff] %v9364_v35  ;;  %3034 = vst.msk [vmem:[#allocation2 + $0x68] sm:$0xff] %vm2111_vm1, %v9364_v35  ;;  %v9378_v22 = vsel %vm6583_vm3, 0, %v2863_v52  ;;  %v12644_v34 = vshrl.u32 %v12633_v17, 16  ;;  %v12645_v39 = vshrl.u32 %v9142_v62, 16 }
 0x3de   :  { %3110 = vrot.lane.b32.xlu0 %v9152_v45, %s6297_s11  ;;  %12642 = vst [vmem:[#allocation92_spill] sm:$0xff] %v9378_v22  ;;  %v2856_v40 = vor.u32 %v2854_v15, %v2853_v12  ;;  %3037 = vst.msk [vmem:[#allocation2 + $0x88] sm:$0xff] %vm2111_vm1, %v9378_v22  ;;  %v12643_v45 = vshrl.u32 %v9140_v2, 16  ;;  %v6287_v12 = vld [vmem:[%s11994_s2 + $0x10] sm:$0xff]   ;;  %v3229_v22 = vrot.slane %v2847_v46, 1  ;;  %v9407_v32 = vor.u32 %v3227_v25, %v2837_v29  ;;  %v6288_v29 = vld [vmem:[%s11994_s2 + $0x18] sm:$0xff]  }
 0x3df   :  { %v3205_v56 = vrot.slane %v12639_v43, 1  ;;  %v6286_v43 = vld [vmem:[%s11994_s2 + $0x8] sm:$0xff]   ;;  %v9397_v52 = vor.u32 %v3223_v13, %v12645_v39  ;;  %v12647_v46 = vshrl.u32 %v9150_v54, 16  ;;  %v3233_v13 = vrot.slane %v2861_v14, 1 }
 0x3e0   :  { %6121 = vmatprep.subr.bf16.mxu1 %v6286_v43  ;;  %v9384_v35 = vor.u32 %v3221_v10, %v12643_v45  ;;  %v12646_v45 = vshrl.u32 %v9146_v5, 16  ;;  %v3231_v10 = vrot.slane %v2854_v15, 1  ;;  %v2865_v15 = vshrl.u32 %v9156_v27, 16 }
 0x3e1   :  { %3794 = vrot.lane.b32.xlu1 %v3293_v41, %s6303_s23  ;;  %v3206_v0 = vor.u32 %v3205_v56, %v12644_v34  ;;  %6122 = vmatpush3.bf16.msra.mxu1 %v6286_v43  ;;  %v9413_v56 = vor.u32 %v3229_v22, %v12647_v46  ;;  %v2875_v14 = vshll.u32 %v9158_v44, 16  ;;  %v12648_v22 = vshll.u32 %v12613_v18, 16 }
 0x3e2   :  { %3657 = vrot.lane.b32.xlu0 %v12633_v17, %s6302_s1  ;;  %v9405_v48 = vor.u32 %v3225_v7, %v12646_v45  ;;  %6123 = vmatprep.subr.bf16.mxu1 %v6287_v12  ;;  %v2868_v7 = vshll.u32 %v9156_v27, 16 }
 0x3e3   :  { %v3294_v43 = vsel %vm6975_vm7, %v3206_v0, 0  ;;  %v2867_v0 = vrot.slane %v2865_v15, 7  ;;  %v3207_v25 = vrot.slane %v12648_v22, 1  ;;  %v3237_v46 = vrot.slane %v2875_v14, 1 }
 0x3e4   :  { %v3235_v34 = vrot.slane %v2868_v7, 1 }
 0x3e5   :  { %3923 = vrot.lane.b32.xlu1 %v9222_v11, %s6304_s26  ;;  %6124 = vmatpush3.bf16.msra.mxu1 %v6287_v12  ;;  %v6289_v12 = vld [vmem:[%s11994_s2 + $0x20] ss:$0 sps:$4 sm:$0xff]   ;;  %v2870_v45 = vor.u32 %v2868_v7, %v2867_v0  ;;  %v2882_v7 = vshll.u32 %v9160_v47, 16  ;;  %v2886_v0 = vshrl.u32 %v9164_v57, 16 }
 0x3e6   :  { %3353 = vrot.lane.b32.xlu0 %v3293_v41, %s6298_s12  ;;  %v9390_v41 = vsel %vm6583_vm3, 0, %v2856_v40  ;;  %v9415_v40 = vor.u32 %v3231_v10, %v2851_v38  ;;  %v2872_v38 = vshrl.u32 %v9158_v44, 16  ;;  %6125 = vmatprep.subr.bf16.mxu1 %v6288_v29  ;;  %v4452_v22 = vsel %vm4450_vm5, %v6289_v12, 0 }
 0x3e7   :  { %3036 = vst.msk [vmem:[#allocation2 + $0x78] sm:$0xff] %vm2111_vm1, %v9390_v41  ;;  %v9444_v44 = vsel %vm6583_vm3, 0, %v2870_v45  ;;  %v3239_v45 = vrot.slane %v2882_v7, 1 }
 0x3e8   :  { %v2874_v39 = vrot.slane %v2872_v38, 7  ;;  %3038 = vst.msk [vmem:[#allocation2 + $0x90] sm:$0xff] %vm2111_vm1, %v9444_v44 }
 0x3e9   :  { %4044 = vrot.lane.b32.xlu1 %v12633_v17, %s6305_s29  ;;  %6126 = vmatpush3.bf16.msra.mxu1 %v6288_v29  ;;  %v9439_v17 = vor.u32 %v3235_v34, %v2865_v15  ;;  %v12650_v29 = vshrl.u32 %v12613_v18, 16  ;;  %v9456_v34 = vor.u32 %v3237_v46, %v2872_v38  ;;  %v2900_v38 = vshrl.u32 %v9168_v1, 16 }
 0x3ea   :  { %3526 = vrot.lane.b32.xlu0 %v9222_v11, %s6300_s18  ;;  %v9424_v11 = vor.u32 %v3233_v13, %v2858_v3  ;;  %v2879_v3 = vshrl.u32 %v9160_v47, 16  ;;  %v2877_v10 = vor.u32 %v2875_v14, %v2874_v39  ;;  %6267 = vmatprep.subr.msk.bf16.mxu1 %vm4450_vm5, %v6289_v12  ;;  %v2889_v39 = vshll.u32 %v9164_v57, 16 }
 0x3eb   :  { %12649 = vst [vmem:[#allocation40_spill] sm:$0xff] %v9439_v17  ;;  %v3208_v15 = vor.u32 %v3207_v25, %v12650_v29  ;;  %12651 = vst [vmem:[#allocation93_spill] sm:$0xff] %v9456_v34  ;;  %v2888_v47 = vrot.slane %v2886_v0, 7  ;;  %v2893_v17 = vshrl.u32 %v9166_v33, 16  ;;  %v2902_v34 = vrot.slane %v2900_v38, 7 }
 0x3ec   :  { %v2881_v13 = vrot.slane %v2879_v3, 7  ;;  %v9454_v14 = vsel %vm6583_vm3, 0, %v2877_v10  ;;  %v3241_v25 = vrot.slane %v2889_v39, 1  ;;  %v2896_v10 = vshll.u32 %v9166_v33, 16 }
 0x3ed   :  { %4165 = vrot.lane.b32.xlu1 %v3294_v43, %s6306_s7  ;;  %3039 = vst.msk [vmem:[#allocation2 + $0x98] sm:$0xff] %vm2111_vm1, %v9454_v14  ;;  %6128 = vmatpush3.bf16.msra.mxu1 %v4452_v22  ;;  %v2895_v29 = vrot.slane %v2893_v17, 7  ;;  %v2903_v33 = vshll.u32 %v9168_v1, 16 }
 0x3ee   :  { %3796 = vrot.lane.b32.xlu0 %v3294_v43, %s6303_s23  ;;  %v2884_v12 = vor.u32 %v2882_v7, %v2881_v13  ;;  %v9471_v13 = vor.u32 %v3239_v45, %v2879_v3  ;;  %v2891_v7 = vor.u32 %v2889_v39, %v2888_v47  ;;  %v9475_v57 = vor.u32 %v3241_v25, %v2886_v0 }
 0x3ef   :  { %v3243_v22 = vrot.slane %v2896_v10, 1  ;;  %v2898_v3 = vor.u32 %v2896_v10, %v2895_v29  ;;  %v2907_v47 = vshrl.u32 %v9170_v55, 16  ;;  %v2905_v39 = vor.u32 %v2903_v33, %v2902_v34 }
 0x3f0   :  { %v9469_v46 = vsel %vm6583_vm3, 0, %v2884_v12  ;;  %v9482_v12 = vsel %vm6583_vm3, 0, %v2891_v7  ;;  %v3245_v45 = vrot.slane %v2903_v33, 1  ;;  %v2910_v10 = vshll.u32 %v9170_v55, 16 }
 0x3f1   :  { %3355 = vrot.lane.b32.xlu1 %v3294_v43, %s6298_s12  ;;  %3040 = vst.msk [vmem:[#allocation2 + $0xa0] sm:$0xff] %vm2111_vm1, %v9469_v46  ;;  %v3295_v43 = vsel %vm6975_vm7, %v3208_v15, 0  ;;  %3041 = vst.msk [vmem:[#allocation2 + $0xa8] sm:$0xff] %vm2111_vm1, %v9482_v12  ;;  %v9488_v0 = vor.u32 %v3243_v22, %v2893_v17  ;;  %v9494_v15 = vsel %vm6583_vm3, 0, %v2898_v3  ;;  %v2909_v25 = vrot.slane %v2907_v47, 7 }
 0x3f2   :  { %3925 = vrot.lane.b32.xlu0 %v9232_v60, %s6304_s26  ;;  %12653 = vst [vmem:[#allocation94_spill] sm:$0xff] %v9494_v15  ;;  %v2914_v7 = vshrl.u32 %v9172_v24, 16  ;;  %3042 = vst.msk [vmem:[#allocation2 + $0xb0] sm:$0xff] %vm2111_vm1, %v9494_v15  ;;  %v9502_v17 = vsel %vm6583_vm3, 0, %v2905_v39  ;;  %v9504_v33 = vor.u32 %v3245_v45, %v2900_v38  ;;  %v3247_v29 = vrot.slane %v2910_v10, 1 }
 0x3f3   :  { %12652 = vst [vmem:[#allocation35_spill] sm:$0xff] %v9488_v0  ;;  %12654 = vst [vmem:[#allocation39_spill] sm:$0xff] %v9502_v17  ;;  %v2912_v34 = vor.u32 %v2910_v10, %v2909_v25  ;;  %v2921_v3 = vshrl.u32 %v9174_v28, 16  ;;  %v12656_v55 = vshll.u32 %v12634_v30, 16  ;;  %v2924_v39 = vshll.u32 %v9174_v28, 16 }
 0x3f4   :  { %12655 = vst [vmem:[#allocation71_spill] sm:$0xff] %v9504_v33  ;;  %3043 = vst.msk [vmem:[#allocation2 + $0xb8] sm:$0xff] %vm2111_vm1, %v9502_v17  ;;  %v2916_v22 = vrot.slane %v2914_v7, 7  ;;  %v2928_v38 = vshrl.u32 %v9176_v36, 16  ;;  %v9521_v25 = vor.u32 %v3247_v29, %v2907_v47  ;;  %v2931_v17 = vshll.u32 %v9176_v36, 16 }
 0x3f5   :  { %3528 = vrot.lane.b32.xlu1 %v9232_v60, %s6300_s18  ;;  %v2917_v60 = vshll.u32 %v9172_v24, 16  ;;  %v3209_v1 = vrot.slane %v12656_v55, 1  ;;  %v9519_v45 = vsel %vm6583_vm3, 0, %v2912_v34  ;;  %v2923_v24 = vrot.slane %v2921_v3, 7 }
 0x3f6   :  { %4046 = vrot.lane.b32.xlu0 %v12613_v18, %s6305_s29  ;;  %3044 = vst.msk [vmem:[#allocation2 + $0xc0] sm:$0xff] %vm2111_vm1, %v9519_v45  ;;  %v3251_v33 = vrot.slane %v2924_v39, 1  ;;  %v2930_v28 = vrot.slane %v2928_v38, 7  ;;  %v2935_v34 = vshrl.u32 %v9178_v16, 16 }
 0x3f7   :  { %v3249_v0 = vrot.slane %v2917_v60, 1  ;;  %v2919_v10 = vor.u32 %v2917_v60, %v2916_v22  ;;  %v2926_v15 = vor.u32 %v2924_v39, %v2923_v24  ;;  %v2938_v24 = vshll.u32 %v9178_v16, 16 }
 0x3f8   :  { %v9537_v47 = vor.u32 %v3251_v33, %v2921_v3  ;;  %v2937_v29 = vrot.slane %v2935_v34, 7  ;;  %v2942_v22 = vshrl.u32 %v9180_v23, 16  ;;  %v12657_v39 = vshrl.u32 %v12634_v30, 16 }
 0x3f9   :  { %3659 = vrot.lane.b32.xlu1 %v12613_v18, %s6302_s1  ;;  %v9525_v55 = vor.u32 %v3249_v0, %v2914_v7  ;;  %v9530_v18 = vsel %vm6583_vm3, 0, %v2919_v10  ;;  %v2933_v0 = vor.u32 %v2931_v17, %v2930_v28  ;;  %v3253_v7 = vrot.slane %v2931_v17, 1 }
 0x3fa   :  { %4167 = vrot.lane.b32.xlu0 %v3295_v43, %s6306_s7  ;;  %3045 = vst.msk [vmem:[#allocation2 + $0xc8] sm:$0xff] %vm2111_vm1, %v9530_v18  ;;  %v9542_v60 = vsel %vm6583_vm3, 0, %v2926_v15  ;;  %v3210_v10 = vor.u32 %v3209_v1, %v12657_v39  ;;  %v2945_v15 = vshll.u32 %v9180_v23, 16  ;;  %v2940_v17 = vor.u32 %v2938_v24, %v2937_v29 }
 0x3fb   :  { %3046 = vst.msk [vmem:[#allocation2 + $0xd0] sm:$0xff] %vm2111_vm1, %v9542_v60  ;;  %v9552_v28 = vsel %vm6583_vm3, 0, %v2933_v0  ;;  %v3255_v33 = vrot.slane %v2938_v24, 1  ;;  %v2944_v3 = vrot.slane %v2942_v22, 7  ;;  %v2949_v16 = vshrl.u32 %v9182_v58, 16  ;;  %v12660_v0 = vld [vmem:[#allocation59_spill] sm:$0xff] }
 0x3fc   :  { %12658 = vst [vmem:[#allocation95_spill] sm:$0xff] %v9552_v28  ;;  %3047 = vst.msk [vmem:[#allocation2 + $0xd8] sm:$0xff] %vm2111_vm1, %v9552_v28  ;;  %v3257_v1 = vrot.slane %v2945_v15, 1  ;;  %v2952_v39 = vshll.u32 %v9182_v58, 16  ;;  %v2956_v36 = vshrl.u32 %v12660_v0, 16  ;;  %v2959_v28 = vshll.u32 %v12660_v0, 16 }
 0x3fd   :  { %3798 = vrot.lane.b32.xlu1 %v3295_v43, %s6303_s23  ;;  %v2947_v29 = vor.u32 %v2945_v15, %v2944_v3  ;;  %v2951_v24 = vrot.slane %v2949_v16, 7 }
 0x3fe   :  { %3357 = vrot.lane.b32.xlu0 %v3295_v43, %s6298_s12  ;;  %v9554_v43 = vor.u32 %v3253_v7, %v2928_v38  ;;  %v9568_v38 = vsel %vm6583_vm3, 0, %v2940_v17  ;;  %v9570_v7 = vor.u32 %v3255_v33, %v2935_v34  ;;  %v9574_v23 = vor.u32 %v3257_v1, %v2942_v22 }
 0x3ff   :  { %3048 = vst.msk [vmem:[#allocation2 + $0xe0] sm:$0xff] %vm2111_vm1, %v9568_v38  ;;  %v2958_v58 = vrot.slane %v2956_v36, 7  ;;  %v9581_v17 = vsel %vm6583_vm3, 0, %v2947_v29  ;;  %v2954_v34 = vor.u32 %v2952_v39, %v2951_v24  ;;  %v3261_v33 = vrot.slane %v2959_v28, 1 }
 0x400   :  { %12659 = vst [vmem:[#allocation72_spill] sm:$0xff] %v9554_v43  ;;  %v3259_v43 = vrot.slane %v2952_v39, 1  ;;  %3049 = vst.msk [vmem:[#allocation2 + $0xe8] sm:$0xff] %vm2111_vm1, %v9581_v17 }
 0x401   :  { %3927 = vrot.lane.b32.xlu1 %v9236_v37, %s6304_s26  ;;  %v2961_v22 = vor.u32 %v2959_v28, %v2958_v58  ;;  %v9600_v1 = vor.u32 %v3261_v33, %v2956_v36  ;;  %v12662_v28 = vshrl.u32 %v12630_v51, 16 }
 0x402   :  { %3530 = vrot.lane.b32.xlu0 %v9236_v37, %s6300_s18  ;;  %v3296_v37 = vsel %vm6975_vm7, %v3210_v10, 0  ;;  %v9586_v15 = vor.u32 %v3259_v43, %v2949_v16  ;;  %v9592_v10 = vsel %vm6583_vm3, 0, %v2954_v34  ;;  %v12661_v16 = vshll.u32 %v12630_v51, 16 }
 0x403   :  { %3050 = vst.msk [vmem:[#allocation2 + $0xf0] sm:$0xff] %vm2111_vm1, %v9592_v10  ;;  %v9598_v3 = vsel %vm6583_vm3, 0, %v2961_v22  ;;  %v3301_v22 = vsel %vm6975_vm7, %v9341_v6, 0 }
 0x404   :  { %v3211_v58 = vrot.slane %v12661_v16, 1  ;;  %3051 = vst.msk [vmem:[#allocation2 + $0xf8] sm:$0xff] %vm2111_vm1, %v9598_v3 }
 0x405   :  { %4048 = vrot.lane.b32.xlu1 %v12634_v30, %s6305_s29 }
 0x406   :  { %3661 = vrot.lane.b32.xlu0 %v12634_v30, %s6302_s1  ;;  %v3085_v30 = vpop.permute.xlu1 %3084  ;;  %v3212_v43 = vor.u32 %v3211_v58, %v12662_v28 }
 0x407   :  { %3174 = vst.msk [vmem:[#allocation2 + $0x10] sm:$0xff] %vm3172_vm6, %v3085_v30 }
 0x408   :  { %v3297_v36 = vsel %vm6975_vm7, %v3212_v43, 0  ;;  %v3302_v43 = vsel %vm6975_vm7, %v9384_v35, 0 }
 0x409   :  { %4169 = vrot.lane.b32.xlu1 %v3296_v37, %s6306_s7 }
 0x40a   :  { %3800 = vrot.lane.b32.xlu0 %v3296_v37, %s6303_s23 }
 0x40b   :  { %v3083_v39 = vpop.permute.xlu0 %3082 }
 0x40c   :  { %3173 = vst.msk [vmem:[#allocation2 + $0x8] sm:$0xff] %vm3172_vm6, %v3083_v39 }
 0x40d   :  { %3359 = vrot.lane.b32.xlu1 %v3296_v37, %s6298_s12 }
 0x40e   :  { %3929 = vrot.lane.b32.xlu0 %v9266_v63, %s6304_s26  ;;  %v3089_v29 = vpop.permute.xlu1 %3088 }
 0x40f   :  { %3176 = vst.msk [vmem:[#allocation2 + $0x20] sm:$0xff] %vm3172_vm6, %v3089_v29  ;;  %v12663_v29 = vld [vmem:[#allocation34_spill] sm:$0xff] }
 0x411   :  { %3532 = vrot.lane.b32.xlu1 %v9266_v63, %s6300_s18 }
 0x412   :  { %4050 = vrot.lane.b32.xlu0 %v12630_v51, %s6305_s29 }
 0x415   :  { %3663 = vrot.lane.b32.xlu1 %v12630_v51, %s6302_s1  ;;  %v3298_v51 = vsel %vm6975_vm7, %v9260_v26, 0 }
 0x416   :  { %4171 = vrot.lane.b32.xlu0 %v3297_v36, %s6306_s7 }
 0x419   :  { %3802 = vrot.lane.b32.xlu1 %v3297_v36, %s6303_s23 }
 0x41a   :  { %3361 = vrot.lane.b32.xlu0 %v3297_v36, %s6298_s12 }
 0x41d   :  { %3931 = vrot.lane.b32.xlu1 %v9270_v53, %s6304_s26 }
 0x41e   :  { %3534 = vrot.lane.b32.xlu0 %v9270_v53, %s6300_s18  ;;  %v3299_v53 = vsel %vm6975_vm7, %v9262_v31, 0 }
 0x421   :  { %4052 = vrot.lane.b32.xlu1 %v9123_v49, %s6305_s29 }
 0x422   :  { %3665 = vrot.lane.b32.xlu0 %v9123_v49, %s6302_s1 }
 0x425   :  { %4173 = vrot.lane.b32.xlu1 %v3298_v51, %s6306_s7 }
 0x426   :  { %3804 = vrot.lane.b32.xlu0 %v3298_v51, %s6303_s23 }
 0x429   :  { %3363 = vrot.lane.b32.xlu1 %v3298_v51, %s6298_s12 }
 0x42a   :  { %3933 = vrot.lane.b32.xlu0 %v9280_v61, %s6304_s26 }
 0x42d   :  { %3536 = vrot.lane.b32.xlu1 %v9280_v61, %s6300_s18  ;;  %v3300_v61 = vsel %vm6975_vm7, %v9286_v42, 0 }
 0x42e   :  { %4054 = vrot.lane.b32.xlu0 %v9131_v59, %s6305_s29 }
 0x431   :  { %3667 = vrot.lane.b32.xlu1 %v9131_v59, %s6302_s1 }
 0x432   :  { %4175 = vrot.lane.b32.xlu0 %v3299_v53, %s6306_s7 }
 0x433   :  { %v3093_v63 = vpop.permute.xlu1 %3092 }
 0x434   :  { %3178 = vst.msk [vmem:[#allocation2 + $0x30] sm:$0xff] %vm3172_vm6, %v3093_v63 }
 0x435   :  { %3806 = vrot.lane.b32.xlu1 %v3299_v53, %s6303_s23 }
 0x436   :  { %3365 = vrot.lane.b32.xlu0 %v3299_v53, %s6298_s12  ;;  %v3303_v53 = vsel %vm6975_vm7, %v9397_v52, 0 }
 0x437   :  { %v3097_v31 = vpop.permute.xlu1 %3096 }
 0x438   :  { %v3087_v49 = vpop.permute.xlu0 %3086  ;;  %3180 = vst.msk [vmem:[#allocation2 + $0x40] sm:$0xff] %vm3172_vm6, %v3097_v31 }
 0x439   :  { %3175 = vst.msk [vmem:[#allocation2 + $0x18] sm:$0xff] %vm3172_vm6, %v3087_v49  ;;  %3935 = vrot.lane.b32.xlu1 %v9284_v21, %s6304_s26 }
 0x43a   :  { %3538 = vrot.lane.b32.xlu0 %v9284_v21, %s6300_s18 }
 0x43b   :  { %v3101_v24 = vpop.permute.xlu1 %3100 }
 0x43c   :  { %v3091_v26 = vpop.permute.xlu0 %3090  ;;  %3182 = vst.msk [vmem:[#allocation2 + $0x50] sm:$0xff] %vm3172_vm6, %v3101_v24 }
 0x43d   :  { %3177 = vst.msk [vmem:[#allocation2 + $0x28] sm:$0xff] %vm3172_vm6, %v3091_v26  ;;  %4056 = vrot.lane.b32.xlu1 %v9136_v4, %s6305_s29 }
 0x43e   :  { %3669 = vrot.lane.b32.xlu0 %v9136_v4, %s6302_s1 }
 0x43f   :  { %v3105_v34 = vpop.permute.xlu1 %3104 }
 0x440   :  { %v3095_v59 = vpop.permute.xlu0 %3094  ;;  %3184 = vst.msk [vmem:[#allocation2 + $0x60] sm:$0xff] %vm3172_vm6, %v3105_v34 }
 0x441   :  { %3179 = vst.msk [vmem:[#allocation2 + $0x38] sm:$0xff] %vm3172_vm6, %v3095_v59  ;;  %4177 = vrot.lane.b32.xlu1 %v3300_v61, %s6306_s7 }
 0x442   :  { %3808 = vrot.lane.b32.xlu0 %v3300_v61, %s6303_s23 }
 0x443   :  { %v3109_v42 = vpop.permute.xlu1 %3108 }
 0x444   :  { %v3099_v37 = vpop.permute.xlu0 %3098  ;;  %3186 = vst.msk [vmem:[#allocation2 + $0x70] sm:$0xff] %vm3172_vm6, %v3109_v42 }
 0x445   :  { %3181 = vst.msk [vmem:[#allocation2 + $0x48] sm:$0xff] %vm3172_vm6, %v3099_v37  ;;  %3367 = vrot.lane.b32.xlu1 %v3300_v61, %s6298_s12  ;;  %v12664_v61 = vld [vmem:[#allocation70_spill] sm:$0xff] }
 0x446   :  { %3937 = vrot.lane.b32.xlu0 %v9324_v9, %s6304_s26 }
 0x447   :  { %v3113_v33 = vpop.permute.xlu1 %3112 }
 0x448   :  { %v3103_v21 = vpop.permute.xlu0 %3102  ;;  %3188 = vst.msk [vmem:[#allocation2 + $0x88] sm:$0xff] %vm3172_vm6, %v3113_v33  ;;  %v12665_v33 = vld [vmem:[#allocation38_spill] sm:$0xff] }
 0x449   :  { %3183 = vst.msk [vmem:[#allocation2 + $0x58] sm:$0xff] %vm3172_vm6, %v3103_v21  ;;  %3540 = vrot.lane.b32.xlu1 %v9324_v9, %s6300_s18  ;;  %v3304_v21 = vsel %vm6975_vm7, %v9405_v48, 0 }
 0x44a   :  { %4058 = vrot.lane.b32.xlu0 %v9138_v50, %s6305_s29 }
 0x44b   :  { %v3656_v58 = vpop.permute.xlu1 %3655 }
 0x44c   :  { %v3107_v4 = vpop.permute.xlu0 %3106 }
 0x44d   :  { %3185 = vst.msk [vmem:[#allocation2 + $0x68] sm:$0xff] %vm3172_vm6, %v3107_v4  ;;  %3671 = vrot.lane.b32.xlu1 %v9138_v50, %s6302_s1 }
 0x44e   :  { %4179 = vrot.lane.b32.xlu0 %v3301_v22, %s6306_s7 }
 0x44f   :  { %v3525_v6 = vpop.permute.xlu1 %3524 }
 0x450   :  { %v3111_v16 = vpop.permute.xlu0 %3110  ;;  %3621 = vst.msk [vmem:[#allocation2] sm:$0xff] %vm3620_vm9, %v3525_v6 }
 0x451   :  { %3187 = vst.msk [vmem:[#allocation2 + $0x78] sm:$0xff] %vm3172_vm6, %v3111_v16  ;;  %3810 = vrot.lane.b32.xlu1 %v3301_v22, %s6303_s23 }
 0x452   :  { %3369 = vrot.lane.b32.xlu0 %v3301_v22, %s6298_s12  ;;  %3752 = vst.msk [vmem:[#allocation2] sm:$0xff] %vm3751_vm10, %v3656_v58  ;;  %v12666_v58 = vld [vmem:[#allocation55_spill] sm:$0xff] }
 0x453   :  { %v3795_v28 = vpop.permute.xlu1 %3794 }
 0x454   :  { %v3658_v30 = vpop.permute.xlu0 %3657  ;;  %3891 = vst.msk [vmem:[#allocation2] sm:$0xff] %vm3890_vm12, %v3795_v28 }
 0x455   :  { %3939 = vrot.lane.b32.xlu1 %v9320_v20, %s6304_s26 }
 0x456   :  { %3542 = vrot.lane.b32.xlu0 %v9320_v20, %s6300_s18 }
 0x457   :  { %v3924_v36 = vpop.permute.xlu1 %3923 }
 0x458   :  { %v3354_v9 = vpop.permute.xlu0 %3353  ;;  %4014 = vst.msk [vmem:[#allocation2] sm:$0xff] %vm4013_vm13, %v3924_v36  ;;  %v12667_v36 = vld [vmem:[#allocation91_spill] sm:$0xff] }
 0x459   :  { %3444 = vst.msk [vmem:[#allocation2 + $0x8] sm:$0xff] %vm3443_vm11, %v3354_v9  ;;  %4060 = vrot.lane.b32.xlu1 %v9140_v2, %s6305_s29 }
 0x45a   :  { %3673 = vrot.lane.b32.xlu0 %v9140_v2, %s6302_s1 }
 0x45b   :  { %v4045_v39 = vpop.permute.xlu1 %4044 }
 0x45c   :  { %v3527_v50 = vpop.permute.xlu0 %3526  ;;  %4135 = vst.msk [vmem:[#allocation2] sm:$0xff] %vm4134_vm14, %v4045_v39 }
 0x45d   :  { %3622 = vst.msk [vmem:[#allocation2 + $0x8] sm:$0xff] %vm3620_vm9, %v3527_v50  ;;  %4181 = vrot.lane.b32.xlu1 %v3302_v43, %s6306_s7 }
 0x45e   :  { %3753 = vst.msk [vmem:[#allocation2 + $0x8] sm:$0xff] %vm3751_vm10, %v3658_v30  ;;  %3812 = vrot.lane.b32.xlu0 %v3302_v43, %s6303_s23  ;;  %v3305_v30 = vsel %vm6975_vm7, %v9407_v32, 0 }
 0x45f   :  { %v4166_v51 = vpop.permute.xlu1 %4165 }
 0x460   :  { %v3797_v20 = vpop.permute.xlu0 %3796  ;;  %4256 = vst.msk [vmem:[#allocation2] sm:$0xff] %vm4255_vm15, %v4166_v51  ;;  %v3306_v51 = vsel %vm6975_vm7, %v9413_v56, 0 }
 0x461   :  { %3892 = vst.msk [vmem:[#allocation2 + $0x8] sm:$0xff] %vm3890_vm12, %v3797_v20  ;;  %3371 = vrot.lane.b32.xlu1 %v3302_v43, %s6298_s12 }
 0x462   :  { %3941 = vrot.lane.b32.xlu0 %v12663_v29, %s6304_s26 }
 0x463   :  { %v3356_v49 = vpop.permute.xlu1 %3355 }
 0x464   :  { %v3926_v35 = vpop.permute.xlu0 %3925  ;;  %3445 = vst.msk [vmem:[#allocation2 + $0x10] sm:$0xff] %vm3443_vm11, %v3356_v49 }
 0x465   :  { %4015 = vst.msk [vmem:[#allocation2 + $0x8] sm:$0xff] %vm4013_vm13, %v3926_v35  ;;  %3544 = vrot.lane.b32.xlu1 %v12663_v29, %s6300_s18 }
 0x466   :  { %4062 = vrot.lane.b32.xlu0 %v9142_v62, %s6305_s29 }
 0x467   :  { %v3529_v26 = vpop.permute.xlu1 %3528  ;;  %v4286_v31 = vld [vmem:[#allocation2] sm:$0xff] }
 0x468   :  { %v4047_v2 = vpop.permute.xlu0 %4046  ;;  %3623 = vst.msk [vmem:[#allocation2 + $0x10] sm:$0xff] %vm3620_vm9, %v3529_v26  ;;  %6129 = vmatprep.mubr.msk.bf16.mxu1 %vm2747_vm4, %v4286_v31  ;;  %v12668_v26 = vld [vmem:[#allocation85_spill] sm:$0xff] }
 0x469   :  { %4136 = vst.msk [vmem:[#allocation2 + $0x8] sm:$0xff] %vm4134_vm14, %v4047_v2  ;;  %3675 = vrot.lane.b32.xlu1 %v9142_v62, %s6302_s1 }
 0x46a   :  { %4183 = vrot.lane.b32.xlu0 %v3303_v53, %s6306_s7 }
 0x46b   :  { %v3660_v59 = vpop.permute.xlu1 %3659 }
 0x46c   :  { %v4168_v63 = vpop.permute.xlu0 %4167  ;;  %3754 = vst.msk [vmem:[#allocation2 + $0x10] sm:$0xff] %vm3751_vm10, %v3660_v59  ;;  %v3307_v59 = vsel %vm6975_vm7, %v9415_v40, 0 }
 0x46d   :  { %4257 = vst.msk [vmem:[#allocation2 + $0x8] sm:$0xff] %vm4255_vm15, %v4168_v63  ;;  %3814 = vrot.lane.b32.xlu1 %v3303_v53, %s6303_s23 }
 0x46e   :  { %3373 = vrot.lane.b32.xlu0 %v3303_v53, %s6298_s12 }
 0x46f   :  { %v3799_v34 = vpop.permute.xlu1 %3798 }
 0x470   :  { %v3358_v52 = vpop.permute.xlu0 %3357  ;;  %3893 = vst.msk [vmem:[#allocation2 + $0x10] sm:$0xff] %vm3890_vm12, %v3799_v34 }
 0x471   :  { %3446 = vst.msk [vmem:[#allocation2 + $0x18] sm:$0xff] %vm3443_vm11, %v3358_v52  ;;  %3943 = vrot.lane.b32.xlu1 %v12664_v61, %s6304_s26 }
 0x472   :  { %3546 = vrot.lane.b32.xlu0 %v12664_v61, %s6300_s18 }
 0x473   :  { %v3928_v42 = vpop.permute.xlu1 %3927 }
 0x474   :  { %v3531_v24 = vpop.permute.xlu0 %3530  ;;  %v4287_v37 = vld [vmem:[#allocation2 + $0x8] sm:$0xff]  ;;  %4016 = vst.msk [vmem:[#allocation2 + $0x10] sm:$0xff] %vm4013_vm13, %v3928_v42 }
 0x475   :  { %3624 = vst.msk [vmem:[#allocation2 + $0x18] sm:$0xff] %vm3620_vm9, %v3531_v24  ;;  %6130 = vmatmul.mubr.msk.bf16.vlgmr.msra.gmra.mrb[32].mxu1 %vm2747_vm4, %v4287_v37  ;;  %4064 = vrot.lane.b32.xlu1 %v9146_v5, %s6305_s29 }
 0x476   :  { %3677 = vrot.lane.b32.xlu0 %v9146_v5, %s6302_s1 }
 0x477   :  { %v4049_v22 = vpop.permute.xlu1 %4048 }
 0x478   :  { %v3662_v62 = vpop.permute.xlu0 %3661  ;;  %4137 = vst.msk [vmem:[#allocation2 + $0x10] sm:$0xff] %vm4134_vm14, %v4049_v22 }
 0x479   :  { %3755 = vst.msk [vmem:[#allocation2 + $0x18] sm:$0xff] %vm3751_vm10, %v3662_v62  ;;  %4185 = vrot.lane.b32.xlu1 %v3304_v21, %s6306_s7 }
 0x47a   :  { %3816 = vrot.lane.b32.xlu0 %v3304_v21, %s6303_s23 }
 0x47b   :  { %v4170_v16 = vpop.permute.xlu1 %4169 }
 0x47c   :  { %v3801_v4 = vpop.permute.xlu0 %3800  ;;  %4258 = vst.msk [vmem:[#allocation2 + $0x10] sm:$0xff] %vm4255_vm15, %v4170_v16 }
 0x47d   :  { %3894 = vst.msk [vmem:[#allocation2 + $0x18] sm:$0xff] %vm3890_vm12, %v3801_v4  ;;  %3375 = vrot.lane.b32.xlu1 %v3304_v21, %s6298_s12 }
 0x47e   :  { %3945 = vrot.lane.b32.xlu0 %v12665_v33, %s6304_s26 }
 0x47f   :  { %v3360_v6 = vpop.permute.xlu1 %3359 }
 0x480   :  { %v3930_v48 = vpop.permute.xlu0 %3929  ;;  %3447 = vst.msk [vmem:[#allocation2 + $0x20] sm:$0xff] %vm3443_vm11, %v3360_v6 }
 0x481   :  { %4017 = vst.msk [vmem:[#allocation2 + $0x18] sm:$0xff] %vm4013_vm13, %v3930_v48  ;;  %3548 = vrot.lane.b32.xlu1 %v12665_v33, %s6300_s18 }
 0x482   :  { %4066 = vrot.lane.b32.xlu0 %v12666_v58, %s6305_s29 }
 0x483   :  { %v3533_v28 = vpop.permute.xlu1 %3532  ;;  %v4288_v50 = vld [vmem:[#allocation2 + $0x10] sm:$0xff] }
 0x484   :  { %v4051_v5 = vpop.permute.xlu0 %4050  ;;  %3625 = vst.msk [vmem:[#allocation2 + $0x20] sm:$0xff] %vm3620_vm9, %v3533_v28  ;;  %6133 = vmatprep.mubr.msk.bf16.mxu1 %vm2747_vm4, %v4288_v50  ;;  %v12670_v50 = vld [vmem:[#allocation92_spill] sm:$0xff] }
 0x485   :  { %4138 = vst.msk [vmem:[#allocation2 + $0x18] sm:$0xff] %vm4134_vm14, %v4051_v5  ;;  %3679 = vrot.lane.b32.xlu1 %v12666_v58, %s6302_s1 }
 0x486   :  { %4187 = vrot.lane.b32.xlu0 %v3305_v30, %s6306_s7 }
 0x487   :  { %v3664_v43 = vpop.permute.xlu1 %3663 }
 0x488   :  { %v4172_v9 = vpop.permute.xlu0 %4171  ;;  %3756 = vst.msk [vmem:[#allocation2 + $0x20] sm:$0xff] %vm3751_vm10, %v3664_v43  ;;  %v3308_v43 = vsel %vm6975_vm7, %v9424_v11, 0 }
 0x489   :  { %4259 = vst.msk [vmem:[#allocation2 + $0x18] sm:$0xff] %vm4255_vm15, %v4172_v9  ;;  %3818 = vrot.lane.b32.xlu1 %v3305_v30, %s6303_s23 }
 0x48a   :  { %3377 = vrot.lane.b32.xlu0 %v3305_v30, %s6298_s12 }
 0x48b   :  { %v3803_v29 = vpop.permute.xlu1 %3802 }
 0x48c   :  { %v3362_v32 = vpop.permute.xlu0 %3361  ;;  %3895 = vst.msk [vmem:[#allocation2 + $0x20] sm:$0xff] %vm3890_vm12, %v3803_v29 }
 0x48d   :  { %3448 = vst.msk [vmem:[#allocation2 + $0x28] sm:$0xff] %vm3443_vm11, %v3362_v32  ;;  %3947 = vrot.lane.b32.xlu1 %v12667_v36, %s6304_s26 }
 0x48e   :  { %3550 = vrot.lane.b32.xlu0 %v12667_v36, %s6300_s18 }
 0x48f   :  { %v3932_v2 = vpop.permute.xlu1 %3931 }
 0x490   :  { %v3535_v20 = vpop.permute.xlu0 %3534  ;;  %v4289_v39 = vld [vmem:[#allocation2 + $0x18] sm:$0xff]  ;;  %4018 = vst.msk [vmem:[#allocation2 + $0x20] sm:$0xff] %vm4013_vm13, %v3932_v2 }
 0x491   :  { %3626 = vst.msk [vmem:[#allocation2 + $0x28] sm:$0xff] %vm3620_vm9, %v3535_v20  ;;  %6134 = vmatmul.mubr.msk.bf16.gmra.mrb[36].mxu1 %vm2747_vm4, %v4289_v39  ;;  %4068 = vrot.lane.b32.xlu1 %v9150_v54, %s6305_s29  ;;  %v12671_v20 = vld [vmem:[#allocation69_spill] sm:$0xff] }
 0x492   :  { %3681 = vrot.lane.b32.xlu0 %v9150_v54, %s6302_s1  ;;  %v12669_v54 = vld [vmem:[#allocation57_spill] sm:$0xff] }
 0x493   :  { %v4053_v49 = vpop.permute.xlu1 %4052  ;;  %v3475_v31 = vshrl.u32 %v12669_v54, 16  ;;  %v3478_v34 = vshll.u32 %v12669_v54, 16 }
 0x494   :  { %v3666_v35 = vpop.permute.xlu0 %3665  ;;  %4139 = vst.msk [vmem:[#allocation2 + $0x20] sm:$0xff] %vm4134_vm14, %v4053_v49 }
 0x495   :  { %3757 = vst.msk [vmem:[#allocation2 + $0x28] sm:$0xff] %vm3751_vm10, %v3666_v35  ;;  %4189 = vrot.lane.b32.xlu1 %v3306_v51, %s6306_s7  ;;  %v3477_v24 = vrot.slane %v3475_v31, 7  ;;  %v3784_v33 = vrot.slane %v3478_v34, 1 }
 0x496   :  { %3820 = vrot.lane.b32.xlu0 %v3306_v51, %s6303_s23 }
 0x497   :  { %v4174_v63 = vpop.permute.xlu1 %4173  ;;  %v3480_v40 = vor.u32 %v3478_v34, %v3477_v24  ;;  %v3785_v58 = vor.u32 %v3784_v33, %v3475_v31  ;;  %v12675_v33 = vld [vmem:[#allocation61_spill] sm:$0xff] }
 0x498   :  { %v3805_v53 = vpop.permute.xlu0 %3804  ;;  %4260 = vst.msk [vmem:[#allocation2 + $0x20] sm:$0xff] %vm4255_vm15, %v4174_v63 }
 0x499   :  { %3896 = vst.msk [vmem:[#allocation2 + $0x28] sm:$0xff] %vm3890_vm12, %v3805_v53  ;;  %3379 = vrot.lane.b32.xlu1 %v3306_v51, %s6298_s12  ;;  %v3490_v22 = vsel %vm6583_vm3, 0, %v3480_v40  ;;  %v3790_v6 = vsel %vm6975_vm7, %v3785_v58, 0  ;;  %v12672_v53 = vld [vmem:[#allocation40_spill] sm:$0xff] }
 0x49a   :  { %3949 = vrot.lane.b32.xlu0 %v9390_v41, %s6304_s26  ;;  %v3309_v49 = vsel %vm6975_vm7, %v12672_v53, 0 }
 0x49b   :  { %v3364_v61 = vpop.permute.xlu1 %3363 }
 0x49c   :  { %v3934_v56 = vpop.permute.xlu0 %3933  ;;  %3449 = vst.msk [vmem:[#allocation2 + $0x30] sm:$0xff] %vm3443_vm11, %v3364_v61 }
 0x49d   :  { %4019 = vst.msk [vmem:[#allocation2 + $0x28] sm:$0xff] %vm4013_vm13, %v3934_v56  ;;  %3683 = vrot.lane.b32.xlu1 %v12668_v26, %s6302_s1 }
 0x49e   :  { %4070 = vrot.lane.b32.xlu0 %v12668_v26, %s6305_s29 }
 0x49f   :  { %v3537_v62 = vpop.permute.xlu1 %3536  ;;  %v4290_v21 = vld [vmem:[#allocation2 + $0x20] sm:$0xff] }
 0x4a0   :  { %v4055_v52 = vpop.permute.xlu0 %4054  ;;  %3627 = vst.msk [vmem:[#allocation2 + $0x30] sm:$0xff] %vm3620_vm9, %v3537_v62  ;;  %6137 = vmatprep.mubr.msk.bf16.mxu1 %vm2747_vm4, %v4290_v21 }
 0x4a1   :  { %4140 = vst.msk [vmem:[#allocation2 + $0x28] sm:$0xff] %vm4134_vm14, %v4055_v52  ;;  %3381 = vrot.lane.b32.xlu1 %v3307_v59, %s6298_s12  ;;  %v12673_v52 = vld [vmem:[#allocation60_spill] sm:$0xff] }
 0x4a2   :  { %4191 = vrot.lane.b32.xlu0 %v3307_v59, %s6306_s7 }
 0x4a3   :  { %v3668_v4 = vpop.permute.xlu1 %3667 }
 0x4a4   :  { %v4176_v37 = vpop.permute.xlu0 %4175  ;;  %3758 = vst.msk [vmem:[#allocation2 + $0x30] sm:$0xff] %vm3751_vm10, %v3668_v4 }
 0x4a5   :  { %4261 = vst.msk [vmem:[#allocation2 + $0x28] sm:$0xff] %vm4255_vm15, %v4176_v37  ;;  %3554 = vrot.lane.b32.xlu1 %v3490_v22, %s6300_s18 }
 0x4a6   :  { %3552 = vrot.lane.b32.xlu0 %v9390_v41, %s6300_s18 }
 0x4a7   :  { %v3807_v16 = vpop.permute.xlu1 %3806 }
 0x4a8   :  { %v3366_v42 = vpop.permute.xlu0 %3365  ;;  %3897 = vst.msk [vmem:[#allocation2 + $0x30] sm:$0xff] %vm3890_vm12, %v3807_v16  ;;  %v3311_v16 = vsel %vm6975_vm7, %v9471_v13, 0 }
 0x4a9   :  { %3450 = vst.msk [vmem:[#allocation2 + $0x38] sm:$0xff] %vm3443_vm11, %v3366_v42  ;;  %3685 = vrot.lane.b32.xlu1 %v12669_v54, %s6302_s1 }
 0x4aa   :  { %3822 = vrot.lane.b32.xlu0 %v3307_v59, %s6303_s23  ;;  %v12674_v59 = vld [vmem:[#allocation93_spill] sm:$0xff] }
 0x4ab   :  { %v3936_v30 = vpop.permute.xlu1 %3935  ;;  %v3310_v61 = vsel %vm6975_vm7, %v12674_v59, 0  ;;  %v12681_v59 = vld [vmem:[#allocation64_spill] sm:$0xff] }
 0x4ac   :  { %v3539_v41 = vpop.permute.xlu0 %3538  ;;  %v4291_v48 = vld [vmem:[#allocation2 + $0x28] sm:$0xff]  ;;  %4020 = vst.msk [vmem:[#allocation2 + $0x30] sm:$0xff] %vm4013_vm13, %v3936_v30 }
 0x4ad   :  { %3628 = vst.msk [vmem:[#allocation2 + $0x38] sm:$0xff] %vm3620_vm9, %v3539_v41  ;;  %6138 = vmatmul.mubr.msk.bf16.gmra.mrb[40].mxu1 %vm2747_vm4, %v4291_v48  ;;  %3824 = vrot.lane.b32.xlu1 %v3790_v6, %s6303_s23 }
 0x4ae   :  { %3951 = vrot.lane.b32.xlu0 %v3490_v22, %s6304_s26 }
 0x4af   :  { %v4057_v28 = vpop.permute.xlu1 %4056 }
 0x4b0   :  { %v3670_v5 = vpop.permute.xlu0 %3669  ;;  %4141 = vst.msk [vmem:[#allocation2 + $0x30] sm:$0xff] %vm4134_vm14, %v4057_v28 }
 0x4b1   :  { %3759 = vst.msk [vmem:[#allocation2 + $0x38] sm:$0xff] %vm3751_vm10, %v3670_v5  ;;  %3556 = vrot.lane.b32.xlu1 %v12670_v50, %s6300_s18 }
 0x4b2   :  { %4072 = vrot.lane.b32.xlu0 %v12669_v54, %s6305_s29 }
 0x4b3   :  { %v4178_v36 = vpop.permute.xlu1 %4177 }
 0x4b4   :  { %v3809_v9 = vpop.permute.xlu0 %3808  ;;  %4262 = vst.msk [vmem:[#allocation2 + $0x30] sm:$0xff] %vm4255_vm15, %v4178_v36 }
 0x4b5   :  { %3898 = vst.msk [vmem:[#allocation2 + $0x38] sm:$0xff] %vm3890_vm12, %v3809_v9  ;;  %3687 = vrot.lane.b32.xlu1 %v12671_v20, %s6302_s1  ;;  %v3312_v9 = vsel %vm6975_vm7, %v9475_v57, 0 }
 0x4b6   :  { %4193 = vrot.lane.b32.xlu0 %v3790_v6, %s6306_s7  ;;  %v12676_v6 = vld [vmem:[#allocation62_spill] sm:$0xff] }
 0x4b7   :  { %v3368_v29 = vpop.permute.xlu1 %3367 }
 0x4b8   :  { %v3938_v32 = vpop.permute.xlu0 %3937  ;;  %3451 = vst.msk [vmem:[#allocation2 + $0x40] sm:$0xff] %vm3443_vm11, %v3368_v29 }
 0x4b9   :  { %4021 = vst.msk [vmem:[#allocation2 + $0x38] sm:$0xff] %vm4013_vm13, %v3938_v32  ;;  %3826 = vrot.lane.b32.xlu1 %v3308_v43, %s6303_s23 }
 0x4ba   :  { %3383 = vrot.lane.b32.xlu0 %v3308_v43, %s6298_s12 }
 0x4bb   :  { %v3541_v35 = vpop.permute.xlu1 %3540  ;;  %v4292_v51 = vld [vmem:[#allocation2 + $0x30] sm:$0xff] }
 0x4bc   :  { %v4059_v39 = vpop.permute.xlu0 %4058  ;;  %3629 = vst.msk [vmem:[#allocation2 + $0x40] sm:$0xff] %vm3620_vm9, %v3541_v35  ;;  %6141 = vmatprep.mubr.msk.bf16.mxu1 %vm2747_vm4, %v4292_v51 }
 0x4bd   :  { %4142 = vst.msk [vmem:[#allocation2 + $0x38] sm:$0xff] %vm4134_vm14, %v4059_v39  ;;  %3953 = vrot.lane.b32.xlu1 %v9444_v44, %s6304_s26 }
 0x4be   :  { %3558 = vrot.lane.b32.xlu0 %v9444_v44, %s6300_s18 }
 0x4bf   :  { %v3672_v56 = vpop.permute.xlu1 %3671 }
 0x4c0   :  { %v4180_v11 = vpop.permute.xlu0 %4179  ;;  %3760 = vst.msk [vmem:[#allocation2 + $0x40] sm:$0xff] %vm3751_vm10, %v3672_v56 }
 0x4c1   :  { %4263 = vst.msk [vmem:[#allocation2 + $0x38] sm:$0xff] %vm4255_vm15, %v4180_v11  ;;  %4074 = vrot.lane.b32.xlu1 %v9156_v27, %s6305_s29 }
 0x4c2   :  { %3689 = vrot.lane.b32.xlu0 %v9156_v27, %s6302_s1 }
 0x4c3   :  { %v3811_v44 = vpop.permute.xlu1 %3810 }
 0x4c4   :  { %v3370_v2 = vpop.permute.xlu0 %3369  ;;  %3899 = vst.msk [vmem:[#allocation2 + $0x40] sm:$0xff] %vm3890_vm12, %v3811_v44 }
 0x4c5   :  { %3452 = vst.msk [vmem:[#allocation2 + $0x48] sm:$0xff] %vm3443_vm11, %v3370_v2  ;;  %4195 = vrot.lane.b32.xlu1 %v3309_v49, %s6306_s7  ;;  %v12678_v2 = vld [vmem:[#allocation63_spill] sm:$0xff] }
 0x4c6   :  { %3828 = vrot.lane.b32.xlu0 %v3309_v49, %s6303_s23 }
 0x4c7   :  { %v3940_v31 = vpop.permute.xlu1 %3939 }
 0x4c8   :  { %v3543_v63 = vpop.permute.xlu0 %3542  ;;  %v4293_v26 = vld [vmem:[#allocation2 + $0x38] sm:$0xff]  ;;  %4022 = vst.msk [vmem:[#allocation2 + $0x40] sm:$0xff] %vm4013_vm13, %v3940_v31 }
 0x4c9   :  { %3630 = vst.msk [vmem:[#allocation2 + $0x48] sm:$0xff] %vm3620_vm9, %v3543_v63  ;;  %6142 = vmatmul.mubr.msk.bf16.gmra.mrb[44].mxu1 %vm2747_vm4, %v4293_v26  ;;  %4197 = vrot.lane.b32.xlu1 %v3310_v61, %s6306_s7 }
 0x4ca   :  { %3955 = vrot.lane.b32.xlu0 %v9454_v14, %s6304_s26 }
 0x4cb   :  { %v4061_v37 = vpop.permute.xlu1 %4060 }
 0x4cc   :  { %v3674_v54 = vpop.permute.xlu0 %3673  ;;  %4143 = vst.msk [vmem:[#allocation2 + $0x40] sm:$0xff] %vm4134_vm14, %v4061_v37 }
 0x4cd   :  { %3761 = vst.msk [vmem:[#allocation2 + $0x48] sm:$0xff] %vm3751_vm10, %v3674_v54  ;;  %3385 = vrot.lane.b32.xlu1 %v3309_v49, %s6298_s12  ;;  %v12679_v49 = vld [vmem:[#allocation35_spill] sm:$0xff] }
 0x4ce   :  { %4076 = vrot.lane.b32.xlu0 %v12673_v52, %s6305_s29  ;;  %v3313_v56 = vsel %vm6975_vm7, %v12679_v49, 0  ;;  %v12680_v54 = vld [vmem:[#allocation39_spill] sm:$0xff] }
 0x4cf   :  { %v4182_v62 = vpop.permute.xlu1 %4181  ;;  %v12692_v49 = vld [vmem:[#allocation11_spill] sm:$0xff] }
 0x4d0   :  { %v3813_v24 = vpop.permute.xlu0 %3812  ;;  %4264 = vst.msk [vmem:[#allocation2 + $0x40] sm:$0xff] %vm4255_vm15, %v4182_v62 }
 0x4d1   :  { %3900 = vst.msk [vmem:[#allocation2 + $0x48] sm:$0xff] %vm3890_vm12, %v3813_v24  ;;  %3560 = vrot.lane.b32.xlu1 %v9454_v14, %s6300_s18 }
 0x4d2   :  { %3114 = vrot.lane.b32.xlu0 %v9156_v27, %s6297_s11 }
 0x4d3   :  { %v3372_v27 = vpop.permute.xlu1 %3371 }
 0x4d4   :  { %v3942_v34 = vpop.permute.xlu0 %3941  ;;  %3453 = vst.msk [vmem:[#allocation2 + $0x50] sm:$0xff] %vm3443_vm11, %v3372_v27 }
 0x4d5   :  { %4023 = vst.msk [vmem:[#allocation2 + $0x48] sm:$0xff] %vm4013_vm13, %v3942_v34  ;;  %3691 = vrot.lane.b32.xlu1 %v12673_v52, %s6302_s1 }
 0x4d6   :  { %3116 = vrot.lane.b32.xlu0 %v12673_v52, %s6297_s11 }
 0x4d7   :  { %v3545_v42 = vpop.permute.xlu1 %3544  ;;  %v4294_v4 = vld [vmem:[#allocation2 + $0x40] sm:$0xff] }
 0x4d8   :  { %v4063_v21 = vpop.permute.xlu0 %4062  ;;  %3631 = vst.msk [vmem:[#allocation2 + $0x50] sm:$0xff] %vm3620_vm9, %v3545_v42  ;;  %6145 = vmatprep.mubr.msk.bf16.mxu1 %vm2747_vm4, %v4294_v4  ;;  %v5218_v4 = vld [vmem:[%s11995_s3] sm:$0x3] }
 0x4d9   :  { %4144 = vst.msk [vmem:[#allocation2 + $0x48] sm:$0xff] %vm4134_vm14, %v4063_v21  ;;  %3830 = vrot.lane.b32.xlu1 %v3310_v61, %s6303_s23  ;;  %6268 = vmatprep.subr.msk.bf16.mxu0 %vm1818_vm8, %v5218_v4 }
 0x4da   :  { %3387 = vrot.lane.b32.xlu0 %v3310_v61, %s6298_s12  ;;  %v12682_v61 = vld [vmem:[#allocation71_spill] sm:$0xff] }
 0x4db   :  { %v3676_v22 = vpop.permute.xlu1 %3675  ;;  %v3314_v24 = vsel %vm6975_vm7, %v12682_v61, 0 }
 0x4dc   :  { %v4184_v40 = vpop.permute.xlu0 %4183  ;;  %3762 = vst.msk [vmem:[#allocation2 + $0x50] sm:$0xff] %vm3751_vm10, %v3676_v22 }
 0x4dd   :  { %4265 = vst.msk [vmem:[#allocation2 + $0x48] sm:$0xff] %vm4255_vm15, %v4184_v40  ;;  %3957 = vrot.lane.b32.xlu1 %v9469_v46, %s6304_s26 }
 0x4de   :  { %3562 = vrot.lane.b32.xlu0 %v9469_v46, %s6300_s18 }
 0x4df   :  { %v3815_v58 = vpop.permute.xlu1 %3814 }
 0x4e0   :  { %v3374_v14 = vpop.permute.xlu0 %3373  ;;  %3901 = vst.msk [vmem:[#allocation2 + $0x50] sm:$0xff] %vm3890_vm12, %v3815_v58 }
 0x4e1   :  { %3454 = vst.msk [vmem:[#allocation2 + $0x58] sm:$0xff] %vm3443_vm11, %v3374_v14  ;;  %4078 = vrot.lane.b32.xlu1 %v12675_v33, %s6305_s29 }
 0x4e2   :  { %3693 = vrot.lane.b32.xlu0 %v12675_v33, %s6302_s1 }
 0x4e3   :  { %v3944_v46 = vpop.permute.xlu1 %3943 }
 0x4e4   :  { %v3547_v41 = vpop.permute.xlu0 %3546  ;;  %v4295_v48 = vld [vmem:[#allocation2 + $0x48] sm:$0xff]  ;;  %4024 = vst.msk [vmem:[#allocation2 + $0x50] sm:$0xff] %vm4013_vm13, %v3944_v46  ;;  %v12685_v46 = vld [vmem:[#allocation65_spill] sm:$0xff] }
 0x4e5   :  { %3632 = vst.msk [vmem:[#allocation2 + $0x58] sm:$0xff] %vm3620_vm9, %v3547_v41  ;;  %6146 = vmatmul.mubr.msk.bf16.gmra.mrb[48].mxu1 %vm2747_vm4, %v4295_v48  ;;  %4199 = vrot.lane.b32.xlu1 %v3311_v16, %s6306_s7 }
 0x4e6   :  { %3832 = vrot.lane.b32.xlu0 %v3311_v16, %s6303_s23 }
 0x4e7   :  { %v4065_v30 = vpop.permute.xlu1 %4064 }
 0x4e8   :  { %v3678_v5 = vpop.permute.xlu0 %3677  ;;  %4145 = vst.msk [vmem:[#allocation2 + $0x50] sm:$0xff] %vm4134_vm14, %v4065_v30  ;;  %v3315_v30 = vsel %vm6975_vm7, %v9521_v25, 0 }
 0x4e9   :  { %3763 = vst.msk [vmem:[#allocation2 + $0x58] sm:$0xff] %vm3751_vm10, %v3678_v5  ;;  %4201 = vrot.lane.b32.xlu1 %v3312_v9, %s6306_s7  ;;  %v12684_v5 = vld [vmem:[#allocation3_spill] sm:$0xff] }
 0x4ea   :  { %3959 = vrot.lane.b32.xlu0 %v9482_v12, %s6304_s26 }
 0x4eb   :  { %v4186_v50 = vpop.permute.xlu1 %4185 }
 0x4ec   :  { %v3817_v13 = vpop.permute.xlu0 %3816  ;;  %4266 = vst.msk [vmem:[#allocation2 + $0x50] sm:$0xff] %vm4255_vm15, %v4186_v50  ;;  %v12687_v50 = vld [vmem:[#allocation7_spill] sm:$0xff] }
 0x4ed   :  { %3902 = vst.msk [vmem:[#allocation2 + $0x58] sm:$0xff] %vm3890_vm12, %v3817_v13  ;;  %3389 = vrot.lane.b32.xlu1 %v3311_v16, %s6298_s12  ;;  %v12683_v16 = vld [vmem:[#allocation5_spill] sm:$0xff] }
 0x4ee   :  { %4080 = vrot.lane.b32.xlu0 %v12676_v6, %s6305_s29 }
 0x4ef   :  { %v3376_v43 = vpop.permute.xlu1 %3375 }
 0x4f0   :  { %v3946_v28 = vpop.permute.xlu0 %3945  ;;  %3455 = vst.msk [vmem:[#allocation2 + $0x60] sm:$0xff] %vm3443_vm11, %v3376_v43  ;;  %v12688_v43 = vld [vmem:[#allocation87_spill] sm:$0xff] }
 0x4f1   :  { %4025 = vst.msk [vmem:[#allocation2 + $0x58] sm:$0xff] %vm4013_vm13, %v3946_v28  ;;  %3564 = vrot.lane.b32.xlu1 %v9482_v12, %s6300_s18  ;;  %v12677_v12 = vld [vmem:[#allocation94_spill] sm:$0xff]  ;;  %v12686_v28 = vld [vmem:[#allocation4_spill] sm:$0xff] }
 0x4f2   :  { %3118 = vrot.lane.b32.xlu0 %v12675_v33, %s6297_s11  ;;  %v5288_v33 = vsel %vm1818_vm8, %v5218_v4, 0 }
 0x4f3   :  { %v3549_v36 = vpop.permute.xlu1 %3548  ;;  %v4296_v20 = vld [vmem:[#allocation2 + $0x50] sm:$0xff]  ;;  %6194 = vmatpush3.bf16.msra.mxu0 %v5288_v33 }
 0x4f4   :  { %v4067_v32 = vpop.permute.xlu0 %4066  ;;  %3633 = vst.msk [vmem:[#allocation2 + $0x60] sm:$0xff] %vm3620_vm9, %v3549_v36  ;;  %6149 = vmatprep.mubr.msk.bf16.mxu1 %vm2747_vm4, %v4296_v20 }
 0x4f5   :  { %4146 = vst.msk [vmem:[#allocation2 + $0x58] sm:$0xff] %vm4134_vm14, %v4067_v32  ;;  %3695 = vrot.lane.b32.xlu1 %v12676_v6, %s6302_s1 }
 0x4f6   :  { %3120 = vrot.lane.b32.xlu0 %v12676_v6, %s6297_s11  ;;  %6196 = vmatmul.mubr.msk.bf16.vlgmr.msra.gmra.mrb[32].mxu0 %vm402_vm2, %v12683_v16 }
 0x4f7   :  { %v3680_v29 = vpop.permute.xlu1 %3679  ;;  %6199 = vmatprep.mubr.msk.bf16.mxu0 %vm402_vm2, %v12684_v5 }
 0x4f8   :  { %v4188_v57 = vpop.permute.xlu0 %4187  ;;  %3764 = vst.msk [vmem:[#allocation2 + $0x60] sm:$0xff] %vm3751_vm10, %v3680_v29  ;;  %v12689_v29 = vld [vmem:[#allocation6_spill] sm:$0xff] }
 0x4f9   :  { %4267 = vst.msk [vmem:[#allocation2 + $0x58] sm:$0xff] %vm4255_vm15, %v4188_v57  ;;  %3834 = vrot.lane.b32.xlu1 %v3312_v9, %s6303_s23  ;;  %v3316_v57 = vsel %vm6975_vm7, %v9525_v55, 0 }
 0x4fa   :  { %3391 = vrot.lane.b32.xlu0 %v3312_v9, %s6298_s12 }
 0x4fb   :  { %v3819_v51 = vpop.permute.xlu1 %3818 }
 0x4fc   :  { %v3378_v39 = vpop.permute.xlu0 %3377  ;;  %3903 = vst.msk [vmem:[#allocation2 + $0x60] sm:$0xff] %vm3890_vm12, %v3819_v51 }
 0x4fd   :  { %3456 = vst.msk [vmem:[#allocation2 + $0x68] sm:$0xff] %vm3443_vm11, %v3378_v39  ;;  %3961 = vrot.lane.b32.xlu1 %v12677_v12, %s6304_s26 }
 0x4fe   :  { %3566 = vrot.lane.b32.xlu0 %v12677_v12, %s6300_s18  ;;  %6200 = vmatmul.mubr.msk.bf16.gmra.mrb[36].mxu0 %vm402_vm2, %v12686_v28 }
 0x4ff   :  { %v3948_v63 = vpop.permute.xlu1 %3947  ;;  %6203 = vmatprep.mubr.msk.bf16.mxu0 %vm402_vm2, %v12687_v50 }
 0x500   :  { %v3551_v11 = vpop.permute.xlu0 %3550  ;;  %v4297_v35 = vld [vmem:[#allocation2 + $0x58] sm:$0xff]  ;;  %4026 = vst.msk [vmem:[#allocation2 + $0x60] sm:$0xff] %vm4013_vm13, %v3948_v63 }
 0x501   :  { %3634 = vst.msk [vmem:[#allocation2 + $0x68] sm:$0xff] %vm3620_vm9, %v3551_v11  ;;  %6150 = vmatmul.mubr.msk.bf16.gmra.mrb[52].mxu1 %vm2747_vm4, %v4297_v35  ;;  %4082 = vrot.lane.b32.xlu1 %v12678_v2, %s6305_s29  ;;  %v12690_v11 = vld [vmem:[#allocation9_spill] sm:$0xff] }
 0x502   :  { %3697 = vrot.lane.b32.xlu0 %v12678_v2, %s6302_s1 }
 0x503   :  { %v4069_v44 = vpop.permute.xlu1 %4068 }
 0x504   :  { %v3682_v53 = vpop.permute.xlu0 %3681  ;;  %4147 = vst.msk [vmem:[#allocation2 + $0x60] sm:$0xff] %vm4134_vm14, %v4069_v44 }
 0x505   :  { %3765 = vst.msk [vmem:[#allocation2 + $0x68] sm:$0xff] %vm3751_vm10, %v3682_v53  ;;  %4203 = vrot.lane.b32.xlu1 %v3313_v56, %s6306_s7 }
 0x506   :  { %3836 = vrot.lane.b32.xlu0 %v3313_v56, %s6303_s23  ;;  %6204 = vmatmul.mubr.msk.bf16.gmra.mrb[40].mxu0 %vm402_vm2, %v12689_v29 }
 0x507   :  { %v4190_v52 = vpop.permute.xlu1 %4189  ;;  %6207 = vmatprep.mubr.msk.bf16.mxu0 %vm402_vm2, %v12690_v11 }
 0x508   :  { %v3821_v26 = vpop.permute.xlu0 %3820  ;;  %4268 = vst.msk [vmem:[#allocation2 + $0x60] sm:$0xff] %vm4255_vm15, %v4190_v52 }
 0x509   :  { %3904 = vst.msk [vmem:[#allocation2 + $0x68] sm:$0xff] %vm3890_vm12, %v3821_v26  ;;  %4205 = vrot.lane.b32.xlu1 %v3314_v24, %s6306_s7  ;;  %v12693_v26 = vld [vmem:[#allocation10_spill] sm:$0xff] }
 0x50a   :  { %3963 = vrot.lane.b32.xlu0 %v12680_v54, %s6304_s26 }
 0x50b   :  { %v3380_v34 = vpop.permute.xlu1 %3379 }
 0x50c   :  { %v3950_v31 = vpop.permute.xlu0 %3949  ;;  %3457 = vst.msk [vmem:[#allocation2 + $0x70] sm:$0xff] %vm3443_vm11, %v3380_v34  ;;  %v12697_v34 = vld [vmem:[#allocation12_spill] sm:$0xff] }
 0x50d   :  { %4027 = vst.msk [vmem:[#allocation2 + $0x68] sm:$0xff] %vm4013_vm13, %v3950_v31  ;;  %3393 = vrot.lane.b32.xlu1 %v3313_v56, %s6298_s12  ;;  %v12695_v31 = vld [vmem:[#allocation66_spill] sm:$0xff] }
 0x50e   :  { %4084 = vrot.lane.b32.xlu0 %v12681_v59, %s6305_s29 }
 0x50f   :  { %v3684_v21 = vpop.permute.xlu1 %3683  ;;  %v4298_v27 = vld [vmem:[#allocation2 + $0x60] sm:$0xff] }
 0x510   :  { %v4071_v37 = vpop.permute.xlu0 %4070  ;;  %6153 = vmatprep.mubr.msk.bf16.mxu1 %vm2747_vm4, %v4298_v27  ;;  %v12699_v27 = vld [vmem:[#allocation15_spill] sm:$0xff] }
 0x511   :  { %4148 = vst.msk [vmem:[#allocation2 + $0x68] sm:$0xff] %vm4134_vm14, %v4071_v37  ;;  %3568 = vrot.lane.b32.xlu1 %v12680_v54, %s6300_s18  ;;  %v12694_v54 = vld [vmem:[#allocation13_spill] sm:$0xff] }
 0x512   :  { %3122 = vrot.lane.b32.xlu0 %v12678_v2, %s6297_s11  ;;  %v12691_v2 = vld [vmem:[#allocation8_spill] sm:$0xff] }
 0x513   :  { %v3382_v42 = vpop.permute.xlu1 %3381  ;;  %6208 = vmatmul.mubr.msk.bf16.gmra.mrb[44].mxu0 %vm402_vm2, %v12691_v2 }
 0x514   :  { %v4192_v62 = vpop.permute.xlu0 %4191  ;;  %3458 = vst.msk [vmem:[#allocation2 + $0x78] sm:$0xff] %vm3443_vm11, %v3382_v42  ;;  %6211 = vmatprep.mubr.msk.bf16.mxu0 %vm402_vm2, %v12692_v49  ;;  %v12700_v42 = vld [vmem:[#allocation95_spill] sm:$0xff] }
 0x515   :  { %4269 = vst.msk [vmem:[#allocation2 + $0x68] sm:$0xff] %vm4255_vm15, %v4192_v62  ;;  %3699 = vrot.lane.b32.xlu1 %v12681_v59, %s6302_s1 }
 0x516   :  { %3124 = vrot.lane.b32.xlu0 %v12681_v59, %s6297_s11  ;;  %v3317_v59 = vsel %vm6975_vm7, %v9537_v47, 0 }
 0x517   :  { %v3555_v41 = vpop.permute.xlu1 %3554 }
 0x518   :  { %v3553_v40 = vpop.permute.xlu0 %3552  ;;  %3636 = vst.msk [vmem:[#allocation2 + $0x78] sm:$0xff] %vm3620_vm9, %v3555_v41 }
 0x519   :  { %3635 = vst.msk [vmem:[#allocation2 + $0x70] sm:$0xff] %vm3620_vm9, %v3553_v40  ;;  %3838 = vrot.lane.b32.xlu1 %v3314_v24, %s6303_s23 }
 0x51a   :  { %3766 = vst.msk [vmem:[#allocation2 + $0x70] sm:$0xff] %vm3751_vm10, %v3684_v21  ;;  %3395 = vrot.lane.b32.xlu0 %v3314_v24, %s6298_s12 }
 0x51b   :  { %v3686_v58 = vpop.permute.xlu1 %3685  ;;  %6212 = vmatmul.mubr.msk.bf16.gmra.mrb[48].mxu0 %vm402_vm2, %v12693_v26 }
 0x51c   :  { %v3823_v14 = vpop.permute.xlu0 %3822  ;;  %v4299_v22 = vld [vmem:[#allocation2 + $0x68] sm:$0xff]  ;;  %3767 = vst.msk [vmem:[#allocation2 + $0x78] sm:$0xff] %vm3751_vm10, %v3686_v58  ;;  %6215 = vmatprep.mubr.msk.bf16.mxu0 %vm402_vm2, %v12694_v54 }
 0x51d   :  { %3905 = vst.msk [vmem:[#allocation2 + $0x70] sm:$0xff] %vm3890_vm12, %v3823_v14  ;;  %6154 = vmatmul.mubr.msk.bf16.gmra.mrb[56].mxu1 %vm2747_vm4, %v4299_v22  ;;  %3965 = vrot.lane.b32.xlu1 %v9519_v45, %s6304_s26 }
 0x51e   :  { %3570 = vrot.lane.b32.xlu0 %v9519_v45, %s6300_s18 }
 0x51f   :  { %v3825_v6 = vpop.permute.xlu1 %3824 }
 0x520   :  { %v3952_v48 = vpop.permute.xlu0 %3951  ;;  %3906 = vst.msk [vmem:[#allocation2 + $0x78] sm:$0xff] %vm3890_vm12, %v3825_v6 }
 0x521   :  { %4028 = vst.msk [vmem:[#allocation2 + $0x70] sm:$0xff] %vm4013_vm13, %v3952_v48  ;;  %4086 = vrot.lane.b32.xlu1 %v12685_v46, %s6305_s29 }
 0x522   :  { %3701 = vrot.lane.b32.xlu0 %v12685_v46, %s6302_s1 }
 0x523   :  { %v3557_v45 = vpop.permute.xlu1 %3556  ;;  %6216 = vmatmul.mubr.msk.bf16.gmra.mrb[52].mxu0 %vm402_vm2, %v12697_v34 }
 0x524   :  { %v4073_v13 = vpop.permute.xlu0 %4072  ;;  %3637 = vst.msk [vmem:[#allocation2 + $0x80] sm:$0xff] %vm3620_vm9, %v3557_v45  ;;  %6219 = vmatprep.mubr.msk.bf16.mxu0 %vm402_vm2, %v12699_v27  ;;  %v12704_v45 = vld [vmem:[#allocation88_spill] sm:$0xff] }
 0x525   :  { %4149 = vst.msk [vmem:[#allocation2 + $0x70] sm:$0xff] %vm4134_vm14, %v4073_v13  ;;  %4207 = vrot.lane.b32.xlu1 %v3315_v30, %s6306_s7 }
 0x526   :  { %3840 = vrot.lane.b32.xlu0 %v3315_v30, %s6303_s23 }
 0x527   :  { %v3688_v32 = vpop.permute.xlu1 %3687  ;;  %v4301_v36 = vld [vmem:[#allocation2 + $0x78] sm:$0xff] }
 0x528   :  { %v4194_v9 = vpop.permute.xlu0 %4193  ;;  %3768 = vst.msk [vmem:[#allocation2 + $0x80] sm:$0xff] %vm3751_vm10, %v3688_v32 }
 0x529   :  { %4270 = vst.msk [vmem:[#allocation2 + $0x70] sm:$0xff] %vm4255_vm15, %v4194_v9  ;;  %4209 = vrot.lane.b32.xlu1 %v3316_v57, %s6306_s7 }
 0x52a   :  { %3967 = vrot.lane.b32.xlu0 %v9530_v18, %s6304_s26 }
 0x52b   :  { %v3827_v12 = vpop.permute.xlu1 %3826 }
 0x52c   :  { %v3384_v25 = vpop.permute.xlu0 %3383  ;;  %3907 = vst.msk [vmem:[#allocation2 + $0x80] sm:$0xff] %vm3890_vm12, %v3827_v12  ;;  %v12706_v12 = vld [vmem:[#allocation17_spill] sm:$0xff] }
 0x52d   :  { %3459 = vst.msk [vmem:[#allocation2 + $0x88] sm:$0xff] %vm3443_vm11, %v3384_v25  ;;  %3397 = vrot.lane.b32.xlu1 %v3315_v30, %s6298_s12 }
 0x52e   :  { %4088 = vrot.lane.b32.xlu0 %v12688_v43, %s6305_s29 }
 0x52f   :  { %v3954_v35 = vpop.permute.xlu1 %3953 }
 0x530   :  { %v3559_v20 = vpop.permute.xlu0 %3558  ;;  %v4300_v39 = vld [vmem:[#allocation2 + $0x70] sm:$0xff]  ;;  %4029 = vst.msk [vmem:[#allocation2 + $0x80] sm:$0xff] %vm4013_vm13, %v3954_v35 }
 0x531   :  { %3638 = vst.msk [vmem:[#allocation2 + $0x88] sm:$0xff] %vm3620_vm9, %v3559_v20  ;;  %6157 = vmatprep.mubr.msk.bf16.mxu1 %vm2747_vm4, %v4300_v39  ;;  %3572 = vrot.lane.b32.xlu1 %v9530_v18, %s6300_s18 }
 0x532   :  { %3126 = vrot.lane.b32.xlu0 %v12685_v46, %s6297_s11  ;;  %6158 = vmatmul.mubr.msk.bf16.gmra.mrb[60].mxu1 %vm2747_vm4, %v4301_v36  ;;  %v12703_v46 = vld [vmem:[#allocation72_spill] sm:$0xff]  ;;  %v12705_v36 = vld [vmem:[#allocation14_spill] sm:$0xff] }
 0x533   :  { %v4075_v53 = vpop.permute.xlu1 %4074  ;;  %v3318_v13 = vsel %vm6975_vm7, %v12703_v46, 0  ;;  %6220 = vmatmul.mubr.msk.bf16.gmra.mrb[56].mxu0 %vm402_vm2, %v12705_v36 }
 0x534   :  { %v3690_v55 = vpop.permute.xlu0 %3689  ;;  %4150 = vst.msk [vmem:[#allocation2 + $0x80] sm:$0xff] %vm4134_vm14, %v4075_v53  ;;  %6223 = vmatprep.mubr.msk.bf16.mxu0 %vm402_vm2, %v12706_v12  ;;  %v12707_v53 = vld [vmem:[#allocation37_spill] sm:$0xff]  ;;  %v3320_v12 = vsel %vm6975_vm7, %v9574_v23, 0 }
 0x535   :  { %3769 = vst.msk [vmem:[#allocation2 + $0x88] sm:$0xff] %vm3751_vm10, %v3690_v55  ;;  %3703 = vrot.lane.b32.xlu1 %v12688_v43, %s6302_s1 }
 0x536   :  { %3128 = vrot.lane.b32.xlu0 %v12688_v43, %s6297_s11 }
 0x537   :  { %v4196_v18 = vpop.permute.xlu1 %4195 }
 0x538   :  { %v3829_v51 = vpop.permute.xlu0 %3828  ;;  %4271 = vst.msk [vmem:[#allocation2 + $0x80] sm:$0xff] %vm4255_vm15, %v4196_v18 }
 0x539   :  { %3908 = vst.msk [vmem:[#allocation2 + $0x88] sm:$0xff] %vm3890_vm12, %v3829_v51  ;;  %3842 = vrot.lane.b32.xlu1 %v3316_v57, %s6303_s23 }
 0x53a   :  { %3399 = vrot.lane.b32.xlu0 %v3316_v57, %s6298_s12 }
 0x53b   :  { %v4198_v44 = vpop.permute.xlu1 %4197  ;;  %6224 = vmatmul.mubr.msk.bf16.gmra.mrb[60].mxu0 %vm402_vm2, %v12707_v53 }
 0x53c   :  { %v3956_v56 = vpop.permute.xlu0 %3955 }
 0x53d   :  { %4030 = vst.msk [vmem:[#allocation2 + $0x88] sm:$0xff] %vm4013_vm13, %v3956_v56  ;;  %3969 = vrot.lane.b32.xlu1 %v9542_v60, %s6304_s26  ;;  %v12708_v56 = vld [vmem:[#allocation16_spill] sm:$0xff] }
 0x53e   :  { %3574 = vrot.lane.b32.xlu0 %v9542_v60, %s6300_s18  ;;  %6227 = vmatprep.mubr.msk.bf16.mxu0 %vm402_vm2, %v12708_v56  ;;  %v12721_v56 = vld [vmem:[#allocation26_spill] sm:$0xff] }
 0x53f   :  { %v3386_v61 = vpop.permute.xlu1 %3385  ;;  %v4302_v24 = vld [vmem:[#allocation2 + $0x80] sm:$0xff] }
 0x540   :  { %v4077_v63 = vpop.permute.xlu0 %4076  ;;  %6161 = vmatprep.mubr.msk.bf16.mxu1 %vm2747_vm4, %v4302_v24 }
 0x541   :  { %4151 = vst.msk [vmem:[#allocation2 + $0x88] sm:$0xff] %vm4134_vm14, %v4077_v63  ;;  %4090 = vrot.lane.b32.xlu1 %v12695_v31, %s6305_s29 }
 0x542   :  { %3705 = vrot.lane.b32.xlu0 %v12695_v31, %s6302_s1  ;;  %4272 = vst.msk [vmem:[#allocation2 + $0x88] sm:$0xff] %vm4255_vm15, %v4198_v44  ;;  %v12709_v44 = vld [vmem:[#allocation19_spill] sm:$0xff] }
 0x543   :  { %v3561_v62 = vpop.permute.xlu1 %3560  ;;  %6228 = vmatmul.mubr.msk.bf16.gmra.mrb[64].mxu0 %vm402_vm2, %v12709_v44 }
 0x544   :  { %v3115_v52 = vpop.permute.xlu0 %3114 }
 0x545   :  { %3189 = vst.msk [vmem:[#allocation2 + $0x90] sm:$0xff] %vm3172_vm6, %v3115_v52  ;;  %4211 = vrot.lane.b32.xlu1 %v3317_v59, %s6306_s7  ;;  %v12711_v52 = vld [vmem:[#allocation67_spill] sm:$0xff] }
 0x546   :  { %3844 = vrot.lane.b32.xlu0 %v3317_v59, %s6303_s23  ;;  %3460 = vst.msk [vmem:[#allocation2 + $0x90] sm:$0xff] %vm3443_vm11, %v3386_v61 }
 0x547   :  { %3639 = vst.msk [vmem:[#allocation2 + $0x90] sm:$0xff] %vm3620_vm9, %v3561_v62  ;;  %v3692_v5 = vpop.permute.xlu1 %3691 }
 0x548   :  { %v3117_v37 = vpop.permute.xlu0 %3116  ;;  %v10107_v60 = vpop.f32.mrb[32].mxu1  ;;  %3770 = vst.msk [vmem:[#allocation2 + $0x90] sm:$0xff] %vm3751_vm10, %v3692_v5 }
 0x549   :  { %12696 = vst [vmem:[#allocation96_spill] sm:$0xff] %v10107_v60  ;;  %3190 = vst.msk [vmem:[#allocation2 + $0x98] sm:$0xff] %vm3172_vm6, %v3117_v37  ;;  %v10112_v47 = vpop.f32.mrb[33].mxu1  ;;  %v4303_v21 = vld [vmem:[#allocation2 + $0x88] sm:$0xff]  ;;  %v4879_v22 = vmul.f32 %v10107_v60, %v10107_v60  ;;  %v4746_v30 = vsel %vm2111_vm1, %v10107_v60, 0.0  ;;  %4213 = vrot.lane.b32.xlu1 %v3318_v13, %s6306_s7  ;;  %v3319_v37 = vsel %vm6975_vm7, %v9570_v7, 0 }
 0x54a   :  { %12698 = vst [vmem:[#allocation42_spill] sm:$0xff] %v10112_v47  ;;  %v4877_v40 = vmul.f32 %v10112_v47, %v10112_v47  ;;  %3971 = vrot.lane.b32.xlu0 %v12700_v42, %s6304_s26  ;;  %v10120_v4 = vpop.f32.mrb[34].mxu1  ;;  %6162 = vmatmul.mubr.msk.bf16.gmra.mrb[64].mxu1 %vm2747_vm4, %v4303_v21  ;;  %v4743_v33 = vsel %vm2111_vm1, %v10112_v47, 0.0 }
 0x54b   :  { %12701 = vst [vmem:[#allocation54_spill] sm:$0xff] %v10120_v4  ;;  %v10124_v14 = vpop.f32.mrb[35].mxu1  ;;  %v4880_v9 = vmul.f32 %v10120_v4, %v10120_v4  ;;  %v4944_v32 = vsel %vm2111_vm1, %v4879_v22, 0.0  ;;  %v4748_v43 = vsel %vm2111_vm1, %v10120_v4, 0.0  ;;  %v3831_v39 = vpop.permute.xlu1 %3830 }
 0x54c   :  { %12702 = vst [vmem:[#allocation73_spill] sm:$0xff] %v10124_v14  ;;  %v4744_v41 = vsel %vm2111_vm1, %v10124_v14, 0.0  ;;  %v4878_v48 = vmul.f32 %v10124_v14, %v10124_v14  ;;  %v3388_v16 = vpop.permute.xlu0 %3387  ;;  %v4941_v6 = vsel %vm2111_vm1, %v4877_v40, 0.0  ;;  %3909 = vst.msk [vmem:[#allocation2 + $0x90] sm:$0xff] %vm3890_vm12, %v3831_v39 }
 0x54d   :  { %v4745_v58 = vadd.f32 %v4744_v41, %v4743_v33  ;;  %3461 = vst.msk [vmem:[#allocation2 + $0x98] sm:$0xff] %vm3443_vm11, %v3388_v16  ;;  %v4946_v11 = vsel %vm2111_vm1, %v4880_v9, 0.0  ;;  %3401 = vrot.lane.b32.xlu1 %v3317_v59, %s6298_s12  ;;  %v12716_v16 = vld [vmem:[#allocation21_spill] sm:$0xff] }
 0x54e   :  { %v4942_v28 = vsel %vm2111_vm1, %v4878_v48, 0.0  ;;  %4092 = vrot.lane.b32.xlu0 %v12704_v45, %s6305_s29 }
 0x54f   :  { %v4747_v50 = vadd.f32 %v4746_v30, %v4745_v58  ;;  %v4943_v25 = vadd.f32 %v4942_v28, %v4941_v6  ;;  %v3958_v51 = vpop.permute.xlu1 %3957  ;;  %v12717_v30 = vld [vmem:[#allocation20_spill] sm:$0xff] }
 0x550   :  { %v3563_v57 = vpop.permute.xlu0 %3562  ;;  %4031 = vst.msk [vmem:[#allocation2 + $0x90] sm:$0xff] %vm4013_vm13, %v3958_v51 }
 0x551   :  { %v4945_v20 = vadd.f32 %v4944_v32, %v4943_v25  ;;  %3640 = vst.msk [vmem:[#allocation2 + $0x98] sm:$0xff] %vm3620_vm9, %v3563_v57  ;;  %v4749_v29 = vadd.f32 %v4748_v43, %v4747_v50  ;;  %3576 = vrot.lane.b32.xlu1 %v12700_v42, %s6300_s18 }
 0x552   :  { %3130 = vrot.lane.b32.xlu0 %v12695_v31, %s6297_s11  ;;  %v12710_v31 = vld [vmem:[#allocation18_spill] sm:$0xff] }
 0x553   :  { %v4947_v55 = vadd.f32 %v4946_v11, %v4945_v20  ;;  %v4079_v49 = vpop.permute.xlu1 %4078  ;;  %6231 = vmatprep.mubr.msk.bf16.mxu0 %vm402_vm2, %v12710_v31  ;;  %v12724_v31 = vld [vmem:[#allocation28_spill] sm:$0xff] }
 0x554   :  { %v3694_v35 = vpop.permute.xlu0 %3693  ;;  %4152 = vst.msk [vmem:[#allocation2 + $0x90] sm:$0xff] %vm4134_vm14, %v4079_v49  ;;  %6232 = vmatmul.mubr.msk.bf16.gmra.mrb[68].mxu0 %vm402_vm2, %v12716_v16 }
 0x555   :  { %3771 = vst.msk [vmem:[#allocation2 + $0x98] sm:$0xff] %vm3751_vm10, %v3694_v35  ;;  %3707 = vrot.lane.b32.xlu1 %v12704_v45, %s6302_s1  ;;  %6235 = vmatprep.mubr.msk.bf16.mxu0 %vm402_vm2, %v12717_v30  ;;  %v12719_v35 = vld [vmem:[#allocation23_spill] sm:$0xff] }
 0x556   :  { %3132 = vrot.lane.b32.xlu0 %v12704_v45, %s6297_s11 }
 0x557   :  { %v4200_v63 = vpop.permute.xlu1 %4199 }
 0x558   :  { %v3833_v2 = vpop.permute.xlu0 %3832  ;;  %4273 = vst.msk [vmem:[#allocation2 + $0x90] sm:$0xff] %vm4255_vm15, %v4200_v63  ;;  %v12722_v63 = vld [vmem:[#allocation24_spill] sm:$0xff] }
 0x559   :  { %3910 = vst.msk [vmem:[#allocation2 + $0x98] sm:$0xff] %vm3890_vm12, %v3833_v2  ;;  %3846 = vrot.lane.b32.xlu1 %v3318_v13, %s6303_s23  ;;  %v12720_v2 = vld [vmem:[#allocation22_spill] sm:$0xff] }
 0x55a   :  { %3403 = vrot.lane.b32.xlu0 %v3318_v13, %s6298_s12 }
 0x55b   :  { %v4202_v54 = vpop.permute.xlu1 %4201 }
 0x55c   :  { %v3960_v18 = vpop.permute.xlu0 %3959  ;;  %6236 = vmatmul.mubr.msk.bf16.gmra.mrb[72].mxu0 %vm402_vm2, %v12719_v35  ;;  %v3322_v35 = vsel %vm6975_vm7, %v9600_v1, 0 }
 0x55d   :  { %4032 = vst.msk [vmem:[#allocation2 + $0x98] sm:$0xff] %vm4013_vm13, %v3960_v18  ;;  %3973 = vrot.lane.b32.xlu1 %v9568_v38, %s6304_s26  ;;  %6239 = vmatprep.mubr.msk.bf16.mxu0 %vm402_vm2, %v12720_v2  ;;  %v12732_v2 = vld [vmem:[#allocation32_spill] sm:$0xff] }
 0x55e   :  { %3578 = vrot.lane.b32.xlu0 %v9568_v38, %s6300_s18 }
 0x55f   :  { %v3390_v34 = vpop.permute.xlu1 %3389  ;;  %v4304_v62 = vld [vmem:[#allocation2 + $0x90] sm:$0xff] }
 0x560   :  { %v4081_v26 = vpop.permute.xlu0 %4080  ;;  %6165 = vmatprep.mubr.msk.bf16.mxu1 %vm2747_vm4, %v4304_v62 }
 0x561   :  { %4153 = vst.msk [vmem:[#allocation2 + $0x98] sm:$0xff] %vm4134_vm14, %v4081_v26  ;;  %4094 = vrot.lane.b32.xlu1 %v12711_v52, %s6305_s29 }
 0x562   :  { %3709 = vrot.lane.b32.xlu0 %v12711_v52, %s6302_s1  ;;  %4274 = vst.msk [vmem:[#allocation2 + $0x98] sm:$0xff] %vm4255_vm15, %v4202_v54 }
 0x563   :  { %v3565_v46 = vpop.permute.xlu1 %3564 }
 0x564   :  { %v3119_v59 = vpop.permute.xlu0 %3118  ;;  %v10192_v61 = vpop.f32.mrb[36].mxu1  ;;  %6240 = vmatmul.mubr.msk.bf16.gmra.mrb[76].mxu0 %vm402_vm2, %v12721_v56 }
 0x565   :  { %12712 = vst [vmem:[#allocation74_spill] sm:$0xff] %v10192_v61  ;;  %3191 = vst.msk [vmem:[#allocation2 + $0xa0] sm:$0xff] %vm3172_vm6, %v3119_v59  ;;  %v10195_v24 = vpop.f32.mrb[37].mxu1  ;;  %v4883_v7 = vmul.f32 %v10192_v61, %v10192_v61  ;;  %v4754_v6 = vsel %vm2111_vm1, %v10192_v61, 0.0  ;;  %4215 = vrot.lane.b32.xlu1 %v3319_v37, %s6306_s7  ;;  %6243 = vmatprep.mubr.msk.bf16.mxu0 %vm402_vm2, %v12722_v63 }
 0x566   :  { %12713 = vst [vmem:[#allocation75_spill] sm:$0xff] %v10195_v24  ;;  %v4750_v21 = vsel %vm2111_vm1, %v10195_v24, 0.0  ;;  %v4881_v27 = vmul.f32 %v10195_v24, %v10195_v24  ;;  %3848 = vrot.lane.b32.xlu0 %v3319_v37, %s6303_s23  ;;  %v10205_v38 = vpop.f32.mrb[38].mxu1  ;;  %3462 = vst.msk [vmem:[#allocation2 + $0xa0] sm:$0xff] %vm3443_vm11, %v3390_v34 }
 0x567   :  { %12714 = vst [vmem:[#allocation44_spill] sm:$0xff] %v10205_v38  ;;  %v4751_v40 = vadd.f32 %v4750_v21, %v4749_v29  ;;  %v10209_v42 = vpop.f32.mrb[39].mxu1  ;;  %v4884_v9 = vmul.f32 %v10205_v38, %v10205_v38  ;;  %3641 = vst.msk [vmem:[#allocation2 + $0xa0] sm:$0xff] %vm3620_vm9, %v3565_v46  ;;  %v4952_v25 = vsel %vm2111_vm1, %v4883_v7, 0.0  ;;  %v4756_v32 = vsel %vm2111_vm1, %v10205_v38, 0.0  ;;  %v3696_v36 = vpop.permute.xlu1 %3695  ;;  %v12718_v29 = vld [vmem:[#allocation89_spill] sm:$0xff] }
 0x568   :  { %12715 = vst [vmem:[#allocation77_spill] sm:$0xff] %v10209_v42  ;;  %v4948_v22 = vsel %vm2111_vm1, %v4881_v27, 0.0  ;;  %v4752_v33 = vsel %vm2111_vm1, %v10209_v42, 0.0  ;;  %v4882_v41 = vmul.f32 %v10209_v42, %v10209_v42  ;;  %v3121_v48 = vpop.permute.xlu0 %3120  ;;  %3772 = vst.msk [vmem:[#allocation2 + $0xa0] sm:$0xff] %vm3751_vm10, %v3696_v36  ;;  %v12727_v21 = vld [vmem:[#allocation68_spill] sm:$0xff] }
 0x569   :  { %v4949_v58 = vadd.f32 %v4948_v22, %v4947_v55  ;;  %v4753_v5 = vadd.f32 %v4752_v33, %v4751_v40  ;;  %3192 = vst.msk [vmem:[#allocation2 + $0xa8] sm:$0xff] %vm3172_vm6, %v3121_v48  ;;  %v4305_v13 = vld [vmem:[#allocation2 + $0x98] sm:$0xff]  ;;  %v4954_v39 = vsel %vm2111_vm1, %v4884_v9, 0.0  ;;  %4217 = vrot.lane.b32.xlu1 %v3320_v12, %s6306_s7 }
 0x56a   :  { %v4950_v28 = vsel %vm2111_vm1, %v4882_v41, 0.0  ;;  %3975 = vrot.lane.b32.xlu0 %v9581_v17, %s6304_s26  ;;  %6166 = vmatmul.mubr.msk.bf16.gmra.mrb[68].mxu1 %vm2747_vm4, %v4305_v13 }
 0x56b   :  { %v4755_v45 = vadd.f32 %v4754_v6, %v4753_v5  ;;  %v4951_v50 = vadd.f32 %v4950_v28, %v4949_v58  ;;  %v3835_v51 = vpop.permute.xlu1 %3834 }
 0x56c   :  { %v3392_v43 = vpop.permute.xlu0 %3391  ;;  %3911 = vst.msk [vmem:[#allocation2 + $0xa0] sm:$0xff] %vm3890_vm12, %v3835_v51  ;;  %6244 = vmatmul.mubr.msk.bf16.gmra.mrb[80].mxu0 %vm402_vm2, %v12724_v31 }
 0x56d   :  { %v4953_v57 = vadd.f32 %v4952_v25, %v4951_v50  ;;  %3463 = vst.msk [vmem:[#allocation2 + $0xa8] sm:$0xff] %vm3443_vm11, %v3392_v43  ;;  %v4757_v20 = vadd.f32 %v4756_v32, %v4755_v45  ;;  %3405 = vrot.lane.b32.xlu1 %v3319_v37, %s6298_s12  ;;  %v12726_v37 = vld [vmem:[#allocation27_spill] sm:$0xff] }
 0x56e   :  { %4096 = vrot.lane.b32.xlu0 %v12718_v29, %s6305_s29  ;;  %6247 = vmatprep.mubr.msk.bf16.mxu0 %vm402_vm2, %v12726_v37  ;;  %v12730_v32 = vld [vmem:[#allocation31_spill] sm:$0xff] }
 0x56f   :  { %v4955_v11 = vadd.f32 %v4954_v39, %v4953_v57  ;;  %v3962_v53 = vpop.permute.xlu1 %3961  ;;  %v12731_v39 = vld [vmem:[#allocation29_spill] sm:$0xff] }
 0x570   :  { %v3567_v55 = vpop.permute.xlu0 %3566  ;;  %4033 = vst.msk [vmem:[#allocation2 + $0xa0] sm:$0xff] %vm4013_vm13, %v3962_v53  ;;  %v12733_v53 = vld [vmem:[#allocation30_spill] sm:$0xff] }
 0x571   :  { %3642 = vst.msk [vmem:[#allocation2 + $0xa8] sm:$0xff] %vm3620_vm9, %v3567_v55  ;;  %3580 = vrot.lane.b32.xlu1 %v9581_v17, %s6300_s18 }
 0x572   :  { %3134 = vrot.lane.b32.xlu0 %v12711_v52, %s6297_s11 }
 0x573   :  { %v4083_v18 = vpop.permute.xlu1 %4082 }
 0x574   :  { %v3698_v23 = vpop.permute.xlu0 %3697  ;;  %4154 = vst.msk [vmem:[#allocation2 + $0xa0] sm:$0xff] %vm4134_vm14, %v4083_v18  ;;  %6248 = vmatmul.mubr.msk.bf16.gmra.mrb[84].mxu0 %vm402_vm2, %v12730_v32 }
 0x575   :  { %3773 = vst.msk [vmem:[#allocation2 + $0xa8] sm:$0xff] %vm3751_vm10, %v3698_v23  ;;  %3711 = vrot.lane.b32.xlu1 %v12718_v29, %s6302_s1  ;;  %6251 = vmatprep.mubr.msk.bf16.mxu0 %vm402_vm2, %v12731_v39 }
 0x576   :  { %3136 = vrot.lane.b32.xlu0 %v12718_v29, %s6297_s11 }
 0x577   :  { %v4204_v17 = vpop.permute.xlu1 %4203 }
 0x578   :  { %v3837_v49 = vpop.permute.xlu0 %3836  ;;  %4275 = vst.msk [vmem:[#allocation2 + $0xa0] sm:$0xff] %vm4255_vm15, %v4204_v17 }
 0x579   :  { %3912 = vst.msk [vmem:[#allocation2 + $0xa8] sm:$0xff] %vm3890_vm12, %v3837_v49  ;;  %3850 = vrot.lane.b32.xlu1 %v3320_v12, %s6303_s23  ;;  %v12734_v49 = vld [vmem:[#allocation90_spill] sm:$0xff] }
 0x57a   :  { %3407 = vrot.lane.b32.xlu0 %v3320_v12, %s6298_s12  ;;  %v3482_v56 = vshrl.u32 %v12734_v49, 16  ;;  %v3485_v17 = vshll.u32 %v12734_v49, 16 }
 0x57b   :  { %v4206_v59 = vpop.permute.xlu1 %4205 }
 0x57c   :  { %v3964_v26 = vpop.permute.xlu0 %3963  ;;  %6252 = vmatmul.mubr.msk.bf16.gmra.mrb[88].mxu0 %vm402_vm2, %v12732_v2  ;;  %v3484_v63 = vrot.slane %v3482_v56, 7 }
 0x57d   :  { %4034 = vst.msk [vmem:[#allocation2 + $0xa8] sm:$0xff] %vm4013_vm13, %v3964_v26  ;;  %3977 = vrot.lane.b32.xlu1 %v9592_v10, %s6304_s26  ;;  %6255 = vmatprep.mubr.msk.bf16.mxu0 %vm402_vm2, %v12733_v53 }
 0x57e   :  { %3582 = vrot.lane.b32.xlu0 %v9592_v10, %s6300_s18  ;;  %v3321_v10 = vsel %vm6975_vm7, %v9586_v15, 0  ;;  %v3487_v31 = vor.u32 %v3485_v17, %v3484_v63 }
 0x57f   :  { %v3394_v46 = vpop.permute.xlu1 %3393  ;;  %v4306_v13 = vld [vmem:[#allocation2 + $0xa0] sm:$0xff] }
 0x580   :  { %v4085_v44 = vpop.permute.xlu0 %4084  ;;  %v10276_v54 = vpop.f32.mrb[40].mxu1  ;;  %6169 = vmatprep.mubr.msk.bf16.mxu1 %vm2747_vm4, %v4306_v13 }
 0x581   :  { %12723 = vst [vmem:[#allocation41_spill] sm:$0xff] %v10276_v54  ;;  %4155 = vst.msk [vmem:[#allocation2 + $0xa8] sm:$0xff] %vm4134_vm14, %v4085_v44  ;;  %v10281_v52 = vpop.f32.mrb[41].mxu1  ;;  %v4887_v22 = vmul.f32 %v10276_v54, %v10276_v54  ;;  %v4762_v30 = vsel %vm2111_vm1, %v10276_v54, 0.0  ;;  %4098 = vrot.lane.b32.xlu1 %v12727_v21, %s6305_s29  ;;  %v12735_v44 = vld [vmem:[#allocation33_spill] sm:$0xff] }
 0x582   :  { %12725 = vst [vmem:[#allocation78_spill] sm:$0xff] %v10281_v52  ;;  %v4758_v34 = vsel %vm2111_vm1, %v10281_v52, 0.0  ;;  %v4885_v62 = vmul.f32 %v10281_v52, %v10281_v52  ;;  %3713 = vrot.lane.b32.xlu0 %v12727_v21, %s6302_s1  ;;  %v10291_v27 = vpop.f32.mrb[42].mxu1  ;;  %4276 = vst.msk [vmem:[#allocation2 + $0xa8] sm:$0xff] %vm4255_vm15, %v4206_v59 }
 0x583   :  { %12728 = vst [vmem:[#allocation48_spill] sm:$0xff] %v10291_v27  ;;  %v4759_v40 = vadd.f32 %v4758_v34, %v4757_v20  ;;  %v10294_v7 = vpop.f32.mrb[43].mxu1  ;;  %v4888_v6 = vmul.f32 %v10291_v27, %v10291_v27  ;;  %v4960_v15 = vsel %vm2111_vm1, %v4887_v22, 0.0  ;;  %v4764_v50 = vsel %vm2111_vm1, %v10291_v27, 0.0  ;;  %v3569_v57 = vpop.permute.xlu1 %3568 }
 0x584   :  { %12729 = vst [vmem:[#allocation43_spill] sm:$0xff] %v10294_v7  ;;  %v4956_v33 = vsel %vm2111_vm1, %v4885_v62, 0.0  ;;  %v4760_v41 = vsel %vm2111_vm1, %v10294_v7, 0.0  ;;  %v4886_v48 = vmul.f32 %v10294_v7, %v10294_v7  ;;  %v3123_v16 = vpop.permute.xlu0 %3122  ;;  %6256 = vmatmul.mubr.msk.bf16.gmra.mrb[92].mxu0 %vm402_vm2, %v12735_v44  ;;  %v3491_v22 = vsel %vm6583_vm3, 0, %v3487_v31 }
 0x585   :  { %v4957_v58 = vadd.f32 %v4956_v33, %v4955_v11  ;;  %v4761_v5 = vadd.f32 %v4760_v41, %v4759_v40  ;;  %3193 = vst.msk [vmem:[#allocation2 + $0xb0] sm:$0xff] %vm3172_vm6, %v3123_v16  ;;  %v4962_v29 = vsel %vm2111_vm1, %v4888_v6, 0.0  ;;  %4219 = vrot.lane.b32.xlu1 %v3321_v10, %s6306_s7  ;;  %v3786_v33 = vrot.slane %v3485_v17, 1 }
 0x586   :  { %v4958_v9 = vsel %vm2111_vm1, %v4886_v48, 0.0  ;;  %3852 = vrot.lane.b32.xlu0 %v3321_v10, %s6303_s23  ;;  %3464 = vst.msk [vmem:[#allocation2 + $0xb0] sm:$0xff] %vm3443_vm11, %v3394_v46 }
 0x587   :  { %v4763_v28 = vadd.f32 %v4762_v30, %v4761_v5  ;;  %v4959_v45 = vadd.f32 %v4958_v9, %v4957_v58  ;;  %3643 = vst.msk [vmem:[#allocation2 + $0xb0] sm:$0xff] %vm3620_vm9, %v3569_v57  ;;  %v3700_v55 = vpop.permute.xlu1 %3699 }
 0x588   :  { %v3125_v25 = vpop.permute.xlu0 %3124  ;;  %3774 = vst.msk [vmem:[#allocation2 + $0xb0] sm:$0xff] %vm3751_vm10, %v3700_v55 }
 0x589   :  { %v4961_v43 = vadd.f32 %v4960_v15, %v4959_v45  ;;  %3194 = vst.msk [vmem:[#allocation2 + $0xb8] sm:$0xff] %vm3172_vm6, %v3125_v25  ;;  %v4307_v36 = vld [vmem:[#allocation2 + $0xa8] sm:$0xff]  ;;  %v4765_v20 = vadd.f32 %v4764_v50, %v4763_v28  ;;  %4221 = vrot.lane.b32.xlu1 %v3322_v35, %s6306_s7  ;;  %v3787_v45 = vor.u32 %v3786_v33, %v3482_v56 }
 0x58a   :  { %3979 = vrot.lane.b32.xlu0 %v9598_v3, %s6304_s26  ;;  %6170 = vmatmul.mubr.msk.bf16.gmra.mrb[72].mxu1 %vm2747_vm4, %v4307_v36 }
 0x58b   :  { %v4963_v12 = vadd.f32 %v4962_v29, %v4961_v43  ;;  %v3839_v23 = vpop.permute.xlu1 %3838 }
 0x58c   :  { %v3396_v11 = vpop.permute.xlu0 %3395  ;;  %3913 = vst.msk [vmem:[#allocation2 + $0xb0] sm:$0xff] %vm3890_vm12, %v3839_v23 }
 0x58d   :  { %3465 = vst.msk [vmem:[#allocation2 + $0xb8] sm:$0xff] %vm3443_vm11, %v3396_v11  ;;  %3584 = vrot.lane.b32.xlu1 %v9598_v3, %s6300_s18 }
 0x58e   :  { %4100 = vrot.lane.b32.xlu0 %v12660_v0, %s6305_s29 }
 0x58f   :  { %v3966_v18 = vpop.permute.xlu1 %3965 }
 0x590   :  { %v3571_v51 = vpop.permute.xlu0 %3570  ;;  %4035 = vst.msk [vmem:[#allocation2 + $0xb0] sm:$0xff] %vm4013_vm13, %v3966_v18 }
 0x591   :  { %3644 = vst.msk [vmem:[#allocation2 + $0xb8] sm:$0xff] %vm3620_vm9, %v3571_v51  ;;  %3140 = vrot.lane.b32.xlu1 %v12660_v0, %s6297_s11 }
 0x592   :  { %3138 = vrot.lane.b32.xlu0 %v12727_v21, %s6297_s11 }
 0x593   :  { %v4087_v3 = vpop.permute.xlu1 %4086 }
 0x594   :  { %v3702_v1 = vpop.permute.xlu0 %3701  ;;  %4156 = vst.msk [vmem:[#allocation2 + $0xb0] sm:$0xff] %vm4134_vm14, %v4087_v3 }
 0x595   :  { %3775 = vst.msk [vmem:[#allocation2 + $0xb8] sm:$0xff] %vm3751_vm10, %v3702_v1  ;;  %3411 = vrot.lane.b32.xlu1 %v3322_v35, %s6298_s12 }
 0x596   :  { %3409 = vrot.lane.b32.xlu0 %v3321_v10, %s6298_s12 }
 0x597   :  { %v4208_v62 = vpop.permute.xlu1 %4207 }
 0x598   :  { %v3841_v26 = vpop.permute.xlu0 %3840  ;;  %4277 = vst.msk [vmem:[#allocation2 + $0xb0] sm:$0xff] %vm4255_vm15, %v4208_v62 }
 0x599   :  { %3914 = vst.msk [vmem:[#allocation2 + $0xb8] sm:$0xff] %vm3890_vm12, %v3841_v26  ;;  %3586 = vrot.lane.b32.xlu1 %v3491_v22, %s6300_s18 }
 0x59a   :  { %3715 = vrot.lane.b32.xlu0 %v12660_v0, %s6302_s1 }
 0x59b   :  { %v4210_v30 = vpop.permute.xlu1 %4209 }
 0x59c   :  { %v3968_v59 = vpop.permute.xlu0 %3967  ;;  %v10365_v37 = vpop.f32.mrb[44].mxu1 }
 0x59d   :  { %12736 = vst [vmem:[#allocation45_spill] sm:$0xff] %v10365_v37  ;;  %4036 = vst.msk [vmem:[#allocation2 + $0xb8] sm:$0xff] %vm4013_vm13, %v3968_v59  ;;  %v10368_v34 = vpop.f32.mrb[45].mxu1  ;;  %v4891_v16 = vmul.f32 %v10365_v37, %v10365_v37  ;;  %v4770_v6 = vsel %vm2111_vm1, %v10365_v37, 0.0  ;;  %3717 = vrot.lane.b32.xlu1 %v12734_v49, %s6302_s1 }
 0x59e   :  { %12737 = vst [vmem:[#allocation46_spill] sm:$0xff] %v10368_v34  ;;  %v4766_v21 = vsel %vm2111_vm1, %v10368_v34, 0.0  ;;  %v4889_v40 = vmul.f32 %v10368_v34, %v10368_v34  ;;  %3854 = vrot.lane.b32.xlu0 %v3322_v35, %s6303_s23  ;;  %v10375_v0 = vpop.f32.mrb[46].mxu1 }
 0x59f   :  { %12738 = vst [vmem:[#allocation47_spill] sm:$0xff] %v10375_v0  ;;  %v4767_v41 = vadd.f32 %v4766_v21, %v4765_v20  ;;  %v10380_v48 = vpop.f32.mrb[47].mxu1  ;;  %v4892_v9 = vmul.f32 %v10375_v0, %v10375_v0  ;;  %v4968_v25 = vsel %vm2111_vm1, %v4891_v16, 0.0  ;;  %v4772_v32 = vsel %vm2111_vm1, %v10375_v0, 0.0  ;;  %v3398_v36 = vpop.permute.xlu1 %3397  ;;  %v4308_v20 = vld [vmem:[#allocation2 + $0xb0] sm:$0xff] }
 0x5a0   :  { %12739 = vst [vmem:[#allocation79_spill] sm:$0xff] %v10380_v48  ;;  %v4964_v58 = vsel %vm2111_vm1, %v4889_v40, 0.0  ;;  %v4768_v5 = vsel %vm2111_vm1, %v10380_v48, 0.0  ;;  %v4890_v10 = vmul.f32 %v10380_v48, %v10380_v48  ;;  %v4089_v46 = vpop.permute.xlu0 %4088  ;;  %6173 = vmatprep.mubr.msk.bf16.mxu1 %vm2747_vm4, %v4308_v20 }
 0x5a1   :  { %v4965_v19 = vadd.f32 %v4964_v58, %v4963_v12  ;;  %v4769_v13 = vadd.f32 %v4768_v5, %v4767_v41  ;;  %4157 = vst.msk [vmem:[#allocation2 + $0xb8] sm:$0xff] %vm4134_vm14, %v4089_v46  ;;  %v4970_v29 = vsel %vm2111_vm1, %v4892_v9, 0.0  ;;  %v3791_v12 = vsel %vm6975_vm7, %v3787_v45, 0 }
 0x5a2   :  { %v4966_v28 = vsel %vm2111_vm1, %v4890_v10, 0.0  ;;  %3981 = vrot.lane.b32.xlu0 %v3491_v22, %s6304_s26  ;;  %4278 = vst.msk [vmem:[#allocation2 + $0xb8] sm:$0xff] %vm4255_vm15, %v4210_v30  ;;  %3856 = vrot.lane.b32.xlu1 %v3791_v12, %s6303_s23 }
 0x5a3   :  { %v4771_v15 = vadd.f32 %v4770_v6, %v4769_v13  ;;  %v4967_v50 = vadd.f32 %v4966_v28, %v4965_v19  ;;  %v3573_v35 = vpop.permute.xlu1 %3572 }
 0x5a4   :  { %v3127_v43 = vpop.permute.xlu0 %3126 }
 0x5a5   :  { %v4969_v57 = vadd.f32 %v4968_v25, %v4967_v50  ;;  %3195 = vst.msk [vmem:[#allocation2 + $0xc0] sm:$0xff] %vm3172_vm6, %v3127_v43  ;;  %v4773_v39 = vadd.f32 %v4772_v32, %v4771_v15 }
 0x5a6   :  { %4102 = vrot.lane.b32.xlu0 %v12734_v49, %s6305_s29  ;;  %3466 = vst.msk [vmem:[#allocation2 + $0xc0] sm:$0xff] %vm3443_vm11, %v3398_v36 }
 0x5a7   :  { %v4971_v11 = vadd.f32 %v4970_v29, %v4969_v57  ;;  %3645 = vst.msk [vmem:[#allocation2 + $0xc0] sm:$0xff] %vm3620_vm9, %v3573_v35  ;;  %v3704_v23 = vpop.permute.xlu1 %3703 }
 0x5a8   :  { %v3129_v55 = vpop.permute.xlu0 %3128  ;;  %3776 = vst.msk [vmem:[#allocation2 + $0xc0] sm:$0xff] %vm3751_vm10, %v3704_v23 }
 0x5a9   :  { %3196 = vst.msk [vmem:[#allocation2 + $0xc8] sm:$0xff] %vm3172_vm6, %v3129_v55  ;;  %v4309_v51 = vld [vmem:[#allocation2 + $0xb8] sm:$0xff] }
 0x5aa   :  { %4223 = vrot.lane.b32.xlu0 %v3791_v12, %s6306_s7  ;;  %6174 = vmatmul.mubr.msk.bf16.gmra.mrb[76].mxu1 %vm2747_vm4, %v4309_v51 }
 0x5ab   :  { %v3843_v53 = vpop.permute.xlu1 %3842 }
 0x5ac   :  { %v3400_v2 = vpop.permute.xlu0 %3399  ;;  %3915 = vst.msk [vmem:[#allocation2 + $0xc0] sm:$0xff] %vm3890_vm12, %v3843_v53 }
 0x5ad   :  { %3467 = vst.msk [vmem:[#allocation2 + $0xc8] sm:$0xff] %vm3443_vm11, %v3400_v2 }
 0x5af   :  { %v3970_v56 = vpop.permute.xlu1 %3969 }
 0x5b0   :  { %v3575_v8 = vpop.permute.xlu0 %3574  ;;  %4037 = vst.msk [vmem:[#allocation2 + $0xc0] sm:$0xff] %vm4013_vm13, %v3970_v56 }
 0x5b1   :  { %3646 = vst.msk [vmem:[#allocation2 + $0xc8] sm:$0xff] %vm3620_vm9, %v3575_v8 }
 0x5b3   :  { %v4091_v26 = vpop.permute.xlu1 %4090 }
 0x5b4   :  { %v3706_v49 = vpop.permute.xlu0 %3705  ;;  %4158 = vst.msk [vmem:[#allocation2 + $0xc0] sm:$0xff] %vm4134_vm14, %v4091_v26 }
 0x5b5   :  { %3777 = vst.msk [vmem:[#allocation2 + $0xc8] sm:$0xff] %vm3751_vm10, %v3706_v49 }
 0x5b7   :  { %v4212_v58 = vpop.permute.xlu1 %4211 }
 0x5b8   :  { %v3845_v1 = vpop.permute.xlu0 %3844  ;;  %v10422_v18 = vpop.f32.mrb[48].mxu1  ;;  %4279 = vst.msk [vmem:[#allocation2 + $0xc0] sm:$0xff] %vm4255_vm15, %v4212_v58 }
 0x5b9   :  { %12740 = vst [vmem:[#allocation50_spill] sm:$0xff] %v10422_v18  ;;  %3916 = vst.msk [vmem:[#allocation2 + $0xc8] sm:$0xff] %vm3890_vm12, %v3845_v1  ;;  %v10425_v63 = vpop.f32.mrb[49].mxu1  ;;  %v4895_v62 = vmul.f32 %v10422_v18, %v10422_v18  ;;  %v4778_v5 = vsel %vm2111_vm1, %v10422_v18, 0.0 }
 0x5ba   :  { %12741 = vst [vmem:[#allocation80_spill] sm:$0xff] %v10425_v63  ;;  %v4774_v17 = vsel %vm2111_vm1, %v10425_v63, 0.0  ;;  %v4893_v44 = vmul.f32 %v10425_v63, %v10425_v63  ;;  %v10431_v3 = vpop.f32.mrb[50].mxu1 }
 0x5bb   :  { %12742 = vst [vmem:[#allocation52_spill] sm:$0xff] %v10431_v3  ;;  %v4775_v31 = vadd.f32 %v4774_v17, %v4773_v39  ;;  %v10434_v59 = vpop.f32.mrb[51].mxu1  ;;  %v4896_v10 = vmul.f32 %v10431_v3, %v10431_v3  ;;  %v4976_v30 = vsel %vm2111_vm1, %v4895_v62, 0.0  ;;  %v4780_v6 = vsel %vm2111_vm1, %v10431_v3, 0.0  ;;  %v4214_v45 = vpop.permute.xlu1 %4213 }
 0x5bc   :  { %12743 = vst [vmem:[#allocation81_spill] sm:$0xff] %v10434_v59  ;;  %v4972_v21 = vsel %vm2111_vm1, %v4893_v44, 0.0  ;;  %v4776_v40 = vsel %vm2111_vm1, %v10434_v59, 0.0  ;;  %v4894_v22 = vmul.f32 %v10434_v59, %v10434_v59  ;;  %v3972_v33 = vpop.permute.xlu0 %3971 }
 0x5bd   :  { %v4973_v41 = vadd.f32 %v4972_v21, %v4971_v11  ;;  %v4777_v16 = vadd.f32 %v4776_v40, %v4775_v31  ;;  %4038 = vst.msk [vmem:[#allocation2 + $0xc8] sm:$0xff] %vm4013_vm13, %v3972_v33  ;;  %v4978_v50 = vsel %vm2111_vm1, %v4896_v10, 0.0 }
 0x5be   :  { %v4974_v46 = vsel %vm2111_vm1, %v4894_v22, 0.0 }
 0x5bf   :  { %v4779_v19 = vadd.f32 %v4778_v5, %v4777_v16  ;;  %v4975_v13 = vadd.f32 %v4974_v46, %v4973_v41  ;;  %v3402_v43 = vpop.permute.xlu1 %3401  ;;  %v4310_v57 = vld [vmem:[#allocation2 + $0xc0] sm:$0xff] }
 0x5c0   :  { %v4093_v9 = vpop.permute.xlu0 %4092  ;;  %6177 = vmatprep.mubr.msk.bf16.mxu1 %vm2747_vm4, %v4310_v57 }
 0x5c1   :  { %v4977_v28 = vadd.f32 %v4976_v30, %v4975_v13  ;;  %4159 = vst.msk [vmem:[#allocation2 + $0xc8] sm:$0xff] %vm4134_vm14, %v4093_v9  ;;  %v4781_v15 = vadd.f32 %v4780_v6, %v4779_v19 }
 0x5c2   :  { %4280 = vst.msk [vmem:[#allocation2 + $0xc8] sm:$0xff] %vm4255_vm15, %v4214_v45 }
 0x5c3   :  { %v4979_v25 = vadd.f32 %v4978_v50, %v4977_v28  ;;  %v3577_v20 = vpop.permute.xlu1 %3576 }
 0x5c4   :  { %v3131_v32 = vpop.permute.xlu0 %3130 }
 0x5c5   :  { %3197 = vst.msk [vmem:[#allocation2 + $0xd0] sm:$0xff] %vm3172_vm6, %v3131_v32 }
 0x5c6   :  { %3468 = vst.msk [vmem:[#allocation2 + $0xd0] sm:$0xff] %vm3443_vm11, %v3402_v43 }
 0x5c7   :  { %3647 = vst.msk [vmem:[#allocation2 + $0xd0] sm:$0xff] %vm3620_vm9, %v3577_v20  ;;  %v3708_v12 = vpop.permute.xlu1 %3707 }
 0x5c8   :  { %v3133_v36 = vpop.permute.xlu0 %3132  ;;  %3778 = vst.msk [vmem:[#allocation2 + $0xd0] sm:$0xff] %vm3751_vm10, %v3708_v12 }
 0x5c9   :  { %3198 = vst.msk [vmem:[#allocation2 + $0xd8] sm:$0xff] %vm3172_vm6, %v3133_v36  ;;  %v4311_v39 = vld [vmem:[#allocation2 + $0xc8] sm:$0xff] }
 0x5ca   :  { %6178 = vmatmul.mubr.msk.bf16.gmra.mrb[80].mxu1 %vm2747_vm4, %v4311_v39 }
 0x5cb   :  { %v3847_v55 = vpop.permute.xlu1 %3846 }
 0x5cc   :  { %v3404_v29 = vpop.permute.xlu0 %3403  ;;  %3917 = vst.msk [vmem:[#allocation2 + $0xd0] sm:$0xff] %vm3890_vm12, %v3847_v55 }
 0x5cd   :  { %3469 = vst.msk [vmem:[#allocation2 + $0xd8] sm:$0xff] %vm3443_vm11, %v3404_v29 }
 0x5cf   :  { %v3974_v23 = vpop.permute.xlu1 %3973 }
 0x5d0   :  { %v3579_v11 = vpop.permute.xlu0 %3578  ;;  %4039 = vst.msk [vmem:[#allocation2 + $0xd0] sm:$0xff] %vm4013_vm13, %v3974_v23 }
 0x5d1   :  { %3648 = vst.msk [vmem:[#allocation2 + $0xd8] sm:$0xff] %vm3620_vm9, %v3579_v11 }
 0x5d3   :  { %v4095_v22 = vpop.permute.xlu1 %4094 }
 0x5d4   :  { %v3710_v35 = vpop.permute.xlu0 %3709  ;;  %v10466_v51 = vpop.f32.mrb[52].mxu1  ;;  %4160 = vst.msk [vmem:[#allocation2 + $0xd0] sm:$0xff] %vm4134_vm14, %v4095_v22 }
 0x5d5   :  { %12744 = vst [vmem:[#allocation49_spill] sm:$0xff] %v10466_v51  ;;  %3779 = vst.msk [vmem:[#allocation2 + $0xd8] sm:$0xff] %vm3751_vm10, %v3710_v35  ;;  %v10469_v2 = vpop.f32.mrb[53].mxu1  ;;  %v4899_v26 = vmul.f32 %v10466_v51, %v10466_v51  ;;  %v4786_v33 = vsel %vm2111_vm1, %v10466_v51, 0.0 }
 0x5d6   :  { %12745 = vst [vmem:[#allocation83_spill] sm:$0xff] %v10469_v2  ;;  %v4782_v8 = vsel %vm2111_vm1, %v10469_v2, 0.0  ;;  %v4897_v53 = vmul.f32 %v10469_v2, %v10469_v2  ;;  %v10475_v49 = vpop.f32.mrb[54].mxu1 }
 0x5d7   :  { %12746 = vst [vmem:[#allocation51_spill] sm:$0xff] %v10475_v49  ;;  %v4783_v56 = vadd.f32 %v4782_v8, %v4781_v15  ;;  %v10478_v1 = vpop.f32.mrb[55].mxu1  ;;  %v4900_v41 = vmul.f32 %v10475_v49, %v10475_v49  ;;  %v4984_v10 = vsel %vm2111_vm1, %v4899_v26, 0.0  ;;  %v4788_v46 = vsel %vm2111_vm1, %v10475_v49, 0.0  ;;  %v4216_v30 = vpop.permute.xlu1 %4215 }
 0x5d8   :  { %12747 = vst [vmem:[#allocation84_spill] sm:$0xff] %v10478_v1  ;;  %v4980_v17 = vsel %vm2111_vm1, %v4897_v53, 0.0  ;;  %v4784_v44 = vsel %vm2111_vm1, %v10478_v1, 0.0  ;;  %v4898_v31 = vmul.f32 %v10478_v1, %v10478_v1  ;;  %v3849_v62 = vpop.permute.xlu0 %3848  ;;  %4281 = vst.msk [vmem:[#allocation2 + $0xd0] sm:$0xff] %vm4255_vm15, %v4216_v30 }
 0x5d9   :  { %v4981_v21 = vadd.f32 %v4980_v17, %v4979_v25  ;;  %v4785_v40 = vadd.f32 %v4784_v44, %v4783_v56  ;;  %3918 = vst.msk [vmem:[#allocation2 + $0xd8] sm:$0xff] %vm3890_vm12, %v3849_v62  ;;  %v4986_v9 = vsel %vm2111_vm1, %v4900_v41, 0.0 }
 0x5da   :  { %v4982_v16 = vsel %vm2111_vm1, %v4898_v31, 0.0 }
 0x5db   :  { %v4787_v58 = vadd.f32 %v4786_v33, %v4785_v40  ;;  %v4983_v5 = vadd.f32 %v4982_v16, %v4981_v21  ;;  %v4218_v15 = vpop.permute.xlu1 %4217 }
 0x5dc   :  { %v3976_v19 = vpop.permute.xlu0 %3975 }
 0x5dd   :  { %v4985_v13 = vadd.f32 %v4984_v10, %v4983_v5  ;;  %4040 = vst.msk [vmem:[#allocation2 + $0xd8] sm:$0xff] %vm4013_vm13, %v3976_v19  ;;  %v4789_v6 = vadd.f32 %v4788_v46, %v4787_v58 }
 0x5df   :  { %v4987_v28 = vadd.f32 %v4986_v9, %v4985_v13  ;;  %v3406_v25 = vpop.permute.xlu1 %3405  ;;  %v4312_v32 = vld [vmem:[#allocation2 + $0xd0] sm:$0xff] }
 0x5e0   :  { %v4097_v45 = vpop.permute.xlu0 %4096  ;;  %6181 = vmatprep.mubr.msk.bf16.mxu1 %vm2747_vm4, %v4312_v32 }
 0x5e1   :  { %4161 = vst.msk [vmem:[#allocation2 + $0xd8] sm:$0xff] %vm4134_vm14, %v4097_v45 }
 0x5e2   :  { %4282 = vst.msk [vmem:[#allocation2 + $0xd8] sm:$0xff] %vm4255_vm15, %v4218_v15 }
 0x5e3   :  { %v3581_v57 = vpop.permute.xlu1 %3580 }
 0x5e4   :  { %v3135_v50 = vpop.permute.xlu0 %3134 }
 0x5e5   :  { %3199 = vst.msk [vmem:[#allocation2 + $0xe0] sm:$0xff] %vm3172_vm6, %v3135_v50 }
 0x5e6   :  { %3470 = vst.msk [vmem:[#allocation2 + $0xe0] sm:$0xff] %vm3443_vm11, %v3406_v25 }
 0x5e7   :  { %3649 = vst.msk [vmem:[#allocation2 + $0xe0] sm:$0xff] %vm3620_vm9, %v3581_v57  ;;  %v3712_v39 = vpop.permute.xlu1 %3711 }
 0x5e8   :  { %v3137_v43 = vpop.permute.xlu0 %3136  ;;  %3780 = vst.msk [vmem:[#allocation2 + $0xe0] sm:$0xff] %vm3751_vm10, %v3712_v39 }
 0x5e9   :  { %3200 = vst.msk [vmem:[#allocation2 + $0xe8] sm:$0xff] %vm3172_vm6, %v3137_v43  ;;  %v4313_v36 = vld [vmem:[#allocation2 + $0xd8] sm:$0xff] }
 0x5ea   :  { %6182 = vmatmul.mubr.msk.bf16.gmra.mrb[84].mxu1 %vm2747_vm4, %v4313_v36 }
 0x5eb   :  { %v3851_v55 = vpop.permute.xlu1 %3850 }
 0x5ec   :  { %v3408_v20 = vpop.permute.xlu0 %3407  ;;  %3919 = vst.msk [vmem:[#allocation2 + $0xe0] sm:$0xff] %vm3890_vm12, %v3851_v55 }
 0x5ed   :  { %3471 = vst.msk [vmem:[#allocation2 + $0xe8] sm:$0xff] %vm3443_vm11, %v3408_v20 }
 0x5ef   :  { %v3978_v22 = vpop.permute.xlu1 %3977 }
 0x5f0   :  { %v3583_v29 = vpop.permute.xlu0 %3582  ;;  %v10510_v12 = vpop.f32.mrb[56].mxu1  ;;  %4041 = vst.msk [vmem:[#allocation2 + $0xe0] sm:$0xff] %vm4013_vm13, %v3978_v22 }
 0x5f1   :  { %12748 = vst [vmem:[#allocation56_spill] sm:$0xff] %v10510_v12  ;;  %3650 = vst.msk [vmem:[#allocation2 + $0xe8] sm:$0xff] %vm3620_vm9, %v3583_v29  ;;  %v10513_v11 = vpop.f32.mrb[57].mxu1  ;;  %v4903_v26 = vmul.f32 %v10510_v12, %v10510_v12  ;;  %v4794_v33 = vsel %vm2111_vm1, %v10510_v12, 0.0 }
 0x5f2   :  { %12749 = vst [vmem:[#allocation76_spill] sm:$0xff] %v10513_v11  ;;  %v4790_v35 = vsel %vm2111_vm1, %v10513_v11, 0.0  ;;  %v4901_v23 = vmul.f32 %v10513_v11, %v10513_v11  ;;  %v10519_v8 = vpop.f32.mrb[58].mxu1 }
 0x5f3   :  { %12750 = vst [vmem:[#allocation82_spill] sm:$0xff] %v10519_v8  ;;  %v4791_v53 = vadd.f32 %v4790_v35, %v4789_v6  ;;  %v10522_v56 = vpop.f32.mrb[59].mxu1  ;;  %v4904_v41 = vmul.f32 %v10519_v8, %v10519_v8  ;;  %v4992_v10 = vsel %vm2111_vm1, %v4903_v26, 0.0  ;;  %v4796_v46 = vsel %vm2111_vm1, %v10519_v8, 0.0  ;;  %v4099_v30 = vpop.permute.xlu1 %4098 }
 0x5f4   :  { %12751 = vst [vmem:[#allocation53_spill] sm:$0xff] %v10522_v56  ;;  %v4988_v17 = vsel %vm2111_vm1, %v4901_v23, 0.0  ;;  %v4792_v44 = vsel %vm2111_vm1, %v10522_v56, 0.0  ;;  %v4902_v31 = vmul.f32 %v10522_v56, %v10522_v56  ;;  %v3714_v62 = vpop.permute.xlu0 %3713  ;;  %4162 = vst.msk [vmem:[#allocation2 + $0xe0] sm:$0xff] %vm4134_vm14, %v4099_v30 }
 0x5f5   :  { %v4989_v21 = vadd.f32 %v4988_v17, %v4987_v28  ;;  %v4793_v40 = vadd.f32 %v4792_v44, %v4791_v53  ;;  %3781 = vst.msk [vmem:[#allocation2 + $0xe8] sm:$0xff] %vm3751_vm10, %v3714_v62  ;;  %v4994_v9 = vsel %vm2111_vm1, %v4904_v41, 0.0 }
 0x5f6   :  { %v4990_v16 = vsel %vm2111_vm1, %v4902_v31, 0.0 }
 0x5f7   :  { %v4795_v58 = vadd.f32 %v4794_v33, %v4793_v40  ;;  %v4991_v5 = vadd.f32 %v4990_v16, %v4989_v21  ;;  %v4220_v15 = vpop.permute.xlu1 %4219 }
 0x5f8   :  { %v3853_v19 = vpop.permute.xlu0 %3852  ;;  %4283 = vst.msk [vmem:[#allocation2 + $0xe0] sm:$0xff] %vm4255_vm15, %v4220_v15 }
 0x5f9   :  { %v4993_v13 = vadd.f32 %v4992_v10, %v4991_v5  ;;  %3920 = vst.msk [vmem:[#allocation2 + $0xe8] sm:$0xff] %vm3890_vm12, %v3853_v19  ;;  %v4797_v6 = vadd.f32 %v4796_v46, %v4795_v58 }
 0x5fb   :  { %v4995_v28 = vadd.f32 %v4994_v9, %v4993_v13  ;;  %v4222_v25 = vpop.permute.xlu1 %4221 }
 0x5fc   :  { %v3980_v45 = vpop.permute.xlu0 %3979 }
 0x5fd   :  { %4042 = vst.msk [vmem:[#allocation2 + $0xe8] sm:$0xff] %vm4013_vm13, %v3980_v45 }
 0x5ff   :  { %v3585_v57 = vpop.permute.xlu1 %3584  ;;  %v4314_v36 = vld [vmem:[#allocation2 + $0xe0] sm:$0xff] }
 0x600   :  { %v4101_v50 = vpop.permute.xlu0 %4100  ;;  %6185 = vmatprep.mubr.msk.bf16.mxu1 %vm2747_vm4, %v4314_v36 }
 0x601   :  { %4163 = vst.msk [vmem:[#allocation2 + $0xe8] sm:$0xff] %vm4134_vm14, %v4101_v50 }
 0x602   :  { %4284 = vst.msk [vmem:[#allocation2 + $0xe8] sm:$0xff] %vm4255_vm15, %v4222_v25 }
 0x603   :  { %v3141_v62 = vpop.permute.xlu1 %3140 }
 0x604   :  { %v3139_v32 = vpop.permute.xlu0 %3138  ;;  %3202 = vst.msk [vmem:[#allocation2 + $0xf8] sm:$0xff] %vm3172_vm6, %v3141_v62 }
 0x605   :  { %3201 = vst.msk [vmem:[#allocation2 + $0xf0] sm:$0xff] %vm3172_vm6, %v3139_v32  ;;  %v10549_v43 = vpop.f32.mrb[60].mxu1 }
 0x606   :  { %12752 = vst [vmem:[#allocation86_spill] sm:$0xff] %v10549_v43  ;;  %v10551_v20 = vpop.f32.mrb[61].mxu1  ;;  %v4907_v26 = vmul.f32 %v10549_v43, %v10549_v43  ;;  %v4802_v33 = vsel %vm2111_vm1, %v10549_v43, 0.0 }
 0x607   :  { %12753 = vst [vmem:[#allocation25_spill] sm:$0xff] %v10551_v20  ;;  %v4798_v39 = vsel %vm2111_vm1, %v10551_v20, 0.0  ;;  %v4905_v29 = vmul.f32 %v10551_v20, %v10551_v20  ;;  %v10558_v55 = vpop.f32.mrb[62].mxu1  ;;  %v3412_v13 = vpop.permute.xlu1 %3411 }
 0x608   :  { %12754 = vst [vmem:[#allocation36_spill] sm:$0xff] %v10558_v55  ;;  %v4799_v35 = vadd.f32 %v4798_v39, %v4797_v6  ;;  %v3410_v23 = vpop.permute.xlu0 %3409  ;;  %v10560_v53 = vpop.f32.mrb[63].mxu1  ;;  %v4908_v41 = vmul.f32 %v10558_v55, %v10558_v55  ;;  %v5000_v46 = vsel %vm2111_vm1, %v4907_v26, 0.0  ;;  %v4804_v19 = vsel %vm2111_vm1, %v10558_v55, 0.0  ;;  %3473 = vst.msk [vmem:[#allocation2 + $0xf8] sm:$0xff] %vm3443_vm11, %v3412_v13 }
 0x609   :  { %12755 = vst [vmem:[#allocation59_spill] sm:$0xff] %v10560_v53  ;;  %v4996_v17 = vsel %vm2111_vm1, %v4905_v29, 0.0  ;;  %3472 = vst.msk [vmem:[#allocation2 + $0xf0] sm:$0xff] %vm3443_vm11, %v3410_v23  ;;  %v4800_v44 = vsel %vm2111_vm1, %v10560_v53, 0.0  ;;  %v4906_v31 = vmul.f32 %v10560_v53, %v10560_v53  ;;  %v4315_v21 = vld [vmem:[#allocation2 + $0xe8] sm:$0xff] }
 0x60a   :  { %v4997_v40 = vadd.f32 %v4996_v17, %v4995_v28  ;;  %3651 = vst.msk [vmem:[#allocation2 + $0xf0] sm:$0xff] %vm3620_vm9, %v3585_v57  ;;  %v4801_v22 = vadd.f32 %v4800_v44, %v4799_v35  ;;  %6186 = vmatmul.mubr.msk.bf16.gmra.mrb[88].mxu1 %vm2747_vm4, %v4315_v21  ;;  %v5002_v9 = vsel %vm2111_vm1, %v4908_v41, 0.0 }
 0x60b   :  { %v4998_v16 = vsel %vm2111_vm1, %v4906_v31, 0.0  ;;  %v3587_v15 = vpop.permute.xlu1 %3586 }
 0x60c   :  { %v4803_v58 = vadd.f32 %v4802_v33, %v4801_v22  ;;  %v4999_v5 = vadd.f32 %v4998_v16, %v4997_v40  ;;  %v3716_v10 = vpop.permute.xlu0 %3715  ;;  %3652 = vst.msk [vmem:[#allocation2 + $0xf8] sm:$0xff] %vm3620_vm9, %v3587_v15 }
 0x60d   :  { %3782 = vst.msk [vmem:[#allocation2 + $0xf0] sm:$0xff] %vm3751_vm10, %v3716_v10 }
 0x60e   :  { %v5001_v30 = vadd.f32 %v5000_v46, %v4999_v5  ;;  %v4805_v6 = vadd.f32 %v4804_v19, %v4803_v58 }
 0x60f   :  { %v3718_v25 = vpop.permute.xlu1 %3717 }
 0x610   :  { %v3855_v28 = vpop.permute.xlu0 %3854  ;;  %v5003_v45 = vadd.f32 %v5002_v9, %v5001_v30  ;;  %3783 = vst.msk [vmem:[#allocation2 + $0xf8] sm:$0xff] %vm3751_vm10, %v3718_v25 }
 0x611   :  { %3921 = vst.msk [vmem:[#allocation2 + $0xf0] sm:$0xff] %vm3890_vm12, %v3855_v28  ;;  %v10620_v28 = vpop.f32.mrb[32].mxu0 }
 0x612   :  { %v10623_v15 = vpop.f32.mrb[33].mxu0 }
 0x613   :  { %v10625_v25 = vpop.f32.mrb[34].mxu0 }
 0x614   :  { %v3982_v50 = vpop.permute.xlu0 %3981  ;;  %v3857_v57 = vpop.permute.xlu1 %3856 }
 0x615   :  { %4043 = vst.msk [vmem:[#allocation2 + $0xf0] sm:$0xff] %vm4013_vm13, %v3982_v50 }
 0x616   :  { %3922 = vst.msk [vmem:[#allocation2 + $0xf8] sm:$0xff] %vm3890_vm12, %v3857_v57 }
 0x618   :  { %v4103_v32 = vpop.permute.xlu0 %4102 }
 0x619   :  { %4164 = vst.msk [vmem:[#allocation2 + $0xf0] sm:$0xff] %vm4134_vm14, %v4103_v32  ;;  %v10627_v32 = vpop.f32.mrb[35].mxu0 }
 0x61a   :  { %v10629_v57 = vpop.f32.mrb[36].mxu0 }
 0x61c   :  { %v4224_v36 = vpop.permute.xlu0 %4223 }
 0x61d   :  { %4285 = vst.msk [vmem:[#allocation2 + $0xf0] sm:$0xff] %vm4255_vm15, %v4224_v36  ;;  %v10591_v39 = vpop.f32.mrb[64].mxu1  ;;  %v4317_v5 = vld [vmem:[#allocation2 + $0xf8] sm:$0xff]  ;;  %v10631_v36 = vpop.f32.mrb[37].mxu0 }
 0x61e   :  { %12756 = vst [vmem:[#allocation34_spill] sm:$0xff] %v10591_v39  ;;  %v10593_v29 = vpop.f32.mrb[65].mxu1  ;;  %v4911_v31 = vmul.f32 %v10591_v39, %v10591_v39  ;;  %v4810_v41 = vsel %vm2111_vm1, %v10591_v39, 0.0 }
 0x61f   :  { %12757 = vst [vmem:[#allocation70_spill] sm:$0xff] %v10593_v29  ;;  %v4806_v35 = vsel %vm2111_vm1, %v10593_v29, 0.0  ;;  %v4909_v23 = vmul.f32 %v10593_v29, %v10593_v29  ;;  %v10599_v26 = vpop.f32.mrb[66].mxu1 }
 0x620   :  { %12758 = vst [vmem:[#allocation38_spill] sm:$0xff] %v10599_v26  ;;  %v4807_v17 = vadd.f32 %v4806_v35, %v4805_v6  ;;  %v10601_v44 = vpop.f32.mrb[67].mxu1  ;;  %v4912_v16 = vmul.f32 %v10599_v26, %v10599_v26  ;;  %v5008_v13 = vsel %vm2111_vm1, %v4911_v31, 0.0  ;;  %v4812_v30 = vsel %vm2111_vm1, %v10599_v26, 0.0  ;;  %v10633_v35 = vpop.f32.mrb[38].mxu0 }
 0x621   :  { %12759 = vst [vmem:[#allocation55_spill] sm:$0xff] %v10601_v44  ;;  %v5004_v62 = vsel %vm2111_vm1, %v4909_v23, 0.0  ;;  %v4808_v21 = vsel %vm2111_vm1, %v10601_v44, 0.0  ;;  %v4910_v40 = vmul.f32 %v10601_v44, %v10601_v44  ;;  %v10635_v23 = vpop.f32.mrb[39].mxu0 }
 0x622   :  { %v5005_v22 = vadd.f32 %v5004_v62, %v5003_v45  ;;  %v4809_v33 = vadd.f32 %v4808_v21, %v4807_v17  ;;  %v5010_v45 = vsel %vm2111_vm1, %v4912_v16, 0.0  ;;  %v10637_v17 = vpop.f32.mrb[40].mxu0 }
 0x623   :  { %v5006_v58 = vsel %vm2111_vm1, %v4910_v40, 0.0  ;;  %v10639_v31 = vpop.f32.mrb[41].mxu0 }
 0x624   :  { %v4811_v10 = vadd.f32 %v4810_v41, %v4809_v33  ;;  %v5007_v46 = vadd.f32 %v5006_v58, %v5005_v22  ;;  %v4316_v19 = vld [vmem:[#allocation2 + $0xf0] sm:$0xff]  ;;  %v10641_v62 = vpop.f32.mrb[42].mxu0 }
 0x625   :  { %6189 = vmatprep.mubr.msk.bf16.mxu1 %vm2747_vm4, %v4316_v19  ;;  %v10643_v21 = vpop.f32.mrb[43].mxu0 }
 0x626   :  { %v5009_v6 = vadd.f32 %v5008_v13, %v5007_v46  ;;  %6190 = vmatmul.mubr.msk.bf16.gmra.mrb[92].mxu1 %vm2747_vm4, %v4317_v5  ;;  %v4813_v9 = vadd.f32 %v4812_v30, %v4811_v10 }
 0x628   :  { %v5011_v50 = vadd.f32 %v5010_v45, %v5009_v6 }
 0x63d   :  { %v10645_v40 = vpop.f32.mrb[68].mxu1 }
 0x63e   :  { %12760 = vst [vmem:[#allocation91_spill] sm:$0xff] %v10645_v40  ;;  %v10647_v22 = vpop.f32.mrb[69].mxu1  ;;  %v4915_v10 = vmul.f32 %v10645_v40, %v10645_v40  ;;  %v4818_v45 = vsel %vm2111_vm1, %v10645_v40, 0.0 }
 0x63f   :  { %12761 = vst [vmem:[#allocation85_spill] sm:$0xff] %v10647_v22  ;;  %v4814_v33 = vsel %vm2111_vm1, %v10647_v22, 0.0  ;;  %v4913_v41 = vmul.f32 %v10647_v22, %v10647_v22  ;;  %v10653_v16 = vpop.f32.mrb[70].mxu1 }
 0x640   :  { %12762 = vst [vmem:[#allocation57_spill] sm:$0xff] %v10653_v16  ;;  %v4815_v58 = vadd.f32 %v4814_v33, %v4813_v9  ;;  %v10655_v5 = vpop.f32.mrb[71].mxu1  ;;  %v4916_v9 = vmul.f32 %v10653_v16, %v10653_v16  ;;  %v4820_v39 = vsel %vm2111_vm1, %v10653_v16, 0.0 }
 0x641   :  { %12763 = vst [vmem:[#allocation92_spill] sm:$0xff] %v10655_v5  ;;  %v5012_v46 = vsel %vm2111_vm1, %v4913_v41, 0.0  ;;  %v4816_v19 = vsel %vm2111_vm1, %v10655_v5, 0.0  ;;  %v4914_v13 = vmul.f32 %v10655_v5, %v10655_v5  ;;  %v5016_v41 = vsel %vm2111_vm1, %v4915_v10, 0.0  ;;  %v10672_v5 = vpop.f32.mrb[44].mxu0 }
 0x642   :  { %v5013_v30 = vadd.f32 %v5012_v46, %v5011_v50  ;;  %v4817_v6 = vadd.f32 %v4816_v19, %v4815_v58  ;;  %v5018_v50 = vsel %vm2111_vm1, %v4916_v9, 0.0  ;;  %v10675_v58 = vpop.f32.mrb[45].mxu0 }
 0x643   :  { %v5014_v33 = vsel %vm2111_vm1, %v4914_v13, 0.0  ;;  %v10677_v19 = vpop.f32.mrb[46].mxu0 }
 0x644   :  { %v4819_v22 = vadd.f32 %v4818_v45, %v4817_v6  ;;  %v5015_v26 = vadd.f32 %v5014_v33, %v5013_v30  ;;  %v10679_v40 = vpop.f32.mrb[47].mxu0 }
 0x645   :  { %v10681_v13 = vpop.f32.mrb[48].mxu0 }
 0x646   :  { %v5017_v44 = vadd.f32 %v5016_v41, %v5015_v26  ;;  %v4821_v29 = vadd.f32 %v4820_v39, %v4819_v22  ;;  %v10683_v30 = vpop.f32.mrb[49].mxu0 }
 0x647   :  { %v10685_v10 = vpop.f32.mrb[50].mxu0 }
 0x648   :  { %v5019_v46 = vadd.f32 %v5018_v50, %v5017_v44  ;;  %v10687_v6 = vpop.f32.mrb[51].mxu0 }
 0x649   :  { %v10689_v39 = vpop.f32.mrb[52].mxu0 }
 0x64a   :  { %v10691_v26 = vpop.f32.mrb[53].mxu0 }
 0x64b   :  { %v10693_v22 = vpop.f32.mrb[54].mxu0 }
 0x64c   :  { %v10695_v45 = vpop.f32.mrb[55].mxu0 }
 0x64d   :  { %v10697_v44 = vpop.f32.mrb[56].mxu0 }
 0x64e   :  { %v10699_v9 = vpop.f32.mrb[57].mxu0 }
 0x64f   :  { %v10701_v33 = vpop.f32.mrb[58].mxu0 }
 0x650   :  { %v10703_v41 = vpop.f32.mrb[59].mxu0 }
 0x65d   :  { %v10705_v50 = vpop.f32.mrb[72].mxu1 }
 0x65e   :  { %12764 = vst [vmem:[#allocation69_spill] sm:$0xff] %v10705_v50  ;;  %v10707_v16 = vpop.f32.mrb[73].mxu1  ;;  %v4919_v12 = vmul.f32 %v10705_v50, %v10705_v50 }
 0x65f   :  { %12765 = vst [vmem:[#allocation40_spill] sm:$0xff] %v10707_v16  ;;  %v4822_v55 = vsel %vm2111_vm1, %v10707_v16, 0.0  ;;  %v4917_v43 = vmul.f32 %v10707_v16, %v10707_v16  ;;  %v10713_v53 = vpop.f32.mrb[74].mxu1  ;;  %v4826_v16 = vsel %vm2111_vm1, %v10705_v50, 0.0 }
 0x660   :  { %12766 = vst [vmem:[#allocation60_spill] sm:$0xff] %v10713_v53  ;;  %v4823_v20 = vadd.f32 %v4822_v55, %v4821_v29  ;;  %v10715_v8 = vpop.f32.mrb[75].mxu1  ;;  %v4920_v55 = vmul.f32 %v10713_v53, %v10713_v53  ;;  %v4828_v18 = vsel %vm2111_vm1, %v10713_v53, 0.0 }
 0x661   :  { %12767 = vst [vmem:[#allocation93_spill] sm:$0xff] %v10715_v8  ;;  %v5020_v56 = vsel %vm2111_vm1, %v4917_v43, 0.0  ;;  %v4824_v11 = vsel %vm2111_vm1, %v10715_v8, 0.0  ;;  %v4918_v49 = vmul.f32 %v10715_v8, %v10715_v8  ;;  %v5024_v43 = vsel %vm2111_vm1, %v4919_v12, 0.0  ;;  %v10732_v8 = vpop.f32.mrb[60].mxu0 }
 0x662   :  { %v5021_v51 = vadd.f32 %v5020_v56, %v5019_v46  ;;  %v4825_v1 = vadd.f32 %v4824_v11, %v4823_v20  ;;  %v5026_v11 = vsel %vm2111_vm1, %v4920_v55, 0.0  ;;  %v10735_v56 = vpop.f32.mrb[61].mxu0 }
 0x663   :  { %v5022_v29 = vsel %vm2111_vm1, %v4918_v49, 0.0  ;;  %v10737_v46 = vpop.f32.mrb[62].mxu0 }
 0x664   :  { %v4827_v2 = vadd.f32 %v4826_v16, %v4825_v1  ;;  %v5023_v3 = vadd.f32 %v5022_v29, %v5021_v51  ;;  %v10739_v50 = vpop.f32.mrb[63].mxu0 }
 0x665   :  { %v10741_v49 = vpop.f32.mrb[64].mxu0 }
 0x666   :  { %v5025_v59 = vadd.f32 %v5024_v43, %v5023_v3  ;;  %v4829_v63 = vadd.f32 %v4828_v18, %v4827_v2  ;;  %v10743_v51 = vpop.f32.mrb[65].mxu0 }
 0x667   :  { %v10745_v1 = vpop.f32.mrb[66].mxu0 }
 0x668   :  { %v5027_v20 = vadd.f32 %v5026_v11, %v5025_v59  ;;  %v10747_v12 = vpop.f32.mrb[67].mxu0 }
 0x669   :  { %v10749_v18 = vpop.f32.mrb[68].mxu0 }
 0x66a   :  { %v10751_v3 = vpop.f32.mrb[69].mxu0 }
 0x66b   :  { %v10753_v2 = vpop.f32.mrb[70].mxu0 }
 0x66c   :  { %v10755_v16 = vpop.f32.mrb[71].mxu0 }
 0x67d   :  { %v10757_v59 = vpop.f32.mrb[76].mxu1 }
 0x67e   :  { %12768 = vst [vmem:[#allocation61_spill] sm:$0xff] %v10757_v59  ;;  %v10759_v55 = vpop.f32.mrb[77].mxu1  ;;  %v4923_v37 = vmul.f32 %v10757_v59, %v10757_v59 }
 0x67f   :  { %12769 = vst [vmem:[#allocation62_spill] sm:$0xff] %v10759_v55  ;;  %v4830_v29 = vsel %vm2111_vm1, %v10759_v55, 0.0  ;;  %v4921_v43 = vmul.f32 %v10759_v55, %v10759_v55  ;;  %v10765_v11 = vpop.f32.mrb[78].mxu1  ;;  %v4834_v55 = vsel %vm2111_vm1, %v10757_v59, 0.0 }
 0x680   :  { %12770 = vst [vmem:[#allocation94_spill] sm:$0xff] %v10765_v11  ;;  %v4831_v53 = vadd.f32 %v4830_v29, %v4829_v63  ;;  %v10767_v0 = vpop.f32.mrb[79].mxu1  ;;  %v4924_v63 = vmul.f32 %v10765_v11, %v10765_v11  ;;  %v4836_v61 = vsel %vm2111_vm1, %v10765_v11, 0.0 }
 0x681   :  { %12771 = vst [vmem:[#allocation63_spill] sm:$0xff] %v10767_v0  ;;  %v5028_v48 = vsel %vm2111_vm1, %v4921_v43, 0.0  ;;  %v4832_v34 = vsel %vm2111_vm1, %v10767_v0, 0.0  ;;  %v4922_v27 = vmul.f32 %v10767_v0, %v10767_v0  ;;  %v5032_v43 = vsel %vm2111_vm1, %v4923_v37, 0.0 }
 0x682   :  { %v5029_v54 = vadd.f32 %v5028_v48, %v5027_v20  ;;  %v4833_v7 = vadd.f32 %v4832_v34, %v4831_v53  ;;  %v5034_v48 = vsel %vm2111_vm1, %v4924_v63, 0.0 }
 0x683   :  { %v5030_v29 = vsel %vm2111_vm1, %v4922_v27, 0.0 }
 0x684   :  { %v4835_v52 = vadd.f32 %v4834_v55, %v4833_v7  ;;  %v5031_v38 = vadd.f32 %v5030_v29, %v5029_v54 }
 0x686   :  { %v5033_v42 = vadd.f32 %v5032_v43, %v5031_v38  ;;  %v4837_v24 = vadd.f32 %v4836_v61, %v4835_v52 }
 0x688   :  { %v5035_v34 = vadd.f32 %v5034_v48, %v5033_v42 }
 0x69d   :  { %v10785_v53 = vpop.f32.mrb[80].mxu1 }
 0x69e   :  { %12772 = vst [vmem:[#allocation35_spill] sm:$0xff] %v10785_v53  ;;  %v10787_v20 = vpop.f32.mrb[81].mxu1  ;;  %v4927_v61 = vmul.f32 %v10785_v53, %v10785_v53  ;;  %v4842_v29 = vsel %vm2111_vm1, %v10785_v53, 0.0 }
 0x69f   :  { %12773 = vst [vmem:[#allocation39_spill] sm:$0xff] %v10787_v20  ;;  %v4838_v0 = vsel %vm2111_vm1, %v10787_v20, 0.0  ;;  %v4925_v54 = vmul.f32 %v10787_v20, %v10787_v20  ;;  %v10793_v27 = vpop.f32.mrb[82].mxu1 }
 0x6a0   :  { %12774 = vst [vmem:[#allocation64_spill] sm:$0xff] %v10793_v27  ;;  %v4839_v7 = vadd.f32 %v4838_v0, %v4837_v24  ;;  %v10795_v37 = vpop.f32.mrb[83].mxu1  ;;  %v4928_v24 = vmul.f32 %v10793_v27, %v10793_v27  ;;  %v4844_v20 = vsel %vm2111_vm1, %v10793_v27, 0.0 }
 0x6a1   :  { %12775 = vst [vmem:[#allocation71_spill] sm:$0xff] %v10795_v37  ;;  %v5036_v38 = vsel %vm2111_vm1, %v4925_v54, 0.0  ;;  %v4840_v42 = vsel %vm2111_vm1, %v10795_v37, 0.0  ;;  %v4926_v52 = vmul.f32 %v10795_v37, %v10795_v37  ;;  %v5040_v54 = vsel %vm2111_vm1, %v4927_v61, 0.0 }
 0x6a2   :  { %v5037_v55 = vadd.f32 %v5036_v38, %v5035_v34  ;;  %v4841_v63 = vadd.f32 %v4840_v42, %v4839_v7  ;;  %v5042_v34 = vsel %vm2111_vm1, %v4928_v24, 0.0  ;;  %v10815_v42 = vpop.f32.mrb[72].mxu0 }
 0x6a3   :  { %v5038_v0 = vsel %vm2111_vm1, %v4926_v52, 0.0 }
 0x6a4   :  { %v4843_v43 = vadd.f32 %v4842_v29, %v4841_v63  ;;  %v5039_v48 = vadd.f32 %v5038_v0, %v5037_v55 }
 0x6a6   :  { %v5041_v11 = vadd.f32 %v5040_v54, %v5039_v48  ;;  %v4845_v59 = vadd.f32 %v4844_v20, %v4843_v43 }
 0x6a8   :  { %v5043_v7 = vadd.f32 %v5042_v34, %v5041_v11 }
 0x6bd   :  { %v10813_v38 = vpop.f32.mrb[84].mxu1 }
 0x6be   :  { %12776 = vst [vmem:[#allocation5_spill] sm:$0xff] %v10813_v38  ;;  %v10817_v37 = vpop.f32.mrb[85].mxu1  ;;  %v4931_v11 = vmul.f32 %v10813_v38, %v10813_v38  ;;  %v4850_v54 = vsel %vm2111_vm1, %v10813_v38, 0.0 }
 0x6bf   :  { %12777 = vst [vmem:[#allocation3_spill] sm:$0xff] %v10817_v37  ;;  %v4846_v52 = vsel %vm2111_vm1, %v10817_v37, 0.0  ;;  %v4929_v61 = vmul.f32 %v10817_v37, %v10817_v37  ;;  %v10823_v55 = vpop.f32.mrb[86].mxu1 }
 0x6c0   :  { %12778 = vst [vmem:[#allocation65_spill] sm:$0xff] %v10823_v55  ;;  %v4847_v63 = vadd.f32 %v4846_v52, %v4845_v59  ;;  %v10825_v29 = vpop.f32.mrb[87].mxu1  ;;  %v4932_v59 = vmul.f32 %v10823_v55, %v10823_v55  ;;  %v4852_v27 = vsel %vm2111_vm1, %v10823_v55, 0.0 }
 0x6c1   :  { %12779 = vst [vmem:[#allocation4_spill] sm:$0xff] %v10825_v29  ;;  %v5044_v20 = vsel %vm2111_vm1, %v4929_v61, 0.0  ;;  %v4848_v24 = vsel %vm2111_vm1, %v10825_v29, 0.0  ;;  %v4930_v0 = vmul.f32 %v10825_v29, %v10825_v29  ;;  %v5048_v61 = vsel %vm2111_vm1, %v4931_v11, 0.0  ;;  %v10842_v29 = vpop.f32.mrb[73].mxu0 }
 0x6c2   :  { %v5045_v43 = vadd.f32 %v5044_v20, %v5043_v7  ;;  %v4849_v48 = vadd.f32 %v4848_v24, %v4847_v63  ;;  %12780 = vst [vmem:[#allocation7_spill] sm:$0xff] %v10842_v29  ;;  %v5050_v7 = vsel %vm2111_vm1, %v4932_v59, 0.0  ;;  %v10845_v63 = vpop.f32.mrb[74].mxu0 }
 0x6c3   :  { %v5046_v34 = vsel %vm2111_vm1, %v4930_v0, 0.0  ;;  %12781 = vst [vmem:[#allocation87_spill] sm:$0xff] %v10845_v63  ;;  %v10847_v24 = vpop.f32.mrb[75].mxu0 }
 0x6c4   :  { %v4851_v52 = vadd.f32 %v4850_v54, %v4849_v48  ;;  %v5047_v37 = vadd.f32 %v5046_v34, %v5045_v43  ;;  %12782 = vst [vmem:[#allocation6_spill] sm:$0xff] %v10847_v24  ;;  %v10849_v38 = vpop.f32.mrb[76].mxu0 }
 0x6c5   :  { %12783 = vst [vmem:[#allocation9_spill] sm:$0xff] %v10849_v38  ;;  %v10851_v0 = vpop.f32.mrb[77].mxu0 }
 0x6c6   :  { %v5049_v53 = vadd.f32 %v5048_v61, %v5047_v37  ;;  %v4853_v4 = vadd.f32 %v4852_v27, %v4851_v52  ;;  %12784 = vst [vmem:[#allocation8_spill] sm:$0xff] %v10851_v0  ;;  %v10853_v43 = vpop.f32.mrb[78].mxu0 }
 0x6c7   :  { %12785 = vst [vmem:[#allocation11_spill] sm:$0xff] %v10853_v43  ;;  %v10855_v11 = vpop.f32.mrb[79].mxu0 }
 0x6c8   :  { %v5051_v20 = vadd.f32 %v5050_v7, %v5049_v53  ;;  %12786 = vst [vmem:[#allocation10_spill] sm:$0xff] %v10855_v11  ;;  %v10857_v48 = vpop.f32.mrb[80].mxu0 }
 0x6c9   :  { %12787 = vst [vmem:[#allocation13_spill] sm:$0xff] %v10857_v48  ;;  %v10859_v27 = vpop.f32.mrb[81].mxu0 }
 0x6ca   :  { %12788 = vst [vmem:[#allocation66_spill] sm:$0xff] %v10859_v27  ;;  %v10861_v37 = vpop.f32.mrb[82].mxu0 }
 0x6cb   :  { %12789 = vst [vmem:[#allocation12_spill] sm:$0xff] %v10861_v37  ;;  %v10863_v54 = vpop.f32.mrb[83].mxu0 }
 0x6cc   :  { %12790 = vst [vmem:[#allocation15_spill] sm:$0xff] %v10863_v54  ;;  %v10867_v53 = vpop.f32.mrb[84].mxu0 }
 0x6cd   :  { %12792 = vst [vmem:[#allocation72_spill] sm:$0xff] %v10867_v53  ;;  %v10871_v52 = vpop.f32.mrb[85].mxu0 }
 0x6ce   :  { %12794 = vst [vmem:[#allocation14_spill] sm:$0xff] %v10871_v52  ;;  %v10879_v60 = vpop.f32.mrb[86].mxu0 }
 0x6cf   :  { %12796 = vst [vmem:[#allocation37_spill] sm:$0xff] %v10879_v60  ;;  %v10883_v54 = vpop.f32.mrb[87].mxu0 }
 0x6d0   :  { %12798 = vst [vmem:[#allocation19_spill] sm:$0xff] %v10883_v54  ;;  %v10900_v0 = vpop.f32.mrb[88].mxu0 }
 0x6d1   :  { %12799 = vst [vmem:[#allocation18_spill] sm:$0xff] %v10900_v0 }
 0x6dd   :  { %v10865_v59 = vpop.f32.mrb[88].mxu1 }
 0x6de   :  { %12791 = vst [vmem:[#allocation95_spill] sm:$0xff] %v10865_v59  ;;  %v10869_v34 = vpop.f32.mrb[89].mxu1  ;;  %v4935_v53 = vmul.f32 %v10865_v59, %v10865_v59 }
 0x6df   :  { %12793 = vst [vmem:[#allocation88_spill] sm:$0xff] %v10869_v34  ;;  %v4854_v61 = vsel %vm2111_vm1, %v10869_v34, 0.0  ;;  %v4933_v7 = vmul.f32 %v10869_v34, %v10869_v34  ;;  %v10877_v55 = vpop.f32.mrb[90].mxu1 }
 0x6e0   :  { %12795 = vst [vmem:[#allocation17_spill] sm:$0xff] %v10877_v55  ;;  %v4855_v14 = vadd.f32 %v4854_v61, %v4853_v4  ;;  %v10881_v47 = vpop.f32.mrb[91].mxu1  ;;  %v4858_v4 = vsel %vm2111_vm1, %v10865_v59, 0.0  ;;  %v4936_v61 = vmul.f32 %v10877_v55, %v10877_v55  ;;  %v4860_v43 = vsel %vm2111_vm1, %v10877_v55, 0.0 }
 0x6e1   :  { %12797 = vst [vmem:[#allocation16_spill] sm:$0xff] %v10881_v47  ;;  %v5052_v52 = vsel %vm2111_vm1, %v4933_v7, 0.0  ;;  %v4856_v37 = vsel %vm2111_vm1, %v10881_v47, 0.0  ;;  %v4934_v34 = vmul.f32 %v10881_v47, %v10881_v47  ;;  %v5056_v7 = vsel %vm2111_vm1, %v4935_v53, 0.0 }
 0x6e2   :  { %v5053_v27 = vadd.f32 %v5052_v52, %v5051_v20  ;;  %v4857_v48 = vadd.f32 %v4856_v37, %v4855_v14  ;;  %v10902_v14 = vpop.f32.mrb[89].mxu0  ;;  %v5058_v37 = vsel %vm2111_vm1, %v4936_v61, 0.0 }
 0x6e3   :  { %v5054_v54 = vsel %vm2111_vm1, %v4934_v34, 0.0  ;;  %12800 = vst [vmem:[#allocation67_spill] sm:$0xff] %v10902_v14  ;;  %v10905_v52 = vpop.f32.mrb[90].mxu0 }
 0x6e4   :  { %v4859_v60 = vadd.f32 %v4858_v4, %v4857_v48  ;;  %v5055_v11 = vadd.f32 %v5054_v54, %v5053_v27  ;;  %12801 = vst [vmem:[#allocation21_spill] sm:$0xff] %v10905_v52  ;;  %v10907_v38 = vpop.f32.mrb[91].mxu0 }
 0x6e5   :  { %12802 = vst [vmem:[#allocation20_spill] sm:$0xff] %v10907_v38  ;;  %v10909_v48 = vpop.f32.mrb[92].mxu0 }
 0x6e6   :  { %v5057_v47 = vadd.f32 %v5056_v7, %v5055_v11  ;;  %v4861_v20 = vadd.f32 %v4860_v43, %v4859_v60  ;;  %12803 = vst [vmem:[#allocation89_spill] sm:$0xff] %v10909_v48  ;;  %v10911_v27 = vpop.f32.mrb[93].mxu0 }
 0x6e7   :  { %12804 = vst [vmem:[#allocation23_spill] sm:$0xff] %v10911_v27  ;;  %v10913_v54 = vpop.f32.mrb[94].mxu0 }
 0x6e8   :  { %v5059_v59 = vadd.f32 %v5058_v37, %v5057_v47  ;;  %12805 = vst [vmem:[#allocation22_spill] sm:$0xff] %v10913_v54  ;;  %v10915_v53 = vpop.f32.mrb[95].mxu0 }
 0x6e9   :  { %12806 = vst [vmem:[#allocation26_spill] sm:$0xff] %v10915_v53 }
 0x6f9   :  { %v10917_v34 = vpop.f32.mrb[92].mxu1 }
 0x6fa   :  { %12807 = vst [vmem:[#allocation24_spill] sm:$0xff] %v10917_v34  ;;  %v10919_v60 = vpop.f32.mrb[93].mxu1  ;;  %v4939_v7 = vmul.f32 %v10917_v34, %v10917_v34 }
 0x6fb   :  { %12808 = vst [vmem:[#allocation28_spill] sm:$0xff] %v10919_v60  ;;  %v4862_v43 = vsel %vm2111_vm1, %v10919_v60, 0.0  ;;  %v4937_v47 = vmul.f32 %v10919_v60, %v10919_v60  ;;  %v10925_v11 = vpop.f32.mrb[94].mxu1  ;;  %v4866_v60 = vsel %vm2111_vm1, %v10917_v34, 0.0 }
 0x6fc   :  { %12809 = vst [vmem:[#allocation27_spill] sm:$0xff] %v10925_v11  ;;  %v4863_v4 = vadd.f32 %v4862_v43, %v4861_v20  ;;  %v10927_v61 = vpop.f32.mrb[95].mxu1  ;;  %v4940_v20 = vmul.f32 %v10925_v11, %v10925_v11  ;;  %v4868_v52 = vsel %vm2111_vm1, %v10925_v11, 0.0 }
 0x6fd   :  { %12810 = vst [vmem:[#allocation68_spill] sm:$0xff] %v10927_v61  ;;  %v5060_v37 = vsel %vm2111_vm1, %v4937_v47, 0.0  ;;  %v4864_v54 = vsel %vm2111_vm1, %v10927_v61, 0.0  ;;  %v4938_v55 = vmul.f32 %v10927_v61, %v10927_v61  ;;  %v5064_v47 = vsel %vm2111_vm1, %v4939_v7, 0.0 }
 0x6fe   :  { %v5061_v53 = vadd.f32 %v5060_v37, %v5059_v59  ;;  %v4865_v27 = vadd.f32 %v4864_v54, %v4863_v4  ;;  %v5066_v59 = vsel %vm2111_vm1, %v4940_v20, 0.0  ;;  %v12848_v20 = vld [vmem:[#allocation6_spill] sm:$0xff] }
 0x6ff   :  { %v5062_v43 = vsel %vm2111_vm1, %v4938_v55, 0.0 }
 0x700   :  { %v4867_v48 = vadd.f32 %v4866_v60, %v4865_v27  ;;  %v5063_v38 = vadd.f32 %v5062_v43, %v5061_v53 }
 0x702   :  { %v4869_v14 = vadd.f32 %v4868_v52, %v4867_v48  ;;  %v5065_v0 = vadd.f32 %v5064_v47, %v5063_v38  ;;  %v12850_v47 = vld [vmem:[#allocation9_spill] sm:$0xff] }
 0x704   :  { %v4870_v54 = vrot.slane %v4869_v14, 4  ;;  %v5067_v4 = vadd.f32 %v5066_v59, %v5065_v0  ;;  %v10952_v0 = vld [vmem:[%s11993_s4 + $0x4] ss:$0 sm:$0xff] }
 0x705   :  { %12811 = vst [vmem:[#allocation31_spill] sm:$0xff] %v10952_v0  ;;  %v10956_v52 = vadd.f32 %v10620_v28, %v10952_v0  ;;  %v10968_v48 = vadd.f32 %v10952_v0, %v10627_v32  ;;  %v10976_v28 = vadd.f32 %v10952_v0, %v10631_v36  ;;  %v10988_v32 = vadd.f32 %v10637_v17, %v10952_v0 }
 0x706   :  { %v4871_v37 = vadd.f32 %v4870_v54, %v4869_v14  ;;  %v5068_v34 = vrot.slane %v5067_v4, 4  ;;  %v10996_v36 = vadd.f32 %v10641_v62, %v10952_v0  ;;  %v11008_v17 = vadd.f32 %v10952_v0, %v10675_v58  ;;  %v12852_v54 = vld [vmem:[#allocation8_spill] sm:$0xff] }
 0x707   :  { %12812 = vst [vmem:[#allocation29_spill] sm:$0xff] %v10988_v32  ;;  %v11016_v62 = vadd.f32 %v10952_v0, %v10679_v40  ;;  %v11028_v58 = vadd.f32 %v10685_v10, %v10952_v0  ;;  %v11036_v40 = vadd.f32 %v10689_v39, %v10952_v0  ;;  %v11048_v10 = vadd.f32 %v10952_v0, %v10695_v45 }
 0x708   :  { %v4872_v61 = vrot.slane %v4871_v37, 2  ;;  %v5069_v24 = vadd.f32 %v5068_v34, %v5067_v4  ;;  %v10972_v34 = vadd.f32 %v10629_v57, %v10952_v0  ;;  %v10992_v57 = vadd.f32 %v10952_v0, %v10639_v31  ;;  %12813 = vst [vmem:[#allocation32_spill] sm:$0xff] %v10996_v36  ;;  %12816 = vst [vmem:[#allocation33_spill] sm:$0xff] %v11008_v17  ;;  %v12933_v36 = vld [vmem:[#allocation40_spill] sm:$0xff] }
 0x709   :  { %v11012_v31 = vadd.f32 %v10677_v19, %v10952_v0  ;;  %12818 = vst [vmem:[#allocation98_spill] sm:$0xff] %v11016_v62  ;;  %12821 = vst [vmem:[#allocation101_spill] sm:$0xff] %v11028_v58  ;;  %v11032_v19 = vadd.f32 %v10952_v0, %v10687_v6  ;;  %v11052_v6 = vadd.f32 %v10697_v44, %v10952_v0  ;;  %v12930_v62 = vld [vmem:[#allocation68_spill] sm:$0xff] }
 0x70a   :  { %v4873_v63 = vadd.f32 %v4872_v61, %v4871_v37  ;;  %v5070_v29 = vrot.slane %v5069_v24, 2  ;;  %12823 = vst [vmem:[#allocation103_spill] sm:$0xff] %v11036_v40  ;;  %12826 = vst [vmem:[#allocation106_spill] sm:$0xff] %v11048_v10  ;;  %v11056_v39 = vadd.f32 %v10952_v0, %v10699_v9  ;;  %v11068_v45 = vadd.f32 %v10732_v8, %v10952_v0  ;;  %v12846_v61 = vld [vmem:[#allocation87_spill] sm:$0xff]  ;;  %v12922_v10 = vld [vmem:[#allocation70_spill] sm:$0xff] }
 0x70b   :  { %12817 = vst [vmem:[#allocation97_spill] sm:$0xff] %v11012_v31  ;;  %12822 = vst [vmem:[#allocation102_spill] sm:$0xff] %v11032_v19  ;;  %v11072_v44 = vadd.f32 %v10952_v0, %v10735_v56  ;;  %v11076_v9 = vadd.f32 %v10737_v46, %v10952_v0  ;;  %v11088_v8 = vadd.f32 %v10952_v0, %v10743_v51  ;;  %v12854_v37 = vld [vmem:[#allocation11_spill] sm:$0xff]  ;;  %v12926_v19 = vld [vmem:[#allocation85_spill] sm:$0xff] }
 0x70c   :  { %v4874_v55 = vrot.slane %v4873_v63, 1  ;;  %v5071_v27 = vadd.f32 %v5070_v29, %v5069_v24  ;;  %v10960_v29 = vadd.f32 %v10952_v0, %v10623_v15  ;;  %v10980_v15 = vadd.f32 %v10633_v35, %v10952_v0  ;;  %12827 = vst [vmem:[#allocation107_spill] sm:$0xff] %v11052_v6  ;;  %12828 = vst [vmem:[#allocation108_spill] sm:$0xff] %v11056_v39  ;;  %v12919_v39 = vld [vmem:[#allocation59_spill] sm:$0xff] }
 0x70d   :  { %v11000_v35 = vadd.f32 %v10952_v0, %v10643_v21  ;;  %v11020_v21 = vadd.f32 %v10681_v13, %v10952_v0  ;;  %v11040_v13 = vadd.f32 %v10952_v0, %v10691_v26  ;;  %v11060_v26 = vadd.f32 %v10701_v33, %v10952_v0  ;;  %12831 = vst [vmem:[#allocation111_spill] sm:$0xff] %v11068_v45 }
 0x70e   :  { %v4875_v53 = vadd.f32 %v4874_v55, %v4873_v63  ;;  %v5072_v60 = vrot.slane %v5071_v27, 1  ;;  %v10964_v63 = vadd.f32 %v10625_v25, %v10952_v0  ;;  %v10984_v25 = vadd.f32 %v10952_v0, %v10635_v23  ;;  %12832 = vst [vmem:[#allocation112_spill] sm:$0xff] %v11072_v44  ;;  %12833 = vst [vmem:[#allocation113_spill] sm:$0xff] %v11076_v9  ;;  %v12915_v44 = vld [vmem:[#allocation53_spill] sm:$0xff] }
 0x70f   :  { %12814 = vst [vmem:[#allocation30_spill] sm:$0xff] %v11000_v35  ;;  %v11004_v23 = vadd.f32 %v10672_v5, %v10952_v0  ;;  %12819 = vst [vmem:[#allocation99_spill] sm:$0xff] %v11020_v21  ;;  %v11024_v5 = vadd.f32 %v10952_v0, %v10683_v30  ;;  %v11044_v30 = vadd.f32 %v10693_v22, %v10952_v0 }
 0x710   :  { %v10945_v7 = vmul.f32 0.001953125, %v4875_v53  ;;  %v5073_v43 = vadd.f32 %v5072_v60, %v5071_v27  ;;  %12824 = vst [vmem:[#allocation104_spill] sm:$0xff] %v11040_v13  ;;  %12829 = vst [vmem:[#allocation109_spill] sm:$0xff] %v11060_v26  ;;  %v11064_v22 = vadd.f32 %v10952_v0, %v10703_v41  ;;  %v11080_v33 = vadd.f32 %v10952_v0, %v10739_v50  ;;  %v12856_v27 = vld [vmem:[#allocation10_spill] sm:$0xff]  ;;  %v12858_v60 = vld [vmem:[#allocation13_spill] sm:$0xff] }
 0x711   :  { %12815 = vst [vmem:[#allocation90_spill] sm:$0xff] %v11004_v23  ;;  %12820 = vst [vmem:[#allocation100_spill] sm:$0xff] %v11024_v5  ;;  %v11084_v41 = vadd.f32 %v10741_v49, %v10952_v0  ;;  %v11092_v56 = vadd.f32 %v10745_v1, %v10952_v0  ;;  %v11096_v46 = vadd.f32 %v10952_v0, %v10747_v12  ;;  %v23_v12 = vld [vmem:[%s11993_s4 + $0x2] sm:$0x1]  ;;  %v12927_v5 = vld [vmem:[#allocation92_spill] sm:$0xff] }
 0x712   :  { %v5074_v11 = vmul.f32 0.001953125, %v5073_v43  ;;  %v5075_v38 = vmul.f32 %v10945_v7, %v10945_v7  ;;  %12825 = vst [vmem:[#allocation105_spill] sm:$0xff] %v11044_v30  ;;  %12830 = vst [vmem:[#allocation110_spill] sm:$0xff] %v11064_v22  ;;  %v11100_v50 = vadd.f32 %v10749_v18, %v10952_v0  ;;  %v11104_v49 = vadd.f32 %v10952_v0, %v10751_v3  ;;  %v12918_v22 = vld [vmem:[#allocation25_spill] sm:$0xff]  ;;  %v12923_v13 = vld [vmem:[#allocation55_spill] sm:$0xff] }
 0x713   :  { %12834 = vst [vmem:[#allocation114_spill] sm:$0xff] %v11080_v33  ;;  %12835 = vst [vmem:[#allocation115_spill] sm:$0xff] %v11084_v41  ;;  %v11108_v51 = vadd.f32 %v10753_v2, %v10952_v0  ;;  %v11112_v1 = vadd.f32 %v10952_v0, %v10755_v16  ;;  %v11119_v18 = vadd.f32 %v10815_v42, %v10952_v0  ;;  %v12914_v33 = vld [vmem:[#allocation76_spill] sm:$0xff] }
 0x714   :  { %v5076_v14 = vsub.f32 %v5074_v11, %v5075_v38  ;;  %12836 = vst [vmem:[#allocation116_spill] sm:$0xff] %v11088_v8  ;;  %12837 = vst [vmem:[#allocation117_spill] sm:$0xff] %v11092_v56  ;;  %v12844_v11 = vld [vmem:[#allocation7_spill] sm:$0xff]  ;;  %v11127_v2 = vadd.f32 %v12846_v61, %v10952_v0  ;;  %v11131_v16 = vadd.f32 %v10952_v0, %v12848_v20  ;;  %v12860_v38 = vld [vmem:[#allocation66_spill] sm:$0xff] }
 0x715   :  { %12838 = vst [vmem:[#allocation118_spill] sm:$0xff] %v11096_v46  ;;  %12839 = vst [vmem:[#allocation119_spill] sm:$0xff] %v11100_v50  ;;  %v11123_v3 = vadd.f32 %v10952_v0, %v12844_v11  ;;  %v11135_v59 = vadd.f32 %v12850_v47, %v10952_v0  ;;  %v11139_v42 = vadd.f32 %v10952_v0, %v12852_v54  ;;  %v12862_v11 = vld [vmem:[#allocation12_spill] sm:$0xff]  ;;  %v12864_v20 = vld [vmem:[#allocation15_spill] sm:$0xff] }
 0x716   :  { %v5077_v24 = vadd.f32 0.8, %v5076_v14  ;;  %12840 = vst [vmem:[#allocation120_spill] sm:$0xff] %v11104_v49  ;;  %12841 = vst [vmem:[#allocation121_spill] sm:$0xff] %v11108_v51  ;;  %v11143_v55 = vadd.f32 %v12854_v37, %v10952_v0  ;;  %v11147_v53 = vadd.f32 %v10952_v0, %v12856_v27  ;;  %v11151_v43 = vadd.f32 %v12858_v60, %v10952_v0  ;;  %v12866_v54 = vld [vmem:[#allocation72_spill] sm:$0xff]  ;;  %v12868_v60 = vld [vmem:[#allocation14_spill] sm:$0xff] }
 0x717   :  { %12842 = vst [vmem:[#allocation122_spill] sm:$0xff] %v11112_v1  ;;  %12843 = vst [vmem:[#allocation123_spill] sm:$0xff] %v11119_v18  ;;  %v11155_v14 = vadd.f32 %v10952_v0, %v12860_v38  ;;  %v11159_v61 = vadd.f32 %v12862_v11, %v10952_v0  ;;  %v11163_v47 = vadd.f32 %v10952_v0, %v12864_v20  ;;  %v24_v27 = vld [vmem:[%s11993_s4 + $0x3] sm:$0x1]  ;;  %v12906_v1 = vld [vmem:[#allocation80_spill] sm:$0xff] }
 0x718   :  { %6292 = vrsqrt.f32 %v5077_v24  ;;  %12845 = vst [vmem:[#allocation7_spill] sm:$0xff] %v11123_v3  ;;  %12847 = vst [vmem:[#allocation87_spill] sm:$0xff] %v11127_v2  ;;  %v11167_v37 = vadd.f32 %v12866_v54, %v10952_v0  ;;  %v11174_v38 = vadd.f32 %v10952_v0, %v12868_v60  ;;  %v12872_v11 = vld [vmem:[#allocation19_spill] sm:$0xff]  ;;  %v12902_v3 = vld [vmem:[#allocation46_spill] sm:$0xff] }
 0x719   :  { %12849 = vst [vmem:[#allocation6_spill] sm:$0xff] %v11131_v16  ;;  %12851 = vst [vmem:[#allocation9_spill] sm:$0xff] %v11135_v59  ;;  %v11182_v20 = vadd.f32 %v10952_v0, %v12872_v11  ;;  %v12899_v59 = vld [vmem:[#allocation43_spill] sm:$0xff]  ;;  %v12907_v49 = vld [vmem:[#allocation81_spill] sm:$0xff] }
 0x71a   :  { %12853 = vst [vmem:[#allocation8_spill] sm:$0xff] %v11139_v42  ;;  %12855 = vst [vmem:[#allocation11_spill] sm:$0xff] %v11143_v55  ;;  %v12894_v42 = vld [vmem:[#allocation75_spill] sm:$0xff]  ;;  %v12911_v8 = vld [vmem:[#allocation84_spill] sm:$0xff] }
 0x71b   :  { %12857 = vst [vmem:[#allocation10_spill] sm:$0xff] %v11147_v53  ;;  %12859 = vst [vmem:[#allocation13_spill] sm:$0xff] %v11151_v43  ;;  %v12878_v43 = vld [vmem:[#allocation67_spill] sm:$0xff]  ;;  %v12890_v53 = vld [vmem:[#allocation42_spill] sm:$0xff] }
 0x71c   :  { %12861 = vst [vmem:[#allocation66_spill] sm:$0xff] %v11155_v14  ;;  %12863 = vst [vmem:[#allocation12_spill] sm:$0xff] %v11159_v61  ;;  %v12876_v61 = vld [vmem:[#allocation58_spill] sm:$0xff]  ;;  %v11194_v60 = vadd.f32 %v10952_v0, %v12878_v43  ;;  %v12903_v18 = vld [vmem:[#allocation79_spill] sm:$0xff] }
 0x71d   :  { %12865 = vst [vmem:[#allocation15_spill] sm:$0xff] %v11163_v47  ;;  %12867 = vst [vmem:[#allocation72_spill] sm:$0xff] %v11167_v37  ;;  %v12874_v47 = vld [vmem:[#allocation18_spill] sm:$0xff]  ;;  %v12910_v46 = vld [vmem:[#allocation83_spill] sm:$0xff] }
 0x71e   :  { %12869 = vst [vmem:[#allocation14_spill] sm:$0xff] %v11174_v38  ;;  %12873 = vst [vmem:[#allocation19_spill] sm:$0xff] %v11182_v20  ;;  %v11186_v54 = vadd.f32 %v12874_v47, %v10952_v0  ;;  %v12882_v38 = vld [vmem:[#allocation20_spill] sm:$0xff]  ;;  %v12884_v47 = vld [vmem:[#allocation89_spill] sm:$0xff] }
 0x71f   :  { %12879 = vst [vmem:[#allocation67_spill] sm:$0xff] %v11194_v60  ;;  %v11202_v11 = vadd.f32 %v10952_v0, %v12882_v38  ;;  %v12888_v20 = vld [vmem:[#allocation26_spill] sm:$0xff] }
 0x720   :  { %12875 = vst [vmem:[#allocation18_spill] sm:$0xff] %v11186_v54  ;;  %v11206_v54 = vadd.f32 %v12884_v47, %v10952_v0  ;;  %v11214_v43 = vadd.f32 %v10952_v0, %v12888_v20  ;;  %v12893_v47 = vld [vmem:[#allocation54_spill] sm:$0xff] }
 0x721   :  { %12883 = vst [vmem:[#allocation20_spill] sm:$0xff] %v11202_v11  ;;  %v12892_v11 = vld [vmem:[#allocation96_spill] sm:$0xff] }
 0x722   :  { %v6293_v4 = vpop.eup %6292  ;;  %12885 = vst [vmem:[#allocation89_spill] sm:$0xff] %v11206_v54  ;;  %12889 = vst [vmem:[#allocation26_spill] sm:$0xff] %v11214_v43 }
 0x723   :  { %v5079_v24 = vmul.f32 %v6293_v4, %v23_v12  ;;  %v12870_v12 = vld [vmem:[#allocation37_spill] sm:$0xff] }
 0x724   :  { %v11178_v4 = vadd.f32 %v12870_v12, %v10952_v0  ;;  %v12880_v12 = vld [vmem:[#allocation21_spill] sm:$0xff] }
 0x725   :  { %v5080_v37 = vmul.f32 %v5079_v24, %v10945_v7  ;;  %v11190_v14 = vrot.slane %v5079_v24, %v12876_v61  ;;  %v12886_v7 = vld [vmem:[#allocation23_spill] sm:$0xff] }
 0x726   :  { %12871 = vst [vmem:[#allocation37_spill] sm:$0xff] %v11178_v4  ;;  %v11198_v4 = vadd.f32 %v12880_v12, %v10952_v0  ;;  %v11210_v24 = vadd.f32 %v10952_v0, %v12886_v7  ;;  %v12898_v0 = vld [vmem:[#allocation78_spill] sm:$0xff] }
 0x727   :  { %12877 = vst [vmem:[#allocation58_spill] sm:$0xff] %v11190_v14  ;;  %v5081_v60 = vsub.f32 %v24_v27, %v5080_v37  ;;  %v5086_v12 = vmul.f32 %v11190_v14, %v12890_v53  ;;  %v5088_v55 = vmul.f32 %v12892_v11, %v11190_v14  ;;  %v5089_v54 = vmul.f32 %v12893_v47, %v11190_v14  ;;  %v12896_v37 = vld [vmem:[#allocation74_spill] sm:$0xff]  ;;  %v12897_v53 = vld [vmem:[#allocation44_spill] sm:$0xff]  ;;  %v12900_v47 = vld [vmem:[#allocation41_spill] sm:$0xff] }
 0x728   :  { %12881 = vst [vmem:[#allocation21_spill] sm:$0xff] %v11198_v4  ;;  %12887 = vst [vmem:[#allocation23_spill] sm:$0xff] %v11210_v24  ;;  %v12891_v4 = vld [vmem:[#allocation73_spill] sm:$0xff]  ;;  %v5090_v7 = vmul.f32 %v11190_v14, %v12894_v42  ;;  %v5092_v27 = vmul.f32 %v12896_v37, %v11190_v14  ;;  %v5093_v43 = vmul.f32 %v12897_v53, %v11190_v14  ;;  %v12901_v42 = vld [vmem:[#allocation48_spill] sm:$0xff] }
 0x729   :  { %v5087_v38 = vmul.f32 %v11190_v14, %v12891_v4  ;;  %v12895_v24 = vld [vmem:[#allocation77_spill] sm:$0xff]  ;;  %v5094_v4 = vmul.f32 %v11190_v14, %v12898_v0  ;;  %v5095_v11 = vmul.f32 %v11190_v14, %v12899_v59  ;;  %v5096_v16 = vmul.f32 %v12900_v47, %v11190_v14  ;;  %v12905_v0 = vld [vmem:[#allocation47_spill] sm:$0xff] }
 0x72a   :  { %v5091_v20 = vmul.f32 %v11190_v14, %v12895_v24  ;;  %v5097_v2 = vmul.f32 %v12901_v42, %v11190_v14  ;;  %v5098_v24 = vmul.f32 %v11190_v14, %v12902_v3  ;;  %v5099_v37 = vmul.f32 %v11190_v14, %v12903_v18  ;;  %v12904_v53 = vld [vmem:[#allocation45_spill] sm:$0xff]  ;;  %v12908_v42 = vld [vmem:[#allocation50_spill] sm:$0xff]  ;;  %v12909_v3 = vld [vmem:[#allocation52_spill] sm:$0xff] }
 0x72b   :  { %v5100_v51 = vmul.f32 %v12904_v53, %v11190_v14  ;;  %v5101_v50 = vmul.f32 %v12905_v0, %v11190_v14  ;;  %v5102_v59 = vmul.f32 %v11190_v14, %v12906_v1  ;;  %v5103_v47 = vmul.f32 %v11190_v14, %v12907_v49  ;;  %v12912_v0 = vld [vmem:[#allocation49_spill] sm:$0xff]  ;;  %v12913_v1 = vld [vmem:[#allocation51_spill] sm:$0xff] }
 0x72c   :  { %v5104_v56 = vmul.f32 %v12908_v42, %v11190_v14  ;;  %v5105_v41 = vmul.f32 %v12909_v3, %v11190_v14  ;;  %v5106_v18 = vmul.f32 %v11190_v14, %v12910_v46  ;;  %v5107_v53 = vmul.f32 %v11190_v14, %v12911_v8  ;;  %v12916_v3 = vld [vmem:[#allocation56_spill] sm:$0xff]  ;;  %v12917_v46 = vld [vmem:[#allocation82_spill] sm:$0xff] }
 0x72d   :  { %v5108_v9 = vmul.f32 %v12912_v0, %v11190_v14  ;;  %v5109_v45 = vmul.f32 %v12913_v1, %v11190_v14  ;;  %v5110_v49 = vmul.f32 %v11190_v14, %v12914_v33  ;;  %v5111_v42 = vmul.f32 %v11190_v14, %v12915_v44  ;;  %v12920_v1 = vld [vmem:[#allocation86_spill] sm:$0xff]  ;;  %v12921_v33 = vld [vmem:[#allocation36_spill] sm:$0xff] }
 0x72e   :  { %v5112_v26 = vmul.f32 %v12916_v3, %v11190_v14  ;;  %v5113_v6 = vmul.f32 %v12917_v46, %v11190_v14  ;;  %v5114_v8 = vmul.f32 %v11190_v14, %v12918_v22  ;;  %v5115_v0 = vmul.f32 %v11190_v14, %v12919_v39  ;;  %v12924_v46 = vld [vmem:[#allocation34_spill] sm:$0xff] }
 0x72f   :  { %v5116_v30 = vmul.f32 %v12920_v1, %v11190_v14  ;;  %v5117_v40 = vmul.f32 %v12921_v33, %v11190_v14  ;;  %v5118_v44 = vmul.f32 %v11190_v14, %v12922_v10  ;;  %v5119_v3 = vmul.f32 %v11190_v14, %v12923_v13  ;;  %v12925_v22 = vld [vmem:[#allocation38_spill] sm:$0xff]  ;;  %v12928_v33 = vld [vmem:[#allocation91_spill] sm:$0xff]  ;;  %v12929_v10 = vld [vmem:[#allocation57_spill] sm:$0xff] }
 0x730   :  { %v5120_v58 = vmul.f32 %v12924_v46, %v11190_v14  ;;  %v5121_v21 = vmul.f32 %v12925_v22, %v11190_v14  ;;  %v5122_v39 = vmul.f32 %v11190_v14, %v12926_v19  ;;  %v5123_v1 = vmul.f32 %v11190_v14, %v12927_v5  ;;  %v12932_v22 = vld [vmem:[#allocation69_spill] sm:$0xff]  ;;  %v12934_v5 = vld [vmem:[#allocation60_spill] sm:$0xff] }
 0x731   :  { %v5124_v31 = vmul.f32 %v12928_v33, %v11190_v14  ;;  %v5125_v23 = vmul.f32 %v12929_v10, %v11190_v14  ;;  %v5147_v13 = vmul.f32 %v11190_v14, %v12930_v62  ;;  %v11299_v46 = vrot.slane %v5081_v60, %v12876_v61  ;;  %v12936_v33 = vld [vmem:[#allocation93_spill] sm:$0xff] }
 0x732   :  { %v5128_v17 = vmul.f32 %v12932_v22, %v11190_v14  ;;  %v11305_v19 = vmul.f32 %v11190_v14, %v12933_v36  ;;  %v11309_v32 = vmul.f32 %v12934_v5, %v11190_v14  ;;  %v11313_v10 = vmul.f32 %v11190_v14, %v12936_v33  ;;  %v12938_v62 = vld [vmem:[#allocation61_spill] sm:$0xff] }
 0x733   :  { %12931 = vst [vmem:[#allocation42_spill] sm:$0xff] %v11299_v46  ;;  %v11317_v35 = vmul.f32 %v12938_v62, %v11190_v14  ;;  %v11320_v61 = vadd.f32 %v11299_v46, %v5147_v13  ;;  %v5154_v60 = vadd.f32 %v11299_v46, %v5086_v12  ;;  %v5155_v36 = vadd.f32 %v11299_v46, %v5087_v38 }
 0x734   :  { %12935 = vst [vmem:[#allocation73_spill] sm:$0xff] %v11309_v32  ;;  %12937 = vst [vmem:[#allocation96_spill] sm:$0xff] %v11313_v10  ;;  %v5156_v22 = vadd.f32 %v11299_v46, %v5088_v55  ;;  %v5157_v5 = vadd.f32 %v11299_v46, %v5089_v54  ;;  %v5158_v32 = vadd.f32 %v11299_v46, %v5090_v7 }
 0x735   :  { %12939 = vst [vmem:[#allocation54_spill] sm:$0xff] %v11317_v35  ;;  %12940 = vst [vmem:[#allocation75_spill] sm:$0xff] %v11320_v61  ;;  %v5159_v33 = vadd.f32 %v11299_v46, %v5091_v20  ;;  %v5160_v10 = vadd.f32 %v11299_v46, %v5092_v27  ;;  %v5161_v62 = vadd.f32 %v11299_v46, %v5093_v43 }
 0x736   :  { %v5162_v14 = vadd.f32 %v11299_v46, %v5094_v4  ;;  %v5163_v13 = vadd.f32 %v11299_v46, %v5095_v11  ;;  %v5164_v12 = vadd.f32 %v11299_v46, %v5096_v16  ;;  %v5165_v38 = vadd.f32 %v11299_v46, %v5097_v2 }
 0x737   :  { %v5166_v55 = vadd.f32 %v11299_v46, %v5098_v24  ;;  %v5167_v54 = vadd.f32 %v11299_v46, %v5099_v37  ;;  %v5168_v7 = vadd.f32 %v11299_v46, %v5100_v51  ;;  %v5169_v20 = vadd.f32 %v11299_v46, %v5101_v50 }
 0x738   :  { %v5170_v27 = vadd.f32 %v11299_v46, %v5102_v59  ;;  %v5171_v43 = vadd.f32 %v11299_v46, %v5103_v47  ;;  %v5172_v4 = vadd.f32 %v11299_v46, %v5104_v56  ;;  %v5173_v11 = vadd.f32 %v11299_v46, %v5105_v41 }
 0x739   :  { %v5174_v16 = vadd.f32 %v11299_v46, %v5106_v18  ;;  %v5175_v2 = vadd.f32 %v11299_v46, %v5107_v53  ;;  %v5176_v24 = vadd.f32 %v11299_v46, %v5108_v9  ;;  %v5177_v37 = vadd.f32 %v11299_v46, %v5109_v45 }
 0x73a   :  { %v5178_v51 = vadd.f32 %v11299_v46, %v5110_v49  ;;  %v5179_v50 = vadd.f32 %v11299_v46, %v5111_v42  ;;  %v5180_v59 = vadd.f32 %v11299_v46, %v5112_v26  ;;  %v5181_v47 = vadd.f32 %v11299_v46, %v5113_v6 }
 0x73b   :  { %v5182_v56 = vadd.f32 %v11299_v46, %v5114_v8  ;;  %v5183_v41 = vadd.f32 %v11299_v46, %v5115_v0  ;;  %v5184_v18 = vadd.f32 %v11299_v46, %v5116_v30  ;;  %v5185_v53 = vadd.f32 %v11299_v46, %v5117_v40 }
 0x73c   :  { %v5186_v9 = vadd.f32 %v11299_v46, %v5118_v44  ;;  %v5187_v45 = vadd.f32 %v11299_v46, %v5119_v3  ;;  %v5188_v49 = vadd.f32 %v11299_v46, %v5120_v58  ;;  %v5189_v42 = vadd.f32 %v11299_v46, %v5121_v21 }
 0x73d   :  { %v5190_v26 = vadd.f32 %v11299_v46, %v5122_v39  ;;  %v5191_v6 = vadd.f32 %v11299_v46, %v5123_v1  ;;  %v5192_v8 = vadd.f32 %v11299_v46, %v5124_v31  ;;  %v5193_v0 = vadd.f32 %v11299_v46, %v5125_v23 }
 0x73e   :  { %v5196_v30 = vadd.f32 %v11299_v46, %v5128_v17  ;;  %v5579_v40 = vadd.f32 %v10960_v29, %v5154_v60  ;;  %v11365_v44 = vadd.f32 %v10968_v48, %v5155_v36  ;;  %v11368_v3 = vadd.f32 %v10956_v52, %v5156_v22  ;;  %v12941_v52 = vld [vmem:[#allocation30_spill] sm:$0xff]  ;;  %v12948_v36 = vld [vmem:[#allocation100_spill] sm:$0xff] }
 0x73f   :  { %v11371_v21 = vadd.f32 %v10964_v63, %v5157_v5  ;;  %v11374_v58 = vadd.f32 %v10976_v28, %v5158_v32  ;;  %v11377_v31 = vadd.f32 %v10984_v25, %v5159_v33  ;;  %v11380_v23 = vadd.f32 %v10972_v34, %v5160_v10  ;;  %v12942_v63 = vld [vmem:[#allocation29_spill] sm:$0xff]  ;;  %v12943_v28 = vld [vmem:[#allocation32_spill] sm:$0xff]  ;;  %v12945_v34 = vld [vmem:[#allocation98_spill] sm:$0xff] }
 0x740   :  { %v11383_v29 = vadd.f32 %v10980_v15, %v5161_v62  ;;  %v11386_v48 = vadd.f32 %v10992_v57, %v5162_v14  ;;  %v11389_v17 = vadd.f32 %v12941_v52, %v5163_v13  ;;  %v11392_v39 = vadd.f32 %v12942_v63, %v5164_v12  ;;  %v12944_v25 = vld [vmem:[#allocation33_spill] sm:$0xff]  ;;  %v12946_v15 = vld [vmem:[#allocation90_spill] sm:$0xff]  ;;  %v12950_v62 = vld [vmem:[#allocation99_spill] sm:$0xff] }
 0x741   :  { %v11395_v32 = vadd.f32 %v12943_v28, %v5165_v38  ;;  %v11398_v1 = vadd.f32 %v12944_v25, %v5166_v55  ;;  %v11401_v10 = vadd.f32 %v12945_v34, %v5167_v54  ;;  %v11404_v60 = vadd.f32 %v12946_v15, %v5168_v7  ;;  %v12947_v57 = vld [vmem:[#allocation97_spill] sm:$0xff]  ;;  %v12949_v5 = vld [vmem:[#allocation102_spill] sm:$0xff]  ;;  %v12952_v55 = vld [vmem:[#allocation104_spill] sm:$0xff] }
 0x742   :  { %v11407_v14 = vadd.f32 %v12947_v57, %v5169_v20  ;;  %v11410_v22 = vadd.f32 %v12948_v36, %v5170_v27  ;;  %v11413_v33 = vadd.f32 %v12949_v5, %v5171_v43  ;;  %v11416_v13 = vadd.f32 %v12950_v62, %v5172_v4  ;;  %v12951_v12 = vld [vmem:[#allocation101_spill] sm:$0xff]  ;;  %v12953_v7 = vld [vmem:[#allocation106_spill] sm:$0xff]  ;;  %v12954_v20 = vld [vmem:[#allocation103_spill] sm:$0xff] }
 0x743   :  { %v11419_v38 = vadd.f32 %v12951_v12, %v5173_v11  ;;  %v11422_v54 = vadd.f32 %v12952_v55, %v5174_v16  ;;  %v11425_v52 = vadd.f32 %v12953_v7, %v5175_v2  ;;  %v11428_v63 = vadd.f32 %v12954_v20, %v5176_v24  ;;  %v12955_v27 = vld [vmem:[#allocation105_spill] sm:$0xff]  ;;  %v12956_v43 = vld [vmem:[#allocation108_spill] sm:$0xff]  ;;  %v12957_v4 = vld [vmem:[#allocation110_spill] sm:$0xff] }
 0x744   :  { %v11431_v28 = vadd.f32 %v12955_v27, %v5177_v37  ;;  %v11434_v25 = vadd.f32 %v12956_v43, %v5178_v51  ;;  %v11437_v34 = vadd.f32 %v12957_v4, %v5179_v50  ;;  %v12958_v11 = vld [vmem:[#allocation107_spill] sm:$0xff]  ;;  %v12959_v16 = vld [vmem:[#allocation109_spill] sm:$0xff]  ;;  %v12960_v2 = vld [vmem:[#allocation112_spill] sm:$0xff] }
 0x745   :  { %v11440_v15 = vadd.f32 %v12958_v11, %v5180_v59  ;;  %v11443_v57 = vadd.f32 %v12959_v16, %v5181_v47  ;;  %v11446_v36 = vadd.f32 %v12960_v2, %v5182_v56  ;;  %v12961_v24 = vld [vmem:[#allocation114_spill] sm:$0xff]  ;;  %v12962_v37 = vld [vmem:[#allocation111_spill] sm:$0xff]  ;;  %v12963_v51 = vld [vmem:[#allocation113_spill] sm:$0xff] }
 0x746   :  { %v11449_v5 = vadd.f32 %v12961_v24, %v5183_v41  ;;  %v11452_v62 = vadd.f32 %v12962_v37, %v5184_v18  ;;  %v11455_v12 = vadd.f32 %v12963_v51, %v5185_v53  ;;  %v12964_v50 = vld [vmem:[#allocation116_spill] sm:$0xff]  ;;  %v12965_v59 = vld [vmem:[#allocation118_spill] sm:$0xff]  ;;  %v12966_v47 = vld [vmem:[#allocation115_spill] sm:$0xff]  ;;  %v5644_v24 = vmul.f32 0.2, %v11365_v44 }
 0x747   :  { %v11458_v55 = vadd.f32 %v12964_v50, %v5186_v9  ;;  %v11461_v7 = vadd.f32 %v12965_v59, %v5187_v45  ;;  %v11464_v20 = vadd.f32 %v12966_v47, %v5188_v49  ;;  %v12967_v56 = vld [vmem:[#allocation117_spill] sm:$0xff]  ;;  %v12969_v41 = vld [vmem:[#allocation120_spill] sm:$0xff]  ;;  %v12970_v18 = vld [vmem:[#allocation122_spill] sm:$0xff]  ;;  %v5643_v49 = vmul.f32 0.2, %v5579_v40 }
 0x748   :  { %v11467_v27 = vadd.f32 %v12967_v56, %v5189_v42  ;;  %v11470_v43 = vadd.f32 %v12969_v41, %v5190_v26  ;;  %v11473_v4 = vadd.f32 %v12970_v18, %v5191_v6  ;;  %v12971_v53 = vld [vmem:[#allocation119_spill] sm:$0xff]  ;;  %v12973_v9 = vld [vmem:[#allocation121_spill] sm:$0xff]  ;;  %v5645_v42 = vmul.f32 0.2, %v11368_v3 }
 0x749   :  { %v11476_v11 = vadd.f32 %v12971_v53, %v5192_v8  ;;  %v11479_v16 = vadd.f32 %v12973_v9, %v5193_v0  ;;  %v12974_v45 = vld [vmem:[#allocation123_spill] sm:$0xff]  ;;  %v5646_v26 = vmul.f32 0.2, %v11371_v21  ;;  %v11489_v6 = vadd.f32 %v11299_v46, %v11305_v19 }
 0x74a   :  { %12968 = vst [vmem:[#allocation77_spill] sm:$0xff] %v11467_v27  ;;  %v11482_v2 = vadd.f32 %v12974_v45, %v5196_v30  ;;  %v5647_v8 = vmul.f32 0.2, %v11374_v58  ;;  %v5648_v37 = vmul.f32 0.2, %v11377_v31  ;;  %v5707_v51 = vmax.f32 %v5579_v40, %v5643_v49 }
 0x74b   :  { %12972 = vst [vmem:[#allocation74_spill] sm:$0xff] %v11476_v11  ;;  %12975 = vst [vmem:[#allocation44_spill] sm:$0xff] %v11489_v6  ;;  %v5649_v0 = vmul.f32 0.2, %v11380_v23  ;;  %v5650_v30 = vmul.f32 0.2, %v11383_v29  ;;  %v5708_v47 = vmax.f32 %v11365_v44, %v5644_v24  ;;  %v5709_v18 = vmax.f32 %v11368_v3, %v5645_v42 }
 0x74c   :  { %v5651_v50 = vmul.f32 0.2, %v11386_v48  ;;  %v5652_v59 = vmul.f32 0.2, %v11389_v17  ;;  %v5653_v56 = vmul.f32 0.2, %v11392_v39  ;;  %v5710_v9 = vmax.f32 %v11371_v21, %v5646_v26 }
 0x74d   :  { %v5654_v19 = vmul.f32 0.2, %v11395_v32  ;;  %v11501_v41 = vmul.f32 0.2, %v11398_v1  ;;  %5771 = vst.msk [vmem:[%s11996_s5] sm:$0xff] %vm2111_vm1, %v5707_v51  ;;  %5772 = vst.msk [vmem:[%s11996_s5 + $0x8] sm:$0xff] %vm2111_vm1, %v5708_v47  ;;  %v5711_v24 = vmax.f32 %v11374_v58, %v5647_v8  ;;  %v5712_v51 = vmax.f32 %v11377_v31, %v5648_v37 }
 0x74e   :  { %v5656_v40 = vmul.f32 0.2, %v11401_v10  ;;  %v5657_v53 = vmul.f32 0.2, %v11404_v60  ;;  %v11511_v44 = vmul.f32 0.2, %v11407_v14  ;;  %v5714_v61 = vmax.f32 %v11383_v29, %v5650_v30 }
 0x74f   :  { %v11519_v3 = vmul.f32 0.2, %v11410_v22  ;;  %v11522_v45 = vmul.f32 0.2, %v11413_v33  ;;  %v11525_v49 = vmul.f32 0.2, %v11416_v13  ;;  %v5715_v35 = vmax.f32 %v11386_v48, %v5651_v50 }
 0x750   :  { %5773 = vst.msk [vmem:[%s11996_s5 + $0x10] sm:$0xff] %vm2111_vm1, %v5709_v18  ;;  %v11533_v21 = vmul.f32 0.2, %v11419_v38  ;;  %v11536_v42 = vmul.f32 0.2, %v11422_v54  ;;  %5774 = vst.msk [vmem:[%s11996_s5 + $0x18] sm:$0xff] %vm2111_vm1, %v5710_v9  ;;  %v5713_v18 = vmax.f32 %v11380_v23, %v5649_v0  ;;  %v5716_v46 = vmax.f32 %v11389_v17, %v5652_v59 }
 0x751   :  { %v11539_v26 = vmul.f32 0.2, %v11425_v52  ;;  %v11547_v58 = vmul.f32 0.2, %v11428_v63  ;;  %v11550_v8 = vmul.f32 0.2, %v11431_v28  ;;  %v5717_v6 = vmax.f32 %v11392_v39, %v5653_v56 }
 0x752   :  { %v11553_v47 = vmul.f32 0.2, %v11434_v25  ;;  %5775 = vst.msk [vmem:[%s11996_s5 + $0x20] sm:$0xff] %vm2111_vm1, %v5711_v24  ;;  %v11561_v31 = vmul.f32 0.2, %v11437_v34  ;;  %5776 = vst.msk [vmem:[%s11996_s5 + $0x28] sm:$0xff] %vm2111_vm1, %v5712_v51  ;;  %v5720_v56 = vmax.f32 %v11401_v10, %v5656_v40  ;;  %v5726_v10 = vmax.f32 %v11419_v38, %v11533_v21 }
 0x753   :  { %v11564_v37 = vmul.f32 0.2, %v11440_v15  ;;  %v11567_v9 = vmul.f32 0.2, %v11443_v57  ;;  %v11575_v23 = vmul.f32 0.2, %v11446_v36 }
 0x754   :  { %v11578_v0 = vmul.f32 0.2, %v11449_v5  ;;  %v11581_v24 = vmul.f32 0.2, %v11452_v62  ;;  %5777 = vst.msk [vmem:[%s11996_s5 + $0x30] sm:$0xff] %vm2111_vm1, %v5713_v18  ;;  %5778 = vst.msk [vmem:[%s11996_s5 + $0x38] sm:$0xff] %vm2111_vm1, %v5714_v61  ;;  %v5732_v38 = vmax.f32 %v11437_v34, %v11561_v31 }
 0x755   :  { %v11589_v29 = vmul.f32 0.2, %v11455_v12  ;;  %v11592_v30 = vmul.f32 0.2, %v11458_v55  ;;  %v11595_v51 = vmul.f32 0.2, %v11461_v7 }
 0x756   :  { %v11603_v48 = vmul.f32 0.2, %v11464_v20  ;;  %v11606_v50 = vmul.f32 0.2, %v11467_v27  ;;  %v11609_v18 = vmul.f32 0.2, %v11470_v43  ;;  %v5718_v27 = vmax.f32 %v11395_v32, %v5654_v19 }
 0x757   :  { %5779 = vst.msk [vmem:[%s11996_s5 + $0x40] sm:$0xff] %vm2111_vm1, %v5715_v35  ;;  %v11617_v17 = vmul.f32 0.2, %v11473_v4  ;;  %v11620_v61 = vmul.f32 0.2, %v11476_v11  ;;  %5780 = vst.msk [vmem:[%s11996_s5 + $0x48] sm:$0xff] %vm2111_vm1, %v5716_v46  ;;  %v5719_v35 = vmax.f32 %v11398_v1, %v11501_v41  ;;  %v5721_v11 = vmax.f32 %v11404_v60, %v5657_v53 }
 0x758   :  { %v11623_v59 = vmul.f32 0.2, %v11479_v16  ;;  %v11631_v39 = vmul.f32 0.2, %v11482_v2  ;;  %5781 = vst.msk [vmem:[%s11996_s5 + $0x50] sm:$0xff] %vm2111_vm1, %v5717_v6  ;;  %v5722_v32 = vmax.f32 %v11407_v14, %v11511_v44  ;;  %v5723_v46 = vmax.f32 %v11410_v22, %v11519_v3  ;;  %5782 = vst.msk [vmem:[%s11996_s5 + $0x58] sm:$0xff] %vm2111_vm1, %v5718_v27 }
 0x759   :  { %v5724_v19 = vmax.f32 %v11413_v33, %v11522_v45  ;;  %v5725_v1 = vmax.f32 %v11416_v13, %v11525_v49  ;;  %v5727_v60 = vmax.f32 %v11422_v54, %v11536_v42  ;;  %v5728_v14 = vmax.f32 %v11425_v52, %v11539_v26  ;;  %5783 = vst.msk [vmem:[%s11996_s5 + $0x60] sm:$0xff] %vm2111_vm1, %v5719_v35  ;;  %v12981_v6 = vld [vmem:[#allocation42_spill] sm:$0xff]  ;;  %v12982_v40 = vld [vmem:[#allocation96_spill] sm:$0xff]  ;;  %v12988_v31 = vld [vmem:[#allocation63_spill] sm:$0xff] }
 0x75a   :  { %v5729_v22 = vmax.f32 %v11428_v63, %v11547_v58  ;;  %5784 = vst.msk [vmem:[%s11996_s5 + $0x68] sm:$0xff] %vm2111_vm1, %v5720_v56  ;;  %5785 = vst.msk [vmem:[%s11996_s5 + $0x70] sm:$0xff] %vm2111_vm1, %v5721_v11  ;;  %v5730_v33 = vmax.f32 %v11431_v28, %v11550_v8  ;;  %v5731_v13 = vmax.f32 %v11434_v25, %v11553_v47  ;;  %v12979_v11 = vld [vmem:[#allocation7_spill] sm:$0xff]  ;;  %v12983_v44 = vld [vmem:[#allocation54_spill] sm:$0xff] }
 0x75b   :  { %v5733_v54 = vmax.f32 %v11440_v15, %v11564_v37  ;;  %5786 = vst.msk [vmem:[%s11996_s5 + $0x78] sm:$0xff] %vm2111_vm1, %v5722_v32  ;;  %5787 = vst.msk [vmem:[%s11996_s5 + $0x80] sm:$0xff] %vm2111_vm1, %v5723_v46  ;;  %v5734_v52 = vmax.f32 %v11443_v57, %v11567_v9  ;;  %v5735_v63 = vmax.f32 %v11446_v36, %v11575_v23  ;;  %v12984_v45 = vld [vmem:[#allocation62_spill] sm:$0xff]  ;;  %v12987_v8 = vld [vmem:[#allocation87_spill] sm:$0xff] }
 0x75c   :  { %5788 = vst.msk [vmem:[%s11996_s5 + $0x88] sm:$0xff] %vm2111_vm1, %v5724_v19  ;;  %5789 = vst.msk [vmem:[%s11996_s5 + $0x90] sm:$0xff] %vm2111_vm1, %v5725_v1  ;;  %v5736_v28 = vmax.f32 %v11449_v5, %v11578_v0  ;;  %v5737_v25 = vmax.f32 %v11452_v62, %v11581_v24  ;;  %v5738_v34 = vmax.f32 %v11455_v12, %v11589_v29  ;;  %v12976_v5 = vld [vmem:[#allocation77_spill] sm:$0xff]  ;;  %v12985_v49 = vld [vmem:[#allocation58_spill] sm:$0xff] }
 0x75d   :  { %5790 = vst.msk [vmem:[%s11996_s5 + $0x98] sm:$0xff] %vm2111_vm1, %v5726_v10  ;;  %5791 = vst.msk [vmem:[%s11996_s5 + $0xa0] sm:$0xff] %vm2111_vm1, %v5727_v60  ;;  %v5739_v15 = vmax.f32 %v11458_v55, %v11592_v30  ;;  %v5740_v57 = vmax.f32 %v11461_v7, %v11595_v51  ;;  %v5741_v36 = vmax.f32 %v11464_v20, %v11603_v48  ;;  %v12977_v7 = vld [vmem:[#allocation74_spill] sm:$0xff]  ;;  %v12989_v9 = vld [vmem:[#allocation35_spill] sm:$0xff] }
 0x75e   :  { %5792 = vst.msk [vmem:[%s11996_s5 + $0xa8] sm:$0xff] %vm2111_vm1, %v5728_v14  ;;  %5793 = vst.msk [vmem:[%s11996_s5 + $0xb0] sm:$0xff] %vm2111_vm1, %v5729_v22  ;;  %v5742_v62 = vmax.f32 %v12976_v5, %v11606_v50  ;;  %v5743_v12 = vmax.f32 %v11470_v43, %v11609_v18  ;;  %v5744_v55 = vmax.f32 %v11473_v4, %v11617_v17  ;;  %v12978_v4 = vld [vmem:[#allocation44_spill] sm:$0xff]  ;;  %v12986_v42 = vld [vmem:[#allocation94_spill] sm:$0xff] }
 0x75f   :  { %5794 = vst.msk [vmem:[%s11996_s5 + $0xb8] sm:$0xff] %vm2111_vm1, %v5730_v33  ;;  %5795 = vst.msk [vmem:[%s11996_s5 + $0xc0] sm:$0xff] %vm2111_vm1, %v5731_v13  ;;  %v5745_v20 = vmax.f32 %v12977_v7, %v11620_v61  ;;  %v5746_v27 = vmax.f32 %v11479_v16, %v11623_v59  ;;  %v5749_v43 = vmax.f32 %v11482_v2, %v11631_v39  ;;  %v12980_v2 = vld [vmem:[#allocation73_spill] sm:$0xff]  ;;  %v12990_v0 = vld [vmem:[#allocation6_spill] sm:$0xff] }
 0x760   :  { %5796 = vst.msk [vmem:[%s11996_s5 + $0xc8] sm:$0xff] %vm2111_vm1, %v5732_v38  ;;  %5797 = vst.msk [vmem:[%s11996_s5 + $0xd0] sm:$0xff] %vm2111_vm1, %v5733_v54  ;;  %v5619_v16 = vadd.f32 %v12979_v11, %v12978_v4  ;;  %v5197_v41 = vadd.f32 %v12981_v6, %v12980_v2  ;;  %v5195_v53 = vadd.f32 %v12981_v6, %v12982_v40  ;;  %v12991_v29 = vld [vmem:[#allocation9_spill] sm:$0xff]  ;;  %v12992_v35 = vld [vmem:[#allocation8_spill] sm:$0xff] }
 0x761   :  { %5798 = vst.msk [vmem:[%s11996_s5 + $0xd8] sm:$0xff] %vm2111_vm1, %v5734_v52  ;;  %5799 = vst.msk [vmem:[%s11996_s5 + $0xe0] sm:$0xff] %vm2111_vm1, %v5735_v63  ;;  %v5200_v3 = vadd.f32 %v12981_v6, %v12983_v44  ;;  %v5130_v21 = vmul.f32 %v12985_v49, %v12984_v45  ;;  %v5133_v26 = vmul.f32 %v12986_v42, %v12985_v49  ;;  %v12993_v32 = vld [vmem:[#allocation11_spill] sm:$0xff]  ;;  %v12994_v1 = vld [vmem:[#allocation10_spill] sm:$0xff] }
 0x762   :  { %5800 = vst.msk [vmem:[%s11996_s5 + $0xe8] sm:$0xff] %vm2111_vm1, %v5736_v28  ;;  %5801 = vst.msk [vmem:[%s11996_s5 + $0xf0] sm:$0xff] %vm2111_vm1, %v5737_v25  ;;  %v5683_v58 = vmul.f32 0.2, %v5619_v16  ;;  %v5622_v47 = vadd.f32 %v12987_v8, %v5197_v41  ;;  %v5131_v37 = vmul.f32 %v12985_v49, %v12988_v31  ;;  %v5136_v23 = vmul.f32 %v12989_v9, %v12985_v49  ;;  %v12995_v60 = vld [vmem:[#allocation13_spill] sm:$0xff]  ;;  %v12996_v22 = vld [vmem:[#allocation39_spill] sm:$0xff] }
 0x763   :  { %5802 = vst.msk [vmem:[%s11996_s5 + $0xf8] sm:$0xff] %vm2111_vm1, %v5738_v34  ;;  %5803 = vst.msk [vmem:[%s11996_s5 + $0x100] sm:$0xff] %vm2111_vm1, %v5739_v15  ;;  %v5620_v24 = vadd.f32 %v12990_v0, %v5195_v53  ;;  %v5625_v30 = vadd.f32 %v12991_v29, %v5200_v3  ;;  %v5198_v51 = vadd.f32 %v12981_v6, %v5130_v21  ;;  %v12997_v34 = vld [vmem:[#allocation64_spill] sm:$0xff]  ;;  %v12998_v5 = vld [vmem:[#allocation71_spill] sm:$0xff] }
 0x764   :  { %5804 = vst.msk [vmem:[%s11996_s5 + $0x108] sm:$0xff] %vm2111_vm1, %v5740_v57  ;;  %5805 = vst.msk [vmem:[%s11996_s5 + $0x110] sm:$0xff] %vm2111_vm1, %v5741_v36  ;;  %v5201_v48 = vadd.f32 %v12981_v6, %v5133_v26  ;;  %v5747_v50 = vmax.f32 %v5619_v16, %v5683_v58  ;;  %v5686_v18 = vmul.f32 0.2, %v5622_v47  ;;  %v5199_v17 = vadd.f32 %v12981_v6, %v5131_v37  ;;  %v13001_v2 = vld [vmem:[#allocation3_spill] sm:$0xff]  ;;  %v13002_v40 = vld [vmem:[#allocation65_spill] sm:$0xff] }
 0x765   :  { %5806 = vst.msk [vmem:[%s11996_s5 + $0x118] sm:$0xff] %vm2111_vm1, %v5742_v62  ;;  %5807 = vst.msk [vmem:[%s11996_s5 + $0x120] sm:$0xff] %vm2111_vm1, %v5743_v12  ;;  %v5204_v61 = vadd.f32 %v12981_v6, %v5136_v23  ;;  %v5684_v59 = vmul.f32 0.2, %v5620_v24  ;;  %v5689_v39 = vmul.f32 0.2, %v5625_v30  ;;  %v5623_v56 = vadd.f32 %v12992_v35, %v5198_v51 }
 0x766   :  { %5808 = vst.msk [vmem:[%s11996_s5 + $0x128] sm:$0xff] %vm2111_vm1, %v5744_v55  ;;  %5809 = vst.msk [vmem:[%s11996_s5 + $0x130] sm:$0xff] %vm2111_vm1, %v5745_v20  ;;  %v5626_v46 = vadd.f32 %v12993_v32, %v5201_v48  ;;  %v5750_v19 = vmax.f32 %v5622_v47, %v5686_v18  ;;  %v5624_v10 = vadd.f32 %v12994_v1, %v5199_v17  ;;  %v12999_v12 = vld [vmem:[#allocation5_spill] sm:$0xff]  ;;  %v13003_v3 = vld [vmem:[#allocation12_spill] sm:$0xff] }
 0x767   :  { %5810 = vst.msk [vmem:[%s11996_s5 + $0x138] sm:$0xff] %vm2111_vm1, %v5746_v27  ;;  %5813 = vst.msk [vmem:[%s11996_s5 + $0x150] sm:$0xff] %vm2111_vm1, %v5749_v43  ;;  %v5629_v14 = vadd.f32 %v12995_v60, %v5204_v61  ;;  %v5134_v33 = vmul.f32 %v12985_v49, %v12996_v22  ;;  %v5748_v13 = vmax.f32 %v5620_v24, %v5684_v59  ;;  %v5687_v54 = vmul.f32 0.2, %v5623_v56  ;;  %v13000_v27 = vld [vmem:[#allocation66_spill] sm:$0xff]  ;;  %v13004_v21 = vld [vmem:[#allocation4_spill] sm:$0xff] }
 0x768   :  { %5811 = vst.msk [vmem:[%s11996_s5 + $0x140] sm:$0xff] %vm2111_vm1, %v5747_v50  ;;  %v5753_v38 = vmax.f32 %v5625_v30, %v5689_v39  ;;  %v5690_v52 = vmul.f32 0.2, %v5626_v46  ;;  %5814 = vst.msk [vmem:[%s11996_s5 + $0x158] sm:$0xff] %vm2111_vm1, %v5750_v19  ;;  %v5688_v63 = vmul.f32 0.2, %v5624_v10  ;;  %v5137_v15 = vmul.f32 %v12997_v34, %v12985_v49 }
 0x769   :  { %v5693_v28 = vmul.f32 0.2, %v5629_v14  ;;  %v5202_v25 = vadd.f32 %v12981_v6, %v5134_v33  ;;  %5812 = vst.msk [vmem:[%s11996_s5 + $0x148] sm:$0xff] %vm2111_vm1, %v5748_v13  ;;  %v5751_v57 = vmax.f32 %v5623_v56, %v5687_v54  ;;  %v5135_v62 = vmul.f32 %v12985_v49, %v12998_v5  ;;  %v13005_v26 = vld [vmem:[#allocation95_spill] sm:$0xff]  ;;  %v13007_v31 = vld [vmem:[#allocation72_spill] sm:$0xff]  ;;  %v13008_v50 = vld [vmem:[#allocation14_spill] sm:$0xff] }
 0x76a   :  { %5817 = vst.msk [vmem:[%s11996_s5 + $0x170] sm:$0xff] %vm2111_vm1, %v5753_v38  ;;  %v5754_v36 = vmax.f32 %v5626_v46, %v5690_v52  ;;  %v5140_v55 = vmul.f32 %v12999_v12, %v12985_v49  ;;  %v5752_v7 = vmax.f32 %v5624_v10, %v5688_v63  ;;  %v5205_v4 = vadd.f32 %v12981_v6, %v5137_v15  ;;  %v13006_v8 = vld [vmem:[#allocation15_spill] sm:$0xff]  ;;  %v13009_v17 = vld [vmem:[#allocation37_spill] sm:$0xff]  ;;  %v13011_v56 = vld [vmem:[#allocation18_spill] sm:$0xff] }
 0x76b   :  { %v5757_v20 = vmax.f32 %v5629_v14, %v5693_v28  ;;  %v5627_v43 = vadd.f32 %v13000_v27, %v5202_v25  ;;  %5815 = vst.msk [vmem:[%s11996_s5 + $0x160] sm:$0xff] %vm2111_vm1, %v5751_v57  ;;  %v5203_v11 = vadd.f32 %v12981_v6, %v5135_v62  ;;  %v5138_v41 = vmul.f32 %v12985_v49, %v13001_v2  ;;  %v13010_v39 = vld [vmem:[#allocation19_spill] sm:$0xff]  ;;  %v13012_v46 = vld [vmem:[#allocation88_spill] sm:$0xff]  ;;  %v13013_v38 = vld [vmem:[#allocation17_spill] sm:$0xff] }
 0x76c   :  { %5818 = vst.msk [vmem:[%s11996_s5 + $0x178] sm:$0xff] %vm2111_vm1, %v5754_v36  ;;  %v5208_v16 = vadd.f32 %v12981_v6, %v5140_v55  ;;  %v5141_v53 = vmul.f32 %v13002_v40, %v12985_v49  ;;  %5816 = vst.msk [vmem:[%s11996_s5 + $0x168] sm:$0xff] %vm2111_vm1, %v5752_v7  ;;  %v5630_v45 = vadd.f32 %v13003_v3, %v5205_v4  ;;  %v13014_v28 = vld [vmem:[#allocation16_spill] sm:$0xff]  ;;  %v13016_v5 = vld [vmem:[#allocation67_spill] sm:$0xff] }
 0x76d   :  { %5821 = vst.msk [vmem:[%s11996_s5 + $0x190] sm:$0xff] %vm2111_vm1, %v5757_v20  ;;  %v5691_v44 = vmul.f32 0.2, %v5627_v43  ;;  %v5139_v42 = vmul.f32 %v12985_v49, %v13004_v21  ;;  %v5144_v58 = vmul.f32 %v13005_v26, %v12985_v49  ;;  %v5628_v47 = vadd.f32 %v13006_v8, %v5203_v11  ;;  %v13015_v34 = vld [vmem:[#allocation24_spill] sm:$0xff]  ;;  %v13021_v40 = vld [vmem:[#allocation22_spill] sm:$0xff] }
 0x76e   :  { %v5633_v37 = vadd.f32 %v13007_v31, %v5208_v16  ;;  %v5206_v9 = vadd.f32 %v12981_v6, %v5138_v41  ;;  %v5209_v23 = vadd.f32 %v12981_v6, %v5141_v53  ;;  %v5694_v24 = vmul.f32 0.2, %v5630_v45  ;;  %v13017_v20 = vld [vmem:[#allocation28_spill] sm:$0xff]  ;;  %v13019_v16 = vld [vmem:[#allocation21_spill] sm:$0xff]  ;;  %v13020_v41 = vld [vmem:[#allocation31_spill] sm:$0xff] }
 0x76f   :  { %v5755_v0 = vmax.f32 %v5627_v43, %v5691_v44  ;;  %v5207_v29 = vadd.f32 %v12981_v6, %v5139_v42  ;;  %v5212_v30 = vadd.f32 %v12981_v6, %v5144_v58  ;;  %v5692_v51 = vmul.f32 0.2, %v5628_v47  ;;  %v13018_v43 = vld [vmem:[#allocation27_spill] sm:$0xff]  ;;  %v13023_v3 = vld [vmem:[#allocation26_spill] sm:$0xff]  ;;  %v13025_v42 = vld [vmem:[#allocation89_spill] sm:$0xff] }
 0x770   :  { %v5697_v48 = vmul.f32 0.2, %v5633_v37  ;;  %v5631_v18 = vadd.f32 %v13008_v50, %v5206_v9  ;;  %v5634_v61 = vadd.f32 %v13009_v17, %v5209_v23  ;;  %v5758_v59 = vmax.f32 %v5630_v45, %v5694_v24  ;;  %v13022_v44 = vld [vmem:[#allocation75_spill] sm:$0xff] }
 0x771   :  { %5819 = vst.msk [vmem:[%s11996_s5 + $0x180] sm:$0xff] %vm2111_vm1, %v5755_v0  ;;  %v5632_v35 = vadd.f32 %v13010_v39, %v5207_v29  ;;  %v5637_v32 = vadd.f32 %v13011_v56, %v5212_v30  ;;  %v5142_v19 = vmul.f32 %v12985_v49, %v13012_v46  ;;  %v5756_v1 = vmax.f32 %v5628_v47, %v5692_v51  ;;  %v13026_v0 = vld [vmem:[#allocation23_spill] sm:$0xff] }
 0x772   :  { %v5761_v10 = vmax.f32 %v5633_v37, %v5697_v48  ;;  %v5695_v60 = vmul.f32 0.2, %v5631_v18  ;;  %v5698_v14 = vmul.f32 0.2, %v5634_v61  ;;  %5822 = vst.msk [vmem:[%s11996_s5 + $0x198] sm:$0xff] %vm2111_vm1, %v5758_v59  ;;  %v5145_v54 = vmul.f32 %v13013_v38, %v12985_v49 }
 0x773   :  { %v5696_v22 = vmul.f32 0.2, %v5632_v35  ;;  %v5701_v33 = vmul.f32 0.2, %v5637_v32  ;;  %v5210_v13 = vadd.f32 %v12981_v6, %v5142_v19  ;;  %5820 = vst.msk [vmem:[%s11996_s5 + $0x188] sm:$0xff] %vm2111_vm1, %v5756_v1  ;;  %v5143_v25 = vmul.f32 %v12985_v49, %v13014_v28 }
 0x774   :  { %5825 = vst.msk [vmem:[%s11996_s5 + $0x1b0] sm:$0xff] %vm2111_vm1, %v5761_v10  ;;  %v5759_v52 = vmax.f32 %v5631_v18, %v5695_v60  ;;  %v5762_v63 = vmax.f32 %v5634_v61, %v5698_v14  ;;  %v5148_v15 = vmul.f32 %v13015_v34, %v12985_v49  ;;  %v5213_v12 = vadd.f32 %v12981_v6, %v5145_v54 }
 0x775   :  { %v5760_v57 = vmax.f32 %v5632_v35, %v5696_v22  ;;  %v5765_v36 = vmax.f32 %v5637_v32, %v5701_v33  ;;  %v5635_v62 = vadd.f32 %v13016_v5, %v5210_v13  ;;  %v5211_v55 = vadd.f32 %v12981_v6, %v5143_v25 }
 0x776   :  { %5823 = vst.msk [vmem:[%s11996_s5 + $0x1a0] sm:$0xff] %vm2111_vm1, %v5759_v52  ;;  %5826 = vst.msk [vmem:[%s11996_s5 + $0x1b8] sm:$0xff] %vm2111_vm1, %v5762_v63  ;;  %v5216_v7 = vadd.f32 %v12981_v6, %v5148_v15  ;;  %v5146_v27 = vmul.f32 %v12985_v49, %v13017_v20  ;;  %v5149_v4 = vmul.f32 %v13018_v43, %v12985_v49  ;;  %v13024_v49 = vld [vmem:[#allocation20_spill] sm:$0xff] }
 0x777   :  { %5824 = vst.msk [vmem:[%s11996_s5 + $0x1a8] sm:$0xff] %vm2111_vm1, %v5760_v57  ;;  %5829 = vst.msk [vmem:[%s11996_s5 + $0x1d0] sm:$0xff] %vm2111_vm1, %v5765_v36  ;;  %v5699_v11 = vmul.f32 0.2, %v5635_v62  ;;  %v5638_v2 = vadd.f32 %v13019_v16, %v5213_v12  ;;  %v5576_v53 = vadd.f32 %v13021_v40, %v13020_v41  ;;  %v5640_v45 = vadd.f32 %v13023_v3, %v13022_v44 }
 0x778   :  { %v5636_v21 = vadd.f32 %v13024_v49, %v5211_v55  ;;  %v5641_v26 = vadd.f32 %v13025_v42, %v5216_v7  ;;  %v5214_v58 = vadd.f32 %v12981_v6, %v5146_v27  ;;  %v5217_v8 = vadd.f32 %v12981_v6, %v5149_v4 }
 0x779   :  { %v5763_v47 = vmax.f32 %v5635_v62, %v5699_v11  ;;  %v5702_v31 = vmul.f32 0.2, %v5638_v2  ;;  %v5704_v37 = vmul.f32 0.2, %v5640_v45 }
 0x77a   :  { %v5700_v9 = vmul.f32 0.2, %v5636_v21  ;;  %v5705_v23 = vmul.f32 0.2, %v5641_v26  ;;  %v5639_v24 = vadd.f32 %v13026_v0, %v5214_v58  ;;  %v5642_v29 = vadd.f32 %v5576_v53, %v5217_v8 }
 0x77b   :  { %5827 = vst.msk [vmem:[%s11996_s5 + $0x1c0] sm:$0xff] %vm2111_vm1, %v5763_v47  ;;  %v5766_v30 = vmax.f32 %v5638_v2, %v5702_v31  ;;  %v5768_v51 = vmax.f32 %v5640_v45, %v5704_v37 }
 0x77c   :  { %v5764_v48 = vmax.f32 %v5636_v21, %v5700_v9  ;;  %v5769_v50 = vmax.f32 %v5641_v26, %v5705_v23  ;;  %v5703_v18 = vmul.f32 0.2, %v5639_v24  ;;  %v5706_v17 = vmul.f32 0.2, %v5642_v29 }
 0x77d   :  { %5830 = vst.msk [vmem:[%s11996_s5 + $0x1d8] sm:$0xff] %vm2111_vm1, %v5766_v30  ;;  %5832 = vst.msk [vmem:[%s11996_s5 + $0x1e8] sm:$0xff] %vm2111_vm1, %v5768_v51 }
 0x77e   :  { %5828 = vst.msk [vmem:[%s11996_s5 + $0x1c8] sm:$0xff] %vm2111_vm1, %v5764_v48  ;;  %5833 = vst.msk [vmem:[%s11996_s5 + $0x1f0] sm:$0xff] %vm2111_vm1, %v5769_v50  ;;  %v5767_v6 = vmax.f32 %v5639_v24, %v5703_v18  ;;  %v5770_v61 = vmax.f32 %v5642_v29, %v5706_v17 }
 0x780   :  { %5831 = vst.msk [vmem:[%s11996_s5 + $0x1e0] sm:$0xff] %vm2111_vm1, %v5767_v6  ;;  %5834 = vst.msk [vmem:[%s11996_s5 + $0x1f8] sm:$0xff] %vm2111_vm1, %v5770_v61 }

</bundles_post_ra>
